<compile_context>
chip_gen: v7x
topology: tpu7x:2x2x1
jax: 0.10.0
libtpu: 0.0.40
codegen_flags: <defaults>
</compile_context>

<pallas_src>
import math
from functools import partial

import jax
import jax.numpy as jnp
from jax.experimental import pallas as pl
from jax.experimental.pallas import tpu as pltpu

BN_EPS = 1e-5


# ----------------------------------------------------------------------------
# Small static helpers
# ----------------------------------------------------------------------------
def _round_up(x, m):
    return ((x + m - 1) // m) * m


def _largest_tile(dim_pad, max_tile, step=128):
    """Largest multiple of `step` <= max_tile that divides dim_pad.

    dim_pad is always a multiple of `step`, so `step` is a valid fallback.
    """
    t = min(dim_pad, (max_tile // step) * step)
    while t > step:
        if dim_pad % t == 0:
            return t
        t -= step
    return step


# ----------------------------------------------------------------------------
# Pallas kernels
# ----------------------------------------------------------------------------
def _mm_bn_kernel(x_ref, w_ref, b_ref, o_ref, acc_ref, *, relu):
    # (TM, TK)bf16 @ (TK, TN)bf16 -> f32 accumulator; epilogue: +bias, ReLU.
    @pl.when(pl.program_id(2) == 0)
    def _():
        acc_ref[...] = jnp.zeros_like(acc_ref)

    acc_ref[...] += jnp.dot(x_ref[...], w_ref[...],
                            preferred_element_type=jnp.float32)

    @pl.when(pl.program_id(2) == pl.num_programs(2) - 1)
    def _():
        y = acc_ref[...] + b_ref[...]
        if relu:
            y = jnp.maximum(y, 0.0)
        o_ref[...] = y.astype(o_ref.dtype)


def _mm_bn_res_kernel(x_ref, w_ref, b_ref, r_ref, o_ref, acc_ref, *, relu):
    # Same as above plus a residual add in the epilogue.
    @pl.when(pl.program_id(2) == 0)
    def _():
        acc_ref[...] = jnp.zeros_like(acc_ref)

    acc_ref[...] += jnp.dot(x_ref[...], w_ref[...],
                            preferred_element_type=jnp.float32)

    @pl.when(pl.program_id(2) == pl.num_programs(2) - 1)
    def _():
        y = acc_ref[...] + b_ref[...] + r_ref[...].astype(jnp.float32)
        if relu:
            y = jnp.maximum(y, 0.0)
        o_ref[...] = y.astype(o_ref.dtype)


def fused_matmul_bn(x, w_pad, b_pad, cout, residual=None, relu=True,
                    out_dtype=jnp.bfloat16):
    """Conv (as im2col matmul) + folded BN + optional residual + optional ReLU.

    x:        (M, K) activations/patches (any float dtype; cast to bf16 here)
    w_pad:    (K_pad, N_pad) bf16, BN scale already folded in, zero padded
    b_pad:    (1, N_pad) f32 folded BN bias, zero padded
    residual: optional (M, cout), cast to bf16 here
    returns:  (M, cout) in out_dtype
    """
    M, K = x.shape
    K_pad, N_pad = w_pad.shape

    # Tile sizes: MXU/vreg aligned (128-multiples on lane dims, 16 on sublane
    # for bf16).  Worst case VMEM (TM=256, TK=2048, TN=512, double-buffered
    # bf16 inputs + f32 acc) is ~8 MiB -- safe on v5e/v6e/v7x.
    M_pad16 = _round_up(M, 16)
    TM = min(256, M_pad16)
    M_pad = _round_up(M, TM)
    TK = _largest_tile(K_pad, 2048)
    TN = _largest_tile(N_pad, 512)

    x_p = jnp.pad(x.astype(jnp.bfloat16), ((0, M_pad - M), (0, K_pad - K)))

    inputs = [x_p, w_pad, b_pad]
    in_specs = [
        pl.BlockSpec((TM, TK), lambda m, n, k: (m, k)),
        pl.BlockSpec((TK, TN), lambda m, n, k: (k, n)),
        pl.BlockSpec((1, TN), lambda m, n, k: (0, n)),
    ]
    if residual is not None:
        r_p = jnp.pad(residual.astype(jnp.bfloat16),
                      ((0, M_pad - M), (0, N_pad - cout)))
        inputs.append(r_p)
        in_specs.append(pl.BlockSpec((TM, TN), lambda m, n, k: (m, n)))
        kernel = partial(_mm_bn_res_kernel, relu=relu)
    else:
        kernel = partial(_mm_bn_kernel, relu=relu)

    grid = (M_pad // TM, N_pad // TN, K_pad // TK)

    out_bytes = M_pad * N_pad * jnp.dtype(out_dtype).itemsize
    bytes_accessed = (M_pad * K_pad * 2 + K_pad * N_pad * 2 + N_pad * 4
                      + (M_pad * N_pad * 2 if residual is not None else 0)
                      + out_bytes)
    cost = pl.CostEstimate(flops=2 * M_pad * K_pad * N_pad,
                           transcendentals=0,
                           bytes_accessed=bytes_accessed)

    out = pl.pallas_call(
        kernel,
        grid=grid,
        in_specs=in_specs,
        out_specs=pl.BlockSpec((TM, TN), lambda m, n, k: (m, n)),
        out_shape=jax.ShapeDtypeStruct((M_pad, N_pad), out_dtype),
        scratch_shapes=[pltpu.VMEM((TM, TN), jnp.float32)],
        compiler_params=pltpu.CompilerParams(
            dimension_semantics=("parallel", "parallel", "arbitrary"),
            vmem_limit_bytes=32 * 1024 * 1024,
        ),
        cost_estimate=cost,
    )(*inputs)
    return out[:M, :cout]


def _head_kernel(x_ref, w_ref, b_ref, o_ref):
    # x_ref: (N, H*W, C). AdaptiveAvgPool2d((1,1)) == mean over H*W, then fc.
    hw = x_ref.shape[1]
    pooled = jnp.sum(x_ref[...], axis=1) * (1.0 / hw)                 # (N, C)
    o_ref[...] = (
        jnp.dot(pooled, w_ref[...], preferred_element_type=jnp.float32)
        + b_ref[...]
    )


def head(x_flat, fc_w, fc_b):
    n = x_flat.shape[0]
    num_classes = fc_w.shape[1]
    # Tiny (N<=batch, C=512, classes=10): single-shot whole-array kernel.
    return pl.pallas_call(
        _head_kernel,
        out_shape=jax.ShapeDtypeStruct((n, num_classes), jnp.float32),
    )(x_flat.astype(jnp.float32), fc_w, fc_b)


# ----------------------------------------------------------------------------
# Glue: im2col (static strides), parameter init, model assembly
# ----------------------------------------------------------------------------
def im2col(x, ksize, stride, padding):
    """x: (N, H, W, C) -> ((N*Ho*Wo, k*k*C) bf16, (N, Ho, Wo)). Static strides."""
    n, h, w, c = x.shape
    xp = jnp.pad(x.astype(jnp.bfloat16),
                 ((0, 0), (padding, padding), (padding, padding), (0, 0)))
    ho = (h + 2 * padding - ksize) // stride + 1
    wo = (w + 2 * padding - ksize) // stride + 1
    cols = []
    for i in range(ksize):
        for j in range(ksize):
            cols.append(xp[:, i:i + stride * ho:stride, j:j + stride * wo:stride, :])
    patches = jnp.concatenate(cols, axis=-1)                     # (N,Ho,Wo,k*k*C)
    return patches.reshape(n * ho * wo, ksize * ksize * c), (n, ho, wo)


def make_arch(num_blocks=(1, 1, 1, 1), num_classes=10):
    """Static (non-traced) architecture description."""
    layers = []
    in_c = 64
    for li, (out_c, stride0) in enumerate(zip((64, 128, 256, 512), (1, 2, 2, 2))):
        blocks = []
        strides = [stride0] + [1] * (num_blocks[li] - 1)
        for s in strides:
            blocks.append({"stride": s, "cin": in_c, "cout": out_c,
                           "down": (s != 1 or in_c != out_c)})
            in_c = out_c
        layers.append(blocks)
    return {"layers": layers, "num_classes": num_classes}


def init_conv_bn(key, cin, cout, k):
    """Random conv weights + eval-mode BN, BN scale folded into the weights.

    Returns (w_pad, b_pad): (K_pad, N_pad) bf16 and (1, N_pad) f32, with
    K = k*k*cin padded to a multiple of 128 and cout padded to a multiple of
    128 (lane-dense, MXU-aligned).
    """
    k1, k2, k3, k4, k5 = jax.random.split(key, 5)
    w = jax.random.normal(k1, (k, k, cin, cout), jnp.float32) / math.sqrt(k * k * cin)
    gamma = 1.0 + 0.1 * jax.random.normal(k2, (cout,), jnp.float32)
    beta = 0.1 * jax.random.normal(k3, (cout,), jnp.float32)
    mean = 0.1 * jax.random.normal(k4, (cout,), jnp.float32)
    var = jnp.abs(jax.random.normal(k5, (cout,), jnp.float32)) + 0.5
    scale = gamma / jnp.sqrt(var + BN_EPS)
    bias = beta - mean * scale

    K = k * k * cin
    K_pad = _round_up(K, 128)
    N_pad = _round_up(cout, 128)
    w_folded = w.reshape(K, cout) * scale[None, :]               # fold BN scale
    w_pad = jnp.zeros((K_pad, N_pad), jnp.bfloat16)
    w_pad = w_pad.at[:K, :cout].set(w_folded.astype(jnp.bfloat16))
    b_pad = jnp.zeros((1, N_pad), jnp.float32).at[:, :cout].set(bias[None, :])
    return w_pad, b_pad


def init_params(key, arch):
    keys = iter(jax.random.split(key, 128))
    params = {"stem": init_conv_bn(next(keys), 3, 64, 3)}
    layer_params = []
    for blocks in arch["layers"]:
        bps = []
        for blk in blocks:
            p = {
                "conv1": init_conv_bn(next(keys), blk["cin"], blk["cout"], 3),
                "conv2": init_conv_bn(next(keys), blk["cout"], blk["cout"], 3),
            }
            if blk["down"]:
                p["down"] = init_conv_bn(next(keys), blk["cin"], blk["cout"], 1)
            bps.append(p)
        layer_params.append(bps)
    params["layers"] = layer_params
    kw, kb = jax.random.split(next(keys))
    nc = arch["num_classes"]
    params["fc_w"] = jax.random.normal(kw, (512, nc), jnp.float32) / math.sqrt(512)
    params["fc_b"] = 0.01 * jax.random.normal(kb, (1, nc), jnp.float32)
    return params


def basic_block(x, bp, ba):
    n, h, w, cin = x.shape
    stride, cout = ba["stride"], ba["cout"]
    w1, b1 = bp["conv1"]
    w2, b2 = bp["conv2"]

    patches1, (n, ho, wo) = im2col(x, 3, stride, 1)
    out1 = fused_matmul_bn(patches1, w1, b1, cout, relu=True)     # conv1+bn1+relu
    patches2, _ = im2col(out1.reshape(n, ho, wo, cout), 3, 1, 1)

    if ba["down"]:                                                # projection shortcut
        # TODO(synk): the 1x1 downsample could be fused into the main tile loop
        # to avoid one extra (M, Cout) HBM round trip.
        wd, bd = bp["down"]
        res_in = x[:, ::stride, ::stride, :].reshape(n * ho * wo, cin)
        residual = fused_matmul_bn(res_in, wd, bd, cout, relu=False)
    else:                                                         # identity shortcut
        residual = x.reshape(n * ho * wo, cout)

    out2 = fused_matmul_bn(patches2, w2, b2, cout, residual=residual, relu=True)
    return out2.reshape(n, ho, wo, cout)


def resnet_forward(x_nchw, params, arch):
    x = jnp.transpose(x_nchw, (0, 2, 3, 1)).astype(jnp.float32)   # NCHW -> NHWC
    w, b = params["stem"]
    patches, (n, ho, wo) = im2col(x, 3, 1, 1)
    out = fused_matmul_bn(patches, w, b, 64, relu=True).reshape(n, ho, wo, 64)
    for bps, bas in zip(params["layers"], arch["layers"]):
        for bp, ba in zip(bps, bas):
            out = basic_block(out, bp, ba)
    n, h, wd_, c = out.shape
    return head(out.reshape(n, h * wd_, c), params["fc_w"], params["fc_b"])


# ----------------------------------------------------------------------------
if __name__ == "__main__":
    key = jax.random.PRNGKey(0)
    kx, kp = jax.random.split(key)
    # Small example: batch=2, 3 input channels (fixed by module), 16x16 spatial.
    x = jax.random.normal(kx, (2, 3, 16, 16), jnp.float32)        # NCHW like PyTorch
    arch = make_arch(num_blocks=(1, 1, 1, 1), num_classes=10)     # static structure
    params = init_params(kp, arch)                                # traced arrays only

    fwd = jax.jit(lambda xx, pp: resnet_forward(xx, pp, arch))    # arch closed over
    logits = fwd(x, params)
    jax.block_until_ready(logits)
    assert logits.shape == (2, 10), logits.shape
    assert bool(jnp.all(jnp.isfinite(logits)))
    print("KERNEL_OK")
</pallas_src>

<mosaic_0001>
module attributes {stable_mosaic.version = 11 : i64} {
  func.func @_mm_bn_kernel(%arg0: i32, %arg1: i32, %arg2: i32, %arg3: memref<256x128xbf16, #tpu.memory_space<vmem>>, %arg4: memref<128x128xbf16, #tpu.memory_space<vmem>>, %arg5: memref<1x128xf32, #tpu.memory_space<vmem>>, %arg6: memref<256x128xbf16, #tpu.memory_space<vmem>>, %arg7: memref<256x128xf32, #tpu.memory_space<vmem>>) attributes {dimension_semantics = [#tpu.dimension_semantics<parallel>, #tpu.dimension_semantics<parallel>, #tpu.dimension_semantics<arbitrary>], iteration_bounds = array<i64: 2, 1, 1>, scalar_prefetch = 0 : i64, scratch_operands = 1 : i64, tpu.core_type = #tpu.core_type<tc>, window_params = [{transform_indices = @transform_0, window_bounds = array<i64: 256, 128>}, {transform_indices = @transform_1, window_bounds = array<i64: 128, 128>}, {transform_indices = @transform_2, window_bounds = array<i64: 1, 128>}, {transform_indices = @transform_3, window_bounds = array<i64: 256, 128>}]} {
    %c0_i32 = arith.constant 0 : i32
    %0 = arith.cmpi eq, %arg2, %c0_i32 : i32
    %1 = arith.extui %0 : i1 to i32
    %c0_i32_0 = arith.constant 0 : i32
    %2 = arith.cmpi ne, %1, %c0_i32_0 : i32
    scf.if %2 {
      %cst_10 = arith.constant 0.000000e+00 : f32
      %12 = vector.broadcast %cst_10 : f32 to vector<256x128xf32>
      %c0_11 = arith.constant 0 : index
      %c0_12 = arith.constant 0 : index
      %13 = vector.load %arg7[%c0_11, %c0_12] : memref<256x128xf32, #tpu.memory_space<vmem>>, vector<256x128xf32>
      tpu.vector_store %arg7[%c0_11, %c0_12], %12 {strides = array<i32>} : memref<256x128xf32, #tpu.memory_space<vmem>>, vector<256x128xf32>,
    } else {
    }
    %c0 = arith.constant 0 : index
    %c0_1 = arith.constant 0 : index
    %3 = vector.load %arg7[%c0, %c0_1] : memref<256x128xf32, #tpu.memory_space<vmem>>, vector<256x128xf32>
    %c0_2 = arith.constant 0 : index
    %c0_3 = arith.constant 0 : index
    %4 = vector.load %arg3[%c0_2, %c0_3] : memref<256x128xbf16, #tpu.memory_space<vmem>>, vector<256x128xbf16>
    %c0_4 = arith.constant 0 : index
    %c0_5 = arith.constant 0 : index
    %5 = vector.load %arg4[%c0_4, %c0_5] : memref<128x128xbf16, #tpu.memory_space<vmem>>, vector<128x128xbf16>
    %cst = arith.constant dense<0.000000e+00> : vector<256x128xf32>
    %6 = tpu.matmul %4, %5, %cst {dimension_numbers = #tpu.dot_dimension_numbers<[1], [0], [0], [1], [0, 0, 1, 1], [], []>} : vector<256x128xbf16>, vector<128x128xbf16>, vector<256x128xf32> -> vector<256x128xf32>
    %7 = arith.addf %3, %6 : vector<256x128xf32>
    %c0_6 = arith.constant 0 : index
    %c0_7 = arith.constant 0 : index
    %8 = vector.load %arg7[%c0_6, %c0_7] : memref<256x128xf32, #tpu.memory_space<vmem>>, vector<256x128xf32>
    tpu.vector_store %arg7[%c0_6, %c0_7], %7 {strides = array<i32>} : memref<256x128xf32, #tpu.memory_space<vmem>>, vector<256x128xf32>,
    %c0_i32_8 = arith.constant 0 : i32
    %9 = arith.cmpi eq, %arg2, %c0_i32_8 : i32
    %10 = arith.extui %9 : i1 to i32
    %c0_i32_9 = arith.constant 0 : i32
    %11 = arith.cmpi ne, %10, %c0_i32_9 : i32
    scf.if %11 {
      %c0_10 = arith.constant 0 : index
      %c0_11 = arith.constant 0 : index
      %12 = vector.load %arg7[%c0_10, %c0_11] : memref<256x128xf32, #tpu.memory_space<vmem>>, vector<256x128xf32>
      %c0_12 = arith.constant 0 : index
      %c0_13 = arith.constant 0 : index
      %13 = vector.load %arg5[%c0_12, %c0_13] : memref<1x128xf32, #tpu.memory_space<vmem>>, vector<1x128xf32>
      %14 = vector.broadcast %13 : vector<1x128xf32> to vector<256x128xf32>
      %15 = arith.addf %12, %14 : vector<256x128xf32>
      %cst_14 = arith.constant 0.000000e+00 : f32
      %16 = vector.broadcast %cst_14 : f32 to vector<256x128xf32>
      %17 = arith.maximumf %15, %16 : vector<256x128xf32>
      %18 = arith.truncf %17 : vector<256x128xf32> to vector<256x128xbf16>
      %c0_15 = arith.constant 0 : index
      %c0_16 = arith.constant 0 : index
      %19 = vector.load %arg6[%c0_15, %c0_16] : memref<256x128xbf16, #tpu.memory_space<vmem>>, vector<256x128xbf16>
      tpu.vector_store %arg6[%c0_15, %c0_16], %18 {strides = array<i32>} : memref<256x128xbf16, #tpu.memory_space<vmem>>, vector<256x128xbf16>,
    } else {
    }
    return
  }
  func.func @transform_0(%arg0: i32, %arg1: i32, %arg2: i32) -> (i32, i32) {
    %c0_i32 = arith.constant 0 : i32
    return %arg0, %arg2 : i32, i32
  }
  func.func @transform_1(%arg0: i32, %arg1: i32, %arg2: i32) -> (i32, i32) {
    %c0_i32 = arith.constant 0 : i32
    return %arg2, %arg1 : i32, i32
  }
  func.func @transform_2(%arg0: i32, %arg1: i32, %arg2: i32) -> (i32, i32) {
    %c0_i32 = arith.constant 0 : i32
    %c0_i32_0 = arith.constant 0 : i32
    return %c0_i32, %arg1 : i32, i32
  }
  func.func @transform_3(%arg0: i32, %arg1: i32, %arg2: i32) -> (i32, i32) {
    %c0_i32 = arith.constant 0 : i32
    return %arg0, %arg1 : i32, i32
  }
}

module attributes {stable_mosaic.version = 11 : i64} {
  func.func @_mm_bn_kernel(%arg0: i32, %arg1: i32, %arg2: i32, %arg3: memref<256x640xbf16, #tpu.memory_space<vmem>>, %arg4: memref<640x128xbf16, #tpu.memory_space<vmem>>, %arg5: memref<1x128xf32, #tpu.memory_space<vmem>>, %arg6: memref<256x128xbf16, #tpu.memory_space<vmem>>, %arg7: memref<256x128xf32, #tpu.memory_space<vmem>>) attributes {dimension_semantics = [#tpu.dimension_semantics<parallel>, #tpu.dimension_semantics<parallel>, #tpu.dimension_semantics<arbitrary>], iteration_bounds = array<i64: 2, 1, 1>, scalar_prefetch = 0 : i64, scratch_operands = 1 : i64, tpu.core_type = #tpu.core_type<tc>, window_params = [{transform_indices = @transform_0, window_bounds = array<i64: 256, 640>}, {transform_indices = @transform_1, window_bounds = array<i64: 640, 128>}, {transform_indices = @transform_2, window_bounds = array<i64: 1, 128>}, {transform_indices = @transform_3, window_bounds = array<i64: 256, 128>}]} {
    %c0_i32 = arith.constant 0 : i32
    %0 = arith.cmpi eq, %arg2, %c0_i32 : i32
    %1 = arith.extui %0 : i1 to i32
    %c0_i32_0 = arith.constant 0 : i32
    %2 = arith.cmpi ne, %1, %c0_i32_0 : i32
    scf.if %2 {
      %cst_10 = arith.constant 0.000000e+00 : f32
      %12 = vector.broadcast %cst_10 : f32 to vector<256x128xf32>
      %c0_11 = arith.constant 0 : index
      %c0_12 = arith.constant 0 : index
      %13 = vector.load %arg7[%c0_11, %c0_12] : memref<256x128xf32, #tpu.memory_space<vmem>>, vector<256x128xf32>
      tpu.vector_store %arg7[%c0_11, %c0_12], %12 {strides = array<i32>} : memref<256x128xf32, #tpu.memory_space<vmem>>, vector<256x128xf32>,
    } else {
    }
    %c0 = arith.constant 0 : index
    %c0_1 = arith.constant 0 : index
    %3 = vector.load %arg7[%c0, %c0_1] : memref<256x128xf32, #tpu.memory_space<vmem>>, vector<256x128xf32>
    %c0_2 = arith.constant 0 : index
    %c0_3 = arith.constant 0 : index
    %4 = vector.load %arg3[%c0_2, %c0_3] : memref<256x640xbf16, #tpu.memory_space<vmem>>, vector<256x640xbf16>
    %c0_4 = arith.constant 0 : index
    %c0_5 = arith.constant 0 : index
    %5 = vector.load %arg4[%c0_4, %c0_5] : memref<640x128xbf16, #tpu.memory_space<vmem>>, vector<640x128xbf16>
    %cst = arith.constant dense<0.000000e+00> : vector<256x128xf32>
    %6 = tpu.matmul %4, %5, %cst {dimension_numbers = #tpu.dot_dimension_numbers<[1], [0], [0], [1], [0, 0, 1, 1], [], []>} : vector<256x640xbf16>, vector<640x128xbf16>, vector<256x128xf32> -> vector<256x128xf32>
    %7 = arith.addf %3, %6 : vector<256x128xf32>
    %c0_6 = arith.constant 0 : index
    %c0_7 = arith.constant 0 : index
    %8 = vector.load %arg7[%c0_6, %c0_7] : memref<256x128xf32, #tpu.memory_space<vmem>>, vector<256x128xf32>
    tpu.vector_store %arg7[%c0_6, %c0_7], %7 {strides = array<i32>} : memref<256x128xf32, #tpu.memory_space<vmem>>, vector<256x128xf32>,
    %c0_i32_8 = arith.constant 0 : i32
    %9 = arith.cmpi eq, %arg2, %c0_i32_8 : i32
    %10 = arith.extui %9 : i1 to i32
    %c0_i32_9 = arith.constant 0 : i32
    %11 = arith.cmpi ne, %10, %c0_i32_9 : i32
    scf.if %11 {
      %c0_10 = arith.constant 0 : index
      %c0_11 = arith.constant 0 : index
      %12 = vector.load %arg7[%c0_10, %c0_11] : memref<256x128xf32, #tpu.memory_space<vmem>>, vector<256x128xf32>
      %c0_12 = arith.constant 0 : index
      %c0_13 = arith.constant 0 : index
      %13 = vector.load %arg5[%c0_12, %c0_13] : memref<1x128xf32, #tpu.memory_space<vmem>>, vector<1x128xf32>
      %14 = vector.broadcast %13 : vector<1x128xf32> to vector<256x128xf32>
      %15 = arith.addf %12, %14 : vector<256x128xf32>
      %cst_14 = arith.constant 0.000000e+00 : f32
      %16 = vector.broadcast %cst_14 : f32 to vector<256x128xf32>
      %17 = arith.maximumf %15, %16 : vector<256x128xf32>
      %18 = arith.truncf %17 : vector<256x128xf32> to vector<256x128xbf16>
      %c0_15 = arith.constant 0 : index
      %c0_16 = arith.constant 0 : index
      %19 = vector.load %arg6[%c0_15, %c0_16] : memref<256x128xbf16, #tpu.memory_space<vmem>>, vector<256x128xbf16>
      tpu.vector_store %arg6[%c0_15, %c0_16], %18 {strides = array<i32>} : memref<256x128xbf16, #tpu.memory_space<vmem>>, vector<256x128xbf16>,
    } else {
    }
    return
  }
  func.func @transform_0(%arg0: i32, %arg1: i32, %arg2: i32) -> (i32, i32) {
    %c0_i32 = arith.constant 0 : i32
    return %arg0, %arg2 : i32, i32
  }
  func.func @transform_1(%arg0: i32, %arg1: i32, %arg2: i32) -> (i32, i32) {
    %c0_i32 = arith.constant 0 : i32
    return %arg2, %arg1 : i32, i32
  }
  func.func @transform_2(%arg0: i32, %arg1: i32, %arg2: i32) -> (i32, i32) {
    %c0_i32 = arith.constant 0 : i32
    %c0_i32_0 = arith.constant 0 : i32
    return %c0_i32, %arg1 : i32, i32
  }
  func.func @transform_3(%arg0: i32, %arg1: i32, %arg2: i32) -> (i32, i32) {
    %c0_i32 = arith.constant 0 : i32
    return %arg0, %arg1 : i32, i32
  }
}

module attributes {stable_mosaic.version = 11 : i64} {
  func.func @_mm_bn_res_kernel(%arg0: i32, %arg1: i32, %arg2: i32, %arg3: memref<256x640xbf16, #tpu.memory_space<vmem>>, %arg4: memref<640x128xbf16, #tpu.memory_space<vmem>>, %arg5: memref<1x128xf32, #tpu.memory_space<vmem>>, %arg6: memref<256x128xbf16, #tpu.memory_space<vmem>>, %arg7: memref<256x128xbf16, #tpu.memory_space<vmem>>, %arg8: memref<256x128xf32, #tpu.memory_space<vmem>>) attributes {dimension_semantics = [#tpu.dimension_semantics<parallel>, #tpu.dimension_semantics<parallel>, #tpu.dimension_semantics<arbitrary>], iteration_bounds = array<i64: 2, 1, 1>, scalar_prefetch = 0 : i64, scratch_operands = 1 : i64, tpu.core_type = #tpu.core_type<tc>, window_params = [{transform_indices = @transform_0, window_bounds = array<i64: 256, 640>}, {transform_indices = @transform_1, window_bounds = array<i64: 640, 128>}, {transform_indices = @transform_2, window_bounds = array<i64: 1, 128>}, {transform_indices = @transform_3, window_bounds = array<i64: 256, 128>}, {transform_indices = @transform_4, window_bounds = array<i64: 256, 128>}]} {
    %c0_i32 = arith.constant 0 : i32
    %0 = arith.cmpi eq, %arg2, %c0_i32 : i32
    %1 = arith.extui %0 : i1 to i32
    %c0_i32_0 = arith.constant 0 : i32
    %2 = arith.cmpi ne, %1, %c0_i32_0 : i32
    scf.if %2 {
      %cst_10 = arith.constant 0.000000e+00 : f32
      %12 = vector.broadcast %cst_10 : f32 to vector<256x128xf32>
      %c0_11 = arith.constant 0 : index
      %c0_12 = arith.constant 0 : index
      %13 = vector.load %arg8[%c0_11, %c0_12] : memref<256x128xf32, #tpu.memory_space<vmem>>, vector<256x128xf32>
      tpu.vector_store %arg8[%c0_11, %c0_12], %12 {strides = array<i32>} : memref<256x128xf32, #tpu.memory_space<vmem>>, vector<256x128xf32>,
    } else {
    }
    %c0 = arith.constant 0 : index
    %c0_1 = arith.constant 0 : index
    %3 = vector.load %arg8[%c0, %c0_1] : memref<256x128xf32, #tpu.memory_space<vmem>>, vector<256x128xf32>
    %c0_2 = arith.constant 0 : index
    %c0_3 = arith.constant 0 : index
    %4 = vector.load %arg3[%c0_2, %c0_3] : memref<256x640xbf16, #tpu.memory_space<vmem>>, vector<256x640xbf16>
    %c0_4 = arith.constant 0 : index
    %c0_5 = arith.constant 0 : index
    %5 = vector.load %arg4[%c0_4, %c0_5] : memref<640x128xbf16, #tpu.memory_space<vmem>>, vector<640x128xbf16>
    %cst = arith.constant dense<0.000000e+00> : vector<256x128xf32>
    %6 = tpu.matmul %4, %5, %cst {dimension_numbers = #tpu.dot_dimension_numbers<[1], [0], [0], [1], [0, 0, 1, 1], [], []>} : vector<256x640xbf16>, vector<640x128xbf16>, vector<256x128xf32> -> vector<256x128xf32>
    %7 = arith.addf %3, %6 : vector<256x128xf32>
    %c0_6 = arith.constant 0 : index
    %c0_7 = arith.constant 0 : index
    %8 = vector.load %arg8[%c0_6, %c0_7] : memref<256x128xf32, #tpu.memory_space<vmem>>, vector<256x128xf32>
    tpu.vector_store %arg8[%c0_6, %c0_7], %7 {strides = array<i32>} : memref<256x128xf32, #tpu.memory_space<vmem>>, vector<256x128xf32>,
    %c0_i32_8 = arith.constant 0 : i32
    %9 = arith.cmpi eq, %arg2, %c0_i32_8 : i32
    %10 = arith.extui %9 : i1 to i32
    %c0_i32_9 = arith.constant 0 : i32
    %11 = arith.cmpi ne, %10, %c0_i32_9 : i32
    scf.if %11 {
      %c0_10 = arith.constant 0 : index
      %c0_11 = arith.constant 0 : index
      %12 = vector.load %arg8[%c0_10, %c0_11] : memref<256x128xf32, #tpu.memory_space<vmem>>, vector<256x128xf32>
      %c0_12 = arith.constant 0 : index
      %c0_13 = arith.constant 0 : index
      %13 = vector.load %arg5[%c0_12, %c0_13] : memref<1x128xf32, #tpu.memory_space<vmem>>, vector<1x128xf32>
      %14 = vector.broadcast %13 : vector<1x128xf32> to vector<256x128xf32>
      %15 = arith.addf %12, %14 : vector<256x128xf32>
      %c0_14 = arith.constant 0 : index
      %c0_15 = arith.constant 0 : index
      %16 = vector.load %arg6[%c0_14, %c0_15] : memref<256x128xbf16, #tpu.memory_space<vmem>>, vector<256x128xbf16>
      %17 = arith.extf %16 : vector<256x128xbf16> to vector<256x128xf32>
      %18 = arith.addf %15, %17 : vector<256x128xf32>
      %cst_16 = arith.constant 0.000000e+00 : f32
      %19 = vector.broadcast %cst_16 : f32 to vector<256x128xf32>
      %20 = arith.maximumf %18, %19 : vector<256x128xf32>
      %21 = arith.truncf %20 : vector<256x128xf32> to vector<256x128xbf16>
      %c0_17 = arith.constant 0 : index
      %c0_18 = arith.constant 0 : index
      %22 = vector.load %arg7[%c0_17, %c0_18] : memref<256x128xbf16, #tpu.memory_space<vmem>>, vector<256x128xbf16>
      tpu.vector_store %arg7[%c0_17, %c0_18], %21 {strides = array<i32>} : memref<256x128xbf16, #tpu.memory_space<vmem>>, vector<256x128xbf16>,
    } else {
    }
    return
  }
  func.func @transform_0(%arg0: i32, %arg1: i32, %arg2: i32) -> (i32, i32) {
    %c0_i32 = arith.constant 0 : i32
    return %arg0, %arg2 : i32, i32
  }
  func.func @transform_1(%arg0: i32, %arg1: i32, %arg2: i32) -> (i32, i32) {
    %c0_i32 = arith.constant 0 : i32
    return %arg2, %arg1 : i32, i32
  }
  func.func @transform_2(%arg0: i32, %arg1: i32, %arg2: i32) -> (i32, i32) {
    %c0_i32 = arith.constant 0 : i32
    %c0_i32_0 = arith.constant 0 : i32
    return %c0_i32, %arg1 : i32, i32
  }
  func.func @transform_3(%arg0: i32, %arg1: i32, %arg2: i32) -> (i32, i32) {
    %c0_i32 = arith.constant 0 : i32
    return %arg0, %arg1 : i32, i32
  }
  func.func @transform_4(%arg0: i32, %arg1: i32, %arg2: i32) -> (i32, i32) {
    %c0_i32 = arith.constant 0 : i32
    return %arg0, %arg1 : i32, i32
  }
}

module attributes {stable_mosaic.version = 11 : i64} {
  func.func @_mm_bn_kernel(%arg0: i32, %arg1: i32, %arg2: i32, %arg3: memref<128x640xbf16, #tpu.memory_space<vmem>>, %arg4: memref<640x128xbf16, #tpu.memory_space<vmem>>, %arg5: memref<1x128xf32, #tpu.memory_space<vmem>>, %arg6: memref<128x128xbf16, #tpu.memory_space<vmem>>, %arg7: memref<128x128xf32, #tpu.memory_space<vmem>>) attributes {dimension_semantics = [#tpu.dimension_semantics<parallel>, #tpu.dimension_semantics<parallel>, #tpu.dimension_semantics<arbitrary>], iteration_bounds = array<i64: 1, 1, 1>, scalar_prefetch = 0 : i64, scratch_operands = 1 : i64, tpu.core_type = #tpu.core_type<tc>, window_params = [{transform_indices = @transform_0, window_bounds = array<i64: 128, 640>}, {transform_indices = @transform_1, window_bounds = array<i64: 640, 128>}, {transform_indices = @transform_2, window_bounds = array<i64: 1, 128>}, {transform_indices = @transform_3, window_bounds = array<i64: 128, 128>}]} {
    %c0_i32 = arith.constant 0 : i32
    %0 = arith.cmpi eq, %arg2, %c0_i32 : i32
    %1 = arith.extui %0 : i1 to i32
    %c0_i32_0 = arith.constant 0 : i32
    %2 = arith.cmpi ne, %1, %c0_i32_0 : i32
    scf.if %2 {
      %cst_10 = arith.constant 0.000000e+00 : f32
      %12 = vector.broadcast %cst_10 : f32 to vector<128x128xf32>
      %c0_11 = arith.constant 0 : index
      %c0_12 = arith.constant 0 : index
      %13 = vector.load %arg7[%c0_11, %c0_12] : memref<128x128xf32, #tpu.memory_space<vmem>>, vector<128x128xf32>
      tpu.vector_store %arg7[%c0_11, %c0_12], %12 {strides = array<i32>} : memref<128x128xf32, #tpu.memory_space<vmem>>, vector<128x128xf32>,
    } else {
    }
    %c0 = arith.constant 0 : index
    %c0_1 = arith.constant 0 : index
    %3 = vector.load %arg7[%c0, %c0_1] : memref<128x128xf32, #tpu.memory_space<vmem>>, vector<128x128xf32>
    %c0_2 = arith.constant 0 : index
    %c0_3 = arith.constant 0 : index
    %4 = vector.load %arg3[%c0_2, %c0_3] : memref<128x640xbf16, #tpu.memory_space<vmem>>, vector<128x640xbf16>
    %c0_4 = arith.constant 0 : index
    %c0_5 = arith.constant 0 : index
    %5 = vector.load %arg4[%c0_4, %c0_5] : memref<640x128xbf16, #tpu.memory_space<vmem>>, vector<640x128xbf16>
    %cst = arith.constant dense<0.000000e+00> : vector<128x128xf32>
    %6 = tpu.matmul %4, %5, %cst {dimension_numbers = #tpu.dot_dimension_numbers<[1], [0], [0], [1], [0, 0, 1, 1], [], []>} : vector<128x640xbf16>, vector<640x128xbf16>, vector<128x128xf32> -> vector<128x128xf32>
    %7 = arith.addf %3, %6 : vector<128x128xf32>
    %c0_6 = arith.constant 0 : index
    %c0_7 = arith.constant 0 : index
    %8 = vector.load %arg7[%c0_6, %c0_7] : memref<128x128xf32, #tpu.memory_space<vmem>>, vector<128x128xf32>
    tpu.vector_store %arg7[%c0_6, %c0_7], %7 {strides = array<i32>} : memref<128x128xf32, #tpu.memory_space<vmem>>, vector<128x128xf32>,
    %c0_i32_8 = arith.constant 0 : i32
    %9 = arith.cmpi eq, %arg2, %c0_i32_8 : i32
    %10 = arith.extui %9 : i1 to i32
    %c0_i32_9 = arith.constant 0 : i32
    %11 = arith.cmpi ne, %10, %c0_i32_9 : i32
    scf.if %11 {
      %c0_10 = arith.constant 0 : index
      %c0_11 = arith.constant 0 : index
      %12 = vector.load %arg7[%c0_10, %c0_11] : memref<128x128xf32, #tpu.memory_space<vmem>>, vector<128x128xf32>
      %c0_12 = arith.constant 0 : index
      %c0_13 = arith.constant 0 : index
      %13 = vector.load %arg5[%c0_12, %c0_13] : memref<1x128xf32, #tpu.memory_space<vmem>>, vector<1x128xf32>
      %14 = vector.broadcast %13 : vector<1x128xf32> to vector<128x128xf32>
      %15 = arith.addf %12, %14 : vector<128x128xf32>
      %cst_14 = arith.constant 0.000000e+00 : f32
      %16 = vector.broadcast %cst_14 : f32 to vector<128x128xf32>
      %17 = arith.maximumf %15, %16 : vector<128x128xf32>
      %18 = arith.truncf %17 : vector<128x128xf32> to vector<128x128xbf16>
      %c0_15 = arith.constant 0 : index
      %c0_16 = arith.constant 0 : index
      %19 = vector.load %arg6[%c0_15, %c0_16] : memref<128x128xbf16, #tpu.memory_space<vmem>>, vector<128x128xbf16>
      tpu.vector_store %arg6[%c0_15, %c0_16], %18 {strides = array<i32>} : memref<128x128xbf16, #tpu.memory_space<vmem>>, vector<128x128xbf16>,
    } else {
    }
    return
  }
  func.func @transform_0(%arg0: i32, %arg1: i32, %arg2: i32) -> (i32, i32) {
    %c0_i32 = arith.constant 0 : i32
    return %arg0, %arg2 : i32, i32
  }
  func.func @transform_1(%arg0: i32, %arg1: i32, %arg2: i32) -> (i32, i32) {
    %c0_i32 = arith.constant 0 : i32
    return %arg2, %arg1 : i32, i32
  }
  func.func @transform_2(%arg0: i32, %arg1: i32, %arg2: i32) -> (i32, i32) {
    %c0_i32 = arith.constant 0 : i32
    %c0_i32_0 = arith.constant 0 : i32
    return %c0_i32, %arg1 : i32, i32
  }
  func.func @transform_3(%arg0: i32, %arg1: i32, %arg2: i32) -> (i32, i32) {
    %c0_i32 = arith.constant 0 : i32
    return %arg0, %arg1 : i32, i32
  }
}

module attributes {stable_mosaic.version = 11 : i64} {
  func.func @_mm_bn_res_kernel(%arg0: i32, %arg1: i32, %arg2: i32, %arg3: memref<128x1152xbf16, #tpu.memory_space<vmem>>, %arg4: memref<1152x128xbf16, #tpu.memory_space<vmem>>, %arg5: memref<1x128xf32, #tpu.memory_space<vmem>>, %arg6: memref<128x128xbf16, #tpu.memory_space<vmem>>, %arg7: memref<128x128xbf16, #tpu.memory_space<vmem>>, %arg8: memref<128x128xf32, #tpu.memory_space<vmem>>) attributes {dimension_semantics = [#tpu.dimension_semantics<parallel>, #tpu.dimension_semantics<parallel>, #tpu.dimension_semantics<arbitrary>], iteration_bounds = array<i64: 1, 1, 1>, scalar_prefetch = 0 : i64, scratch_operands = 1 : i64, tpu.core_type = #tpu.core_type<tc>, window_params = [{transform_indices = @transform_0, window_bounds = array<i64: 128, 1152>}, {transform_indices = @transform_1, window_bounds = array<i64: 1152, 128>}, {transform_indices = @transform_2, window_bounds = array<i64: 1, 128>}, {transform_indices = @transform_3, window_bounds = array<i64: 128, 128>}, {transform_indices = @transform_4, window_bounds = array<i64: 128, 128>}]} {
    %c0_i32 = arith.constant 0 : i32
    %0 = arith.cmpi eq, %arg2, %c0_i32 : i32
    %1 = arith.extui %0 : i1 to i32
    %c0_i32_0 = arith.constant 0 : i32
    %2 = arith.cmpi ne, %1, %c0_i32_0 : i32
    scf.if %2 {
      %cst_10 = arith.constant 0.000000e+00 : f32
      %12 = vector.broadcast %cst_10 : f32 to vector<128x128xf32>
      %c0_11 = arith.constant 0 : index
      %c0_12 = arith.constant 0 : index
      %13 = vector.load %arg8[%c0_11, %c0_12] : memref<128x128xf32, #tpu.memory_space<vmem>>, vector<128x128xf32>
      tpu.vector_store %arg8[%c0_11, %c0_12], %12 {strides = array<i32>} : memref<128x128xf32, #tpu.memory_space<vmem>>, vector<128x128xf32>,
    } else {
    }
    %c0 = arith.constant 0 : index
    %c0_1 = arith.constant 0 : index
    %3 = vector.load %arg8[%c0, %c0_1] : memref<128x128xf32, #tpu.memory_space<vmem>>, vector<128x128xf32>
    %c0_2 = arith.constant 0 : index
    %c0_3 = arith.constant 0 : index
    %4 = vector.load %arg3[%c0_2, %c0_3] : memref<128x1152xbf16, #tpu.memory_space<vmem>>, vector<128x1152xbf16>
    %c0_4 = arith.constant 0 : index
    %c0_5 = arith.constant 0 : index
    %5 = vector.load %arg4[%c0_4, %c0_5] : memref<1152x128xbf16, #tpu.memory_space<vmem>>, vector<1152x128xbf16>
    %cst = arith.constant dense<0.000000e+00> : vector<128x128xf32>
    %6 = tpu.matmul %4, %5, %cst {dimension_numbers = #tpu.dot_dimension_numbers<[1], [0], [0], [1], [0, 0, 1, 1], [], []>} : vector<128x1152xbf16>, vector<1152x128xbf16>, vector<128x128xf32> -> vector<128x128xf32>
    %7 = arith.addf %3, %6 : vector<128x128xf32>
    %c0_6 = arith.constant 0 : index
    %c0_7 = arith.constant 0 : index
    %8 = vector.load %arg8[%c0_6, %c0_7] : memref<128x128xf32, #tpu.memory_space<vmem>>, vector<128x128xf32>
    tpu.vector_store %arg8[%c0_6, %c0_7], %7 {strides = array<i32>} : memref<128x128xf32, #tpu.memory_space<vmem>>, vector<128x128xf32>,
    %c0_i32_8 = arith.constant 0 : i32
    %9 = arith.cmpi eq, %arg2, %c0_i32_8 : i32
    %10 = arith.extui %9 : i1 to i32
    %c0_i32_9 = arith.constant 0 : i32
    %11 = arith.cmpi ne, %10, %c0_i32_9 : i32
    scf.if %11 {
      %c0_10 = arith.constant 0 : index
      %c0_11 = arith.constant 0 : index
      %12 = vector.load %arg8[%c0_10, %c0_11] : memref<128x128xf32, #tpu.memory_space<vmem>>, vector<128x128xf32>
      %c0_12 = arith.constant 0 : index
      %c0_13 = arith.constant 0 : index
      %13 = vector.load %arg5[%c0_12, %c0_13] : memref<1x128xf32, #tpu.memory_space<vmem>>, vector<1x128xf32>
      %14 = vector.broadcast %13 : vector<1x128xf32> to vector<128x128xf32>
      %15 = arith.addf %12, %14 : vector<128x128xf32>
      %c0_14 = arith.constant 0 : index
      %c0_15 = arith.constant 0 : index
      %16 = vector.load %arg6[%c0_14, %c0_15] : memref<128x128xbf16, #tpu.memory_space<vmem>>, vector<128x128xbf16>
      %17 = arith.extf %16 : vector<128x128xbf16> to vector<128x128xf32>
      %18 = arith.addf %15, %17 : vector<128x128xf32>
      %cst_16 = arith.constant 0.000000e+00 : f32
      %19 = vector.broadcast %cst_16 : f32 to vector<128x128xf32>
      %20 = arith.maximumf %18, %19 : vector<128x128xf32>
      %21 = arith.truncf %20 : vector<128x128xf32> to vector<128x128xbf16>
      %c0_17 = arith.constant 0 : index
      %c0_18 = arith.constant 0 : index
      %22 = vector.load %arg7[%c0_17, %c0_18] : memref<128x128xbf16, #tpu.memory_space<vmem>>, vector<128x128xbf16>
      tpu.vector_store %arg7[%c0_17, %c0_18], %21 {strides = array<i32>} : memref<128x128xbf16, #tpu.memory_space<vmem>>, vector<128x128xbf16>,
    } else {
    }
    return
  }
  func.func @transform_0(%arg0: i32, %arg1: i32, %arg2: i32) -> (i32, i32) {
    %c0_i32 = arith.constant 0 : i32
    return %arg0, %arg2 : i32, i32
  }
  func.func @transform_1(%arg0: i32, %arg1: i32, %arg2: i32) -> (i32, i32) {
    %c0_i32 = arith.constant 0 : i32
    return %arg2, %arg1 : i32, i32
  }
  func.func @transform_2(%arg0: i32, %arg1: i32, %arg2: i32) -> (i32, i32) {
    %c0_i32 = arith.constant 0 : i32
    %c0_i32_0 = arith.constant 0 : i32
    return %c0_i32, %arg1 : i32, i32
  }
  func.func @transform_3(%arg0: i32, %arg1: i32, %arg2: i32) -> (i32, i32) {
    %c0_i32 = arith.constant 0 : i32
    return %arg0, %arg1 : i32, i32
  }
  func.func @transform_4(%arg0: i32, %arg1: i32, %arg2: i32) -> (i32, i32) {
    %c0_i32 = arith.constant 0 : i32
    return %arg0, %arg1 : i32, i32
  }
}

module attributes {stable_mosaic.version = 11 : i64} {
  func.func @_mm_bn_kernel(%arg0: i32, %arg1: i32, %arg2: i32, %arg3: memref<128x128xbf16, #tpu.memory_space<vmem>>, %arg4: memref<128x128xbf16, #tpu.memory_space<vmem>>, %arg5: memref<1x128xf32, #tpu.memory_space<vmem>>, %arg6: memref<128x128xbf16, #tpu.memory_space<vmem>>, %arg7: memref<128x128xf32, #tpu.memory_space<vmem>>) attributes {dimension_semantics = [#tpu.dimension_semantics<parallel>, #tpu.dimension_semantics<parallel>, #tpu.dimension_semantics<arbitrary>], iteration_bounds = array<i64: 1, 1, 1>, scalar_prefetch = 0 : i64, scratch_operands = 1 : i64, tpu.core_type = #tpu.core_type<tc>, window_params = [{transform_indices = @transform_0, window_bounds = array<i64: 128, 128>}, {transform_indices = @transform_1, window_bounds = array<i64: 128, 128>}, {transform_indices = @transform_2, window_bounds = array<i64: 1, 128>}, {transform_indices = @transform_3, window_bounds = array<i64: 128, 128>}]} {
    %c0_i32 = arith.constant 0 : i32
    %0 = arith.cmpi eq, %arg2, %c0_i32 : i32
    %1 = arith.extui %0 : i1 to i32
    %c0_i32_0 = arith.constant 0 : i32
    %2 = arith.cmpi ne, %1, %c0_i32_0 : i32
    scf.if %2 {
      %cst_10 = arith.constant 0.000000e+00 : f32
      %12 = vector.broadcast %cst_10 : f32 to vector<128x128xf32>
      %c0_11 = arith.constant 0 : index
      %c0_12 = arith.constant 0 : index
      %13 = vector.load %arg7[%c0_11, %c0_12] : memref<128x128xf32, #tpu.memory_space<vmem>>, vector<128x128xf32>
      tpu.vector_store %arg7[%c0_11, %c0_12], %12 {strides = array<i32>} : memref<128x128xf32, #tpu.memory_space<vmem>>, vector<128x128xf32>,
    } else {
    }
    %c0 = arith.constant 0 : index
    %c0_1 = arith.constant 0 : index
    %3 = vector.load %arg7[%c0, %c0_1] : memref<128x128xf32, #tpu.memory_space<vmem>>, vector<128x128xf32>
    %c0_2 = arith.constant 0 : index
    %c0_3 = arith.constant 0 : index
    %4 = vector.load %arg3[%c0_2, %c0_3] : memref<128x128xbf16, #tpu.memory_space<vmem>>, vector<128x128xbf16>
    %c0_4 = arith.constant 0 : index
    %c0_5 = arith.constant 0 : index
    %5 = vector.load %arg4[%c0_4, %c0_5] : memref<128x128xbf16, #tpu.memory_space<vmem>>, vector<128x128xbf16>
    %cst = arith.constant dense<0.000000e+00> : vector<128x128xf32>
    %6 = tpu.matmul %4, %5, %cst {dimension_numbers = #tpu.dot_dimension_numbers<[1], [0], [0], [1], [0, 0, 1, 1], [], []>} : vector<128x128xbf16>, vector<128x128xbf16>, vector<128x128xf32> -> vector<128x128xf32>
    %7 = arith.addf %3, %6 : vector<128x128xf32>
    %c0_6 = arith.constant 0 : index
    %c0_7 = arith.constant 0 : index
    %8 = vector.load %arg7[%c0_6, %c0_7] : memref<128x128xf32, #tpu.memory_space<vmem>>, vector<128x128xf32>
    tpu.vector_store %arg7[%c0_6, %c0_7], %7 {strides = array<i32>} : memref<128x128xf32, #tpu.memory_space<vmem>>, vector<128x128xf32>,
    %c0_i32_8 = arith.constant 0 : i32
    %9 = arith.cmpi eq, %arg2, %c0_i32_8 : i32
    %10 = arith.extui %9 : i1 to i32
    %c0_i32_9 = arith.constant 0 : i32
    %11 = arith.cmpi ne, %10, %c0_i32_9 : i32
    scf.if %11 {
      %c0_10 = arith.constant 0 : index
      %c0_11 = arith.constant 0 : index
      %12 = vector.load %arg7[%c0_10, %c0_11] : memref<128x128xf32, #tpu.memory_space<vmem>>, vector<128x128xf32>
      %c0_12 = arith.constant 0 : index
      %c0_13 = arith.constant 0 : index
      %13 = vector.load %arg5[%c0_12, %c0_13] : memref<1x128xf32, #tpu.memory_space<vmem>>, vector<1x128xf32>
      %14 = vector.broadcast %13 : vector<1x128xf32> to vector<128x128xf32>
      %15 = arith.addf %12, %14 : vector<128x128xf32>
      %16 = arith.truncf %15 : vector<128x128xf32> to vector<128x128xbf16>
      %c0_14 = arith.constant 0 : index
      %c0_15 = arith.constant 0 : index
      %17 = vector.load %arg6[%c0_14, %c0_15] : memref<128x128xbf16, #tpu.memory_space<vmem>>, vector<128x128xbf16>
      tpu.vector_store %arg6[%c0_14, %c0_15], %16 {strides = array<i32>} : memref<128x128xbf16, #tpu.memory_space<vmem>>, vector<128x128xbf16>,
    } else {
    }
    return
  }
  func.func @transform_0(%arg0: i32, %arg1: i32, %arg2: i32) -> (i32, i32) {
    %c0_i32 = arith.constant 0 : i32
    return %arg0, %arg2 : i32, i32
  }
  func.func @transform_1(%arg0: i32, %arg1: i32, %arg2: i32) -> (i32, i32) {
    %c0_i32 = arith.constant 0 : i32
    return %arg2, %arg1 : i32, i32
  }
  func.func @transform_2(%arg0: i32, %arg1: i32, %arg2: i32) -> (i32, i32) {
    %c0_i32 = arith.constant 0 : i32
    %c0_i32_0 = arith.constant 0 : i32
    return %c0_i32, %arg1 : i32, i32
  }
  func.func @transform_3(%arg0: i32, %arg1: i32, %arg2: i32) -> (i32, i32) {
    %c0_i32 = arith.constant 0 : i32
    return %arg0, %arg1 : i32, i32
  }
}

module attributes {stable_mosaic.version = 11 : i64} {
  func.func @_mm_bn_kernel(%arg0: i32, %arg1: i32, %arg2: i32, %arg3: memref<32x1152xbf16, #tpu.memory_space<vmem>>, %arg4: memref<1152x256xbf16, #tpu.memory_space<vmem>>, %arg5: memref<1x256xf32, #tpu.memory_space<vmem>>, %arg6: memref<32x256xbf16, #tpu.memory_space<vmem>>, %arg7: memref<32x256xf32, #tpu.memory_space<vmem>>) attributes {dimension_semantics = [#tpu.dimension_semantics<parallel>, #tpu.dimension_semantics<parallel>, #tpu.dimension_semantics<arbitrary>], iteration_bounds = array<i64: 1, 1, 1>, scalar_prefetch = 0 : i64, scratch_operands = 1 : i64, tpu.core_type = #tpu.core_type<tc>, window_params = [{transform_indices = @transform_0, window_bounds = array<i64: 32, 1152>}, {transform_indices = @transform_1, window_bounds = array<i64: 1152, 256>}, {transform_indices = @transform_2, window_bounds = array<i64: 1, 256>}, {transform_indices = @transform_3, window_bounds = array<i64: 32, 256>}]} {
    %c0_i32 = arith.constant 0 : i32
    %0 = arith.cmpi eq, %arg2, %c0_i32 : i32
    %1 = arith.extui %0 : i1 to i32
    %c0_i32_0 = arith.constant 0 : i32
    %2 = arith.cmpi ne, %1, %c0_i32_0 : i32
    scf.if %2 {
      %cst_10 = arith.constant 0.000000e+00 : f32
      %12 = vector.broadcast %cst_10 : f32 to vector<32x256xf32>
      %c0_11 = arith.constant 0 : index
      %c0_12 = arith.constant 0 : index
      %13 = vector.load %arg7[%c0_11, %c0_12] : memref<32x256xf32, #tpu.memory_space<vmem>>, vector<32x256xf32>
      tpu.vector_store %arg7[%c0_11, %c0_12], %12 {strides = array<i32>} : memref<32x256xf32, #tpu.memory_space<vmem>>, vector<32x256xf32>,
    } else {
    }
    %c0 = arith.constant 0 : index
    %c0_1 = arith.constant 0 : index
    %3 = vector.load %arg7[%c0, %c0_1] : memref<32x256xf32, #tpu.memory_space<vmem>>, vector<32x256xf32>
    %c0_2 = arith.constant 0 : index
    %c0_3 = arith.constant 0 : index
    %4 = vector.load %arg3[%c0_2, %c0_3] : memref<32x1152xbf16, #tpu.memory_space<vmem>>, vector<32x1152xbf16>
    %c0_4 = arith.constant 0 : index
    %c0_5 = arith.constant 0 : index
    %5 = vector.load %arg4[%c0_4, %c0_5] : memref<1152x256xbf16, #tpu.memory_space<vmem>>, vector<1152x256xbf16>
    %cst = arith.constant dense<0.000000e+00> : vector<32x256xf32>
    %6 = tpu.matmul %4, %5, %cst {dimension_numbers = #tpu.dot_dimension_numbers<[1], [0], [0], [1], [0, 0, 1, 1], [], []>} : vector<32x1152xbf16>, vector<1152x256xbf16>, vector<32x256xf32> -> vector<32x256xf32>
    %7 = arith.addf %3, %6 : vector<32x256xf32>
    %c0_6 = arith.constant 0 : index
    %c0_7 = arith.constant 0 : index
    %8 = vector.load %arg7[%c0_6, %c0_7] : memref<32x256xf32, #tpu.memory_space<vmem>>, vector<32x256xf32>
    tpu.vector_store %arg7[%c0_6, %c0_7], %7 {strides = array<i32>} : memref<32x256xf32, #tpu.memory_space<vmem>>, vector<32x256xf32>,
    %c0_i32_8 = arith.constant 0 : i32
    %9 = arith.cmpi eq, %arg2, %c0_i32_8 : i32
    %10 = arith.extui %9 : i1 to i32
    %c0_i32_9 = arith.constant 0 : i32
    %11 = arith.cmpi ne, %10, %c0_i32_9 : i32
    scf.if %11 {
      %c0_10 = arith.constant 0 : index
      %c0_11 = arith.constant 0 : index
      %12 = vector.load %arg7[%c0_10, %c0_11] : memref<32x256xf32, #tpu.memory_space<vmem>>, vector<32x256xf32>
      %c0_12 = arith.constant 0 : index
      %c0_13 = arith.constant 0 : index
      %13 = vector.load %arg5[%c0_12, %c0_13] : memref<1x256xf32, #tpu.memory_space<vmem>>, vector<1x256xf32>
      %14 = vector.broadcast %13 : vector<1x256xf32> to vector<32x256xf32>
      %15 = arith.addf %12, %14 : vector<32x256xf32>
      %cst_14 = arith.constant 0.000000e+00 : f32
      %16 = vector.broadcast %cst_14 : f32 to vector<32x256xf32>
      %17 = arith.maximumf %15, %16 : vector<32x256xf32>
      %18 = arith.truncf %17 : vector<32x256xf32> to vector<32x256xbf16>
      %c0_15 = arith.constant 0 : index
      %c0_16 = arith.constant 0 : index
      %19 = vector.load %arg6[%c0_15, %c0_16] : memref<32x256xbf16, #tpu.memory_space<vmem>>, vector<32x256xbf16>
      tpu.vector_store %arg6[%c0_15, %c0_16], %18 {strides = array<i32>} : memref<32x256xbf16, #tpu.memory_space<vmem>>, vector<32x256xbf16>,
    } else {
    }
    return
  }
  func.func @transform_0(%arg0: i32, %arg1: i32, %arg2: i32) -> (i32, i32) {
    %c0_i32 = arith.constant 0 : i32
    return %arg0, %arg2 : i32, i32
  }
  func.func @transform_1(%arg0: i32, %arg1: i32, %arg2: i32) -> (i32, i32) {
    %c0_i32 = arith.constant 0 : i32
    return %arg2, %arg1 : i32, i32
  }
  func.func @transform_2(%arg0: i32, %arg1: i32, %arg2: i32) -> (i32, i32) {
    %c0_i32 = arith.constant 0 : i32
    %c0_i32_0 = arith.constant 0 : i32
    return %c0_i32, %arg1 : i32, i32
  }
  func.func @transform_3(%arg0: i32, %arg1: i32, %arg2: i32) -> (i32, i32) {
    %c0_i32 = arith.constant 0 : i32
    return %arg0, %arg1 : i32, i32
  }
}

module attributes {stable_mosaic.version = 11 : i64} {
  func.func @_mm_bn_res_kernel(%arg0: i32, %arg1: i32, %arg2: i32, %arg3: memref<32x1152xbf16, #tpu.memory_space<vmem>>, %arg4: memref<1152x256xbf16, #tpu.memory_space<vmem>>, %arg5: memref<1x256xf32, #tpu.memory_space<vmem>>, %arg6: memref<32x256xbf16, #tpu.memory_space<vmem>>, %arg7: memref<32x256xbf16, #tpu.memory_space<vmem>>, %arg8: memref<32x256xf32, #tpu.memory_space<vmem>>) attributes {dimension_semantics = [#tpu.dimension_semantics<parallel>, #tpu.dimension_semantics<parallel>, #tpu.dimension_semantics<arbitrary>], iteration_bounds = array<i64: 1, 1, 2>, scalar_prefetch = 0 : i64, scratch_operands = 1 : i64, tpu.core_type = #tpu.core_type<tc>, window_params = [{transform_indices = @transform_0, window_bounds = array<i64: 32, 1152>}, {transform_indices = @transform_1, window_bounds = array<i64: 1152, 256>}, {transform_indices = @transform_2, window_bounds = array<i64: 1, 256>}, {transform_indices = @transform_3, window_bounds = array<i64: 32, 256>}, {transform_indices = @transform_4, window_bounds = array<i64: 32, 256>}]} {
    %c0_i32 = arith.constant 0 : i32
    %0 = arith.cmpi eq, %arg2, %c0_i32 : i32
    %1 = arith.extui %0 : i1 to i32
    %c0_i32_0 = arith.constant 0 : i32
    %2 = arith.cmpi ne, %1, %c0_i32_0 : i32
    scf.if %2 {
      %cst_9 = arith.constant 0.000000e+00 : f32
      %12 = vector.broadcast %cst_9 : f32 to vector<32x256xf32>
      %c0_10 = arith.constant 0 : index
      %c0_11 = arith.constant 0 : index
      %13 = vector.load %arg8[%c0_10, %c0_11] : memref<32x256xf32, #tpu.memory_space<vmem>>, vector<32x256xf32>
      tpu.vector_store %arg8[%c0_10, %c0_11], %12 {strides = array<i32>} : memref<32x256xf32, #tpu.memory_space<vmem>>, vector<32x256xf32>,
    } else {
    }
    %c0 = arith.constant 0 : index
    %c0_1 = arith.constant 0 : index
    %3 = vector.load %arg8[%c0, %c0_1] : memref<32x256xf32, #tpu.memory_space<vmem>>, vector<32x256xf32>
    %c0_2 = arith.constant 0 : index
    %c0_3 = arith.constant 0 : index
    %4 = vector.load %arg3[%c0_2, %c0_3] : memref<32x1152xbf16, #tpu.memory_space<vmem>>, vector<32x1152xbf16>
    %c0_4 = arith.constant 0 : index
    %c0_5 = arith.constant 0 : index
    %5 = vector.load %arg4[%c0_4, %c0_5] : memref<1152x256xbf16, #tpu.memory_space<vmem>>, vector<1152x256xbf16>
    %cst = arith.constant dense<0.000000e+00> : vector<32x256xf32>
    %6 = tpu.matmul %4, %5, %cst {dimension_numbers = #tpu.dot_dimension_numbers<[1], [0], [0], [1], [0, 0, 1, 1], [], []>} : vector<32x1152xbf16>, vector<1152x256xbf16>, vector<32x256xf32> -> vector<32x256xf32>
    %7 = arith.addf %3, %6 : vector<32x256xf32>
    %c0_6 = arith.constant 0 : index
    %c0_7 = arith.constant 0 : index
    %8 = vector.load %arg8[%c0_6, %c0_7] : memref<32x256xf32, #tpu.memory_space<vmem>>, vector<32x256xf32>
    tpu.vector_store %arg8[%c0_6, %c0_7], %7 {strides = array<i32>} : memref<32x256xf32, #tpu.memory_space<vmem>>, vector<32x256xf32>,
    %c1_i32 = arith.constant 1 : i32
    %9 = arith.cmpi eq, %arg2, %c1_i32 : i32
    %10 = arith.extui %9 : i1 to i32
    %c0_i32_8 = arith.constant 0 : i32
    %11 = arith.cmpi ne, %10, %c0_i32_8 : i32
    scf.if %11 {
      %c0_9 = arith.constant 0 : index
      %c0_10 = arith.constant 0 : index
      %12 = vector.load %arg8[%c0_9, %c0_10] : memref<32x256xf32, #tpu.memory_space<vmem>>, vector<32x256xf32>
      %c0_11 = arith.constant 0 : index
      %c0_12 = arith.constant 0 : index
      %13 = vector.load %arg5[%c0_11, %c0_12] : memref<1x256xf32, #tpu.memory_space<vmem>>, vector<1x256xf32>
      %14 = vector.broadcast %13 : vector<1x256xf32> to vector<32x256xf32>
      %15 = arith.addf %12, %14 : vector<32x256xf32>
      %c0_13 = arith.constant 0 : index
      %c0_14 = arith.constant 0 : index
      %16 = vector.load %arg6[%c0_13, %c0_14] : memref<32x256xbf16, #tpu.memory_space<vmem>>, vector<32x256xbf16>
      %17 = arith.extf %16 : vector<32x256xbf16> to vector<32x256xf32>
      %18 = arith.addf %15, %17 : vector<32x256xf32>
      %cst_15 = arith.constant 0.000000e+00 : f32
      %19 = vector.broadcast %cst_15 : f32 to vector<32x256xf32>
      %20 = arith.maximumf %18, %19 : vector<32x256xf32>
      %21 = arith.truncf %20 : vector<32x256xf32> to vector<32x256xbf16>
      %c0_16 = arith.constant 0 : index
      %c0_17 = arith.constant 0 : index
      %22 = vector.load %arg7[%c0_16, %c0_17] : memref<32x256xbf16, #tpu.memory_space<vmem>>, vector<32x256xbf16>
      tpu.vector_store %arg7[%c0_16, %c0_17], %21 {strides = array<i32>} : memref<32x256xbf16, #tpu.memory_space<vmem>>, vector<32x256xbf16>,
    } else {
    }
    return
  }
  func.func @transform_0(%arg0: i32, %arg1: i32, %arg2: i32) -> (i32, i32) {
    %c0_i32 = arith.constant 0 : i32
    return %arg0, %arg2 : i32, i32
  }
  func.func @transform_1(%arg0: i32, %arg1: i32, %arg2: i32) -> (i32, i32) {
    %c0_i32 = arith.constant 0 : i32
    return %arg2, %arg1 : i32, i32
  }
  func.func @transform_2(%arg0: i32, %arg1: i32, %arg2: i32) -> (i32, i32) {
    %c0_i32 = arith.constant 0 : i32
    %c0_i32_0 = arith.constant 0 : i32
    return %c0_i32, %arg1 : i32, i32
  }
  func.func @transform_3(%arg0: i32, %arg1: i32, %arg2: i32) -> (i32, i32) {
    %c0_i32 = arith.constant 0 : i32
    return %arg0, %arg1 : i32, i32
  }
  func.func @transform_4(%arg0: i32, %arg1: i32, %arg2: i32) -> (i32, i32) {
    %c0_i32 = arith.constant 0 : i32
    return %arg0, %arg1 : i32, i32
  }
}

module attributes {stable_mosaic.version = 11 : i64} {
  func.func @_mm_bn_kernel(%arg0: i32, %arg1: i32, %arg2: i32, %arg3: memref<32x128xbf16, #tpu.memory_space<vmem>>, %arg4: memref<128x256xbf16, #tpu.memory_space<vmem>>, %arg5: memref<1x256xf32, #tpu.memory_space<vmem>>, %arg6: memref<32x256xbf16, #tpu.memory_space<vmem>>, %arg7: memref<32x256xf32, #tpu.memory_space<vmem>>) attributes {dimension_semantics = [#tpu.dimension_semantics<parallel>, #tpu.dimension_semantics<parallel>, #tpu.dimension_semantics<arbitrary>], iteration_bounds = array<i64: 1, 1, 1>, scalar_prefetch = 0 : i64, scratch_operands = 1 : i64, tpu.core_type = #tpu.core_type<tc>, window_params = [{transform_indices = @transform_0, window_bounds = array<i64: 32, 128>}, {transform_indices = @transform_1, window_bounds = array<i64: 128, 256>}, {transform_indices = @transform_2, window_bounds = array<i64: 1, 256>}, {transform_indices = @transform_3, window_bounds = array<i64: 32, 256>}]} {
    %c0_i32 = arith.constant 0 : i32
    %0 = arith.cmpi eq, %arg2, %c0_i32 : i32
    %1 = arith.extui %0 : i1 to i32
    %c0_i32_0 = arith.constant 0 : i32
    %2 = arith.cmpi ne, %1, %c0_i32_0 : i32
    scf.if %2 {
      %cst_10 = arith.constant 0.000000e+00 : f32
      %12 = vector.broadcast %cst_10 : f32 to vector<32x256xf32>
      %c0_11 = arith.constant 0 : index
      %c0_12 = arith.constant 0 : index
      %13 = vector.load %arg7[%c0_11, %c0_12] : memref<32x256xf32, #tpu.memory_space<vmem>>, vector<32x256xf32>
      tpu.vector_store %arg7[%c0_11, %c0_12], %12 {strides = array<i32>} : memref<32x256xf32, #tpu.memory_space<vmem>>, vector<32x256xf32>,
    } else {
    }
    %c0 = arith.constant 0 : index
    %c0_1 = arith.constant 0 : index
    %3 = vector.load %arg7[%c0, %c0_1] : memref<32x256xf32, #tpu.memory_space<vmem>>, vector<32x256xf32>
    %c0_2 = arith.constant 0 : index
    %c0_3 = arith.constant 0 : index
    %4 = vector.load %arg3[%c0_2, %c0_3] : memref<32x128xbf16, #tpu.memory_space<vmem>>, vector<32x128xbf16>
    %c0_4 = arith.constant 0 : index
    %c0_5 = arith.constant 0 : index
    %5 = vector.load %arg4[%c0_4, %c0_5] : memref<128x256xbf16, #tpu.memory_space<vmem>>, vector<128x256xbf16>
    %cst = arith.constant dense<0.000000e+00> : vector<32x256xf32>
    %6 = tpu.matmul %4, %5, %cst {dimension_numbers = #tpu.dot_dimension_numbers<[1], [0], [0], [1], [0, 0, 1, 1], [], []>} : vector<32x128xbf16>, vector<128x256xbf16>, vector<32x256xf32> -> vector<32x256xf32>
    %7 = arith.addf %3, %6 : vector<32x256xf32>
    %c0_6 = arith.constant 0 : index
    %c0_7 = arith.constant 0 : index
    %8 = vector.load %arg7[%c0_6, %c0_7] : memref<32x256xf32, #tpu.memory_space<vmem>>, vector<32x256xf32>
    tpu.vector_store %arg7[%c0_6, %c0_7], %7 {strides = array<i32>} : memref<32x256xf32, #tpu.memory_space<vmem>>, vector<32x256xf32>,
    %c0_i32_8 = arith.constant 0 : i32
    %9 = arith.cmpi eq, %arg2, %c0_i32_8 : i32
    %10 = arith.extui %9 : i1 to i32
    %c0_i32_9 = arith.constant 0 : i32
    %11 = arith.cmpi ne, %10, %c0_i32_9 : i32
    scf.if %11 {
      %c0_10 = arith.constant 0 : index
      %c0_11 = arith.constant 0 : index
      %12 = vector.load %arg7[%c0_10, %c0_11] : memref<32x256xf32, #tpu.memory_space<vmem>>, vector<32x256xf32>
      %c0_12 = arith.constant 0 : index
      %c0_13 = arith.constant 0 : index
      %13 = vector.load %arg5[%c0_12, %c0_13] : memref<1x256xf32, #tpu.memory_space<vmem>>, vector<1x256xf32>
      %14 = vector.broadcast %13 : vector<1x256xf32> to vector<32x256xf32>
      %15 = arith.addf %12, %14 : vector<32x256xf32>
      %16 = arith.truncf %15 : vector<32x256xf32> to vector<32x256xbf16>
      %c0_14 = arith.constant 0 : index
      %c0_15 = arith.constant 0 : index
      %17 = vector.load %arg6[%c0_14, %c0_15] : memref<32x256xbf16, #tpu.memory_space<vmem>>, vector<32x256xbf16>
      tpu.vector_store %arg6[%c0_14, %c0_15], %16 {strides = array<i32>} : memref<32x256xbf16, #tpu.memory_space<vmem>>, vector<32x256xbf16>,
    } else {
    }
    return
  }
  func.func @transform_0(%arg0: i32, %arg1: i32, %arg2: i32) -> (i32, i32) {
    %c0_i32 = arith.constant 0 : i32
    return %arg0, %arg2 : i32, i32
  }
  func.func @transform_1(%arg0: i32, %arg1: i32, %arg2: i32) -> (i32, i32) {
    %c0_i32 = arith.constant 0 : i32
    return %arg2, %arg1 : i32, i32
  }
  func.func @transform_2(%arg0: i32, %arg1: i32, %arg2: i32) -> (i32, i32) {
    %c0_i32 = arith.constant 0 : i32
    %c0_i32_0 = arith.constant 0 : i32
    return %c0_i32, %arg1 : i32, i32
  }
  func.func @transform_3(%arg0: i32, %arg1: i32, %arg2: i32) -> (i32, i32) {
    %c0_i32 = arith.constant 0 : i32
    return %arg0, %arg1 : i32, i32
  }
}

module attributes {stable_mosaic.version = 11 : i64} {
  func.func @_mm_bn_kernel(%arg0: i32, %arg1: i32, %arg2: i32, %arg3: memref<16x1152xbf16, #tpu.memory_space<vmem>>, %arg4: memref<1152x512xbf16, #tpu.memory_space<vmem>>, %arg5: memref<1x512xf32, #tpu.memory_space<vmem>>, %arg6: memref<16x512xbf16, #tpu.memory_space<vmem>>, %arg7: memref<16x512xf32, #tpu.memory_space<vmem>>) attributes {dimension_semantics = [#tpu.dimension_semantics<parallel>, #tpu.dimension_semantics<parallel>, #tpu.dimension_semantics<arbitrary>], iteration_bounds = array<i64: 1, 1, 2>, scalar_prefetch = 0 : i64, scratch_operands = 1 : i64, tpu.core_type = #tpu.core_type<tc>, window_params = [{transform_indices = @transform_0, window_bounds = array<i64: 16, 1152>}, {transform_indices = @transform_1, window_bounds = array<i64: 1152, 512>}, {transform_indices = @transform_2, window_bounds = array<i64: 1, 512>}, {transform_indices = @transform_3, window_bounds = array<i64: 16, 512>}]} {
    %c0_i32 = arith.constant 0 : i32
    %0 = arith.cmpi eq, %arg2, %c0_i32 : i32
    %1 = arith.extui %0 : i1 to i32
    %c0_i32_0 = arith.constant 0 : i32
    %2 = arith.cmpi ne, %1, %c0_i32_0 : i32
    scf.if %2 {
      %cst_9 = arith.constant 0.000000e+00 : f32
      %12 = vector.broadcast %cst_9 : f32 to vector<16x512xf32>
      %c0_10 = arith.constant 0 : index
      %c0_11 = arith.constant 0 : index
      %13 = vector.load %arg7[%c0_10, %c0_11] : memref<16x512xf32, #tpu.memory_space<vmem>>, vector<16x512xf32>
      tpu.vector_store %arg7[%c0_10, %c0_11], %12 {strides = array<i32>} : memref<16x512xf32, #tpu.memory_space<vmem>>, vector<16x512xf32>,
    } else {
    }
    %c0 = arith.constant 0 : index
    %c0_1 = arith.constant 0 : index
    %3 = vector.load %arg7[%c0, %c0_1] : memref<16x512xf32, #tpu.memory_space<vmem>>, vector<16x512xf32>
    %c0_2 = arith.constant 0 : index
    %c0_3 = arith.constant 0 : index
    %4 = vector.load %arg3[%c0_2, %c0_3] : memref<16x1152xbf16, #tpu.memory_space<vmem>>, vector<16x1152xbf16>
    %c0_4 = arith.constant 0 : index
    %c0_5 = arith.constant 0 : index
    %5 = vector.load %arg4[%c0_4, %c0_5] : memref<1152x512xbf16, #tpu.memory_space<vmem>>, vector<1152x512xbf16>
    %cst = arith.constant dense<0.000000e+00> : vector<16x512xf32>
    %6 = tpu.matmul %4, %5, %cst {dimension_numbers = #tpu.dot_dimension_numbers<[1], [0], [0], [1], [0, 0, 1, 1], [], []>} : vector<16x1152xbf16>, vector<1152x512xbf16>, vector<16x512xf32> -> vector<16x512xf32>
    %7 = arith.addf %3, %6 : vector<16x512xf32>
    %c0_6 = arith.constant 0 : index
    %c0_7 = arith.constant 0 : index
    %8 = vector.load %arg7[%c0_6, %c0_7] : memref<16x512xf32, #tpu.memory_space<vmem>>, vector<16x512xf32>
    tpu.vector_store %arg7[%c0_6, %c0_7], %7 {strides = array<i32>} : memref<16x512xf32, #tpu.memory_space<vmem>>, vector<16x512xf32>,
    %c1_i32 = arith.constant 1 : i32
    %9 = arith.cmpi eq, %arg2, %c1_i32 : i32
    %10 = arith.extui %9 : i1 to i32
    %c0_i32_8 = arith.constant 0 : i32
    %11 = arith.cmpi ne, %10, %c0_i32_8 : i32
    scf.if %11 {
      %c0_9 = arith.constant 0 : index
      %c0_10 = arith.constant 0 : index
      %12 = vector.load %arg7[%c0_9, %c0_10] : memref<16x512xf32, #tpu.memory_space<vmem>>, vector<16x512xf32>
      %c0_11 = arith.constant 0 : index
      %c0_12 = arith.constant 0 : index
      %13 = vector.load %arg5[%c0_11, %c0_12] : memref<1x512xf32, #tpu.memory_space<vmem>>, vector<1x512xf32>
      %14 = vector.broadcast %13 : vector<1x512xf32> to vector<16x512xf32>
      %15 = arith.addf %12, %14 : vector<16x512xf32>
      %cst_13 = arith.constant 0.000000e+00 : f32
      %16 = vector.broadcast %cst_13 : f32 to vector<16x512xf32>
      %17 = arith.maximumf %15, %16 : vector<16x512xf32>
      %18 = arith.truncf %17 : vector<16x512xf32> to vector<16x512xbf16>
      %c0_14 = arith.constant 0 : index
      %c0_15 = arith.constant 0 : index
      %19 = vector.load %arg6[%c0_14, %c0_15] : memref<16x512xbf16, #tpu.memory_space<vmem>>, vector<16x512xbf16>
      tpu.vector_store %arg6[%c0_14, %c0_15], %18 {strides = array<i32>} : memref<16x512xbf16, #tpu.memory_space<vmem>>, vector<16x512xbf16>,
    } else {
    }
    return
  }
  func.func @transform_0(%arg0: i32, %arg1: i32, %arg2: i32) -> (i32, i32) {
    %c0_i32 = arith.constant 0 : i32
    return %arg0, %arg2 : i32, i32
  }
  func.func @transform_1(%arg0: i32, %arg1: i32, %arg2: i32) -> (i32, i32) {
    %c0_i32 = arith.constant 0 : i32
    return %arg2, %arg1 : i32, i32
  }
  func.func @transform_2(%arg0: i32, %arg1: i32, %arg2: i32) -> (i32, i32) {
    %c0_i32 = arith.constant 0 : i32
    %c0_i32_0 = arith.constant 0 : i32
    return %c0_i32, %arg1 : i32, i32
  }
  func.func @transform_3(%arg0: i32, %arg1: i32, %arg2: i32) -> (i32, i32) {
    %c0_i32 = arith.constant 0 : i32
    return %arg0, %arg1 : i32, i32
  }
}

module attributes {stable_mosaic.version = 11 : i64} {
  func.func @_mm_bn_res_kernel(%arg0: i32, %arg1: i32, %arg2: i32, %arg3: memref<16x1536xbf16, #tpu.memory_space<vmem>>, %arg4: memref<1536x512xbf16, #tpu.memory_space<vmem>>, %arg5: memref<1x512xf32, #tpu.memory_space<vmem>>, %arg6: memref<16x512xbf16, #tpu.memory_space<vmem>>, %arg7: memref<16x512xbf16, #tpu.memory_space<vmem>>, %arg8: memref<16x512xf32, #tpu.memory_space<vmem>>) attributes {dimension_semantics = [#tpu.dimension_semantics<parallel>, #tpu.dimension_semantics<parallel>, #tpu.dimension_semantics<arbitrary>], iteration_bounds = array<i64: 1, 1, 3>, scalar_prefetch = 0 : i64, scratch_operands = 1 : i64, tpu.core_type = #tpu.core_type<tc>, window_params = [{transform_indices = @transform_0, window_bounds = array<i64: 16, 1536>}, {transform_indices = @transform_1, window_bounds = array<i64: 1536, 512>}, {transform_indices = @transform_2, window_bounds = array<i64: 1, 512>}, {transform_indices = @transform_3, window_bounds = array<i64: 16, 512>}, {transform_indices = @transform_4, window_bounds = array<i64: 16, 512>}]} {
    %c0_i32 = arith.constant 0 : i32
    %0 = arith.cmpi eq, %arg2, %c0_i32 : i32
    %1 = arith.extui %0 : i1 to i32
    %c0_i32_0 = arith.constant 0 : i32
    %2 = arith.cmpi ne, %1, %c0_i32_0 : i32
    scf.if %2 {
      %cst_9 = arith.constant 0.000000e+00 : f32
      %12 = vector.broadcast %cst_9 : f32 to vector<16x512xf32>
      %c0_10 = arith.constant 0 : index
      %c0_11 = arith.constant 0 : index
      %13 = vector.load %arg8[%c0_10, %c0_11] : memref<16x512xf32, #tpu.memory_space<vmem>>, vector<16x512xf32>
      tpu.vector_store %arg8[%c0_10, %c0_11], %12 {strides = array<i32>} : memref<16x512xf32, #tpu.memory_space<vmem>>, vector<16x512xf32>,
    } else {
    }
    %c0 = arith.constant 0 : index
    %c0_1 = arith.constant 0 : index
    %3 = vector.load %arg8[%c0, %c0_1] : memref<16x512xf32, #tpu.memory_space<vmem>>, vector<16x512xf32>
    %c0_2 = arith.constant 0 : index
    %c0_3 = arith.constant 0 : index
    %4 = vector.load %arg3[%c0_2, %c0_3] : memref<16x1536xbf16, #tpu.memory_space<vmem>>, vector<16x1536xbf16>
    %c0_4 = arith.constant 0 : index
    %c0_5 = arith.constant 0 : index
    %5 = vector.load %arg4[%c0_4, %c0_5] : memref<1536x512xbf16, #tpu.memory_space<vmem>>, vector<1536x512xbf16>
    %cst = arith.constant dense<0.000000e+00> : vector<16x512xf32>
    %6 = tpu.matmul %4, %5, %cst {dimension_numbers = #tpu.dot_dimension_numbers<[1], [0], [0], [1], [0, 0, 1, 1], [], []>} : vector<16x1536xbf16>, vector<1536x512xbf16>, vector<16x512xf32> -> vector<16x512xf32>
    %7 = arith.addf %3, %6 : vector<16x512xf32>
    %c0_6 = arith.constant 0 : index
    %c0_7 = arith.constant 0 : index
    %8 = vector.load %arg8[%c0_6, %c0_7] : memref<16x512xf32, #tpu.memory_space<vmem>>, vector<16x512xf32>
    tpu.vector_store %arg8[%c0_6, %c0_7], %7 {strides = array<i32>} : memref<16x512xf32, #tpu.memory_space<vmem>>, vector<16x512xf32>,
    %c2_i32 = arith.constant 2 : i32
    %9 = arith.cmpi eq, %arg2, %c2_i32 : i32
    %10 = arith.extui %9 : i1 to i32
    %c0_i32_8 = arith.constant 0 : i32
    %11 = arith.cmpi ne, %10, %c0_i32_8 : i32
    scf.if %11 {
      %c0_9 = arith.constant 0 : index
      %c0_10 = arith.constant 0 : index
      %12 = vector.load %arg8[%c0_9, %c0_10] : memref<16x512xf32, #tpu.memory_space<vmem>>, vector<16x512xf32>
      %c0_11 = arith.constant 0 : index
      %c0_12 = arith.constant 0 : index
      %13 = vector.load %arg5[%c0_11, %c0_12] : memref<1x512xf32, #tpu.memory_space<vmem>>, vector<1x512xf32>
      %14 = vector.broadcast %13 : vector<1x512xf32> to vector<16x512xf32>
      %15 = arith.addf %12, %14 : vector<16x512xf32>
      %c0_13 = arith.constant 0 : index
      %c0_14 = arith.constant 0 : index
      %16 = vector.load %arg6[%c0_13, %c0_14] : memref<16x512xbf16, #tpu.memory_space<vmem>>, vector<16x512xbf16>
      %17 = arith.extf %16 : vector<16x512xbf16> to vector<16x512xf32>
      %18 = arith.addf %15, %17 : vector<16x512xf32>
      %cst_15 = arith.constant 0.000000e+00 : f32
      %19 = vector.broadcast %cst_15 : f32 to vector<16x512xf32>
      %20 = arith.maximumf %18, %19 : vector<16x512xf32>
      %21 = arith.truncf %20 : vector<16x512xf32> to vector<16x512xbf16>
      %c0_16 = arith.constant 0 : index
      %c0_17 = arith.constant 0 : index
      %22 = vector.load %arg7[%c0_16, %c0_17] : memref<16x512xbf16, #tpu.memory_space<vmem>>, vector<16x512xbf16>
      tpu.vector_store %arg7[%c0_16, %c0_17], %21 {strides = array<i32>} : memref<16x512xbf16, #tpu.memory_space<vmem>>, vector<16x512xbf16>,
    } else {
    }
    return
  }
  func.func @transform_0(%arg0: i32, %arg1: i32, %arg2: i32) -> (i32, i32) {
    %c0_i32 = arith.constant 0 : i32
    return %arg0, %arg2 : i32, i32
  }
  func.func @transform_1(%arg0: i32, %arg1: i32, %arg2: i32) -> (i32, i32) {
    %c0_i32 = arith.constant 0 : i32
    return %arg2, %arg1 : i32, i32
  }
  func.func @transform_2(%arg0: i32, %arg1: i32, %arg2: i32) -> (i32, i32) {
    %c0_i32 = arith.constant 0 : i32
    %c0_i32_0 = arith.constant 0 : i32
    return %c0_i32, %arg1 : i32, i32
  }
  func.func @transform_3(%arg0: i32, %arg1: i32, %arg2: i32) -> (i32, i32) {
    %c0_i32 = arith.constant 0 : i32
    return %arg0, %arg1 : i32, i32
  }
  func.func @transform_4(%arg0: i32, %arg1: i32, %arg2: i32) -> (i32, i32) {
    %c0_i32 = arith.constant 0 : i32
    return %arg0, %arg1 : i32, i32
  }
}

module attributes {stable_mosaic.version = 11 : i64} {
  func.func @_mm_bn_kernel(%arg0: i32, %arg1: i32, %arg2: i32, %arg3: memref<16x256xbf16, #tpu.memory_space<vmem>>, %arg4: memref<256x512xbf16, #tpu.memory_space<vmem>>, %arg5: memref<1x512xf32, #tpu.memory_space<vmem>>, %arg6: memref<16x512xbf16, #tpu.memory_space<vmem>>, %arg7: memref<16x512xf32, #tpu.memory_space<vmem>>) attributes {dimension_semantics = [#tpu.dimension_semantics<parallel>, #tpu.dimension_semantics<parallel>, #tpu.dimension_semantics<arbitrary>], iteration_bounds = array<i64: 1, 1, 1>, scalar_prefetch = 0 : i64, scratch_operands = 1 : i64, tpu.core_type = #tpu.core_type<tc>, window_params = [{transform_indices = @transform_0, window_bounds = array<i64: 16, 256>}, {transform_indices = @transform_1, window_bounds = array<i64: 256, 512>}, {transform_indices = @transform_2, window_bounds = array<i64: 1, 512>}, {transform_indices = @transform_3, window_bounds = array<i64: 16, 512>}]} {
    %c0_i32 = arith.constant 0 : i32
    %0 = arith.cmpi eq, %arg2, %c0_i32 : i32
    %1 = arith.extui %0 : i1 to i32
    %c0_i32_0 = arith.constant 0 : i32
    %2 = arith.cmpi ne, %1, %c0_i32_0 : i32
    scf.if %2 {
      %cst_10 = arith.constant 0.000000e+00 : f32
      %12 = vector.broadcast %cst_10 : f32 to vector<16x512xf32>
      %c0_11 = arith.constant 0 : index
      %c0_12 = arith.constant 0 : index
      %13 = vector.load %arg7[%c0_11, %c0_12] : memref<16x512xf32, #tpu.memory_space<vmem>>, vector<16x512xf32>
      tpu.vector_store %arg7[%c0_11, %c0_12], %12 {strides = array<i32>} : memref<16x512xf32, #tpu.memory_space<vmem>>, vector<16x512xf32>,
    } else {
    }
    %c0 = arith.constant 0 : index
    %c0_1 = arith.constant 0 : index
    %3 = vector.load %arg7[%c0, %c0_1] : memref<16x512xf32, #tpu.memory_space<vmem>>, vector<16x512xf32>
    %c0_2 = arith.constant 0 : index
    %c0_3 = arith.constant 0 : index
    %4 = vector.load %arg3[%c0_2, %c0_3] : memref<16x256xbf16, #tpu.memory_space<vmem>>, vector<16x256xbf16>
    %c0_4 = arith.constant 0 : index
    %c0_5 = arith.constant 0 : index
    %5 = vector.load %arg4[%c0_4, %c0_5] : memref<256x512xbf16, #tpu.memory_space<vmem>>, vector<256x512xbf16>
    %cst = arith.constant dense<0.000000e+00> : vector<16x512xf32>
    %6 = tpu.matmul %4, %5, %cst {dimension_numbers = #tpu.dot_dimension_numbers<[1], [0], [0], [1], [0, 0, 1, 1], [], []>} : vector<16x256xbf16>, vector<256x512xbf16>, vector<16x512xf32> -> vector<16x512xf32>
    %7 = arith.addf %3, %6 : vector<16x512xf32>
    %c0_6 = arith.constant 0 : index
    %c0_7 = arith.constant 0 : index
    %8 = vector.load %arg7[%c0_6, %c0_7] : memref<16x512xf32, #tpu.memory_space<vmem>>, vector<16x512xf32>
    tpu.vector_store %arg7[%c0_6, %c0_7], %7 {strides = array<i32>} : memref<16x512xf32, #tpu.memory_space<vmem>>, vector<16x512xf32>,
    %c0_i32_8 = arith.constant 0 : i32
    %9 = arith.cmpi eq, %arg2, %c0_i32_8 : i32
    %10 = arith.extui %9 : i1 to i32
    %c0_i32_9 = arith.constant 0 : i32
    %11 = arith.cmpi ne, %10, %c0_i32_9 : i32
    scf.if %11 {
      %c0_10 = arith.constant 0 : index
      %c0_11 = arith.constant 0 : index
      %12 = vector.load %arg7[%c0_10, %c0_11] : memref<16x512xf32, #tpu.memory_space<vmem>>, vector<16x512xf32>
      %c0_12 = arith.constant 0 : index
      %c0_13 = arith.constant 0 : index
      %13 = vector.load %arg5[%c0_12, %c0_13] : memref<1x512xf32, #tpu.memory_space<vmem>>, vector<1x512xf32>
      %14 = vector.broadcast %13 : vector<1x512xf32> to vector<16x512xf32>
      %15 = arith.addf %12, %14 : vector<16x512xf32>
      %16 = arith.truncf %15 : vector<16x512xf32> to vector<16x512xbf16>
      %c0_14 = arith.constant 0 : index
      %c0_15 = arith.constant 0 : index
      %17 = vector.load %arg6[%c0_14, %c0_15] : memref<16x512xbf16, #tpu.memory_space<vmem>>, vector<16x512xbf16>
      tpu.vector_store %arg6[%c0_14, %c0_15], %16 {strides = array<i32>} : memref<16x512xbf16, #tpu.memory_space<vmem>>, vector<16x512xbf16>,
    } else {
    }
    return
  }
  func.func @transform_0(%arg0: i32, %arg1: i32, %arg2: i32) -> (i32, i32) {
    %c0_i32 = arith.constant 0 : i32
    return %arg0, %arg2 : i32, i32
  }
  func.func @transform_1(%arg0: i32, %arg1: i32, %arg2: i32) -> (i32, i32) {
    %c0_i32 = arith.constant 0 : i32
    return %arg2, %arg1 : i32, i32
  }
  func.func @transform_2(%arg0: i32, %arg1: i32, %arg2: i32) -> (i32, i32) {
    %c0_i32 = arith.constant 0 : i32
    %c0_i32_0 = arith.constant 0 : i32
    return %c0_i32, %arg1 : i32, i32
  }
  func.func @transform_3(%arg0: i32, %arg1: i32, %arg2: i32) -> (i32, i32) {
    %c0_i32 = arith.constant 0 : i32
    return %arg0, %arg1 : i32, i32
  }
}

module attributes {stable_mosaic.version = 11 : i64} {
  func.func @_head_kernel(%arg0: memref<2x4x512xf32, #tpu.memory_space<vmem>>, %arg1: memref<512x10xf32, #tpu.memory_space<vmem>>, %arg2: memref<1x10xf32, #tpu.memory_space<vmem>>, %arg3: memref<2x10xf32, #tpu.memory_space<vmem>>) attributes {dimension_semantics = [], scalar_prefetch = 0 : i64, scratch_operands = 0 : i64, tpu.core_type = #tpu.core_type<tc>} {
    %c0 = arith.constant 0 : index
    %c0_0 = arith.constant 0 : index
    %c0_1 = arith.constant 0 : index
    %0 = vector.load %arg0[%c0, %c0_0, %c0_1] : memref<2x4x512xf32, #tpu.memory_space<vmem>>, vector<2x4x512xf32>
    %cst = arith.constant dense<0.000000e+00> : vector<2x512xf32>
    %1 = vector.multi_reduction <add>, %0, %cst [1] : vector<2x4x512xf32> to vector<2x512xf32>
    %cst_2 = arith.constant 2.500000e-01 : f32
    %2 = vector.broadcast %cst_2 : f32 to vector<2x512xf32>
    %3 = arith.mulf %1, %2 : vector<2x512xf32>
    %c0_3 = arith.constant 0 : index
    %c0_4 = arith.constant 0 : index
    %4 = vector.load %arg1[%c0_3, %c0_4] : memref<512x10xf32, #tpu.memory_space<vmem>>, vector<512x10xf32>
    %cst_5 = arith.constant dense<0.000000e+00> : vector<2x10xf32>
    %5 = tpu.matmul %3, %4, %cst_5 {dimension_numbers = #tpu.dot_dimension_numbers<[1], [0], [0], [1], [0, 0, 1, 1], [], []>} : vector<2x512xf32>, vector<512x10xf32>, vector<2x10xf32> -> vector<2x10xf32>
    %c0_6 = arith.constant 0 : index
    %c0_7 = arith.constant 0 : index
    %6 = vector.load %arg2[%c0_6, %c0_7] : memref<1x10xf32, #tpu.memory_space<vmem>>, vector<1x10xf32>
    %7 = vector.broadcast %6 : vector<1x10xf32> to vector<2x10xf32>
    %8 = arith.addf %5, %7 : vector<2x10xf32>
    %c0_8 = arith.constant 0 : index
    %c0_9 = arith.constant 0 : index
    %9 = vector.load %arg3[%c0_8, %c0_9] : memref<2x10xf32, #tpu.memory_space<vmem>>, vector<2x10xf32>
    tpu.vector_store %arg3[%c0_8, %c0_9], %8 {strides = array<i32>} : memref<2x10xf32, #tpu.memory_space<vmem>>, vector<2x10xf32>,
    return
  }
}

</mosaic_0001>

<bundles_post_ra>
// kernel: _lambda_.13
= control target key start
LH: loop header
LB: loop body
LE: loop exit
PB: predicated region body
PF: predicated region fallthrough
CT: control target
= control target key end

     0   :  { %8 = vsyncpa [#allocation4], 0  ;;  %s1780_s0 = inlined_call_operand.vmem [shape: bf16[512,128], index: 0, kind: input, shape index: {}]   ;;  %s1781_s1 = inlined_call_operand.hbm [shape: bf16[128,128], index: 1, kind: input, shape index: {}]   ;;  %s1782_s2 = inlined_call_operand.hbm [shape: f32[1,128], index: 2, kind: input, shape index: {}]   ;;  %s1783_s3 = inlined_call_operand.vmem [shape: bf16[512,128], index: 3, kind: output, shape index: {}]  }
   0x1   :  { %9 = vsyncpa [#allocation6], 0  ;;  %s1590_s12 = smov 0   ;;  %s1592_s13 = smov 0  }
   0x2   :  { %s1594_s14 = smov 0  }
   0x3 LB: > { %s1120_s15 = sadd.s32 4294967295, %s1564_s14   ;;  %s34_s16 = sadd.s32 1, %s1560_s13  ;;  %s1564_s14 = sphi %s1594_s14, %s15_s14   ;;  %s1560_s13 = sphi %s1592_s13, %s1793_s13   ;;  %s1556_s12 = sphi %s1590_s12, %s1792_s12  }
   0x4   : > { %p36_p0 = scmp.ge.s32.totalorder %s34_s16, 2  ;;  %p1122_p1 = scmp.ge.s32.totalorder %s1564_s14, 1 }
   0x5   : > { %p149_p2 = scmp.lt.s32.totalorder %s1564_s14, 3  ;;  %p1615_p4 = scmp.eq.s32.totalorder %s1120_s15, 0 }
   0x6   : > { %s1795_s16 = smov (%p36_p0, %s34_s16), 0  ;;  %s1566_s19 = smov [#allocation3]  }
   0x7   : > { %p1611_p3 = pnand %p1122_p1, %p149_p2  ;;  %s165_s20 = sshll.u32 %s1566_s19, 4  ;;  %s166_s20 = int_to_ptr.vmem [resolvable:$true] %s165_s20 }
   0x8   : > { %s1788_s18 = scalar_select %p1615_p4, 1, 0 }
   0x9   : > { %s1787_s17 = scalar_select %p1611_p3, 1, 0 }
   0xa   : > { %p1415_p5 = pneg %p1611_p3  ;;  %s1567_s22 = smov [#allocation5]  }
   0xb   : > { %s181_s23 = sshll.u32 %s1567_s22, 4  ;;  %s1478_s26 = scalar_lea.hbm %s1781_s1, 1024  ;;  %s1627_s23 = int_to_ptr.vmem [resolvable:$true] %s181_s23 }
   0xc   : > { %p1623_p6 = pnand %p1615_p4, %p1415_p5  ;;  %p1479_p7 = scmp.ne.s32.totalorder %s1781_s1, %s1478_s26 }
   0xd   : > { %p1485_p11 = scmp.lt.u32.totalorder %s1478_s26, %s1781_s1 }
   0xe   : > { %p1480_p8 = pneg %p1623_p6 }
  0x10   : > { %p1481_p9 = pnand %p1480_p8, %p1479_p7 }
  0x12   : > { %p1482_p10 = pneg %p1481_p9 }
  0x14   : > { %p1487_p12 = pnand %p1485_p11, %p1482_p10 }
  0x16   : > { %1490 = shalt.err (!%p1487_p12)
}
  0x17   : > { %s1491_s4 = scalar_lea.vmem %s166_s20, 1024  ;;  %p1499_p2 = scmp.lt.s32.totalorder %s166_s20, %s166_s20 }
  0x18   : > { %p1492_p13 = scmp.ne.s32.totalorder %s166_s20, %s1491_s4  ;;  %p1500_p5 = scmp.lt.s32.totalorder %s1491_s4, %s1491_s4 }
  0x1a   : > { %p1494_p0 = pnand %p1492_p13, %p1480_p8  ;;  %p1501_p4 = por %p1500_p5, %p1499_p2 }
  0x1c   : > { %p1495_p1 = pneg %p1494_p0 }
  0x1e   : > { %p1502_p3 = pnand %p1501_p4, %p1495_p1 }
  0x20   : > { %1505 = shalt.err (!%p1502_p3)
}
  0x21   : > { %s1568_s5 = smov 64   ;;  %s1569_s6 = smov 4  }
  0x22   : > { %1418 = dma.hbm_to_vmem [thread:$0]  (!%p1623_p6), %s1781_s1, 1024, %s166_s20, [#allocation4], %s1568_s5, %s1568_s5, %s1569_s6  }
  0x23   : > { %s1506_s11 = scalar_lea.hbm %s1782_s2, 16 }
  0x24   : > { %p1507_p7 = scmp.ne.s32.totalorder %s1782_s2, %s1506_s11  ;;  %p1513_p9 = scmp.lt.u32.totalorder %s1506_s11, %s1782_s2 }
  0x26   : > { %p1509_p3 = pnand %p1507_p7, %p1480_p8 }
  0x28   : > { %p1510_p4 = pneg %p1509_p3 }
  0x2a   : > { %p1515_p10 = pnand %p1513_p9, %p1510_p4 }
  0x2c   : > { %1518 = shalt.err (!%p1515_p10)
}
  0x2d   : > { %s1519_s20 = scalar_lea.vmem %s1627_s23, 16  ;;  %s1526_s25 = scalar_lea.vmem %s1627_s23, 32 }
  0x2e   : > { %p1520_p11 = scmp.ne.s32.totalorder %s1627_s23, %s1519_s20  ;;  %p1527_p0 = scmp.lt.s32.totalorder %s1627_s23, %s1627_s23 }
  0x2f   : > { %p1528_p1 = scmp.lt.s32.totalorder %s1526_s25, %s1519_s20 }
  0x30   : > { %p1522_p12 = pnand %p1520_p11, %p1480_p8 }
  0x31   : > { %p1529_p2 = por %p1528_p1, %p1527_p0 }
  0x32   : > { %p1523_p13 = pneg %p1522_p12 }
  0x34   : > { %p1530_p5 = pnand %p1529_p2, %p1523_p13 }
  0x36   : > { %1533 = shalt.err (!%p1530_p5)
}
  0x37   : > { %1421 = dma.hbm_to_vmem [thread:$0]  (!%p1623_p6), %s1782_s2, 16, %s1627_s23, [#allocation6]  }
  0x38   : > { %p1790_p7 = scmp.ne.s32.totalorder %s1787_s17, 0 }
  0x39   : > { %p1791_p8 = scmp.ne.s32.totalorder (!%p1790_p7), %s1788_s18, 0 }
  0x3a   : > { %206 = sbr.rel (%p1790_p7) target bundleno = 347 (0x15b), region = 32 }
  0x41   : > { %1547 = dma.done.wait (%p1791_p8), [#allocation4], 1024  }
  0x42   : > { %1549 = vsyncadd (%p1791_p8), [#allocation4], 4294966272 }
  0x43   : > { %1551 = dma.done.wait (%p1791_p8), [#allocation6], 16  }
  0x44   : > { %1553 = vsyncadd (%p1791_p8), [#allocation6], 4294967280  ;;  %s1129_s21 = sshll.u32 %s1556_s12, 5  ;;  %v1454_v0 = vld [vmem:[#allocation3] sm:$0xff]   ;;  %v1455_v1 = vld [vmem:[#allocation3 + $0x8] sm:$0xff]  }
  0x45   : > { %p241_p3 = scmp.lt.s32.totalorder %s1129_s21, 63  ;;  %1343 = vmatprep.subr.bf16.mxu0 %v1454_v0  ;;  %1391 = vmatprep.subr.bf16.mxu1 %v1454_v0  ;;  %v1456_v2 = vld [vmem:[#allocation3 + $0x10] sm:$0xff]   ;;  %v1457_v3 = vld [vmem:[#allocation3 + $0x18] sm:$0xff]   ;;  %v1458_v6 = vld [vmem:[#allocation3 + $0x20] sm:$0xff]  }
  0x46   : > { %1344 = vmatpush3.bf16.msra.mxu0 %v1454_v0  ;;  %1399 = vmatpush3.bf16.msra.mxu1 %v1454_v0  ;;  %v1459_v7 = vld [vmem:[#allocation3 + $0x28] sm:$0xff]   ;;  %v1460_v8 = vld [vmem:[#allocation3 + $0x30] sm:$0xff]   ;;  %v1461_v9 = vld [vmem:[#allocation3 + $0x38] sm:$0xff]  }
  0x47   : > { %s1797_s21 = smov (!%p241_p3, %s1129_s21), 63  ;;  %1345 = vmatprep.subr.bf16.mxu0 %v1455_v1  ;;  %1392 = vmatprep.subr.bf16.mxu1 %v1455_v1  ;;  %v1714_v24 = vld [vmem:[#allocation5] ss:$0 sm:$0xff] }
  0x48   : > { %s1130_s17 = sshll.u32 %s1797_s21, 2 }
  0x49   : > { %s1696_s12 = scalar_lea.vmem %s1780_s0, %s1130_s17  ;;  %s1729_s30 = scalar_lea.vmem %s1783_s3, %s1130_s17 }
  0x4a   : > { %1346 = vmatpush3.bf16.msra.mxu0 %v1455_v1  ;;  %1400 = vmatpush3.bf16.msra.mxu1 %v1455_v1  ;;  %v1462_v4 = vld [vmem:[%s1696_s12] sm:$0xff]   ;;  %v1464_v10 = vld [vmem:[%s1696_s12 + $0x8] sm:$0xff]   ;;  %v1466_v12 = vld [vmem:[%s1696_s12 + $0x10] sm:$0xff]  }
  0x4b   : > { %1347 = vmatprep.subr.bf16.mxu0 %v1456_v2  ;;  %1393 = vmatprep.subr.bf16.mxu1 %v1456_v2  ;;  %v1463_v5 = vld [vmem:[%s1696_s12 + $0x40] sm:$0xff]   ;;  %v1465_v11 = vld [vmem:[%s1696_s12 + $0x48] sm:$0xff]   ;;  %v1467_v13 = vld [vmem:[%s1696_s12 + $0x50] sm:$0xff]  }
  0x4c   : > { %1359 = vmatprep.mubr.bf16.mxu0 %v1462_v4  ;;  %1375 = vmatprep.mubr.bf16.mxu1 %v1463_v5  ;;  %v1468_v14 = vld [vmem:[%s1696_s12 + $0x18] sm:$0xff]   ;;  %v1470_v16 = vld [vmem:[%s1696_s12 + $0x20] sm:$0xff]   ;;  %v1472_v18 = vld [vmem:[%s1696_s12 + $0x28] sm:$0xff]  }
  0x4d   : > { %v1469_v15 = vld [vmem:[%s1696_s12 + $0x58] sm:$0xff]   ;;  %v1471_v17 = vld [vmem:[%s1696_s12 + $0x60] sm:$0xff]   ;;  %v1473_v19 = vld [vmem:[%s1696_s12 + $0x68] sm:$0xff]  }
  0x4e   : > { %1348 = vmatpush3.bf16.msra.mxu0 %v1456_v2  ;;  %1401 = vmatpush3.bf16.msra.mxu1 %v1456_v2  ;;  %v1474_v20 = vld [vmem:[%s1696_s12 + $0x30] sm:$0xff]   ;;  %v1476_v22 = vld [vmem:[%s1696_s12 + $0x38] sm:$0xff]  }
  0x4f   : > { %1349 = vmatprep.subr.bf16.mxu0 %v1457_v3  ;;  %1394 = vmatprep.subr.bf16.mxu1 %v1457_v3  ;;  %v1475_v21 = vld [vmem:[%s1696_s12 + $0x70] sm:$0xff]   ;;  %v1477_v23 = vld [vmem:[%s1696_s12 + $0x78] sm:$0xff]  }
  0x52   : > { %1350 = vmatpush3.bf16.msra.mxu0 %v1457_v3  ;;  %1402 = vmatpush3.bf16.msra.mxu1 %v1457_v3 }
  0x53   : > { %1351 = vmatprep.subr.bf16.mxu0 %v1458_v6  ;;  %1395 = vmatprep.subr.bf16.mxu1 %v1458_v6 }
  0x56   : > { %1352 = vmatpush3.bf16.msra.mxu0 %v1458_v6  ;;  %1403 = vmatpush3.bf16.msra.mxu1 %v1458_v6 }
  0x57   : > { %1353 = vmatprep.subr.bf16.mxu0 %v1459_v7  ;;  %1396 = vmatprep.subr.bf16.mxu1 %v1459_v7 }
  0x5a   : > { %1354 = vmatpush3.bf16.msra.mxu0 %v1459_v7  ;;  %1404 = vmatpush3.bf16.msra.mxu1 %v1459_v7 }
  0x5b   : > { %1355 = vmatprep.subr.bf16.mxu0 %v1460_v8  ;;  %1397 = vmatprep.subr.bf16.mxu1 %v1460_v8 }
  0x5e   : > { %1356 = vmatpush3.bf16.msra.mxu0 %v1460_v8  ;;  %1405 = vmatpush3.bf16.msra.mxu1 %v1460_v8 }
  0x5f   : > { %1357 = vmatprep.subr.bf16.mxu0 %v1461_v9  ;;  %1398 = vmatprep.subr.bf16.mxu1 %v1461_v9 }
  0x62   : > { %1358 = vmatpush3.bf16.msra.mxu0 %v1461_v9  ;;  %1406 = vmatpush3.bf16.msra.mxu1 %v1461_v9 }
  0x65   : > { %1360 = vmatmul.mubr.bf16.vlgmr.msra.gmra.mrb[0].mxu0 %v1464_v10  ;;  %1376 = vmatmul.mubr.bf16.vlgmr.msra.gmra.mrb[0].mxu1 %v1465_v11 }
  0x66   : > { %1363 = vmatprep.mubr.bf16.mxu0 %v1466_v12  ;;  %1379 = vmatprep.mubr.bf16.mxu1 %v1467_v13 }
  0x6d   : > { %1364 = vmatmul.mubr.bf16.gmra.mrb[4].mxu0 %v1468_v14  ;;  %1380 = vmatmul.mubr.bf16.gmra.mrb[4].mxu1 %v1469_v15 }
  0x6e   : > { %1367 = vmatprep.mubr.bf16.mxu0 %v1470_v16  ;;  %1383 = vmatprep.mubr.bf16.mxu1 %v1471_v17 }
  0x75   : > { %1368 = vmatmul.mubr.bf16.gmra.mrb[8].mxu0 %v1472_v18  ;;  %1384 = vmatmul.mubr.bf16.gmra.mrb[8].mxu1 %v1473_v19 }
  0x76   : > { %1371 = vmatprep.mubr.bf16.mxu0 %v1474_v20  ;;  %1387 = vmatprep.mubr.bf16.mxu1 %v1475_v21 }
  0x7d   : > { %1372 = vmatmul.mubr.bf16.gmra.mrb[12].mxu0 %v1476_v22  ;;  %1388 = vmatmul.mubr.bf16.gmra.mrb[12].mxu1 %v1477_v23 }
 0x138   : > { %v1361_v25 = vpop.f32.mrb[0].mxu0  ;;  %v1377_v26 = vpop.f32.mrb[0].mxu1 }
 0x139   : > { %v789_v27 = vadd.f32 %v1361_v25, %v1714_v24  ;;  %v805_v28 = vadd.f32 %v1377_v26, %v1714_v24  ;;  %v554_v29 = vpop.f32.mrb[1].mxu0  ;;  %v618_v30 = vpop.f32.mrb[1].mxu1 }
 0x13a   : > { %v787_v31 = vadd.f32 %v1714_v24, %v554_v29  ;;  %v803_v32 = vadd.f32 %v1714_v24, %v618_v30  ;;  %v1362_v33 = vpop.f32.mrb[2].mxu0  ;;  %v1378_v34 = vpop.f32.mrb[2].mxu1 }
 0x13b   : > { %v790_v35 = vadd.f32 %v1362_v33, %v1714_v24  ;;  %v806_v36 = vadd.f32 %v1378_v34, %v1714_v24  ;;  %v557_v37 = vpop.f32.mrb[3].mxu0  ;;  %v621_v38 = vpop.f32.mrb[3].mxu1  ;;  %v821_v41 = vmax.f32 %v789_v27, 0.0  ;;  %v837_v42 = vmax.f32 %v805_v28, 0.0 }
 0x13c   : > { %v788_v39 = vadd.f32 %v1714_v24, %v557_v37  ;;  %v804_v40 = vadd.f32 %v1714_v24, %v621_v38  ;;  %v819_v45 = vmax.f32 %v787_v31, 0.0  ;;  %v835_v46 = vmax.f32 %v803_v32, 0.0 }
 0x13d   : > { %v822_v43 = vmax.f32 %v790_v35, 0.0  ;;  %v838_v44 = vmax.f32 %v806_v36, 0.0 }
 0x13e   : > { %v820_v47 = vmax.f32 %v788_v39, 0.0  ;;  %v836_v48 = vmax.f32 %v804_v40, 0.0 }
 0x13f   : > { %v1232_v49 = vpack.c.bf16 %v822_v43, %v821_v41  ;;  %v1272_v50 = vpack.c.bf16 %v838_v44, %v837_v42 }
 0x140   : > { %v1227_v51 = vpack.c.bf16 %v820_v47, %v819_v45  ;;  %v1267_v52 = vpack.c.bf16 %v836_v48, %v835_v46  ;;  %v1365_v53 = vpop.f32.mrb[4].mxu0  ;;  %v1381_v54 = vpop.f32.mrb[4].mxu1 }
 0x141   : > { %1304 = vst [vmem:[%s1729_s30 + $0x8] sm:$0xff] %v1232_v49   ;;  %1312 = vst [vmem:[%s1729_s30 + $0x48] sm:$0xff] %v1272_v50   ;;  %v793_v55 = vadd.f32 %v1365_v53, %v1714_v24  ;;  %v809_v56 = vadd.f32 %v1381_v54, %v1714_v24  ;;  %v570_v57 = vpop.f32.mrb[5].mxu0  ;;  %v634_v58 = vpop.f32.mrb[5].mxu1 }
 0x142   : > { %1228 = vst [vmem:[%s1729_s30] sm:$0xff] %v1227_v51   ;;  %1311 = vst [vmem:[%s1729_s30 + $0x40] sm:$0xff] %v1267_v52   ;;  %v791_v59 = vadd.f32 %v1714_v24, %v570_v57  ;;  %v807_v60 = vadd.f32 %v1714_v24, %v634_v58  ;;  %v1366_v61 = vpop.f32.mrb[6].mxu0  ;;  %v1382_v62 = vpop.f32.mrb[6].mxu1 }
 0x143   : > { %v794_v63 = vadd.f32 %v1366_v61, %v1714_v24  ;;  %v810_v0 = vadd.f32 %v1382_v62, %v1714_v24  ;;  %v573_v1 = vpop.f32.mrb[7].mxu0  ;;  %v637_v2 = vpop.f32.mrb[7].mxu1  ;;  %v825_v5 = vmax.f32 %v793_v55, 0.0  ;;  %v841_v6 = vmax.f32 %v809_v56, 0.0 }
 0x144   : > { %v792_v3 = vadd.f32 %v1714_v24, %v573_v1  ;;  %v808_v4 = vadd.f32 %v1714_v24, %v637_v2  ;;  %v823_v9 = vmax.f32 %v791_v59, 0.0  ;;  %v839_v10 = vmax.f32 %v807_v60, 0.0 }
 0x145   : > { %v826_v7 = vmax.f32 %v794_v63, 0.0  ;;  %v842_v8 = vmax.f32 %v810_v0, 0.0 }
 0x146   : > { %v824_v11 = vmax.f32 %v792_v3, 0.0  ;;  %v840_v12 = vmax.f32 %v808_v4, 0.0 }
 0x147   : > { %v1242_v13 = vpack.c.bf16 %v826_v7, %v825_v5  ;;  %v1282_v14 = vpack.c.bf16 %v842_v8, %v841_v6 }
 0x148   : > { %v1237_v15 = vpack.c.bf16 %v824_v11, %v823_v9  ;;  %v1277_v16 = vpack.c.bf16 %v840_v12, %v839_v10  ;;  %v1369_v17 = vpop.f32.mrb[8].mxu0  ;;  %v1385_v18 = vpop.f32.mrb[8].mxu1 }
 0x149   : > { %1306 = vst [vmem:[%s1729_s30 + $0x18] sm:$0xff] %v1242_v13   ;;  %1314 = vst [vmem:[%s1729_s30 + $0x58] sm:$0xff] %v1282_v14   ;;  %v797_v19 = vadd.f32 %v1369_v17, %v1714_v24  ;;  %v813_v20 = vadd.f32 %v1385_v18, %v1714_v24  ;;  %v586_v21 = vpop.f32.mrb[9].mxu0  ;;  %v650_v22 = vpop.f32.mrb[9].mxu1 }
 0x14a   : > { %1305 = vst [vmem:[%s1729_s30 + $0x10] sm:$0xff] %v1237_v15   ;;  %1313 = vst [vmem:[%s1729_s30 + $0x50] sm:$0xff] %v1277_v16   ;;  %v795_v23 = vadd.f32 %v1714_v24, %v586_v21  ;;  %v811_v25 = vadd.f32 %v1714_v24, %v650_v22  ;;  %v1370_v26 = vpop.f32.mrb[10].mxu0  ;;  %v1386_v27 = vpop.f32.mrb[10].mxu1 }
 0x14b   : > { %v798_v28 = vadd.f32 %v1370_v26, %v1714_v24  ;;  %v814_v29 = vadd.f32 %v1386_v27, %v1714_v24  ;;  %v589_v30 = vpop.f32.mrb[11].mxu0  ;;  %v653_v31 = vpop.f32.mrb[11].mxu1  ;;  %v829_v34 = vmax.f32 %v797_v19, 0.0  ;;  %v845_v35 = vmax.f32 %v813_v20, 0.0 }
 0x14c   : > { %v796_v32 = vadd.f32 %v1714_v24, %v589_v30  ;;  %v812_v33 = vadd.f32 %v1714_v24, %v653_v31  ;;  %v827_v38 = vmax.f32 %v795_v23, 0.0  ;;  %v843_v39 = vmax.f32 %v811_v25, 0.0 }
 0x14d   : > { %v830_v36 = vmax.f32 %v798_v28, 0.0  ;;  %v846_v37 = vmax.f32 %v814_v29, 0.0 }
 0x14e   : > { %v828_v40 = vmax.f32 %v796_v32, 0.0  ;;  %v844_v41 = vmax.f32 %v812_v33, 0.0 }
 0x14f   : > { %v1252_v42 = vpack.c.bf16 %v830_v36, %v829_v34  ;;  %v1292_v43 = vpack.c.bf16 %v846_v37, %v845_v35 }
 0x150   : > { %v1247_v44 = vpack.c.bf16 %v828_v40, %v827_v38  ;;  %v1287_v45 = vpack.c.bf16 %v844_v41, %v843_v39  ;;  %v1373_v46 = vpop.f32.mrb[12].mxu0  ;;  %v1389_v47 = vpop.f32.mrb[12].mxu1 }
 0x151   : > { %1308 = vst [vmem:[%s1729_s30 + $0x28] sm:$0xff] %v1252_v42   ;;  %1316 = vst [vmem:[%s1729_s30 + $0x68] sm:$0xff] %v1292_v43   ;;  %v801_v48 = vadd.f32 %v1373_v46, %v1714_v24  ;;  %v817_v49 = vadd.f32 %v1389_v47, %v1714_v24  ;;  %v602_v50 = vpop.f32.mrb[13].mxu0  ;;  %v666_v51 = vpop.f32.mrb[13].mxu1 }
 0x152   : > { %1307 = vst [vmem:[%s1729_s30 + $0x20] sm:$0xff] %v1247_v44   ;;  %1315 = vst [vmem:[%s1729_s30 + $0x60] sm:$0xff] %v1287_v45   ;;  %v799_v52 = vadd.f32 %v1714_v24, %v602_v50  ;;  %v815_v53 = vadd.f32 %v1714_v24, %v666_v51  ;;  %v1374_v54 = vpop.f32.mrb[14].mxu0  ;;  %v1390_v55 = vpop.f32.mrb[14].mxu1 }
 0x153   : > { %v802_v56 = vadd.f32 %v1374_v54, %v1714_v24  ;;  %v818_v57 = vadd.f32 %v1390_v55, %v1714_v24  ;;  %v605_v58 = vpop.f32.mrb[15].mxu0  ;;  %v669_v59 = vpop.f32.mrb[15].mxu1  ;;  %v833_v62 = vmax.f32 %v801_v48, 0.0  ;;  %v849_v63 = vmax.f32 %v817_v49, 0.0 }
 0x154   : > { %v800_v60 = vadd.f32 %v1714_v24, %v605_v58  ;;  %v816_v61 = vadd.f32 %v1714_v24, %v669_v59  ;;  %v831_v2 = vmax.f32 %v799_v52, 0.0  ;;  %v847_v3 = vmax.f32 %v815_v53, 0.0 }
 0x155   : > { %v834_v0 = vmax.f32 %v802_v56, 0.0  ;;  %v850_v1 = vmax.f32 %v818_v57, 0.0 }
 0x156   : > { %v832_v4 = vmax.f32 %v800_v60, 0.0  ;;  %v848_v5 = vmax.f32 %v816_v61, 0.0 }
 0x157   : > { %v1262_v6 = vpack.c.bf16 %v834_v0, %v833_v62  ;;  %v1302_v7 = vpack.c.bf16 %v850_v1, %v849_v63 }
 0x158   : > { %v1257_v8 = vpack.c.bf16 %v832_v4, %v831_v2  ;;  %v1297_v9 = vpack.c.bf16 %v848_v5, %v847_v3 }
 0x159   : > { %1310 = vst [vmem:[%s1729_s30 + $0x38] sm:$0xff] %v1262_v6   ;;  %1318 = vst [vmem:[%s1729_s30 + $0x78] sm:$0xff] %v1302_v7  }
 0x15a   : > { %1309 = vst [vmem:[%s1729_s30 + $0x30] sm:$0xff] %v1257_v8   ;;  %1317 = vst [vmem:[%s1729_s30 + $0x70] sm:$0xff] %v1297_v9  }
 0x15b PF: > { %s15_s14 = sadd.s32 1, %s1564_s14   ;;  %s1792_s12 = smov %s1560_s13 }
 0x15c   : > { %p12_p6 = scmp.ge.s32.totalorder %s15_s14, 4   ;;  %s1793_s13 = smov %s1795_s16 }
 0x15e   :  { %14 = sbr.rel (!%p12_p6) target bundleno = 3 (0x3), region = 81 }
 0x165   :  { %1039 = vsyncpa [#allocation4], 1 }
 0x166   :  { %1041 = vsyncpa [#allocation4 + $0x1], 1 }
 0x167   :  { %1042 = vsyncpa [#allocation6], 1 }

// kernel: _lambda_.14
= control target key start
LH: loop header
LB: loop body
LE: loop exit
PB: predicated region body
PF: predicated region fallthrough
CT: control target
= control target key end

     0   :  { %s2921_s12 = smov 0   ;;  %s2923_s13 = smov 0   ;;  %s3329_s0 = inlined_call_operand.vmem [shape: bf16[512,640], index: 0, kind: input, shape index: {}]   ;;  %s3330_s1 = inlined_call_operand.vmem [shape: bf16[640,128], index: 1, kind: input, shape index: {}]   ;;  %s3331_s2 = inlined_call_operand.vmem [shape: f32[1,128], index: 2, kind: input, shape index: {}]   ;;  %s3332_s3 = inlined_call_operand.vmem [shape: bf16[512,128], index: 3, kind: output, shape index: {}]  }
   0x1   :  { %s2925_s14 = smov 0  }
   0x2 LB: > { %s32_s15 = sadd.s32 1, %s2895_s13  ;;  %p2101_p0 = scmp.ge.s32.totalorder %s2899_s14, 1  ;;  %s2899_s14 = sphi %s2925_s14, %s13_s14   ;;  %s2895_s13 = sphi %s2923_s13, %s3334_s13   ;;  %s2891_s12 = sphi %s2921_s12, %s3333_s12  }
   0x3   : > { %p34_p1 = scmp.ge.s32.totalorder %s32_s15, 2  ;;  %p191_p2 = scmp.lt.s32.totalorder %s2899_s14, 3 }
   0x5   : > { %s3336_s15 = smov (%p34_p1, %s32_s15), 0  ;;  %p192_p3 = pnand %p2101_p0, %p191_p2 }
   0x6   : > { %v2725_v0 = vld [vmem:[%s3330_s1 + $0x40] sm:$0xff] (!%p192_p3)   ;;  %s2102_s18 = sshll.u32 (!%p192_p3), %s2891_s12, 5  ;;  %v2727_v2 = vld [vmem:[%s3330_s1 + $0x48] sm:$0xff] (!%p192_p3)   ;;  %v2729_v4 = vld [vmem:[%s3330_s1 + $0x50] sm:$0xff] (!%p192_p3)  }
   0x7   : > { %195 = sbr.rel (%p192_p3) target bundleno = 419 (0x1a3), region = 32  ;;  %v2726_v1 = vld [vmem:[%s3330_s1] sm:$0xff] (!%p192_p3)   ;;  %2388 = vmatprep.subr.bf16.mxu0 (!%p192_p3), %v2725_v0  ;;  %2684 = vmatprep.subr.bf16.mxu1 (!%p192_p3), %v2725_v0  ;;  %p236_p4 = scmp.lt.s32.totalorder (!%p192_p3), %s2102_s18, 63  ;;  %v2728_v3 = vld [vmem:[%s3330_s1 + $0x8] sm:$0xff] (!%p192_p3)   ;;  %v2730_v5 = vld [vmem:[%s3330_s1 + $0x10] sm:$0xff] (!%p192_p3)  }
   0x8   : > { %2389 = vmatpush3.bf16.msra.mxu0 (!%p192_p3), %v2726_v1  ;;  %2692 = vmatpush3.bf16.msra.mxu1 (!%p192_p3), %v2726_v1  ;;  %v2731_v6 = vld [vmem:[%s3330_s1 + $0x58] sm:$0xff] (!%p192_p3)   ;;  %v2733_v8 = vld [vmem:[%s3330_s1 + $0x60] sm:$0xff] (!%p192_p3)   ;;  %v2735_v10 = vld [vmem:[%s3330_s1 + $0x68] sm:$0xff] (!%p192_p3)  }
   0x9   : > { %2390 = vmatprep.subr.bf16.mxu0 (!%p192_p3), %v2727_v2  ;;  %2685 = vmatprep.subr.bf16.mxu1 (!%p192_p3), %v2727_v2  ;;  %v2732_v7 = vld [vmem:[%s3330_s1 + $0x18] sm:$0xff] (!%p192_p3)   ;;  %v2734_v9 = vld [vmem:[%s3330_s1 + $0x20] sm:$0xff] (!%p192_p3)   ;;  %v2736_v13 = vld [vmem:[%s3330_s1 + $0x28] sm:$0xff] (!%p192_p3)  }
   0xa   : > { %v2737_v14 = vld [vmem:[%s3330_s1 + $0x70] sm:$0xff] (!%p192_p3)   ;;  %v2739_v16 = vld [vmem:[%s3330_s1 + $0x78] sm:$0xff] (!%p192_p3)   ;;  %v2747_v18 = vld [vmem:[%s3330_s1 + $0xc0] sm:$0xff] (!%p192_p3)  }
   0xb   : > { %v2738_v15 = vld [vmem:[%s3330_s1 + $0x30] sm:$0xff] (!%p192_p3)   ;;  %v2740_v17 = vld [vmem:[%s3330_s1 + $0x38] sm:$0xff] (!%p192_p3)   ;;  %v2750_v19 = vld [vmem:[%s3330_s1 + $0x100] sm:$0xff] (!%p192_p3)  }
   0xc   : > { %2391 = vmatpush3.bf16.msra.mxu0 (!%p192_p3), %v2728_v3  ;;  %2693 = vmatpush3.bf16.msra.mxu1 (!%p192_p3), %v2728_v3  ;;  %v2748_v22 = vld [vmem:[%s3330_s1 + $0x80] sm:$0xff] (!%p192_p3)   ;;  %v2749_v23 = vld [vmem:[%s3330_s1 + $0xc8] sm:$0xff] (!%p192_p3)   ;;  %v2758_v29 = vld [vmem:[%s3330_s1 + $0xd0] sm:$0xff] (!%p192_p3)  }
   0xd   : > { %2392 = vmatprep.subr.bf16.mxu0 (!%p192_p3), %v2729_v4  ;;  %2686 = vmatprep.subr.bf16.mxu1 (!%p192_p3), %v2729_v4  ;;  %v2769_v26 = vld [vmem:[%s3330_s1 + $0x108] sm:$0xff] (!%p192_p3)   ;;  %v2759_v31 = vld [vmem:[%s3330_s1 + $0x90] sm:$0xff] (!%p192_p3)   ;;  %v2760_v33 = vld [vmem:[%s3330_s1 + $0xd8] sm:$0xff] (!%p192_p3)  }
   0xe   : > { %s3338_s18 = smov (!%p236_p4, %s2102_s18), 63  ;;  %v2751_v27 = vld [vmem:[%s3330_s1 + $0x88] sm:$0xff]   ;;  %v2761_v35 = vld [vmem:[%s3330_s1 + $0x98] sm:$0xff]   ;;  %v2768_v36 = vld [vmem:[%s3330_s1 + $0xe0] sm:$0xff]  }
   0xf   : > { %s2700_s4 = smul.u32 20, %s3338_s18  ;;  %v2782_v38 = vld [vmem:[%s3330_s1 + $0x110] sm:$0xff]   ;;  %v2770_v40 = vld [vmem:[%s3330_s1 + $0xa0] sm:$0xff]   ;;  %v2771_v41 = vld [vmem:[%s3330_s1 + $0xe8] sm:$0xff]   ;;  %s2105_s8 = sshll.u32 %s3338_s18, 2 }
  0x10   : > { %2393 = vmatpush3.bf16.msra.mxu0 %v2730_v5  ;;  %2694 = vmatpush3.bf16.msra.mxu1 %v2730_v5  ;;  %v2772_v44 = vld [vmem:[%s3330_s1 + $0xa8] sm:$0xff]   ;;  %v2796_v45 = vld [vmem:[%s3330_s1 + $0x118] sm:$0xff]   ;;  %v2779_v48 = vld [vmem:[%s3330_s1 + $0xf0] sm:$0xff]   ;;  %s3234_s12 = scalar_lea.vmem %s3332_s3, %s2105_s8 }
  0x11   : > { %2394 = vmatprep.subr.bf16.mxu0 %v2731_v6  ;;  %2687 = vmatprep.subr.bf16.mxu1 %v2731_v6  ;;  %s2972_s11 = scalar_lea.vmem %s3329_s0, %s2700_s4  ;;  %v2780_v49 = vld [vmem:[%s3330_s1 + $0xb0] sm:$0xff]   ;;  %v2781_v50 = vld [vmem:[%s3330_s1 + $0xf8] sm:$0xff]   ;;  %v2803_v52 = vld [vmem:[%s3330_s1 + $0x120] sm:$0xff]  }
  0x12   : > { %v2743_v11 = vld [vmem:[%s2972_s11 + $0x4] ss:$20 sps:$4 sm:$0xff]   ;;  %v2741_v20 = vld [vmem:[%s2972_s11] ss:$20 sps:$4 sm:$0xff]   ;;  %v2756_v28 = vld [vmem:[%s2972_s11 + $0x28] ss:$20 sps:$4 sm:$0xff]  }
  0x13   : > { %v2746_v12 = vld [vmem:[%s2972_s11 + $0x1e4] ss:$20 sps:$4 sm:$0xff]   ;;  %1200 = vmatprep.mubr.bf16.mxu0 %v2743_v11  ;;  %v2744_v21 = vld [vmem:[%s2972_s11 + $0x1e0] ss:$20 sps:$4 sm:$0xff]   ;;  %v2757_v30 = vld [vmem:[%s2972_s11 + $0x208] ss:$20 sps:$4 sm:$0xff]  }
  0x14   : > { %2395 = vmatpush3.bf16.msra.mxu0 %v2732_v7  ;;  %2695 = vmatpush3.bf16.msra.mxu1 %v2732_v7  ;;  %v2752_v24 = vld [vmem:[%s2972_s11 + $0x2c] ss:$20 sps:$4 sm:$0xff]   ;;  %v2762_v32 = vld [vmem:[%s2972_s11 + $0x54] ss:$20 sps:$4 sm:$0xff]   ;;  %v2766_v37 = vld [vmem:[%s2972_s11 + $0x50] ss:$20 sps:$4 sm:$0xff]  }
  0x15   : > { %2396 = vmatprep.subr.bf16.mxu0 %v2733_v8  ;;  %2688 = vmatprep.subr.bf16.mxu1 %v2733_v8  ;;  %v2754_v25 = vld [vmem:[%s2972_s11 + $0x20c] ss:$20 sps:$4 sm:$0xff]   ;;  %v2764_v34 = vld [vmem:[%s2972_s11 + $0x234] ss:$20 sps:$4 sm:$0xff]   ;;  %v2767_v39 = vld [vmem:[%s2972_s11 + $0x230] ss:$20 sps:$4 sm:$0xff]  }
  0x16   : > { %1296 = vmatprep.mubr.bf16.mxu1 %v2746_v12  ;;  %v2773_v42 = vld [vmem:[%s2972_s11 + $0x7c] ss:$20 sps:$4 sm:$0xff]   ;;  %v2777_v46 = vld [vmem:[%s2972_s11 + $0x78] ss:$20 sps:$4 sm:$0xff]   ;;  %v2789_v56 = vld [vmem:[%s2972_s11 + $0xa0] ss:$20 sps:$4 sm:$0xff]  }
  0x17   : > { %v2775_v43 = vld [vmem:[%s2972_s11 + $0x25c] ss:$20 sps:$4 sm:$0xff]   ;;  %v2778_v47 = vld [vmem:[%s2972_s11 + $0x258] ss:$20 sps:$4 sm:$0xff]   ;;  %v2792_v59 = vld [vmem:[%s2972_s11 + $0x34] ss:$20 sps:$4 sm:$0xff]  }
  0x18   : > { %2397 = vmatpush3.bf16.msra.mxu0 %v2734_v9  ;;  %2696 = vmatpush3.bf16.msra.mxu1 %v2734_v9  ;;  %v2784_v51 = vld [vmem:[%s2972_s11 + $0xa4] ss:$20 sps:$4 sm:$0xff]   ;;  %v2788_v53 = vld [vmem:[%s2972_s11 + $0xc] ss:$20 sps:$4 sm:$0xff]   ;;  %v2786_v55 = vld [vmem:[%s2972_s11 + $0x8] ss:$20 sps:$4 sm:$0xff]  }
  0x19   : > { %2398 = vmatprep.subr.bf16.mxu0 %v2735_v10  ;;  %2689 = vmatprep.subr.bf16.mxu1 %v2735_v10  ;;  %v2783_v54 = vld [vmem:[%s3330_s1 + $0xb8] sm:$0xff]   ;;  %v2816_v57 = vld [vmem:[%s3330_s1 + $0x128] sm:$0xff]   ;;  %v2823_v60 = vld [vmem:[%s3330_s1 + $0x130] sm:$0xff]  }
  0x1a   : > { %v2790_v58 = vld [vmem:[%s2972_s11 + $0xcc] ss:$20 sps:$4 sm:$0xff]   ;;  %v2794_v61 = vld [vmem:[%s2972_s11 + $0xc8] ss:$20 sps:$4 sm:$0xff]   ;;  %v2795_v62 = vld [vmem:[%s2972_s11 + $0x30] ss:$20 sps:$4 sm:$0xff]  }
  0x1b   : > { %v2797_v63 = vld [vmem:[%s2972_s11 + $0xf4] ss:$20 sps:$4 sm:$0xff]   ;;  %v2799_v0 = vld [vmem:[%s2972_s11 + $0x5c] ss:$20 sps:$4 sm:$0xff]   ;;  %v2802_v3 = vld [vmem:[%s2972_s11 + $0x58] ss:$20 sps:$4 sm:$0xff]  }
  0x1c   : > { %2399 = vmatpush3.bf16.msra.mxu0 %v2736_v13  ;;  %2697 = vmatpush3.bf16.msra.mxu1 %v2736_v13  ;;  %v2836_v1 = vld [vmem:[%s3330_s1 + $0x138] sm:$0xff]   ;;  %v2801_v2 = vld [vmem:[%s2972_s11 + $0xf0] ss:$20 sps:$4 sm:$0xff]   ;;  %v2809_v7 = vld [vmem:[%s2972_s11 + $0x80] ss:$20 sps:$4 sm:$0xff]  }
  0x1d   : > { %2400 = vmatprep.subr.bf16.mxu0 %v2737_v14  ;;  %2690 = vmatprep.subr.bf16.mxu1 %v2737_v14  ;;  %v2804_v4 = vld [vmem:[%s2972_s11 + $0x11c] ss:$20 sps:$4 sm:$0xff]   ;;  %v2806_v5 = vld [vmem:[%s2972_s11 + $0x84] ss:$20 sps:$4 sm:$0xff]   ;;  %v2812_v9 = vld [vmem:[%s2972_s11 + $0xac] ss:$20 sps:$4 sm:$0xff]  }
  0x1e   : > { %v2808_v6 = vld [vmem:[%s2972_s11 + $0x118] ss:$20 sps:$4 sm:$0xff]   ;;  %v2814_v10 = vld [vmem:[%s2972_s11 + $0x140] ss:$20 sps:$4 sm:$0xff]   ;;  %v2815_v11 = vld [vmem:[%s2972_s11 + $0xa8] ss:$20 sps:$4 sm:$0xff]  }
  0x1f   : > { %v2810_v8 = vld [vmem:[%s2972_s11 + $0x144] ss:$20 sps:$4 sm:$0xff]   ;;  %v2817_v12 = vld [vmem:[%s2972_s11 + $0x16c] ss:$20 sps:$4 sm:$0xff]   ;;  %v2819_v13 = vld [vmem:[%s2972_s11 + $0xd4] ss:$20 sps:$4 sm:$0xff]  }
  0x20   : > { %2401 = vmatpush3.bf16.msra.mxu0 %v2738_v15  ;;  %2698 = vmatpush3.bf16.msra.mxu1 %v2738_v15  ;;  %v2821_v14 = vld [vmem:[%s2972_s11 + $0x168] ss:$20 sps:$4 sm:$0xff]   ;;  %v2822_v15 = vld [vmem:[%s2972_s11 + $0xd0] ss:$20 sps:$4 sm:$0xff]  }
  0x21   : > { %2402 = vmatprep.subr.bf16.mxu0 %v2739_v16  ;;  %2691 = vmatprep.subr.bf16.mxu1 %v2739_v16  ;;  %v2824_v16 = vld [vmem:[%s2972_s11 + $0x194] ss:$20 sps:$4 sm:$0xff]  }
  0x24   : > { %2403 = vmatpush3.bf16.msra.mxu0 %v2740_v17  ;;  %2699 = vmatpush3.bf16.msra.mxu1 %v2740_v17  ;;  %v2826_v17 = vld [vmem:[%s2972_s11 + $0xfc] ss:$20 sps:$4 sm:$0xff]  }
  0x25   : > { %2500 = vmatprep.subr.bf16.mxu1 %v2747_v18  ;;  %2636 = vmatprep.subr.bf16.mxu0 %v2750_v19  ;;  %v2828_v18 = vld [vmem:[%s2972_s11 + $0x190] ss:$20 sps:$4 sm:$0xff]  }
  0x27   : > { %1201 = vmatmul.mubr.bf16.vlgmr.msra.gmra.mrb[0].mxu0 %v2741_v20  ;;  %1297 = vmatmul.mubr.bf16.vlgmr.msra.gmra.mrb[0].mxu1 %v2744_v21  ;;  %v2830_v20 = vld [vmem:[%s2972_s11 + $0x1bc] ss:$20 sps:$4 sm:$0xff]   ;;  %v2832_v21 = vld [vmem:[%s2972_s11 + $0x124] ss:$20 sps:$4 sm:$0xff]  }
  0x28   : > { %2501 = vmatpush3.bf16.msra.mxu1 %v2748_v22  ;;  %2637 = vmatpush3.bf16.msra.mxu0 %v2750_v19  ;;  %v2829_v19 = vld [vmem:[%s2972_s11 + $0xf8] ss:$20 sps:$4 sm:$0xff]  }
  0x29   : > { %2502 = vmatprep.subr.bf16.mxu1 %v2749_v23  ;;  %1208 = vmatprep.mubr.bf16.mxu0 %v2752_v24  ;;  %v2834_v22 = vld [vmem:[%s2972_s11 + $0x1b8] ss:$20 sps:$4 sm:$0xff]   ;;  %v2835_v23 = vld [vmem:[%s2972_s11 + $0x120] ss:$20 sps:$4 sm:$0xff]  }
  0x2a   : > { %1304 = vmatprep.mubr.bf16.mxu1 %v2754_v25  ;;  %2638 = vmatprep.subr.bf16.mxu0 %v2769_v26  ;;  %v2837_v24 = vld [vmem:[%s2972_s11 + $0x14c] ss:$20 sps:$4 sm:$0xff]   ;;  %v2839_v25 = vld [vmem:[%s2972_s11 + $0x10] ss:$20 sps:$4 sm:$0xff]  }
  0x2c   : > { %2503 = vmatpush3.bf16.msra.mxu1 %v2751_v27  ;;  %2639 = vmatpush3.bf16.msra.mxu0 %v2769_v26  ;;  %v2840_v26 = vld [vmem:[%s2972_s11 + $0x148] ss:$20 sps:$4 sm:$0xff]   ;;  %v2841_v27 = vld [vmem:[%s2972_s11 + $0x38] ss:$20 sps:$4 sm:$0xff]  }
  0x2d   : > { %2504 = vmatprep.subr.bf16.mxu1 %v2758_v29  ;;  %2640 = vmatprep.subr.bf16.mxu0 %v2782_v38  ;;  %v2844_v29 = vld [vmem:[%s2972_s11 + $0x60] ss:$20 sps:$4 sm:$0xff]  }
  0x2f   : > { %1209 = vmatmul.mubr.bf16.gmra.mrb[4].mxu0 %v2756_v28  ;;  %1305 = vmatmul.mubr.bf16.gmra.mrb[4].mxu1 %v2757_v30  ;;  %v2842_v28 = vld [vmem:[%s2972_s11 + $0x174] ss:$20 sps:$4 sm:$0xff]   ;;  %v2845_v30 = vld [vmem:[%s2972_s11 + $0x170] ss:$20 sps:$4 sm:$0xff]  }
  0x30   : > { %2505 = vmatpush3.bf16.msra.mxu1 %v2759_v31  ;;  %1216 = vmatprep.mubr.bf16.mxu0 %v2762_v32  ;;  %v2846_v31 = vld [vmem:[%s2972_s11 + $0x88] ss:$20 sps:$4 sm:$0xff]  }
  0x31   : > { %2506 = vmatprep.subr.bf16.mxu1 %v2760_v33  ;;  %1312 = vmatprep.mubr.bf16.mxu1 %v2764_v34  ;;  %v2847_v32 = vld [vmem:[%s2972_s11 + $0x19c] ss:$20 sps:$4 sm:$0xff]   ;;  %v2850_v34 = vld [vmem:[%s2972_s11 + $0x198] ss:$20 sps:$4 sm:$0xff]  }
  0x32   : > { %2641 = vmatpush3.bf16.msra.mxu0 %v2782_v38  ;;  %v2849_v33 = vld [vmem:[%s2972_s11 + $0xb0] ss:$20 sps:$4 sm:$0xff]   ;;  %v2855_v38 = vld [vmem:[%s2972_s11 + $0x1c0] ss:$20 sps:$4 sm:$0xff]  }
  0x33   : > { %2642 = vmatprep.subr.bf16.mxu0 %v2796_v45 }
  0x34   : > { %2507 = vmatpush3.bf16.msra.mxu1 %v2761_v35  ;;  %v2851_v35 = vld [vmem:[%s2972_s11 + $0xd8] ss:$20 sps:$4 sm:$0xff]  }
  0x35   : > { %2508 = vmatprep.subr.bf16.mxu1 %v2768_v36  ;;  %v2852_v36 = vld [vmem:[%s2972_s11 + $0x1c4] ss:$20 sps:$4 sm:$0xff]  }
  0x36   : > { %2643 = vmatpush3.bf16.msra.mxu0 %v2796_v45  ;;  %v2864_v45 = vld [vmem:[%s2972_s11 + $0x1a0] ss:$20 sps:$4 sm:$0xff]  }
  0x37   : > { %1217 = vmatmul.mubr.bf16.gmra.mrb[8].mxu0 %v2766_v37  ;;  %1313 = vmatmul.mubr.bf16.gmra.mrb[8].mxu1 %v2767_v39  ;;  %v2854_v37 = vld [vmem:[%s2972_s11 + $0x100] ss:$20 sps:$4 sm:$0xff]   ;;  %v2856_v39 = vld [vmem:[%s2972_s11 + $0x128] ss:$20 sps:$4 sm:$0xff]  }
  0x38   : > { %2509 = vmatpush3.bf16.msra.mxu1 %v2770_v40  ;;  %1224 = vmatprep.mubr.bf16.mxu0 %v2773_v42  ;;  %v2857_v40 = vld [vmem:[%s2972_s11 + $0x1ec] ss:$20 sps:$4 sm:$0xff]   ;;  %v2860_v42 = vld [vmem:[%s2972_s11 + $0x1e8] ss:$20 sps:$4 sm:$0xff]  }
  0x39   : > { %2510 = vmatprep.subr.bf16.mxu1 %v2771_v41  ;;  %1320 = vmatprep.mubr.bf16.mxu1 %v2775_v43  ;;  %v2859_v41 = vld [vmem:[%s2972_s11 + $0x150] ss:$20 sps:$4 sm:$0xff]   ;;  %v2861_v43 = vld [vmem:[%s2972_s11 + $0x178] ss:$20 sps:$4 sm:$0xff]  }
  0x3a   : > { %2644 = vmatprep.subr.bf16.mxu0 %v2803_v52 }
  0x3b   : > { %2645 = vmatpush3.bf16.msra.mxu0 %v2803_v52  ;;  %v2872_v52 = vld [vmem:[%s2972_s11 + $0x264] ss:$20 sps:$4 sm:$0xff]  }
  0x3c   : > { %2511 = vmatpush3.bf16.msra.mxu1 %v2772_v44  ;;  %2646 = vmatprep.subr.bf16.mxu0 %v2816_v57  ;;  %v2862_v44 = vld [vmem:[%s2972_s11 + $0x214] ss:$20 sps:$4 sm:$0xff]  }
  0x3d   : > { %2512 = vmatprep.subr.bf16.mxu1 %v2779_v48  ;;  %v2867_v48 = vld [vmem:[%s2972_s11 + $0x23c] ss:$20 sps:$4 sm:$0xff]  }
  0x3f   : > { %1225 = vmatmul.mubr.bf16.gmra.mrb[12].mxu0 %v2777_v46  ;;  %1321 = vmatmul.mubr.bf16.gmra.mrb[12].mxu1 %v2778_v47  ;;  %v2865_v46 = vld [vmem:[%s2972_s11 + $0x210] ss:$20 sps:$4 sm:$0xff]   ;;  %v2866_v47 = vld [vmem:[%s2972_s11 + $0x1c8] ss:$20 sps:$4 sm:$0xff]  }
  0x40   : > { %2513 = vmatpush3.bf16.msra.mxu1 %v2780_v49  ;;  %1232 = vmatprep.mubr.bf16.mxu0 %v2784_v51  ;;  %v2869_v49 = vld [vmem:[%s2972_s11 + $0x1f0] ss:$20 sps:$4 sm:$0xff]   ;;  %v2871_v51 = vld [vmem:[%s2972_s11 + $0x218] ss:$20 sps:$4 sm:$0xff]  }
  0x41   : > { %2514 = vmatprep.subr.bf16.mxu1 %v2781_v50  ;;  %1361 = vmatprep.mubr.bf16.mxu1 %v2788_v53  ;;  %v2870_v50 = vld [vmem:[%s2972_s11 + $0x238] ss:$20 sps:$4 sm:$0xff]   ;;  %v2874_v53 = vld [vmem:[%s2972_s11 + $0x240] ss:$20 sps:$4 sm:$0xff]  }
  0x42   : > { %2647 = vmatpush3.bf16.msra.mxu0 %v2816_v57 }
  0x43   : > { %2648 = vmatprep.subr.bf16.mxu0 %v2823_v60 }
  0x44   : > { %2515 = vmatpush3.bf16.msra.mxu1 %v2783_v54  ;;  %v2875_v54 = vld [vmem:[%s2972_s11 + $0x260] ss:$20 sps:$4 sm:$0xff]  }
  0x46   : > { %2649 = vmatpush3.bf16.msra.mxu0 %v2823_v60 }
  0x47   : > { %1233 = vmatmul.mubr.bf16.gmra.mrb[16].mxu0 %v2789_v56  ;;  %1362 = vmatmul.mubr.bf16.vlgmr.msra.gmra.mrb[16].mxu1 %v2786_v55  ;;  %v2876_v55 = vld [vmem:[%s2972_s11 + $0x268] ss:$20 sps:$4 sm:$0xff]  }
  0x48   : > { %1240 = vmatprep.mubr.bf16.mxu0 %v2790_v58  ;;  %1369 = vmatprep.mubr.bf16.mxu1 %v2792_v59 }
  0x49   : > { %2650 = vmatprep.subr.bf16.mxu0 %v2836_v1 }
  0x4a   : > { %2651 = vmatpush3.bf16.msra.mxu0 %v2836_v1 }
  0x4f   : > { %1241 = vmatmul.mubr.bf16.gmra.mrb[20].mxu0 %v2794_v61  ;;  %1370 = vmatmul.mubr.bf16.gmra.mrb[20].mxu1 %v2795_v62 }
  0x50   : > { %1248 = vmatprep.mubr.bf16.mxu0 %v2797_v63  ;;  %1377 = vmatprep.mubr.bf16.mxu1 %v2799_v0 }
  0x57   : > { %1249 = vmatmul.mubr.bf16.gmra.mrb[24].mxu0 %v2801_v2  ;;  %1378 = vmatmul.mubr.bf16.gmra.mrb[24].mxu1 %v2802_v3 }
  0x58   : > { %1256 = vmatprep.mubr.bf16.mxu0 %v2804_v4  ;;  %1385 = vmatprep.mubr.bf16.mxu1 %v2806_v5 }
  0x5f   : > { %1257 = vmatmul.mubr.bf16.gmra.mrb[28].mxu0 %v2808_v6  ;;  %1386 = vmatmul.mubr.bf16.gmra.mrb[28].mxu1 %v2809_v7 }
  0x60   : > { %1264 = vmatprep.mubr.bf16.mxu0 %v2810_v8  ;;  %1393 = vmatprep.mubr.bf16.mxu1 %v2812_v9 }
  0x67   : > { %1265 = vmatmul.mubr.bf16.gmra.mrb[32].mxu0 %v2814_v10  ;;  %1394 = vmatmul.mubr.bf16.gmra.mrb[32].mxu1 %v2815_v11 }
  0x68   : > { %1272 = vmatprep.mubr.bf16.mxu0 %v2817_v12  ;;  %1401 = vmatprep.mubr.bf16.mxu1 %v2819_v13 }
  0x6f   : > { %1273 = vmatmul.mubr.bf16.gmra.mrb[36].mxu0 %v2821_v14  ;;  %1402 = vmatmul.mubr.bf16.gmra.mrb[36].mxu1 %v2822_v15 }
  0x70   : > { %1280 = vmatprep.mubr.bf16.mxu0 %v2824_v16  ;;  %1409 = vmatprep.mubr.bf16.mxu1 %v2826_v17 }
  0x77   : > { %1281 = vmatmul.mubr.bf16.gmra.mrb[40].mxu0 %v2828_v18  ;;  %1410 = vmatmul.mubr.bf16.gmra.mrb[40].mxu1 %v2829_v19 }
  0x78   : > { %1288 = vmatprep.mubr.bf16.mxu0 %v2830_v20  ;;  %1417 = vmatprep.mubr.bf16.mxu1 %v2832_v21 }
  0x7f   : > { %1289 = vmatmul.mubr.bf16.gmra.mrb[44].mxu0 %v2834_v22  ;;  %1418 = vmatmul.mubr.bf16.gmra.mrb[44].mxu1 %v2835_v23 }
  0x80   : > { %1425 = vmatprep.mubr.bf16.mxu1 %v2837_v24  ;;  %2652 = vmatprep.mubr.bf16.mxu0 %v2839_v25 }
  0x87   : > { %1426 = vmatmul.mubr.bf16.gmra.mrb[48].mxu1 %v2840_v26  ;;  %2653 = vmatmul.mubr.bf16.vlgmr.msra.gmra.mrb[48].mxu0 %v2841_v27 }
  0x88   : > { %1433 = vmatprep.mubr.bf16.mxu1 %v2842_v28  ;;  %2656 = vmatprep.mubr.bf16.mxu0 %v2844_v29 }
  0x8f   : > { %1434 = vmatmul.mubr.bf16.gmra.mrb[52].mxu1 %v2845_v30  ;;  %2657 = vmatmul.mubr.bf16.gmra.mrb[52].mxu0 %v2846_v31 }
  0x90   : > { %1441 = vmatprep.mubr.bf16.mxu1 %v2847_v32  ;;  %2660 = vmatprep.mubr.bf16.mxu0 %v2849_v33 }
  0x97   : > { %1442 = vmatmul.mubr.bf16.gmra.mrb[56].mxu1 %v2850_v34  ;;  %2661 = vmatmul.mubr.bf16.gmra.mrb[56].mxu0 %v2851_v35 }
  0x98   : > { %1449 = vmatprep.mubr.bf16.mxu1 %v2852_v36  ;;  %2664 = vmatprep.mubr.bf16.mxu0 %v2854_v37 }
  0x9f   : > { %1450 = vmatmul.mubr.bf16.gmra.mrb[60].mxu1 %v2855_v38  ;;  %2665 = vmatmul.mubr.bf16.gmra.mrb[60].mxu0 %v2856_v39 }
  0xa0   : > { %1457 = vmatprep.mubr.bf16.mxu1 %v2857_v40  ;;  %2668 = vmatprep.mubr.bf16.mxu0 %v2859_v41 }
  0xa7   : > { %1458 = vmatmul.mubr.bf16.gmra.mrb[64].mxu1 %v2860_v42  ;;  %2669 = vmatmul.mubr.bf16.gmra.mrb[64].mxu0 %v2861_v43 }
  0xa8   : > { %1465 = vmatprep.mubr.bf16.mxu1 %v2862_v44  ;;  %2672 = vmatprep.mubr.bf16.mxu0 %v2864_v45 }
  0xaf   : > { %1466 = vmatmul.mubr.bf16.gmra.mrb[68].mxu1 %v2865_v46  ;;  %2673 = vmatmul.mubr.bf16.gmra.mrb[68].mxu0 %v2866_v47 }
  0xb0   : > { %1473 = vmatprep.mubr.bf16.mxu1 %v2867_v48  ;;  %2676 = vmatprep.mubr.bf16.mxu0 %v2869_v49 }
  0xb7   : > { %1474 = vmatmul.mubr.bf16.gmra.mrb[72].mxu1 %v2870_v50  ;;  %2677 = vmatmul.mubr.bf16.gmra.mrb[72].mxu0 %v2871_v51 }
  0xb8   : > { %1481 = vmatprep.mubr.bf16.mxu1 %v2872_v52  ;;  %2680 = vmatprep.mubr.bf16.mxu0 %v2874_v53 }
  0xbf   : > { %1482 = vmatmul.mubr.bf16.gmra.mrb[76].mxu1 %v2875_v54  ;;  %2681 = vmatmul.mubr.bf16.gmra.mrb[76].mxu0 %v2876_v55 }
  0xfa   : > { %v2476_v56 = vpop.f32.mrb[0].mxu1  ;;  %v2404_v57 = vpop.f32.mrb[0].mxu0 }
  0xfb   : > { %v2477_v58 = vpop.f32.mrb[1].mxu1  ;;  %v2405_v59 = vpop.f32.mrb[1].mxu0 }
  0xfc   : > { %v3147_v60 = vadd.f32 %v2477_v58, %v2476_v56  ;;  %v2479_v61 = vpop.f32.mrb[2].mxu1  ;;  %v2406_v62 = vadd.f32 %v2405_v59, %v2404_v57  ;;  %v2407_v63 = vpop.f32.mrb[2].mxu0 }
  0xfd   : > { %v2480_v0 = vpop.f32.mrb[3].mxu1  ;;  %v2408_v1 = vpop.f32.mrb[3].mxu0 }
  0xfe   : > { %v3149_v2 = vadd.f32 %v2480_v0, %v2479_v61  ;;  %v2409_v3 = vadd.f32 %v2408_v1, %v2407_v63 }
 0x102   : > { %v2482_v4 = vpop.f32.mrb[4].mxu1  ;;  %v2410_v5 = vpop.f32.mrb[4].mxu0 }
 0x103   : > { %v2483_v6 = vpop.f32.mrb[5].mxu1  ;;  %v2411_v7 = vpop.f32.mrb[5].mxu0 }
 0x104   : > { %v3151_v8 = vadd.f32 %v2483_v6, %v2482_v4  ;;  %v2485_v9 = vpop.f32.mrb[6].mxu1  ;;  %v2412_v10 = vadd.f32 %v2411_v7, %v2410_v5  ;;  %v2413_v11 = vpop.f32.mrb[6].mxu0 }
 0x105   : > { %v2486_v12 = vpop.f32.mrb[7].mxu1  ;;  %v2414_v13 = vpop.f32.mrb[7].mxu0 }
 0x106   : > { %v3153_v14 = vadd.f32 %v2486_v12, %v2485_v9  ;;  %v2415_v15 = vadd.f32 %v2414_v13, %v2413_v11 }
 0x10a   : > { %v2488_v16 = vpop.f32.mrb[8].mxu1  ;;  %v2416_v17 = vpop.f32.mrb[8].mxu0 }
 0x10b   : > { %v2489_v18 = vpop.f32.mrb[9].mxu1  ;;  %v2417_v19 = vpop.f32.mrb[9].mxu0 }
 0x10c   : > { %v3155_v20 = vadd.f32 %v2489_v18, %v2488_v16  ;;  %v2491_v21 = vpop.f32.mrb[10].mxu1  ;;  %v2418_v22 = vadd.f32 %v2417_v19, %v2416_v17  ;;  %v2419_v23 = vpop.f32.mrb[10].mxu0 }
 0x10d   : > { %v2492_v24 = vpop.f32.mrb[11].mxu1  ;;  %v2420_v25 = vpop.f32.mrb[11].mxu0 }
 0x10e   : > { %v3157_v26 = vadd.f32 %v2492_v24, %v2491_v21  ;;  %v2421_v27 = vadd.f32 %v2420_v25, %v2419_v23 }
 0x112   : > { %v2494_v28 = vpop.f32.mrb[12].mxu1  ;;  %v2422_v29 = vpop.f32.mrb[12].mxu0 }
 0x113   : > { %v2495_v30 = vpop.f32.mrb[13].mxu1  ;;  %v2423_v31 = vpop.f32.mrb[13].mxu0 }
 0x114   : > { %v3159_v32 = vadd.f32 %v2495_v30, %v2494_v28  ;;  %v2497_v33 = vpop.f32.mrb[14].mxu1  ;;  %v2424_v34 = vadd.f32 %v2423_v31, %v2422_v29  ;;  %v2425_v35 = vpop.f32.mrb[14].mxu0 }
 0x115   : > { %v2498_v36 = vpop.f32.mrb[15].mxu1  ;;  %v2426_v37 = vpop.f32.mrb[15].mxu0 }
 0x116   : > { %v3161_v38 = vadd.f32 %v2498_v36, %v2497_v33  ;;  %v2427_v39 = vadd.f32 %v2426_v37, %v2425_v35 }
 0x11a   : > { %v2516_v40 = vpop.f32.mrb[16].mxu1  ;;  %v2428_v41 = vpop.f32.mrb[16].mxu0 }
 0x11b   : > { %v2517_v42 = vpop.f32.mrb[17].mxu1  ;;  %v2429_v43 = vpop.f32.mrb[17].mxu0 }
 0x11c   : > { %v2518_v44 = vadd.f32 %v2517_v42, %v2516_v40  ;;  %v2519_v45 = vpop.f32.mrb[18].mxu1  ;;  %v2430_v46 = vadd.f32 %v2429_v43, %v2428_v41  ;;  %v2431_v47 = vpop.f32.mrb[18].mxu0 }
 0x11d   : > { %v2520_v48 = vpop.f32.mrb[19].mxu1  ;;  %v2432_v49 = vpop.f32.mrb[19].mxu0 }
 0x11e   : > { %v2521_v50 = vadd.f32 %v2520_v48, %v2519_v45  ;;  %v2433_v51 = vadd.f32 %v2432_v49, %v2431_v47  ;;  %v3163_v52 = vadd.f32 %v2518_v44, %v2406_v62 }
 0x120   : > { %v3165_v53 = vadd.f32 %v2521_v50, %v2409_v3 }
 0x122   : > { %v2522_v54 = vpop.f32.mrb[20].mxu1  ;;  %v2434_v55 = vpop.f32.mrb[20].mxu0 }
 0x123   : > { %v2523_v56 = vpop.f32.mrb[21].mxu1  ;;  %v2435_v57 = vpop.f32.mrb[21].mxu0 }
 0x124   : > { %v2524_v58 = vadd.f32 %v2523_v56, %v2522_v54  ;;  %v2525_v59 = vpop.f32.mrb[22].mxu1  ;;  %v2436_v61 = vadd.f32 %v2435_v57, %v2434_v55  ;;  %v2437_v63 = vpop.f32.mrb[22].mxu0 }
 0x125   : > { %v2526_v0 = vpop.f32.mrb[23].mxu1  ;;  %v2438_v1 = vpop.f32.mrb[23].mxu0 }
 0x126   : > { %v2527_v4 = vadd.f32 %v2526_v0, %v2525_v59  ;;  %v2439_v5 = vadd.f32 %v2438_v1, %v2437_v63  ;;  %v3167_v6 = vadd.f32 %v2524_v58, %v2412_v10 }
 0x128   : > { %v3169_v7 = vadd.f32 %v2527_v4, %v2415_v15 }
 0x12a   : > { %v2528_v62 = vpop.f32.mrb[24].mxu1  ;;  %v2440_v9 = vpop.f32.mrb[24].mxu0 }
 0x12b   : > { %v2529_v3 = vpop.f32.mrb[25].mxu1  ;;  %v2441_v11 = vpop.f32.mrb[25].mxu0 }
 0x12c   : > { %v2530_v12 = vadd.f32 %v2529_v3, %v2528_v62  ;;  %v2531_v13 = vpop.f32.mrb[26].mxu1  ;;  %v2442_v16 = vadd.f32 %v2441_v11, %v2440_v9  ;;  %v2443_v17 = vpop.f32.mrb[26].mxu0 }
 0x12d   : > { %v2532_v18 = vpop.f32.mrb[27].mxu1  ;;  %v2444_v19 = vpop.f32.mrb[27].mxu0 }
 0x12e   : > { %v2533_v21 = vadd.f32 %v2532_v18, %v2531_v13  ;;  %v2445_v23 = vadd.f32 %v2444_v19, %v2443_v17  ;;  %v3171_v24 = vadd.f32 %v2530_v12, %v2418_v22 }
 0x130   : > { %v3173_v25 = vadd.f32 %v2533_v21, %v2421_v27 }
 0x132   : > { %v2534_v10 = vpop.f32.mrb[28].mxu1  ;;  %v2446_v28 = vpop.f32.mrb[28].mxu0 }
 0x133   : > { %v2535_v15 = vpop.f32.mrb[29].mxu1  ;;  %v2447_v29 = vpop.f32.mrb[29].mxu0 }
 0x134   : > { %v2536_v30 = vadd.f32 %v2535_v15, %v2534_v10  ;;  %v2537_v31 = vpop.f32.mrb[30].mxu1  ;;  %v2448_v33 = vadd.f32 %v2447_v29, %v2446_v28  ;;  %v2449_v35 = vpop.f32.mrb[30].mxu0 }
 0x135   : > { %v2538_v36 = vpop.f32.mrb[31].mxu1  ;;  %v2450_v37 = vpop.f32.mrb[31].mxu0 }
 0x136   : > { %v2539_v40 = vadd.f32 %v2538_v36, %v2537_v31  ;;  %v2451_v41 = vadd.f32 %v2450_v37, %v2449_v35  ;;  %v3175_v42 = vadd.f32 %v2536_v30, %v2424_v34 }
 0x138   : > { %v3177_v43 = vadd.f32 %v2539_v40, %v2427_v39 }
 0x13a   : > { %v2540_v22 = vpop.f32.mrb[32].mxu1  ;;  %v2452_v44 = vpop.f32.mrb[32].mxu0 }
 0x13b   : > { %v2541_v27 = vpop.f32.mrb[33].mxu1  ;;  %v2453_v45 = vpop.f32.mrb[33].mxu0 }
 0x13c   : > { %v2542_v47 = vadd.f32 %v2541_v27, %v2540_v22  ;;  %v2543_v48 = vpop.f32.mrb[34].mxu1  ;;  %v3179_v49 = vadd.f32 %v2453_v45, %v2452_v44  ;;  %v2455_v50 = vpop.f32.mrb[34].mxu0 }
 0x13d   : > { %v2544_v54 = vpop.f32.mrb[35].mxu1  ;;  %v2456_v55 = vpop.f32.mrb[35].mxu0 }
 0x13e   : > { %v2545_v56 = vadd.f32 %v2544_v54, %v2543_v48  ;;  %v3181_v57 = vadd.f32 %v2456_v55, %v2455_v50  ;;  %v3183_v58 = vadd.f32 %v2542_v47, %v2430_v46 }
 0x140   : > { %v3185_v34 = vadd.f32 %v2545_v56, %v2433_v51 }
 0x142   : > { %v2546_v39 = vpop.f32.mrb[36].mxu1  ;;  %v2458_v59 = vpop.f32.mrb[36].mxu0 }
 0x143   : > { %v2547_v63 = vpop.f32.mrb[37].mxu1  ;;  %v2459_v0 = vpop.f32.mrb[37].mxu0 }
 0x144   : > { %v2548_v1 = vadd.f32 %v2547_v63, %v2546_v39  ;;  %v2549_v4 = vpop.f32.mrb[38].mxu1  ;;  %v3187_v62 = vadd.f32 %v2459_v0, %v2458_v59  ;;  %v2461_v9 = vpop.f32.mrb[38].mxu0  ;;  %v3214_v63 = vld [vmem:[%s3331_s2] ss:$0 sm:$0xff] }
 0x145   : > { %v2550_v3 = vpop.f32.mrb[39].mxu1  ;;  %v2462_v11 = vpop.f32.mrb[39].mxu0 }
 0x146   : > { %v2551_v12 = vadd.f32 %v2550_v3, %v2549_v4  ;;  %v3189_v13 = vadd.f32 %v2462_v11, %v2461_v9  ;;  %v3191_v17 = vadd.f32 %v2548_v1, %v2436_v61 }
 0x148   : > { %v3193_v46 = vadd.f32 %v2551_v12, %v2439_v5 }
 0x14a   : > { %v2552_v51 = vpop.f32.mrb[40].mxu1  ;;  %v2464_v18 = vpop.f32.mrb[40].mxu0 }
 0x14b   : > { %v2553_v19 = vpop.f32.mrb[41].mxu1  ;;  %v2465_v21 = vpop.f32.mrb[41].mxu0 }
 0x14c   : > { %v2554_v10 = vadd.f32 %v2553_v19, %v2552_v51  ;;  %v2555_v28 = vpop.f32.mrb[42].mxu1  ;;  %v3195_v15 = vadd.f32 %v2465_v21, %v2464_v18  ;;  %v2467_v29 = vpop.f32.mrb[42].mxu0 }
 0x14d   : > { %v2556_v30 = vpop.f32.mrb[43].mxu1  ;;  %v2468_v31 = vpop.f32.mrb[43].mxu0 }
 0x14e   : > { %v2557_v35 = vadd.f32 %v2556_v30, %v2555_v28  ;;  %v3197_v36 = vadd.f32 %v2468_v31, %v2467_v29  ;;  %v3199_v37 = vadd.f32 %v2554_v10, %v2442_v16 }
 0x150   : > { %v3201_v61 = vadd.f32 %v2557_v35, %v2445_v23 }
 0x152   : > { %v2558_v5 = vpop.f32.mrb[44].mxu1  ;;  %v2470_v40 = vpop.f32.mrb[44].mxu0 }
 0x153   : > { %v2559_v22 = vpop.f32.mrb[45].mxu1  ;;  %v2471_v44 = vpop.f32.mrb[45].mxu0 }
 0x154   : > { %v2560_v27 = vadd.f32 %v2559_v22, %v2558_v5  ;;  %v2561_v45 = vpop.f32.mrb[46].mxu1  ;;  %v3203_v47 = vadd.f32 %v2471_v44, %v2470_v40  ;;  %v2473_v48 = vpop.f32.mrb[46].mxu0 }
 0x155   : > { %v2562_v50 = vpop.f32.mrb[47].mxu1  ;;  %v2474_v54 = vpop.f32.mrb[47].mxu0 }
 0x156   : > { %v2563_v55 = vadd.f32 %v2562_v50, %v2561_v45  ;;  %v3205_v56 = vadd.f32 %v2474_v54, %v2473_v48  ;;  %v3207_v39 = vadd.f32 %v2560_v27, %v2448_v33 }
 0x158   : > { %v3209_v16 = vadd.f32 %v2563_v55, %v2451_v41 }
 0x15a   : > { %v2564_v23 = vpop.f32.mrb[48].mxu1  ;;  %v2654_v59 = vpop.f32.mrb[48].mxu0 }
 0x15b   : > { %v1533_v0 = vadd.f32 %v2654_v59, %v3167_v6  ;;  %v2565_v1 = vpop.f32.mrb[49].mxu1  ;;  %v1524_v4 = vpop.f32.mrb[49].mxu0 }
 0x15c   : > { %v2566_v9 = vadd.f32 %v2565_v1, %v2564_v23  ;;  %v1525_v3 = vadd.f32 %v1524_v4, %v3163_v52  ;;  %v2567_v11 = vpop.f32.mrb[50].mxu1  ;;  %v2655_v33 = vpop.f32.mrb[50].mxu0 }
 0x15d   : > { %v1759_v41 = vadd.f32 %v3214_v63, %v1533_v0  ;;  %v1536_v12 = vadd.f32 %v2655_v33, %v3169_v7  ;;  %v2568_v51 = vpop.f32.mrb[51].mxu1  ;;  %v1527_v18 = vpop.f32.mrb[51].mxu0 }
 0x15e   : > { %v1757_v19 = vadd.f32 %v3214_v63, %v1525_v3  ;;  %v2569_v21 = vadd.f32 %v2568_v51, %v2567_v11  ;;  %v1528_v10 = vadd.f32 %v1527_v18, %v3165_v53  ;;  %v3223_v6 = vadd.f32 %v2566_v9, %v3179_v49 }
 0x15f   : > { %v1760_v28 = vadd.f32 %v3214_v63, %v1536_v12  ;;  %v1791_v30 = vmax.f32 %v1759_v41, 0.0 }
 0x160   : > { %v1758_v52 = vadd.f32 %v3214_v63, %v1528_v10  ;;  %v3229_v29 = vadd.f32 %v2569_v21, %v3181_v57  ;;  %v1789_v31 = vmax.f32 %v1757_v19, 0.0 }
 0x161   : > { %v1792_v7 = vmax.f32 %v1760_v28, 0.0 }
 0x162   : > { %v1790_v53 = vmax.f32 %v1758_v52, 0.0  ;;  %v2570_v49 = vpop.f32.mrb[52].mxu1  ;;  %v2658_v35 = vpop.f32.mrb[52].mxu0 }
 0x163   : > { %v2301_v5 = vpack.c.bf16 %v1792_v7, %v1791_v30  ;;  %v1549_v40 = vadd.f32 %v2658_v35, %v3175_v42  ;;  %v2571_v22 = vpop.f32.mrb[53].mxu1  ;;  %v1540_v44 = vpop.f32.mrb[53].mxu0 }
 0x164   : > { %v2296_v57 = vpack.c.bf16 %v1790_v53, %v1789_v31  ;;  %v2572_v27 = vadd.f32 %v2571_v22, %v2570_v49  ;;  %v1541_v45 = vadd.f32 %v1540_v44, %v3171_v24  ;;  %v2573_v48 = vpop.f32.mrb[54].mxu1  ;;  %v2659_v50 = vpop.f32.mrb[54].mxu0 }
 0x165   : > { %2373 = vst [vmem:[%s3234_s12 + $0x8] sm:$0xff] %v2301_v5   ;;  %v1763_v54 = vadd.f32 %v3214_v63, %v1549_v40  ;;  %v1552_v55 = vadd.f32 %v2659_v50, %v3177_v43  ;;  %v2574_v23 = vpop.f32.mrb[55].mxu1  ;;  %v1543_v59 = vpop.f32.mrb[55].mxu0 }
 0x166   : > { %2297 = vst [vmem:[%s3234_s12] sm:$0xff] %v2296_v57   ;;  %v1761_v0 = vadd.f32 %v3214_v63, %v1541_v45  ;;  %v2575_v1 = vadd.f32 %v2574_v23, %v2573_v48  ;;  %v1544_v42 = vadd.f32 %v1543_v59, %v3173_v25  ;;  %v3245_v4 = vadd.f32 %v2572_v27, %v3187_v62 }
 0x167   : > { %v1764_v24 = vadd.f32 %v3214_v63, %v1552_v55  ;;  %v1795_v43 = vmax.f32 %v1763_v54, 0.0 }
 0x168   : > { %v1762_v9 = vadd.f32 %v3214_v63, %v1544_v42  ;;  %v3250_v3 = vadd.f32 %v2575_v1, %v3189_v13  ;;  %v1793_v33 = vmax.f32 %v1761_v0, 0.0 }
 0x169   : > { %v1796_v11 = vmax.f32 %v1764_v24, 0.0 }
 0x16a   : > { %v1794_v41 = vmax.f32 %v1762_v9, 0.0  ;;  %v2576_v12 = vpop.f32.mrb[56].mxu1  ;;  %v2662_v51 = vpop.f32.mrb[56].mxu0 }
 0x16b   : > { %v2311_v18 = vpack.c.bf16 %v1796_v11, %v1795_v43  ;;  %v1565_v25 = vadd.f32 %v2662_v51, %v3191_v17  ;;  %v2577_v62 = vpop.f32.mrb[57].mxu1  ;;  %v1556_v19 = vpop.f32.mrb[57].mxu0 }
 0x16c   : > { %v2306_v21 = vpack.c.bf16 %v1794_v41, %v1793_v33  ;;  %v2578_v10 = vadd.f32 %v2577_v62, %v2576_v12  ;;  %v1557_v28 = vadd.f32 %v1556_v19, %v3183_v58  ;;  %v2579_v52 = vpop.f32.mrb[58].mxu1  ;;  %v2663_v13 = vpop.f32.mrb[58].mxu0 }
 0x16d   : > { %2375 = vst [vmem:[%s3234_s12 + $0x18] sm:$0xff] %v2311_v18   ;;  %v1767_v30 = vadd.f32 %v3214_v63, %v1565_v25  ;;  %v1568_v7 = vadd.f32 %v2663_v13, %v3193_v46  ;;  %v2580_v31 = vpop.f32.mrb[59].mxu1  ;;  %v1559_v53 = vpop.f32.mrb[59].mxu0 }
 0x16e   : > { %2374 = vst [vmem:[%s3234_s12 + $0x10] sm:$0xff] %v2306_v21   ;;  %v1765_v49 = vadd.f32 %v3214_v63, %v1557_v28  ;;  %v2581_v35 = vadd.f32 %v2580_v31, %v2579_v52  ;;  %v1560_v17 = vadd.f32 %v1559_v53, %v3185_v34  ;;  %v3261_v5 = vadd.f32 %v2578_v10, %v3195_v15 }
 0x16f   : > { %v1768_v58 = vadd.f32 %v3214_v63, %v1568_v7  ;;  %v1799_v46 = vmax.f32 %v1767_v30, 0.0 }
 0x170   : > { %v1766_v40 = vadd.f32 %v3214_v63, %v1560_v17  ;;  %v3266_v22 = vadd.f32 %v2581_v35, %v3197_v36  ;;  %v1797_v57 = vmax.f32 %v1765_v49, 0.0 }
 0x171   : > { %v1800_v44 = vmax.f32 %v1768_v58, 0.0 }
 0x172   : > { %v1798_v27 = vmax.f32 %v1766_v40, 0.0  ;;  %v2582_v45 = vpop.f32.mrb[60].mxu1  ;;  %v2666_v48 = vpop.f32.mrb[60].mxu0 }
 0x173   : > { %v2321_v50 = vpack.c.bf16 %v1800_v44, %v1799_v46  ;;  %v1581_v34 = vadd.f32 %v2666_v48, %v3207_v39  ;;  %v2583_v15 = vpop.f32.mrb[61].mxu1  ;;  %v1572_v54 = vpop.f32.mrb[61].mxu0 }
 0x174   : > { %v2316_v55 = vpack.c.bf16 %v1798_v27, %v1797_v57  ;;  %v2584_v23 = vadd.f32 %v2583_v15, %v2582_v45  ;;  %v1573_v59 = vadd.f32 %v1572_v54, %v3199_v37  ;;  %v2585_v0 = vpop.f32.mrb[62].mxu1  ;;  %v2667_v36 = vpop.f32.mrb[62].mxu0 }
 0x175   : > { %2377 = vst [vmem:[%s3234_s12 + $0x28] sm:$0xff] %v2321_v50   ;;  %v1771_v1 = vadd.f32 %v3214_v63, %v1581_v34  ;;  %v1584_v42 = vadd.f32 %v2667_v36, %v3209_v16  ;;  %v2586_v24 = vpop.f32.mrb[63].mxu1  ;;  %v1575_v9 = vpop.f32.mrb[63].mxu0 }
 0x176   : > { %2376 = vst [vmem:[%s3234_s12 + $0x20] sm:$0xff] %v2316_v55   ;;  %v1769_v43 = vadd.f32 %v3214_v63, %v1573_v59  ;;  %v2587_v11 = vadd.f32 %v2586_v24, %v2585_v0  ;;  %v1576_v39 = vadd.f32 %v1575_v9, %v3201_v61  ;;  %v1452_v33 = vadd.f32 %v2584_v23, %v3203_v47 }
 0x177   : > { %v1772_v41 = vadd.f32 %v3214_v63, %v1584_v42  ;;  %v1803_v51 = vmax.f32 %v1771_v1, 0.0 }
 0x178   : > { %v1770_v37 = vadd.f32 %v3214_v63, %v1576_v39  ;;  %v1455_v12 = vadd.f32 %v2587_v11, %v3205_v56  ;;  %v1801_v16 = vmax.f32 %v1769_v43, 0.0 }
 0x179   : > { %v1804_v18 = vmax.f32 %v1772_v41, 0.0 }
 0x17a   : > { %v1802_v25 = vmax.f32 %v1770_v37, 0.0  ;;  %v2588_v62 = vpop.f32.mrb[64].mxu1  ;;  %v2670_v19 = vpop.f32.mrb[64].mxu0 }
 0x17b   : > { %v2331_v21 = vpack.c.bf16 %v1804_v18, %v1803_v51  ;;  %v1597_v10 = vadd.f32 %v2670_v19, %v3245_v4  ;;  %v2589_v61 = vpop.f32.mrb[65].mxu1  ;;  %v1588_v28 = vpop.f32.mrb[65].mxu0 }
 0x17c   : > { %v2326_v47 = vpack.c.bf16 %v1802_v25, %v1801_v16  ;;  %v2590_v52 = vadd.f32 %v2589_v61, %v2588_v62  ;;  %v1589_v13 = vadd.f32 %v1588_v28, %v3223_v6  ;;  %v2591_v30 = vpop.f32.mrb[66].mxu1  ;;  %v2671_v7 = vpop.f32.mrb[66].mxu0 }
 0x17d   : > { %2379 = vst [vmem:[%s3234_s12 + $0x38] sm:$0xff] %v2331_v21   ;;  %v1775_v56 = vadd.f32 %v3214_v63, %v1597_v10  ;;  %v1600_v31 = vadd.f32 %v2671_v7, %v3250_v3  ;;  %v2592_v53 = vpop.f32.mrb[67].mxu1  ;;  %v1591_v49 = vpop.f32.mrb[67].mxu0 }
 0x17e   : > { %2378 = vst [vmem:[%s3234_s12 + $0x30] sm:$0xff] %v2326_v47   ;;  %v1773_v35 = vadd.f32 %v3214_v63, %v1589_v13  ;;  %v2593_v17 = vadd.f32 %v2592_v53, %v2591_v30  ;;  %v1592_v4 = vadd.f32 %v1591_v49, %v3229_v29  ;;  %v1460_v58 = vadd.f32 %v2590_v52, %v3147_v60 }
 0x17f   : > { %v1776_v40 = vadd.f32 %v3214_v63, %v1600_v31  ;;  %v1807_v44 = vmax.f32 %v1775_v56, 0.0 }
 0x180   : > { %v1774_v6 = vadd.f32 %v3214_v63, %v1592_v4  ;;  %v1463_v46 = vadd.f32 %v2593_v17, %v3149_v2  ;;  %v1805_v3 = vmax.f32 %v1773_v35, 0.0 }
 0x181   : > { %v1808_v57 = vmax.f32 %v1776_v40, 0.0 }
 0x182   : > { %v1806_v27 = vmax.f32 %v1774_v6, 0.0  ;;  %v2594_v45 = vpop.f32.mrb[68].mxu1  ;;  %v2674_v48 = vpop.f32.mrb[68].mxu0 }
 0x183   : > { %v2341_v50 = vpack.c.bf16 %v1808_v57, %v1807_v44  ;;  %v1613_v34 = vadd.f32 %v2674_v48, %v1452_v33  ;;  %v2595_v15 = vpop.f32.mrb[69].mxu1  ;;  %v1604_v29 = vpop.f32.mrb[69].mxu0 }
 0x184   : > { %v2336_v54 = vpack.c.bf16 %v1806_v27, %v1805_v3  ;;  %v2596_v60 = vadd.f32 %v2595_v15, %v2594_v45  ;;  %v1605_v55 = vadd.f32 %v1604_v29, %v3261_v5  ;;  %v2597_v23 = vpop.f32.mrb[70].mxu1  ;;  %v2675_v59 = vpop.f32.mrb[70].mxu0 }
 0x185   : > { %2381 = vst [vmem:[%s3234_s12 + $0x48] sm:$0xff] %v2341_v50   ;;  %v1779_v2 = vadd.f32 %v3214_v63, %v1613_v34  ;;  %v1616_v0 = vadd.f32 %v2675_v59, %v1455_v12  ;;  %v2598_v36 = vpop.f32.mrb[71].mxu1  ;;  %v1607_v1 = vpop.f32.mrb[71].mxu0 }
 0x186   : > { %2380 = vst [vmem:[%s3234_s12 + $0x40] sm:$0xff] %v2336_v54   ;;  %v1777_v42 = vadd.f32 %v3214_v63, %v1605_v55  ;;  %v2599_v24 = vadd.f32 %v2598_v36, %v2597_v23  ;;  %v1608_v9 = vadd.f32 %v1607_v1, %v3266_v22  ;;  %v1468_v43 = vadd.f32 %v2596_v60, %v3151_v8 }
 0x187   : > { %v1780_v11 = vadd.f32 %v3214_v63, %v1616_v0  ;;  %v1811_v33 = vmax.f32 %v1779_v2, 0.0 }
 0x188   : > { %v1778_v5 = vadd.f32 %v3214_v63, %v1608_v9  ;;  %v1471_v39 = vadd.f32 %v2599_v24, %v3153_v14  ;;  %v1809_v37 = vmax.f32 %v1777_v42, 0.0 }
 0x189   : > { %v1812_v41 = vmax.f32 %v1780_v11, 0.0 }
 0x18a   : > { %v1810_v12 = vmax.f32 %v1778_v5, 0.0  ;;  %v2600_v51 = vpop.f32.mrb[72].mxu1  ;;  %v2678_v18 = vpop.f32.mrb[72].mxu0 }
 0x18b   : > { %v2351_v16 = vpack.c.bf16 %v1812_v41, %v1811_v33  ;;  %v1629_v25 = vadd.f32 %v2678_v18, %v1468_v43  ;;  %v2601_v62 = vpop.f32.mrb[73].mxu1  ;;  %v1620_v22 = vpop.f32.mrb[73].mxu0 }
 0x18c   : > { %v2346_v19 = vpack.c.bf16 %v1810_v12, %v1809_v37  ;;  %v2602_v8 = vadd.f32 %v2601_v62, %v2600_v51  ;;  %v1621_v21 = vadd.f32 %v1620_v22, %v1460_v58  ;;  %v2603_v10 = vpop.f32.mrb[74].mxu1  ;;  %v2679_v61 = vpop.f32.mrb[74].mxu0 }
 0x18d   : > { %2383 = vst [vmem:[%s3234_s12 + $0x58] sm:$0xff] %v2351_v16   ;;  %v1783_v14 = vadd.f32 %v3214_v63, %v1629_v25  ;;  %v1632_v28 = vadd.f32 %v2679_v61, %v1471_v39  ;;  %v2604_v47 = vpop.f32.mrb[75].mxu1  ;;  %v1623_v52 = vpop.f32.mrb[75].mxu0 }
 0x18e   : > { %2382 = vst [vmem:[%s3234_s12 + $0x50] sm:$0xff] %v2346_v19   ;;  %v1781_v13 = vadd.f32 %v3214_v63, %v1621_v21  ;;  %v2605_v30 = vadd.f32 %v2604_v47, %v2603_v10  ;;  %v1624_v7 = vadd.f32 %v1623_v52, %v1463_v46  ;;  %v1476_v56 = vadd.f32 %v2602_v8, %v3155_v20 }
 0x18f   : > { %v1784_v31 = vadd.f32 %v3214_v63, %v1632_v28  ;;  %v1815_v35 = vmax.f32 %v1783_v14, 0.0 }
 0x190   : > { %v1782_v53 = vadd.f32 %v3214_v63, %v1624_v7  ;;  %v1479_v49 = vadd.f32 %v2605_v30, %v3157_v26  ;;  %v1813_v4 = vmax.f32 %v1781_v13, 0.0 }
 0x191   : > { %v1816_v17 = vmax.f32 %v1784_v31, 0.0 }
 0x192   : > { %v1814_v58 = vmax.f32 %v1782_v53, 0.0  ;;  %v2606_v40 = vpop.f32.mrb[76].mxu1  ;;  %v2682_v6 = vpop.f32.mrb[76].mxu0 }
 0x193   : > { %v2361_v44 = vpack.c.bf16 %v1816_v17, %v1815_v35  ;;  %v2607_v57 = vpop.f32.mrb[77].mxu1  ;;  %v1636_v3 = vpop.f32.mrb[77].mxu0 }
 0x194   : > { %v2356_v46 = vpack.c.bf16 %v1814_v58, %v1813_v4  ;;  %v2608_v27 = vadd.f32 %v2607_v57, %v2606_v40  ;;  %v1637_v20 = vadd.f32 %v1636_v3, %v1476_v56  ;;  %v2609_v45 = vpop.f32.mrb[78].mxu1  ;;  %v2683_v48 = vpop.f32.mrb[78].mxu0 }
 0x195   : > { %2385 = vst [vmem:[%s3234_s12 + $0x68] sm:$0xff] %v2361_v44   ;;  %v2610_v50 = vpop.f32.mrb[79].mxu1  ;;  %v1639_v34 = vpop.f32.mrb[79].mxu0 }
 0x196   : > { %2384 = vst [vmem:[%s3234_s12 + $0x60] sm:$0xff] %v2356_v46   ;;  %v1484_v26 = vadd.f32 %v2608_v27, %v3159_v32  ;;  %v1785_v15 = vadd.f32 %v3214_v63, %v1637_v20  ;;  %v2611_v29 = vadd.f32 %v2610_v50, %v2609_v45  ;;  %v1640_v54 = vadd.f32 %v1639_v34, %v1479_v49 }
 0x198   : > { %v1645_v60 = vadd.f32 %v2682_v6, %v1484_v26  ;;  %v1487_v55 = vadd.f32 %v2611_v29, %v3161_v38  ;;  %v1786_v23 = vadd.f32 %v3214_v63, %v1640_v54  ;;  %v1817_v2 = vmax.f32 %v1785_v15, 0.0 }
 0x19a   : > { %v1787_v59 = vadd.f32 %v3214_v63, %v1645_v60  ;;  %v1648_v0 = vadd.f32 %v2683_v48, %v1487_v55  ;;  %v1818_v36 = vmax.f32 %v1786_v23, 0.0 }
 0x19c   : > { %v1788_v1 = vadd.f32 %v3214_v63, %v1648_v0  ;;  %v2366_v42 = vpack.c.bf16 %v1818_v36, %v1817_v2  ;;  %v1819_v24 = vmax.f32 %v1787_v59, 0.0 }
 0x19e   : > { %v1820_v32 = vmax.f32 %v1788_v1, 0.0  ;;  %2386 = vst [vmem:[%s3234_s12 + $0x70] sm:$0xff] %v2366_v42  }
 0x1a0   : > { %v2371_v9 = vpack.c.bf16 %v1820_v32, %v1819_v24 }
 0x1a2   : > { %2387 = vst [vmem:[%s3234_s12 + $0x78] sm:$0xff] %v2371_v9  }
 0x1a3 PF: > { %s13_s14 = sadd.s32 1, %s2899_s14   ;;  %s3333_s12 = smov %s2895_s13 }
 0x1a4   : > { %p10_p5 = scmp.ge.s32.totalorder %s13_s14, 4   ;;  %s3334_s13 = smov %s3336_s15 }
 0x1a6   :  { %12 = sbr.rel (!%p10_p5) target bundleno = 2 (0x2), region = 76 }

// kernel: _lambda_.15
= control target key start
LH: loop header
LB: loop body
LE: loop exit
PB: predicated region body
PF: predicated region fallthrough
CT: control target
= control target key end

     0   :  { %s3178_s15 = smov 0   ;;  %s3180_s16 = smov 0   ;;  %s3617_s0 = inlined_call_operand.vmem [shape: bf16[512,640], index: 0, kind: input, shape index: {}]   ;;  %s3618_s1 = inlined_call_operand.vmem [shape: bf16[640,128], index: 1, kind: input, shape index: {}]   ;;  %s3619_s2 = inlined_call_operand.vmem [shape: f32[1,128], index: 2, kind: input, shape index: {}]   ;;  %s3620_s3 = inlined_call_operand.vmem [shape: bf16[512,128], index: 3, kind: input, shape index: {}]   ;;  %s3621_s4 = inlined_call_operand.vmem [shape: bf16[512,128], index: 4, kind: output, shape index: {}]  }
   0x1   :  { %s3182_s17 = smov 0  }
   0x2 LB: > { %s33_s18 = sadd.s32 1, %s3147_s16  ;;  %p2272_p0 = scmp.ge.s32.totalorder %s3151_s17, 1  ;;  %s3151_s17 = sphi %s3182_s17, %s14_s17   ;;  %s3147_s16 = sphi %s3180_s16, %s3623_s16   ;;  %s3143_s15 = sphi %s3178_s15, %s3622_s15  }
   0x3   : > { %p35_p1 = scmp.ge.s32.totalorder %s33_s18, 2  ;;  %p232_p2 = scmp.lt.s32.totalorder %s3151_s17, 3 }
   0x5   : > { %s3625_s18 = smov (%p35_p1, %s33_s18), 0  ;;  %p233_p3 = pnand %p2272_p0, %p232_p2 }
   0x6   : > { %v2977_v0 = vld [vmem:[%s3618_s1 + $0x40] sm:$0xff] (!%p233_p3)   ;;  %s2273_s21 = sshll.u32 (!%p233_p3), %s3143_s15, 5  ;;  %v2979_v2 = vld [vmem:[%s3618_s1 + $0x48] sm:$0xff] (!%p233_p3)   ;;  %v2981_v4 = vld [vmem:[%s3618_s1 + $0x50] sm:$0xff] (!%p233_p3)  }
   0x7   : > { %236 = sbr.rel (%p233_p3) target bundleno = 421 (0x1a5), region = 36  ;;  %v2978_v1 = vld [vmem:[%s3618_s1] sm:$0xff] (!%p233_p3)   ;;  %2640 = vmatprep.subr.bf16.mxu0 (!%p233_p3), %v2977_v0  ;;  %2936 = vmatprep.subr.bf16.mxu1 (!%p233_p3), %v2977_v0  ;;  %p287_p4 = scmp.lt.s32.totalorder (!%p233_p3), %s2273_s21, 63  ;;  %v2980_v3 = vld [vmem:[%s3618_s1 + $0x8] sm:$0xff] (!%p233_p3)   ;;  %v2982_v5 = vld [vmem:[%s3618_s1 + $0x10] sm:$0xff] (!%p233_p3)  }
   0x8   : > { %2641 = vmatpush3.bf16.msra.mxu0 (!%p233_p3), %v2978_v1  ;;  %2944 = vmatpush3.bf16.msra.mxu1 (!%p233_p3), %v2978_v1  ;;  %v2983_v6 = vld [vmem:[%s3618_s1 + $0x58] sm:$0xff] (!%p233_p3)   ;;  %v2985_v8 = vld [vmem:[%s3618_s1 + $0x60] sm:$0xff] (!%p233_p3)   ;;  %v2987_v10 = vld [vmem:[%s3618_s1 + $0x68] sm:$0xff] (!%p233_p3)  }
   0x9   : > { %2642 = vmatprep.subr.bf16.mxu0 (!%p233_p3), %v2979_v2  ;;  %2937 = vmatprep.subr.bf16.mxu1 (!%p233_p3), %v2979_v2  ;;  %v2984_v7 = vld [vmem:[%s3618_s1 + $0x18] sm:$0xff] (!%p233_p3)   ;;  %v2986_v9 = vld [vmem:[%s3618_s1 + $0x20] sm:$0xff] (!%p233_p3)   ;;  %v2988_v13 = vld [vmem:[%s3618_s1 + $0x28] sm:$0xff] (!%p233_p3)  }
   0xa   : > { %v2989_v14 = vld [vmem:[%s3618_s1 + $0x70] sm:$0xff] (!%p233_p3)   ;;  %v2991_v16 = vld [vmem:[%s3618_s1 + $0x78] sm:$0xff] (!%p233_p3)   ;;  %v2999_v18 = vld [vmem:[%s3618_s1 + $0xc0] sm:$0xff] (!%p233_p3)  }
   0xb   : > { %v2990_v15 = vld [vmem:[%s3618_s1 + $0x30] sm:$0xff] (!%p233_p3)   ;;  %v2992_v17 = vld [vmem:[%s3618_s1 + $0x38] sm:$0xff] (!%p233_p3)   ;;  %v3002_v19 = vld [vmem:[%s3618_s1 + $0x100] sm:$0xff] (!%p233_p3)  }
   0xc   : > { %2643 = vmatpush3.bf16.msra.mxu0 (!%p233_p3), %v2980_v3  ;;  %2945 = vmatpush3.bf16.msra.mxu1 (!%p233_p3), %v2980_v3  ;;  %v3000_v22 = vld [vmem:[%s3618_s1 + $0x80] sm:$0xff] (!%p233_p3)   ;;  %v3001_v23 = vld [vmem:[%s3618_s1 + $0xc8] sm:$0xff] (!%p233_p3)   ;;  %v3010_v29 = vld [vmem:[%s3618_s1 + $0xd0] sm:$0xff] (!%p233_p3)  }
   0xd   : > { %2644 = vmatprep.subr.bf16.mxu0 (!%p233_p3), %v2981_v4  ;;  %2938 = vmatprep.subr.bf16.mxu1 (!%p233_p3), %v2981_v4  ;;  %v3021_v26 = vld [vmem:[%s3618_s1 + $0x108] sm:$0xff] (!%p233_p3)   ;;  %v3011_v31 = vld [vmem:[%s3618_s1 + $0x90] sm:$0xff] (!%p233_p3)   ;;  %v3012_v33 = vld [vmem:[%s3618_s1 + $0xd8] sm:$0xff] (!%p233_p3)  }
   0xe   : > { %s3627_s21 = smov (!%p287_p4, %s2273_s21), 63  ;;  %v3003_v27 = vld [vmem:[%s3618_s1 + $0x88] sm:$0xff]   ;;  %v3013_v35 = vld [vmem:[%s3618_s1 + $0x98] sm:$0xff]   ;;  %v3020_v36 = vld [vmem:[%s3618_s1 + $0xe0] sm:$0xff]  }
   0xf   : > { %s2952_s8 = smul.u32 20, %s3627_s21  ;;  %v3034_v38 = vld [vmem:[%s3618_s1 + $0x110] sm:$0xff]   ;;  %v3022_v40 = vld [vmem:[%s3618_s1 + $0xa0] sm:$0xff]   ;;  %v3023_v41 = vld [vmem:[%s3618_s1 + $0xe8] sm:$0xff]  }
  0x10   : > { %2645 = vmatpush3.bf16.msra.mxu0 %v2982_v5  ;;  %2946 = vmatpush3.bf16.msra.mxu1 %v2982_v5  ;;  %v3024_v44 = vld [vmem:[%s3618_s1 + $0xa8] sm:$0xff]   ;;  %v3048_v45 = vld [vmem:[%s3618_s1 + $0x118] sm:$0xff]   ;;  %v3031_v48 = vld [vmem:[%s3618_s1 + $0xf0] sm:$0xff]  }
  0x11   : > { %2646 = vmatprep.subr.bf16.mxu0 %v2983_v6  ;;  %2939 = vmatprep.subr.bf16.mxu1 %v2983_v6  ;;  %s3229_s15 = scalar_lea.vmem %s3617_s0, %s2952_s8  ;;  %v3032_v49 = vld [vmem:[%s3618_s1 + $0xb0] sm:$0xff]   ;;  %v3033_v50 = vld [vmem:[%s3618_s1 + $0xf8] sm:$0xff]   ;;  %v3055_v52 = vld [vmem:[%s3618_s1 + $0x120] sm:$0xff]  }
  0x12   : > { %v2995_v11 = vld [vmem:[%s3229_s15 + $0x4] ss:$20 sps:$4 sm:$0xff]   ;;  %v2993_v20 = vld [vmem:[%s3229_s15] ss:$20 sps:$4 sm:$0xff]   ;;  %v3008_v28 = vld [vmem:[%s3229_s15 + $0x28] ss:$20 sps:$4 sm:$0xff]  }
  0x13   : > { %v2998_v12 = vld [vmem:[%s3229_s15 + $0x1e4] ss:$20 sps:$4 sm:$0xff]   ;;  %1260 = vmatprep.mubr.bf16.mxu0 %v2995_v11  ;;  %v2996_v21 = vld [vmem:[%s3229_s15 + $0x1e0] ss:$20 sps:$4 sm:$0xff]   ;;  %v3009_v30 = vld [vmem:[%s3229_s15 + $0x208] ss:$20 sps:$4 sm:$0xff]  }
  0x14   : > { %2647 = vmatpush3.bf16.msra.mxu0 %v2984_v7  ;;  %2947 = vmatpush3.bf16.msra.mxu1 %v2984_v7  ;;  %v3004_v24 = vld [vmem:[%s3229_s15 + $0x2c] ss:$20 sps:$4 sm:$0xff]   ;;  %v3014_v32 = vld [vmem:[%s3229_s15 + $0x54] ss:$20 sps:$4 sm:$0xff]   ;;  %v3018_v37 = vld [vmem:[%s3229_s15 + $0x50] ss:$20 sps:$4 sm:$0xff]  }
  0x15   : > { %2648 = vmatprep.subr.bf16.mxu0 %v2985_v8  ;;  %2940 = vmatprep.subr.bf16.mxu1 %v2985_v8  ;;  %v3006_v25 = vld [vmem:[%s3229_s15 + $0x20c] ss:$20 sps:$4 sm:$0xff]   ;;  %v3016_v34 = vld [vmem:[%s3229_s15 + $0x234] ss:$20 sps:$4 sm:$0xff]   ;;  %v3019_v39 = vld [vmem:[%s3229_s15 + $0x230] ss:$20 sps:$4 sm:$0xff]  }
  0x16   : > { %1356 = vmatprep.mubr.bf16.mxu1 %v2998_v12  ;;  %v3025_v42 = vld [vmem:[%s3229_s15 + $0x7c] ss:$20 sps:$4 sm:$0xff]   ;;  %v3029_v46 = vld [vmem:[%s3229_s15 + $0x78] ss:$20 sps:$4 sm:$0xff]   ;;  %v3041_v56 = vld [vmem:[%s3229_s15 + $0xa0] ss:$20 sps:$4 sm:$0xff]  }
  0x17   : > { %v3027_v43 = vld [vmem:[%s3229_s15 + $0x25c] ss:$20 sps:$4 sm:$0xff]   ;;  %v3030_v47 = vld [vmem:[%s3229_s15 + $0x258] ss:$20 sps:$4 sm:$0xff]   ;;  %v3044_v59 = vld [vmem:[%s3229_s15 + $0x34] ss:$20 sps:$4 sm:$0xff]  }
  0x18   : > { %2649 = vmatpush3.bf16.msra.mxu0 %v2986_v9  ;;  %2948 = vmatpush3.bf16.msra.mxu1 %v2986_v9  ;;  %v3036_v51 = vld [vmem:[%s3229_s15 + $0xa4] ss:$20 sps:$4 sm:$0xff]   ;;  %v3040_v53 = vld [vmem:[%s3229_s15 + $0xc] ss:$20 sps:$4 sm:$0xff]   ;;  %v3038_v55 = vld [vmem:[%s3229_s15 + $0x8] ss:$20 sps:$4 sm:$0xff]  }
  0x19   : > { %2650 = vmatprep.subr.bf16.mxu0 %v2987_v10  ;;  %2941 = vmatprep.subr.bf16.mxu1 %v2987_v10  ;;  %v3035_v54 = vld [vmem:[%s3618_s1 + $0xb8] sm:$0xff]   ;;  %v3068_v57 = vld [vmem:[%s3618_s1 + $0x128] sm:$0xff]   ;;  %v3075_v60 = vld [vmem:[%s3618_s1 + $0x130] sm:$0xff]  }
  0x1a   : > { %v3042_v58 = vld [vmem:[%s3229_s15 + $0xcc] ss:$20 sps:$4 sm:$0xff]   ;;  %v3046_v61 = vld [vmem:[%s3229_s15 + $0xc8] ss:$20 sps:$4 sm:$0xff]   ;;  %v3047_v62 = vld [vmem:[%s3229_s15 + $0x30] ss:$20 sps:$4 sm:$0xff]  }
  0x1b   : > { %v3049_v63 = vld [vmem:[%s3229_s15 + $0xf4] ss:$20 sps:$4 sm:$0xff]   ;;  %v3051_v0 = vld [vmem:[%s3229_s15 + $0x5c] ss:$20 sps:$4 sm:$0xff]   ;;  %v3054_v3 = vld [vmem:[%s3229_s15 + $0x58] ss:$20 sps:$4 sm:$0xff]  }
  0x1c   : > { %2651 = vmatpush3.bf16.msra.mxu0 %v2988_v13  ;;  %2949 = vmatpush3.bf16.msra.mxu1 %v2988_v13  ;;  %v3088_v1 = vld [vmem:[%s3618_s1 + $0x138] sm:$0xff]   ;;  %v3053_v2 = vld [vmem:[%s3229_s15 + $0xf0] ss:$20 sps:$4 sm:$0xff]   ;;  %v3061_v7 = vld [vmem:[%s3229_s15 + $0x80] ss:$20 sps:$4 sm:$0xff]  }
  0x1d   : > { %2652 = vmatprep.subr.bf16.mxu0 %v2989_v14  ;;  %2942 = vmatprep.subr.bf16.mxu1 %v2989_v14  ;;  %v3056_v4 = vld [vmem:[%s3229_s15 + $0x11c] ss:$20 sps:$4 sm:$0xff]   ;;  %v3058_v5 = vld [vmem:[%s3229_s15 + $0x84] ss:$20 sps:$4 sm:$0xff]   ;;  %v3064_v9 = vld [vmem:[%s3229_s15 + $0xac] ss:$20 sps:$4 sm:$0xff]  }
  0x1e   : > { %v3060_v6 = vld [vmem:[%s3229_s15 + $0x118] ss:$20 sps:$4 sm:$0xff]   ;;  %v3066_v10 = vld [vmem:[%s3229_s15 + $0x140] ss:$20 sps:$4 sm:$0xff]   ;;  %v3067_v11 = vld [vmem:[%s3229_s15 + $0xa8] ss:$20 sps:$4 sm:$0xff]  }
  0x1f   : > { %v3062_v8 = vld [vmem:[%s3229_s15 + $0x144] ss:$20 sps:$4 sm:$0xff]   ;;  %v3069_v12 = vld [vmem:[%s3229_s15 + $0x16c] ss:$20 sps:$4 sm:$0xff]   ;;  %v3071_v13 = vld [vmem:[%s3229_s15 + $0xd4] ss:$20 sps:$4 sm:$0xff]  }
  0x20   : > { %2653 = vmatpush3.bf16.msra.mxu0 %v2990_v15  ;;  %2950 = vmatpush3.bf16.msra.mxu1 %v2990_v15  ;;  %v3073_v14 = vld [vmem:[%s3229_s15 + $0x168] ss:$20 sps:$4 sm:$0xff]   ;;  %v3074_v15 = vld [vmem:[%s3229_s15 + $0xd0] ss:$20 sps:$4 sm:$0xff]  }
  0x21   : > { %2654 = vmatprep.subr.bf16.mxu0 %v2991_v16  ;;  %2943 = vmatprep.subr.bf16.mxu1 %v2991_v16  ;;  %v3076_v16 = vld [vmem:[%s3229_s15 + $0x194] ss:$20 sps:$4 sm:$0xff]  }
  0x24   : > { %2655 = vmatpush3.bf16.msra.mxu0 %v2992_v17  ;;  %2951 = vmatpush3.bf16.msra.mxu1 %v2992_v17  ;;  %v3078_v17 = vld [vmem:[%s3229_s15 + $0xfc] ss:$20 sps:$4 sm:$0xff]  }
  0x25   : > { %2752 = vmatprep.subr.bf16.mxu1 %v2999_v18  ;;  %2888 = vmatprep.subr.bf16.mxu0 %v3002_v19  ;;  %v3080_v18 = vld [vmem:[%s3229_s15 + $0x190] ss:$20 sps:$4 sm:$0xff]  }
  0x27   : > { %1261 = vmatmul.mubr.bf16.vlgmr.msra.gmra.mrb[0].mxu0 %v2993_v20  ;;  %1357 = vmatmul.mubr.bf16.vlgmr.msra.gmra.mrb[0].mxu1 %v2996_v21  ;;  %v3082_v20 = vld [vmem:[%s3229_s15 + $0x1bc] ss:$20 sps:$4 sm:$0xff]   ;;  %v3084_v21 = vld [vmem:[%s3229_s15 + $0x124] ss:$20 sps:$4 sm:$0xff]  }
  0x28   : > { %2753 = vmatpush3.bf16.msra.mxu1 %v3000_v22  ;;  %2889 = vmatpush3.bf16.msra.mxu0 %v3002_v19  ;;  %v3081_v19 = vld [vmem:[%s3229_s15 + $0xf8] ss:$20 sps:$4 sm:$0xff]  }
  0x29   : > { %2754 = vmatprep.subr.bf16.mxu1 %v3001_v23  ;;  %1268 = vmatprep.mubr.bf16.mxu0 %v3004_v24  ;;  %v3086_v22 = vld [vmem:[%s3229_s15 + $0x1b8] ss:$20 sps:$4 sm:$0xff]   ;;  %v3087_v23 = vld [vmem:[%s3229_s15 + $0x120] ss:$20 sps:$4 sm:$0xff]  }
  0x2a   : > { %1364 = vmatprep.mubr.bf16.mxu1 %v3006_v25  ;;  %2890 = vmatprep.subr.bf16.mxu0 %v3021_v26  ;;  %v3089_v24 = vld [vmem:[%s3229_s15 + $0x14c] ss:$20 sps:$4 sm:$0xff]   ;;  %v3091_v25 = vld [vmem:[%s3229_s15 + $0x10] ss:$20 sps:$4 sm:$0xff]  }
  0x2c   : > { %2755 = vmatpush3.bf16.msra.mxu1 %v3003_v27  ;;  %2891 = vmatpush3.bf16.msra.mxu0 %v3021_v26  ;;  %v3092_v26 = vld [vmem:[%s3229_s15 + $0x148] ss:$20 sps:$4 sm:$0xff]   ;;  %v3093_v27 = vld [vmem:[%s3229_s15 + $0x38] ss:$20 sps:$4 sm:$0xff]  }
  0x2d   : > { %2756 = vmatprep.subr.bf16.mxu1 %v3010_v29  ;;  %2892 = vmatprep.subr.bf16.mxu0 %v3034_v38  ;;  %v3096_v29 = vld [vmem:[%s3229_s15 + $0x60] ss:$20 sps:$4 sm:$0xff]  }
  0x2f   : > { %1269 = vmatmul.mubr.bf16.gmra.mrb[4].mxu0 %v3008_v28  ;;  %1365 = vmatmul.mubr.bf16.gmra.mrb[4].mxu1 %v3009_v30  ;;  %v3094_v28 = vld [vmem:[%s3229_s15 + $0x174] ss:$20 sps:$4 sm:$0xff]   ;;  %v3097_v30 = vld [vmem:[%s3229_s15 + $0x170] ss:$20 sps:$4 sm:$0xff]  }
  0x30   : > { %2757 = vmatpush3.bf16.msra.mxu1 %v3011_v31  ;;  %1276 = vmatprep.mubr.bf16.mxu0 %v3014_v32  ;;  %v3098_v31 = vld [vmem:[%s3229_s15 + $0x88] ss:$20 sps:$4 sm:$0xff]  }
  0x31   : > { %2758 = vmatprep.subr.bf16.mxu1 %v3012_v33  ;;  %1372 = vmatprep.mubr.bf16.mxu1 %v3016_v34  ;;  %v3099_v32 = vld [vmem:[%s3229_s15 + $0x19c] ss:$20 sps:$4 sm:$0xff]   ;;  %v3102_v34 = vld [vmem:[%s3229_s15 + $0x198] ss:$20 sps:$4 sm:$0xff]  }
  0x32   : > { %2893 = vmatpush3.bf16.msra.mxu0 %v3034_v38  ;;  %v3101_v33 = vld [vmem:[%s3229_s15 + $0xb0] ss:$20 sps:$4 sm:$0xff]   ;;  %v3107_v38 = vld [vmem:[%s3229_s15 + $0x1c0] ss:$20 sps:$4 sm:$0xff]  }
  0x33   : > { %2894 = vmatprep.subr.bf16.mxu0 %v3048_v45 }
  0x34   : > { %2759 = vmatpush3.bf16.msra.mxu1 %v3013_v35  ;;  %v3103_v35 = vld [vmem:[%s3229_s15 + $0xd8] ss:$20 sps:$4 sm:$0xff]  }
  0x35   : > { %2760 = vmatprep.subr.bf16.mxu1 %v3020_v36  ;;  %v3104_v36 = vld [vmem:[%s3229_s15 + $0x1c4] ss:$20 sps:$4 sm:$0xff]  }
  0x36   : > { %2895 = vmatpush3.bf16.msra.mxu0 %v3048_v45  ;;  %v3116_v45 = vld [vmem:[%s3229_s15 + $0x1a0] ss:$20 sps:$4 sm:$0xff]  }
  0x37   : > { %1277 = vmatmul.mubr.bf16.gmra.mrb[8].mxu0 %v3018_v37  ;;  %1373 = vmatmul.mubr.bf16.gmra.mrb[8].mxu1 %v3019_v39  ;;  %v3106_v37 = vld [vmem:[%s3229_s15 + $0x100] ss:$20 sps:$4 sm:$0xff]   ;;  %v3108_v39 = vld [vmem:[%s3229_s15 + $0x128] ss:$20 sps:$4 sm:$0xff]  }
  0x38   : > { %2761 = vmatpush3.bf16.msra.mxu1 %v3022_v40  ;;  %1284 = vmatprep.mubr.bf16.mxu0 %v3025_v42  ;;  %v3109_v40 = vld [vmem:[%s3229_s15 + $0x1ec] ss:$20 sps:$4 sm:$0xff]   ;;  %v3112_v42 = vld [vmem:[%s3229_s15 + $0x1e8] ss:$20 sps:$4 sm:$0xff]  }
  0x39   : > { %2762 = vmatprep.subr.bf16.mxu1 %v3023_v41  ;;  %1380 = vmatprep.mubr.bf16.mxu1 %v3027_v43  ;;  %v3111_v41 = vld [vmem:[%s3229_s15 + $0x150] ss:$20 sps:$4 sm:$0xff]   ;;  %v3113_v43 = vld [vmem:[%s3229_s15 + $0x178] ss:$20 sps:$4 sm:$0xff]  }
  0x3a   : > { %2896 = vmatprep.subr.bf16.mxu0 %v3055_v52 }
  0x3b   : > { %2897 = vmatpush3.bf16.msra.mxu0 %v3055_v52  ;;  %v3124_v52 = vld [vmem:[%s3229_s15 + $0x264] ss:$20 sps:$4 sm:$0xff]  }
  0x3c   : > { %2763 = vmatpush3.bf16.msra.mxu1 %v3024_v44  ;;  %2898 = vmatprep.subr.bf16.mxu0 %v3068_v57  ;;  %v3114_v44 = vld [vmem:[%s3229_s15 + $0x214] ss:$20 sps:$4 sm:$0xff]  }
  0x3d   : > { %2764 = vmatprep.subr.bf16.mxu1 %v3031_v48  ;;  %v3119_v48 = vld [vmem:[%s3229_s15 + $0x23c] ss:$20 sps:$4 sm:$0xff]  }
  0x3f   : > { %1285 = vmatmul.mubr.bf16.gmra.mrb[12].mxu0 %v3029_v46  ;;  %1381 = vmatmul.mubr.bf16.gmra.mrb[12].mxu1 %v3030_v47  ;;  %v3117_v46 = vld [vmem:[%s3229_s15 + $0x210] ss:$20 sps:$4 sm:$0xff]   ;;  %v3118_v47 = vld [vmem:[%s3229_s15 + $0x1c8] ss:$20 sps:$4 sm:$0xff]  }
  0x40   : > { %2765 = vmatpush3.bf16.msra.mxu1 %v3032_v49  ;;  %1292 = vmatprep.mubr.bf16.mxu0 %v3036_v51  ;;  %v3121_v49 = vld [vmem:[%s3229_s15 + $0x1f0] ss:$20 sps:$4 sm:$0xff]   ;;  %v3123_v51 = vld [vmem:[%s3229_s15 + $0x218] ss:$20 sps:$4 sm:$0xff]  }
  0x41   : > { %2766 = vmatprep.subr.bf16.mxu1 %v3033_v50  ;;  %1421 = vmatprep.mubr.bf16.mxu1 %v3040_v53  ;;  %v3122_v50 = vld [vmem:[%s3229_s15 + $0x238] ss:$20 sps:$4 sm:$0xff]   ;;  %v3126_v53 = vld [vmem:[%s3229_s15 + $0x240] ss:$20 sps:$4 sm:$0xff]  }
  0x42   : > { %2899 = vmatpush3.bf16.msra.mxu0 %v3068_v57 }
  0x43   : > { %2900 = vmatprep.subr.bf16.mxu0 %v3075_v60 }
  0x44   : > { %2767 = vmatpush3.bf16.msra.mxu1 %v3035_v54  ;;  %v3127_v54 = vld [vmem:[%s3229_s15 + $0x260] ss:$20 sps:$4 sm:$0xff]  }
  0x46   : > { %2901 = vmatpush3.bf16.msra.mxu0 %v3075_v60 }
  0x47   : > { %1293 = vmatmul.mubr.bf16.gmra.mrb[16].mxu0 %v3041_v56  ;;  %1422 = vmatmul.mubr.bf16.vlgmr.msra.gmra.mrb[16].mxu1 %v3038_v55  ;;  %v3128_v55 = vld [vmem:[%s3229_s15 + $0x268] ss:$20 sps:$4 sm:$0xff]   ;;  %s2276_s15 = sshll.u32 %s3627_s21, 2 }
  0x48   : > { %1300 = vmatprep.mubr.bf16.mxu0 %v3042_v58  ;;  %1429 = vmatprep.mubr.bf16.mxu1 %v3044_v59  ;;  %s3470_s20 = scalar_lea.vmem %s3620_s3, %s2276_s15  ;;  %s3508_s26 = scalar_lea.vmem %s3621_s4, %s2276_s15 }
  0x49   : > { %2902 = vmatprep.subr.bf16.mxu0 %v3088_v1 }
  0x4a   : > { %2903 = vmatpush3.bf16.msra.mxu0 %v3088_v1 }
  0x4f   : > { %1301 = vmatmul.mubr.bf16.gmra.mrb[20].mxu0 %v3046_v61  ;;  %1430 = vmatmul.mubr.bf16.gmra.mrb[20].mxu1 %v3047_v62 }
  0x50   : > { %1308 = vmatprep.mubr.bf16.mxu0 %v3049_v63  ;;  %1437 = vmatprep.mubr.bf16.mxu1 %v3051_v0 }
  0x57   : > { %1309 = vmatmul.mubr.bf16.gmra.mrb[24].mxu0 %v3053_v2  ;;  %1438 = vmatmul.mubr.bf16.gmra.mrb[24].mxu1 %v3054_v3 }
  0x58   : > { %1316 = vmatprep.mubr.bf16.mxu0 %v3056_v4  ;;  %1445 = vmatprep.mubr.bf16.mxu1 %v3058_v5 }
  0x5f   : > { %1317 = vmatmul.mubr.bf16.gmra.mrb[28].mxu0 %v3060_v6  ;;  %1446 = vmatmul.mubr.bf16.gmra.mrb[28].mxu1 %v3061_v7 }
  0x60   : > { %1324 = vmatprep.mubr.bf16.mxu0 %v3062_v8  ;;  %1453 = vmatprep.mubr.bf16.mxu1 %v3064_v9 }
  0x67   : > { %1325 = vmatmul.mubr.bf16.gmra.mrb[32].mxu0 %v3066_v10  ;;  %1454 = vmatmul.mubr.bf16.gmra.mrb[32].mxu1 %v3067_v11 }
  0x68   : > { %1332 = vmatprep.mubr.bf16.mxu0 %v3069_v12  ;;  %1461 = vmatprep.mubr.bf16.mxu1 %v3071_v13 }
  0x6f   : > { %1333 = vmatmul.mubr.bf16.gmra.mrb[36].mxu0 %v3073_v14  ;;  %1462 = vmatmul.mubr.bf16.gmra.mrb[36].mxu1 %v3074_v15 }
  0x70   : > { %1340 = vmatprep.mubr.bf16.mxu0 %v3076_v16  ;;  %1469 = vmatprep.mubr.bf16.mxu1 %v3078_v17 }
  0x77   : > { %1341 = vmatmul.mubr.bf16.gmra.mrb[40].mxu0 %v3080_v18  ;;  %1470 = vmatmul.mubr.bf16.gmra.mrb[40].mxu1 %v3081_v19 }
  0x78   : > { %1348 = vmatprep.mubr.bf16.mxu0 %v3082_v20  ;;  %1477 = vmatprep.mubr.bf16.mxu1 %v3084_v21 }
  0x7f   : > { %1349 = vmatmul.mubr.bf16.gmra.mrb[44].mxu0 %v3086_v22  ;;  %1478 = vmatmul.mubr.bf16.gmra.mrb[44].mxu1 %v3087_v23 }
  0x80   : > { %1485 = vmatprep.mubr.bf16.mxu1 %v3089_v24  ;;  %2904 = vmatprep.mubr.bf16.mxu0 %v3091_v25 }
  0x87   : > { %1486 = vmatmul.mubr.bf16.gmra.mrb[48].mxu1 %v3092_v26  ;;  %2905 = vmatmul.mubr.bf16.vlgmr.msra.gmra.mrb[48].mxu0 %v3093_v27 }
  0x88   : > { %1493 = vmatprep.mubr.bf16.mxu1 %v3094_v28  ;;  %2908 = vmatprep.mubr.bf16.mxu0 %v3096_v29 }
  0x8f   : > { %1494 = vmatmul.mubr.bf16.gmra.mrb[52].mxu1 %v3097_v30  ;;  %2909 = vmatmul.mubr.bf16.gmra.mrb[52].mxu0 %v3098_v31 }
  0x90   : > { %1501 = vmatprep.mubr.bf16.mxu1 %v3099_v32  ;;  %2912 = vmatprep.mubr.bf16.mxu0 %v3101_v33 }
  0x97   : > { %1502 = vmatmul.mubr.bf16.gmra.mrb[56].mxu1 %v3102_v34  ;;  %2913 = vmatmul.mubr.bf16.gmra.mrb[56].mxu0 %v3103_v35 }
  0x98   : > { %1509 = vmatprep.mubr.bf16.mxu1 %v3104_v36  ;;  %2916 = vmatprep.mubr.bf16.mxu0 %v3106_v37 }
  0x9f   : > { %1510 = vmatmul.mubr.bf16.gmra.mrb[60].mxu1 %v3107_v38  ;;  %2917 = vmatmul.mubr.bf16.gmra.mrb[60].mxu0 %v3108_v39 }
  0xa0   : > { %1517 = vmatprep.mubr.bf16.mxu1 %v3109_v40  ;;  %2920 = vmatprep.mubr.bf16.mxu0 %v3111_v41 }
  0xa7   : > { %1518 = vmatmul.mubr.bf16.gmra.mrb[64].mxu1 %v3112_v42  ;;  %2921 = vmatmul.mubr.bf16.gmra.mrb[64].mxu0 %v3113_v43 }
  0xa8   : > { %1525 = vmatprep.mubr.bf16.mxu1 %v3114_v44  ;;  %2924 = vmatprep.mubr.bf16.mxu0 %v3116_v45 }
  0xaf   : > { %1526 = vmatmul.mubr.bf16.gmra.mrb[68].mxu1 %v3117_v46  ;;  %2925 = vmatmul.mubr.bf16.gmra.mrb[68].mxu0 %v3118_v47 }
  0xb0   : > { %1533 = vmatprep.mubr.bf16.mxu1 %v3119_v48  ;;  %2928 = vmatprep.mubr.bf16.mxu0 %v3121_v49 }
  0xb7   : > { %1534 = vmatmul.mubr.bf16.gmra.mrb[72].mxu1 %v3122_v50  ;;  %2929 = vmatmul.mubr.bf16.gmra.mrb[72].mxu0 %v3123_v51 }
  0xb8   : > { %1541 = vmatprep.mubr.bf16.mxu1 %v3124_v52  ;;  %2932 = vmatprep.mubr.bf16.mxu0 %v3126_v53 }
  0xbf   : > { %1542 = vmatmul.mubr.bf16.gmra.mrb[76].mxu1 %v3127_v54  ;;  %2933 = vmatmul.mubr.bf16.gmra.mrb[76].mxu0 %v3128_v55 }
  0xfa   : > { %v2728_v56 = vpop.f32.mrb[0].mxu1  ;;  %v2656_v57 = vpop.f32.mrb[0].mxu0 }
  0xfb   : > { %v2729_v58 = vpop.f32.mrb[1].mxu1  ;;  %v2657_v59 = vpop.f32.mrb[1].mxu0 }
  0xfc   : > { %v3404_v60 = vadd.f32 %v2729_v58, %v2728_v56  ;;  %v2731_v61 = vpop.f32.mrb[2].mxu1  ;;  %v2658_v62 = vadd.f32 %v2657_v59, %v2656_v57  ;;  %v2659_v63 = vpop.f32.mrb[2].mxu0 }
  0xfd   : > { %v2732_v0 = vpop.f32.mrb[3].mxu1  ;;  %v2660_v1 = vpop.f32.mrb[3].mxu0 }
  0xfe   : > { %v3406_v2 = vadd.f32 %v2732_v0, %v2731_v61  ;;  %v2661_v3 = vadd.f32 %v2660_v1, %v2659_v63 }
 0x102   : > { %v2734_v4 = vpop.f32.mrb[4].mxu1  ;;  %v2662_v5 = vpop.f32.mrb[4].mxu0 }
 0x103   : > { %v2735_v6 = vpop.f32.mrb[5].mxu1  ;;  %v2663_v7 = vpop.f32.mrb[5].mxu0 }
 0x104   : > { %v3408_v8 = vadd.f32 %v2735_v6, %v2734_v4  ;;  %v2737_v9 = vpop.f32.mrb[6].mxu1  ;;  %v2664_v10 = vadd.f32 %v2663_v7, %v2662_v5  ;;  %v2665_v11 = vpop.f32.mrb[6].mxu0 }
 0x105   : > { %v2738_v12 = vpop.f32.mrb[7].mxu1  ;;  %v2666_v13 = vpop.f32.mrb[7].mxu0 }
 0x106   : > { %v3410_v14 = vadd.f32 %v2738_v12, %v2737_v9  ;;  %v2667_v15 = vadd.f32 %v2666_v13, %v2665_v11 }
 0x10a   : > { %v2740_v16 = vpop.f32.mrb[8].mxu1  ;;  %v2668_v17 = vpop.f32.mrb[8].mxu0 }
 0x10b   : > { %v2741_v18 = vpop.f32.mrb[9].mxu1  ;;  %v2669_v19 = vpop.f32.mrb[9].mxu0 }
 0x10c   : > { %v3412_v20 = vadd.f32 %v2741_v18, %v2740_v16  ;;  %v2743_v21 = vpop.f32.mrb[10].mxu1  ;;  %v2670_v22 = vadd.f32 %v2669_v19, %v2668_v17  ;;  %v2671_v23 = vpop.f32.mrb[10].mxu0 }
 0x10d   : > { %v2744_v24 = vpop.f32.mrb[11].mxu1  ;;  %v2672_v25 = vpop.f32.mrb[11].mxu0 }
 0x10e   : > { %v3414_v26 = vadd.f32 %v2744_v24, %v2743_v21  ;;  %v2673_v27 = vadd.f32 %v2672_v25, %v2671_v23 }
 0x112   : > { %v2746_v28 = vpop.f32.mrb[12].mxu1  ;;  %v2674_v29 = vpop.f32.mrb[12].mxu0 }
 0x113   : > { %v2747_v30 = vpop.f32.mrb[13].mxu1  ;;  %v2675_v31 = vpop.f32.mrb[13].mxu0 }
 0x114   : > { %v3416_v32 = vadd.f32 %v2747_v30, %v2746_v28  ;;  %v2749_v33 = vpop.f32.mrb[14].mxu1  ;;  %v2676_v34 = vadd.f32 %v2675_v31, %v2674_v29  ;;  %v2677_v35 = vpop.f32.mrb[14].mxu0 }
 0x115   : > { %v2750_v36 = vpop.f32.mrb[15].mxu1  ;;  %v2678_v37 = vpop.f32.mrb[15].mxu0 }
 0x116   : > { %v3418_v38 = vadd.f32 %v2750_v36, %v2749_v33  ;;  %v2679_v39 = vadd.f32 %v2678_v37, %v2677_v35 }
 0x11a   : > { %v2768_v40 = vpop.f32.mrb[16].mxu1  ;;  %v2680_v41 = vpop.f32.mrb[16].mxu0 }
 0x11b   : > { %v2769_v42 = vpop.f32.mrb[17].mxu1  ;;  %v2681_v43 = vpop.f32.mrb[17].mxu0 }
 0x11c   : > { %v2770_v44 = vadd.f32 %v2769_v42, %v2768_v40  ;;  %v2771_v45 = vpop.f32.mrb[18].mxu1  ;;  %v2682_v46 = vadd.f32 %v2681_v43, %v2680_v41  ;;  %v2683_v47 = vpop.f32.mrb[18].mxu0 }
 0x11d   : > { %v2772_v48 = vpop.f32.mrb[19].mxu1  ;;  %v2684_v49 = vpop.f32.mrb[19].mxu0 }
 0x11e   : > { %v2773_v50 = vadd.f32 %v2772_v48, %v2771_v45  ;;  %v2685_v51 = vadd.f32 %v2684_v49, %v2683_v47  ;;  %v3420_v52 = vadd.f32 %v2770_v44, %v2658_v62 }
 0x120   : > { %v3422_v53 = vadd.f32 %v2773_v50, %v2661_v3 }
 0x122   : > { %v2774_v54 = vpop.f32.mrb[20].mxu1  ;;  %v2686_v55 = vpop.f32.mrb[20].mxu0 }
 0x123   : > { %v2775_v56 = vpop.f32.mrb[21].mxu1  ;;  %v2687_v57 = vpop.f32.mrb[21].mxu0 }
 0x124   : > { %v2776_v58 = vadd.f32 %v2775_v56, %v2774_v54  ;;  %v2777_v59 = vpop.f32.mrb[22].mxu1  ;;  %v2688_v61 = vadd.f32 %v2687_v57, %v2686_v55  ;;  %v2689_v63 = vpop.f32.mrb[22].mxu0 }
 0x125   : > { %v2778_v0 = vpop.f32.mrb[23].mxu1  ;;  %v2690_v1 = vpop.f32.mrb[23].mxu0 }
 0x126   : > { %v2779_v4 = vadd.f32 %v2778_v0, %v2777_v59  ;;  %v2691_v5 = vadd.f32 %v2690_v1, %v2689_v63  ;;  %v3424_v6 = vadd.f32 %v2776_v58, %v2664_v10 }
 0x128   : > { %v3426_v7 = vadd.f32 %v2779_v4, %v2667_v15 }
 0x12a   : > { %v2780_v62 = vpop.f32.mrb[24].mxu1  ;;  %v2692_v9 = vpop.f32.mrb[24].mxu0 }
 0x12b   : > { %v2781_v3 = vpop.f32.mrb[25].mxu1  ;;  %v2693_v11 = vpop.f32.mrb[25].mxu0 }
 0x12c   : > { %v2782_v12 = vadd.f32 %v2781_v3, %v2780_v62  ;;  %v2783_v13 = vpop.f32.mrb[26].mxu1  ;;  %v2694_v16 = vadd.f32 %v2693_v11, %v2692_v9  ;;  %v2695_v17 = vpop.f32.mrb[26].mxu0 }
 0x12d   : > { %v2784_v18 = vpop.f32.mrb[27].mxu1  ;;  %v2696_v19 = vpop.f32.mrb[27].mxu0 }
 0x12e   : > { %v2785_v21 = vadd.f32 %v2784_v18, %v2783_v13  ;;  %v2697_v23 = vadd.f32 %v2696_v19, %v2695_v17  ;;  %v3428_v24 = vadd.f32 %v2782_v12, %v2670_v22 }
 0x130   : > { %v3430_v25 = vadd.f32 %v2785_v21, %v2673_v27 }
 0x132   : > { %v2786_v10 = vpop.f32.mrb[28].mxu1  ;;  %v2698_v28 = vpop.f32.mrb[28].mxu0 }
 0x133   : > { %v2787_v15 = vpop.f32.mrb[29].mxu1  ;;  %v2699_v29 = vpop.f32.mrb[29].mxu0 }
 0x134   : > { %v2788_v30 = vadd.f32 %v2787_v15, %v2786_v10  ;;  %v2789_v31 = vpop.f32.mrb[30].mxu1  ;;  %v3432_v33 = vadd.f32 %v2699_v29, %v2698_v28  ;;  %v2701_v35 = vpop.f32.mrb[30].mxu0 }
 0x135   : > { %v2790_v36 = vpop.f32.mrb[31].mxu1  ;;  %v2702_v37 = vpop.f32.mrb[31].mxu0 }
 0x136   : > { %v2791_v40 = vadd.f32 %v2790_v36, %v2789_v31  ;;  %v2703_v41 = vadd.f32 %v2702_v37, %v2701_v35  ;;  %v3434_v42 = vadd.f32 %v2788_v30, %v2676_v34 }
 0x138   : > { %v3436_v43 = vadd.f32 %v2791_v40, %v2679_v39 }
 0x13a   : > { %v2792_v22 = vpop.f32.mrb[32].mxu1  ;;  %v2704_v27 = vpop.f32.mrb[32].mxu0 }
 0x13b   : > { %v2793_v44 = vpop.f32.mrb[33].mxu1  ;;  %v2705_v45 = vpop.f32.mrb[33].mxu0 }
 0x13c   : > { %v2794_v47 = vadd.f32 %v2793_v44, %v2792_v22  ;;  %v2795_v48 = vpop.f32.mrb[34].mxu1  ;;  %v3438_v49 = vadd.f32 %v2705_v45, %v2704_v27  ;;  %v2707_v50 = vpop.f32.mrb[34].mxu0 }
 0x13d   : > { %v2796_v54 = vpop.f32.mrb[35].mxu1  ;;  %v2708_v55 = vpop.f32.mrb[35].mxu0 }
 0x13e   : > { %v2797_v56 = vadd.f32 %v2796_v54, %v2795_v48  ;;  %v3440_v57 = vadd.f32 %v2708_v55, %v2707_v50  ;;  %v3442_v58 = vadd.f32 %v2794_v47, %v2682_v46 }
 0x140   : > { %v3444_v34 = vadd.f32 %v2797_v56, %v2685_v51  ;;  %v2610_v56 = vld [vmem:[%s3470_s20 + $0x8] sm:$0xff]  }
 0x142   : > { %v2798_v39 = vpop.f32.mrb[36].mxu1  ;;  %v2710_v59 = vpop.f32.mrb[36].mxu0 }
 0x143   : > { %v2799_v63 = vpop.f32.mrb[37].mxu1  ;;  %v2711_v0 = vpop.f32.mrb[37].mxu0 }
 0x144   : > { %v2800_v1 = vadd.f32 %v2799_v63, %v2798_v39  ;;  %v2801_v4 = vpop.f32.mrb[38].mxu1  ;;  %v3446_v62 = vadd.f32 %v2711_v0, %v2710_v59  ;;  %v2713_v9 = vpop.f32.mrb[38].mxu0  ;;  %v2467_v59 = vld [vmem:[%s3470_s20] sm:$0xff]  }
 0x145   : > { %v2802_v3 = vpop.f32.mrb[39].mxu1  ;;  %v2714_v11 = vpop.f32.mrb[39].mxu0 }
 0x146   : > { %v2803_v12 = vadd.f32 %v2802_v3, %v2801_v4  ;;  %v3448_v13 = vadd.f32 %v2714_v11, %v2713_v9  ;;  %v3450_v17 = vadd.f32 %v2800_v1, %v2688_v61  ;;  %v3484_v1 = vld [vmem:[%s3619_s2] ss:$0 sm:$0xff]  ;;  %v2472_v9 = vunpack.c.l.bf16 %v2610_v56 }
 0x148   : > { %v3452_v46 = vadd.f32 %v2803_v12, %v2691_v5 }
 0x14a   : > { %v2804_v51 = vpop.f32.mrb[40].mxu1  ;;  %v2716_v18 = vpop.f32.mrb[40].mxu0 }
 0x14b   : > { %v2805_v19 = vpop.f32.mrb[41].mxu1  ;;  %v2717_v21 = vpop.f32.mrb[41].mxu0 }
 0x14c   : > { %v2806_v10 = vadd.f32 %v2805_v19, %v2804_v51  ;;  %v2807_v28 = vpop.f32.mrb[42].mxu1  ;;  %v3454_v15 = vadd.f32 %v2717_v21, %v2716_v18  ;;  %v2719_v29 = vpop.f32.mrb[42].mxu0  ;;  %v2468_v51 = vunpack.c.l.bf16 %v2467_v59 }
 0x14d   : > { %v2808_v30 = vpop.f32.mrb[43].mxu1  ;;  %v2720_v31 = vpop.f32.mrb[43].mxu0 }
 0x14e   : > { %v2809_v35 = vadd.f32 %v2808_v30, %v2807_v28  ;;  %v3456_v36 = vadd.f32 %v2720_v31, %v2719_v29  ;;  %v3458_v61 = vadd.f32 %v2806_v10, %v2694_v16  ;;  %v2473_v10 = vunpack.c.h.bf16 %v2610_v56 }
 0x14f   : > { %v2469_v30 = vunpack.c.h.bf16 %v2467_v59 }
 0x150   : > { %v3460_v5 = vadd.f32 %v2809_v35, %v2697_v23 }
 0x152   : > { %v2810_v37 = vpop.f32.mrb[44].mxu1  ;;  %v2722_v40 = vpop.f32.mrb[44].mxu0 }
 0x153   : > { %v2811_v22 = vpop.f32.mrb[45].mxu1  ;;  %v2723_v27 = vpop.f32.mrb[45].mxu0 }
 0x154   : > { %v2812_v44 = vadd.f32 %v2811_v22, %v2810_v37  ;;  %v2813_v45 = vpop.f32.mrb[46].mxu1  ;;  %v3463_v47 = vadd.f32 %v2723_v27, %v2722_v40  ;;  %v2725_v48 = vpop.f32.mrb[46].mxu0  ;;  %v2612_v22 = vld [vmem:[%s3470_s20 + $0x18] sm:$0xff]   ;;  %v2611_v27 = vld [vmem:[%s3470_s20 + $0x10] sm:$0xff]  }
 0x155   : > { %v2814_v50 = vpop.f32.mrb[47].mxu1  ;;  %v2726_v54 = vpop.f32.mrb[47].mxu0  ;;  %v2476_v56 = vunpack.c.l.bf16 %v2611_v27 }
 0x156   : > { %v2815_v16 = vadd.f32 %v2814_v50, %v2813_v45  ;;  %v3472_v23 = vadd.f32 %v2726_v54, %v2725_v48  ;;  %v3475_v55 = vadd.f32 %v2812_v44, %v3432_v33 }
 0x158   : > { %v3478_v39 = vadd.f32 %v2815_v16, %v2703_v41 }
 0x15a   : > { %v2816_v63 = vpop.f32.mrb[48].mxu1  ;;  %v2906_v0 = vpop.f32.mrb[48].mxu0 }
 0x15b   : > { %v1593_v4 = vadd.f32 %v2906_v0, %v3424_v6  ;;  %v2817_v3 = vpop.f32.mrb[49].mxu1  ;;  %v1584_v11 = vpop.f32.mrb[49].mxu0 }
 0x15c   : > { %v2818_v12 = vadd.f32 %v2817_v3, %v2816_v63  ;;  %v1585_v33 = vadd.f32 %v1584_v11, %v3420_v52  ;;  %v2819_v41 = vpop.f32.mrb[50].mxu1  ;;  %v2907_v18 = vpop.f32.mrb[50].mxu0 }
 0x15d   : > { %v1819_v19 = vadd.f32 %v3484_v1, %v1593_v4  ;;  %v1596_v21 = vadd.f32 %v2907_v18, %v3426_v7  ;;  %v2820_v28 = vpop.f32.mrb[51].mxu1  ;;  %v1587_v29 = vpop.f32.mrb[51].mxu0 }
 0x15e   : > { %v1817_v6 = vadd.f32 %v3484_v1, %v1585_v33  ;;  %v2821_v31 = vadd.f32 %v2820_v28, %v2819_v41  ;;  %v1588_v35 = vadd.f32 %v1587_v29, %v3422_v53  ;;  %v3493_v52 = vadd.f32 %v2818_v12, %v3438_v49 }
 0x15f   : > { %v1915_v37 = vadd.f32 %v2472_v9, %v1819_v19  ;;  %v1820_v40 = vadd.f32 %v3484_v1, %v1596_v21  ;;  %v2480_v53 = vunpack.c.l.bf16 %v2612_v22  ;;  %v2481_v9 = vunpack.c.h.bf16 %v2612_v22 }
 0x160   : > { %v1913_v44 = vadd.f32 %v2468_v51, %v1817_v6  ;;  %v1818_v7 = vadd.f32 %v3484_v1, %v1588_v35  ;;  %v3500_v45 = vadd.f32 %v2821_v31, %v3440_v57  ;;  %v2614_v35 = vld [vmem:[%s3470_s20 + $0x28] sm:$0xff]  }
 0x161   : > { %v1916_v48 = vadd.f32 %v2473_v10, %v1820_v40  ;;  %v1947_v49 = vmax.f32 %v1915_v37, 0.0  ;;  %v2477_v10 = vunpack.c.h.bf16 %v2611_v27  ;;  %v2613_v37 = vld [vmem:[%s3470_s20 + $0x20] sm:$0xff]  }
 0x162   : > { %v1914_v50 = vadd.f32 %v2469_v30, %v1818_v7  ;;  %v2822_v54 = vpop.f32.mrb[52].mxu1  ;;  %v2910_v16 = vpop.f32.mrb[52].mxu0  ;;  %v1945_v3 = vmax.f32 %v1913_v44, 0.0 }
 0x163   : > { %v1948_v59 = vmax.f32 %v1916_v48, 0.0  ;;  %v1609_v63 = vadd.f32 %v2910_v16, %v3434_v42  ;;  %v2823_v0 = vpop.f32.mrb[53].mxu1  ;;  %v1600_v4 = vpop.f32.mrb[53].mxu0 }
 0x164   : > { %v1946_v57 = vmax.f32 %v1914_v50, 0.0  ;;  %v2824_v11 = vadd.f32 %v2823_v0, %v2822_v54  ;;  %v1601_v12 = vadd.f32 %v1600_v4, %v3428_v24  ;;  %v2825_v33 = vpop.f32.mrb[54].mxu1  ;;  %v2911_v51 = vpop.f32.mrb[54].mxu0  ;;  %v2488_v50 = vunpack.c.l.bf16 %v2614_v35 }
 0x165   : > { %v2538_v42 = vpack.c.bf16 %v1948_v59, %v1947_v49  ;;  %v1823_v41 = vadd.f32 %v3484_v1, %v1609_v63  ;;  %v1612_v18 = vadd.f32 %v2911_v51, %v3436_v43  ;;  %v2826_v19 = vpop.f32.mrb[55].mxu1  ;;  %v1603_v21 = vpop.f32.mrb[55].mxu0  ;;  %v2484_v54 = vunpack.c.l.bf16 %v2613_v37 }
 0x166   : > { %v2533_v28 = vpack.c.bf16 %v1946_v57, %v1945_v3  ;;  %v1821_v29 = vadd.f32 %v3484_v1, %v1601_v12  ;;  %v2827_v30 = vadd.f32 %v2826_v19, %v2825_v33  ;;  %v1604_v6 = vadd.f32 %v1603_v21, %v3430_v25 }
 0x167   : > { %2625 = vst [vmem:[%s3508_s26 + $0x8] sm:$0xff] %v2538_v42   ;;  %v1919_v24 = vadd.f32 %v2480_v53, %v1823_v41  ;;  %v1824_v31 = vadd.f32 %v3484_v1, %v1612_v18  ;;  %v3520_v40 = vadd.f32 %v2824_v11, %v3446_v62  ;;  %v2489_v63 = vunpack.c.h.bf16 %v2614_v35 }
 0x168   : > { %2534 = vst [vmem:[%s3508_s26] sm:$0xff] %v2533_v28   ;;  %v1917_v43 = vadd.f32 %v2476_v56, %v1821_v29  ;;  %v1822_v22 = vadd.f32 %v3484_v1, %v1604_v6  ;;  %v3525_v27 = vadd.f32 %v2827_v30, %v3448_v13  ;;  %v2485_v51 = vunpack.c.h.bf16 %v2613_v37  ;;  %v2615_v28 = vld [vmem:[%s3470_s20 + $0x30] sm:$0xff]  }
 0x169   : > { %v1920_v44 = vadd.f32 %v2481_v9, %v1824_v31  ;;  %v1951_v16 = vmax.f32 %v1919_v24, 0.0 }
 0x16a   : > { %v1918_v7 = vadd.f32 %v2477_v10, %v1822_v22  ;;  %v2828_v48 = vpop.f32.mrb[56].mxu1  ;;  %v2914_v25 = vpop.f32.mrb[56].mxu0  ;;  %v1949_v0 = vmax.f32 %v1917_v43, 0.0  ;;  %v2616_v10 = vld [vmem:[%s3470_s20 + $0x38] sm:$0xff]   ;;  %v2492_v43 = vunpack.c.l.bf16 %v2615_v28 }
 0x16b   : > { %v1952_v53 = vmax.f32 %v1920_v44, 0.0  ;;  %v1625_v49 = vadd.f32 %v2914_v25, %v3450_v17  ;;  %v2829_v59 = vpop.f32.mrb[57].mxu1  ;;  %v1616_v62 = vpop.f32.mrb[57].mxu0  ;;  %v2496_v37 = vunpack.c.l.bf16 %v2616_v10  ;;  %v2497_v25 = vunpack.c.h.bf16 %v2616_v10 }
 0x16c   : > { %v1950_v56 = vmax.f32 %v1918_v7, 0.0  ;;  %v2830_v4 = vadd.f32 %v2829_v59, %v2828_v48  ;;  %v1617_v13 = vadd.f32 %v1616_v62, %v3442_v58  ;;  %v2831_v9 = vpop.f32.mrb[58].mxu1  ;;  %v2915_v3 = vpop.f32.mrb[58].mxu0 }
 0x16d   : > { %v2548_v57 = vpack.c.bf16 %v1952_v53, %v1951_v16  ;;  %v1827_v11 = vadd.f32 %v3484_v1, %v1625_v49  ;;  %v1628_v12 = vadd.f32 %v2915_v3, %v3452_v46  ;;  %v2832_v17 = vpop.f32.mrb[59].mxu1  ;;  %v1619_v33 = vpop.f32.mrb[59].mxu0 }
 0x16e   : > { %v2543_v42 = vpack.c.bf16 %v1950_v56, %v1949_v0  ;;  %v1825_v41 = vadd.f32 %v3484_v1, %v1617_v13  ;;  %v2833_v18 = vadd.f32 %v2832_v17, %v2831_v9  ;;  %v1620_v19 = vadd.f32 %v1619_v33, %v3444_v34 }
 0x16f   : > { %2627 = vst [vmem:[%s3508_s26 + $0x18] sm:$0xff] %v2548_v57   ;;  %v1923_v58 = vadd.f32 %v2488_v50, %v1827_v11  ;;  %v1828_v21 = vadd.f32 %v3484_v1, %v1628_v12  ;;  %v3538_v29 = vadd.f32 %v2830_v4, %v3454_v15  ;;  %v2493_v56 = vunpack.c.h.bf16 %v2615_v28  ;;  %v2618_v11 = vld [vmem:[%s3470_s20 + $0x48] sm:$0xff]   ;;  %v2617_v12 = vld [vmem:[%s3470_s20 + $0x40] sm:$0xff]  }
 0x170   : > { %2626 = vst [vmem:[%s3508_s26 + $0x10] sm:$0xff] %v2543_v42   ;;  %v1921_v46 = vadd.f32 %v2484_v54, %v1825_v41  ;;  %v1826_v30 = vadd.f32 %v3484_v1, %v1620_v19  ;;  %v3543_v6 = vadd.f32 %v2833_v18, %v3456_v36 }
 0x171   : > { %v1924_v24 = vadd.f32 %v2489_v63, %v1828_v21  ;;  %v1955_v22 = vmax.f32 %v1923_v58, 0.0  ;;  %v2504_v58 = vunpack.c.l.bf16 %v2618_v11 }
 0x172   : > { %v1922_v31 = vadd.f32 %v2485_v51, %v1826_v30  ;;  %v2834_v35 = vpop.f32.mrb[60].mxu1  ;;  %v2918_v34 = vpop.f32.mrb[60].mxu0  ;;  %v1953_v50 = vmax.f32 %v1921_v46, 0.0 }
 0x173   : > { %v1956_v44 = vmax.f32 %v1924_v24, 0.0  ;;  %v1641_v7 = vadd.f32 %v2918_v34, %v3475_v55  ;;  %v2835_v48 = vpop.f32.mrb[61].mxu1  ;;  %v1632_v15 = vpop.f32.mrb[61].mxu0  ;;  %v2505_v24 = vunpack.c.h.bf16 %v2618_v11 }
 0x174   : > { %v1954_v54 = vmax.f32 %v1922_v31, 0.0  ;;  %v2836_v16 = vadd.f32 %v2835_v48, %v2834_v35  ;;  %v1633_v36 = vadd.f32 %v1632_v15, %v3458_v61  ;;  %v2837_v53 = vpop.f32.mrb[62].mxu1  ;;  %v2919_v49 = vpop.f32.mrb[62].mxu0  ;;  %v2501_v48 = vunpack.c.h.bf16 %v2617_v12 }
 0x175   : > { %v2558_v59 = vpack.c.bf16 %v1956_v44, %v1955_v22  ;;  %v1831_v62 = vadd.f32 %v3484_v1, %v1641_v7  ;;  %v1644_v63 = vadd.f32 %v2919_v49, %v3478_v39  ;;  %v2838_v55 = vpop.f32.mrb[63].mxu1  ;;  %v1635_v0 = vpop.f32.mrb[63].mxu0 }
 0x176   : > { %v2553_v4 = vpack.c.bf16 %v1954_v54, %v1953_v50  ;;  %v1829_v13 = vadd.f32 %v3484_v1, %v1633_v36  ;;  %v2839_v9 = vadd.f32 %v2838_v55, %v2837_v53  ;;  %v1636_v3 = vadd.f32 %v1635_v0, %v3460_v5  ;;  %v2620_v36 = vld [vmem:[%s3470_s20 + $0x58] sm:$0xff]   ;;  %v2619_v53 = vld [vmem:[%s3470_s20 + $0x50] sm:$0xff]  }
 0x177   : > { %2629 = vst [vmem:[%s3508_s26 + $0x28] sm:$0xff] %v2558_v59   ;;  %v1927_v61 = vadd.f32 %v2496_v37, %v1831_v62  ;;  %v1832_v57 = vadd.f32 %v3484_v1, %v1644_v63  ;;  %v1512_v17 = vadd.f32 %v2836_v16, %v3463_v47  ;;  %v2500_v5 = vunpack.c.l.bf16 %v2617_v12 }
 0x178   : > { %2628 = vst [vmem:[%s3508_s26 + $0x20] sm:$0xff] %v2553_v4   ;;  %v1925_v33 = vadd.f32 %v2492_v43, %v1829_v13  ;;  %v1830_v39 = vadd.f32 %v3484_v1, %v1636_v3  ;;  %v1515_v51 = vadd.f32 %v2839_v9, %v3472_v23  ;;  %v2508_v4 = vunpack.c.l.bf16 %v2619_v53 }
 0x179   : > { %v1928_v42 = vadd.f32 %v2497_v25, %v1832_v57  ;;  %v1959_v21 = vmax.f32 %v1927_v61, 0.0  ;;  %v2513_v11 = vunpack.c.h.bf16 %v2620_v36 }
 0x17a   : > { %v1926_v41 = vadd.f32 %v2493_v56, %v1830_v39  ;;  %v2840_v18 = vpop.f32.mrb[64].mxu1  ;;  %v2922_v19 = vpop.f32.mrb[64].mxu0  ;;  %v1957_v47 = vmax.f32 %v1925_v33, 0.0 }
 0x17b   : > { %v1960_v10 = vmax.f32 %v1928_v42, 0.0  ;;  %v1657_v28 = vadd.f32 %v2922_v19, %v3520_v40  ;;  %v2841_v46 = vpop.f32.mrb[65].mxu1  ;;  %v1648_v30 = vpop.f32.mrb[65].mxu0 }
 0x17c   : > { %v1958_v31 = vmax.f32 %v1926_v41, 0.0  ;;  %v2842_v35 = vadd.f32 %v2841_v46, %v2840_v18  ;;  %v1649_v34 = vadd.f32 %v1648_v30, %v3493_v52  ;;  %v2843_v23 = vpop.f32.mrb[66].mxu1  ;;  %v2923_v37 = vpop.f32.mrb[66].mxu0 }
 0x17d   : > { %v2568_v43 = vpack.c.bf16 %v1960_v10, %v1959_v21  ;;  %v1835_v22 = vadd.f32 %v3484_v1, %v1657_v28  ;;  %v1660_v44 = vadd.f32 %v2923_v37, %v3525_v27  ;;  %v2844_v40 = vpop.f32.mrb[67].mxu1  ;;  %v1651_v7 = vpop.f32.mrb[67].mxu0 }
 0x17e   : > { %v2563_v15 = vpack.c.bf16 %v1958_v31, %v1957_v47  ;;  %v1833_v25 = vadd.f32 %v3484_v1, %v1649_v34  ;;  %v2845_v50 = vadd.f32 %v2844_v40, %v2843_v23  ;;  %v1652_v54 = vadd.f32 %v1651_v7, %v3500_v45  ;;  %v2622_v47 = vld [vmem:[%s3470_s20 + $0x68] sm:$0xff]   ;;  %v2621_v31 = vld [vmem:[%s3470_s20 + $0x60] sm:$0xff]  }
 0x17f   : > { %2631 = vst [vmem:[%s3508_s26 + $0x38] sm:$0xff] %v2568_v43   ;;  %v1931_v52 = vadd.f32 %v2504_v58, %v1835_v22  ;;  %v1836_v16 = vadd.f32 %v3484_v1, %v1660_v44  ;;  %v1520_v49 = vadd.f32 %v2842_v35, %v3404_v60  ;;  %v2512_v45 = vunpack.c.l.bf16 %v2620_v36 }
 0x180   : > { %2630 = vst [vmem:[%s3508_s26 + $0x30] sm:$0xff] %v2563_v15   ;;  %v1929_v59 = vadd.f32 %v2500_v5, %v1833_v25  ;;  %v1834_v27 = vadd.f32 %v3484_v1, %v1652_v54  ;;  %v3573_v62 = vadd.f32 %v2845_v50, %v3406_v2  ;;  %v2509_v5 = vunpack.c.h.bf16 %v2619_v53 }
 0x181   : > { %v1932_v63 = vadd.f32 %v2505_v24, %v1836_v16  ;;  %v1963_v13 = vmax.f32 %v1931_v52, 0.0  ;;  %v2520_v44 = vunpack.c.l.bf16 %v2622_v47 }
 0x182   : > { %v1930_v55 = vadd.f32 %v2501_v48, %v1834_v27  ;;  %v2846_v0 = vpop.f32.mrb[68].mxu1  ;;  %v2926_v56 = vpop.f32.mrb[68].mxu0  ;;  %v1961_v60 = vmax.f32 %v1929_v59, 0.0 }
 0x183   : > { %v1964_v9 = vmax.f32 %v1932_v63, 0.0  ;;  %v1673_v3 = vadd.f32 %v2926_v56, %v1512_v17  ;;  %v2847_v61 = vpop.f32.mrb[69].mxu1  ;;  %v1664_v57 = vpop.f32.mrb[69].mxu0 }
 0x184   : > { %v1962_v12 = vmax.f32 %v1930_v55, 0.0  ;;  %v2848_v33 = vadd.f32 %v2847_v61, %v2846_v0  ;;  %v1665_v39 = vadd.f32 %v1664_v57, %v3538_v29  ;;  %v2849_v2 = vpop.f32.mrb[70].mxu1  ;;  %v2927_v42 = vpop.f32.mrb[70].mxu0  ;;  %v2517_v0 = vunpack.c.h.bf16 %v2621_v31 }
 0x185   : > { %v2578_v41 = vpack.c.bf16 %v1964_v9, %v1963_v13  ;;  %v1839_v18 = vadd.f32 %v3484_v1, %v1673_v3  ;;  %v1676_v19 = vadd.f32 %v2927_v42, %v1515_v51  ;;  %v2850_v58 = vpop.f32.mrb[71].mxu1  ;;  %v1667_v17 = vpop.f32.mrb[71].mxu0 }
 0x186   : > { %v2573_v21 = vpack.c.bf16 %v1962_v12, %v1961_v60  ;;  %v1837_v10 = vadd.f32 %v3484_v1, %v1665_v39  ;;  %v2851_v28 = vadd.f32 %v2850_v58, %v2849_v2  ;;  %v1668_v46 = vadd.f32 %v1667_v17, %v3543_v6  ;;  %v2623_v2 = vld [vmem:[%s3470_s20 + $0x70] sm:$0xff]  }
 0x187   : > { %2633 = vst [vmem:[%s3508_s26 + $0x48] sm:$0xff] %v2578_v41   ;;  %v1935_v29 = vadd.f32 %v2512_v45, %v1839_v18  ;;  %v1840_v30 = vadd.f32 %v3484_v1, %v1676_v19  ;;  %v1528_v24 = vadd.f32 %v2848_v33, %v3408_v8  ;;  %v2516_v6 = vunpack.c.l.bf16 %v2621_v31 }
 0x188   : > { %2632 = vst [vmem:[%s3508_s26 + $0x40] sm:$0xff] %v2573_v21   ;;  %v1933_v35 = vadd.f32 %v2508_v4, %v1837_v10  ;;  %v1838_v51 = vadd.f32 %v3484_v1, %v1668_v46  ;;  %v1531_v34 = vadd.f32 %v2851_v28, %v3410_v14  ;;  %v2521_v8 = vunpack.c.h.bf16 %v2622_v47 }
 0x189   : > { %v1936_v23 = vadd.f32 %v2513_v11, %v1840_v30  ;;  %v1967_v40 = vmax.f32 %v1935_v29, 0.0  ;;  %v2524_v28 = vunpack.c.l.bf16 %v2623_v2 }
 0x18a   : > { %v1934_v37 = vadd.f32 %v2509_v5, %v1838_v51  ;;  %v2852_v43 = vpop.f32.mrb[72].mxu1  ;;  %v2930_v22 = vpop.f32.mrb[72].mxu0  ;;  %v1965_v50 = vmax.f32 %v1933_v35, 0.0  ;;  %v2525_v51 = vunpack.c.h.bf16 %v2623_v2 }
 0x18b   : > { %v1968_v7 = vmax.f32 %v1936_v23, 0.0  ;;  %v1689_v48 = vadd.f32 %v2930_v22, %v1528_v24  ;;  %v2853_v15 = vpop.f32.mrb[73].mxu1  ;;  %v1680_v25 = vpop.f32.mrb[73].mxu0 }
 0x18c   : > { %v1966_v54 = vmax.f32 %v1934_v37, 0.0  ;;  %v2854_v52 = vadd.f32 %v2853_v15, %v2852_v43  ;;  %v1681_v16 = vadd.f32 %v1680_v25, %v1520_v49  ;;  %v2855_v36 = vpop.f32.mrb[74].mxu1  ;;  %v2931_v14 = vpop.f32.mrb[74].mxu0 }
 0x18d   : > { %v2588_v53 = vpack.c.bf16 %v1968_v7, %v1967_v40  ;;  %v1843_v59 = vadd.f32 %v3484_v1, %v1689_v48  ;;  %v1692_v27 = vadd.f32 %v2931_v14, %v1531_v34  ;;  %v2856_v63 = vpop.f32.mrb[75].mxu1  ;;  %v1683_v55 = vpop.f32.mrb[75].mxu0 }
 0x18e   : > { %v2583_v56 = vpack.c.bf16 %v1966_v54, %v1965_v50  ;;  %v1841_v45 = vadd.f32 %v3484_v1, %v1681_v16  ;;  %v2857_v4 = vadd.f32 %v2856_v63, %v2855_v36  ;;  %v1684_v13 = vadd.f32 %v1683_v55, %v3573_v62 }
 0x18f   : > { %2635 = vst [vmem:[%s3508_s26 + $0x58] sm:$0xff] %v2588_v53   ;;  %v1939_v9 = vadd.f32 %v2520_v44, %v1843_v59  ;;  %v1844_v49 = vadd.f32 %v3484_v1, %v1692_v27  ;;  %v1536_v3 = vadd.f32 %v2854_v52, %v3412_v20 }
 0x190   : > { %2634 = vst [vmem:[%s3508_s26 + $0x50] sm:$0xff] %v2583_v56   ;;  %v1937_v61 = vadd.f32 %v2516_v6, %v1841_v45  ;;  %v1842_v57 = vadd.f32 %v3484_v1, %v1684_v13  ;;  %v1539_v11 = vadd.f32 %v2857_v4, %v3414_v26  ;;  %v2624_v26 = vld [vmem:[%s3470_s20 + $0x78] sm:$0xff]  }
 0x191   : > { %v1940_v60 = vadd.f32 %v2521_v8, %v1844_v49  ;;  %v1971_v42 = vmax.f32 %v1939_v9, 0.0  ;;  %v2528_v23 = vunpack.c.l.bf16 %v2624_v26 }
 0x192   : > { %v1938_v12 = vadd.f32 %v2517_v0, %v1842_v57  ;;  %v2858_v33 = vpop.f32.mrb[76].mxu1  ;;  %v2934_v39 = vpop.f32.mrb[76].mxu0  ;;  %v1969_v19 = vmax.f32 %v1937_v61, 0.0 }
 0x193   : > { %v1972_v62 = vmax.f32 %v1940_v60, 0.0  ;;  %v2859_v41 = vpop.f32.mrb[77].mxu1  ;;  %v1696_v18 = vpop.f32.mrb[77].mxu0 }
 0x194   : > { %v1970_v58 = vmax.f32 %v1938_v12, 0.0  ;;  %v2860_v20 = vadd.f32 %v2859_v41, %v2858_v33  ;;  %v1697_v17 = vadd.f32 %v1696_v18, %v1536_v3  ;;  %v2861_v5 = vpop.f32.mrb[78].mxu1  ;;  %v2935_v21 = vpop.f32.mrb[78].mxu0 }
 0x195   : > { %v2598_v10 = vpack.c.bf16 %v1972_v62, %v1971_v42  ;;  %v2862_v46 = vpop.f32.mrb[79].mxu1  ;;  %v1699_v29 = vpop.f32.mrb[79].mxu0 }
 0x196   : > { %v2593_v30 = vpack.c.bf16 %v1970_v58, %v1969_v19  ;;  %v1544_v24 = vadd.f32 %v2860_v20, %v3416_v32  ;;  %v1845_v47 = vadd.f32 %v3484_v1, %v1697_v17  ;;  %v2863_v31 = vadd.f32 %v2862_v46, %v2861_v5 }
 0x197   : > { %2637 = vst [vmem:[%s3508_s26 + $0x68] sm:$0xff] %v2598_v10   ;;  %v1700_v35 = vadd.f32 %v1699_v29, %v1539_v11  ;;  %v2529_v32 = vunpack.c.h.bf16 %v2624_v26 }
 0x198   : > { %2636 = vst [vmem:[%s3508_s26 + $0x60] sm:$0xff] %v2593_v30   ;;  %v1705_v34 = vadd.f32 %v2934_v39, %v1544_v24  ;;  %v1547_v37 = vadd.f32 %v2863_v31, %v3418_v38  ;;  %v1941_v43 = vadd.f32 %v2524_v28, %v1845_v47 }
 0x199   : > { %v1846_v22 = vadd.f32 %v3484_v1, %v1700_v35 }
 0x19a   : > { %v1847_v44 = vadd.f32 %v3484_v1, %v1705_v34  ;;  %v1708_v6 = vadd.f32 %v2935_v21, %v1547_v37  ;;  %v1973_v15 = vmax.f32 %v1941_v43, 0.0 }
 0x19b   : > { %v1942_v40 = vadd.f32 %v2525_v51, %v1846_v22 }
 0x19c   : > { %v1943_v7 = vadd.f32 %v2528_v23, %v1847_v44  ;;  %v1848_v48 = vadd.f32 %v3484_v1, %v1708_v6 }
 0x19d   : > { %v1974_v25 = vmax.f32 %v1942_v40, 0.0 }
 0x19e   : > { %v1944_v8 = vadd.f32 %v2529_v32, %v1848_v48  ;;  %v1975_v54 = vmax.f32 %v1943_v7, 0.0 }
 0x19f   : > { %v2603_v50 = vpack.c.bf16 %v1974_v25, %v1973_v15 }
 0x1a0   : > { %v1976_v52 = vmax.f32 %v1944_v8, 0.0 }
 0x1a1   : > { %2638 = vst [vmem:[%s3508_s26 + $0x70] sm:$0xff] %v2603_v50  }
 0x1a2   : > { %v2608_v38 = vpack.c.bf16 %v1976_v52, %v1975_v54 }
 0x1a4   : > { %2639 = vst [vmem:[%s3508_s26 + $0x78] sm:$0xff] %v2608_v38  }
 0x1a5 PF: > { %s14_s17 = sadd.s32 1, %s3151_s17   ;;  %s3622_s15 = smov %s3147_s16 }
 0x1a6   : > { %p11_p5 = scmp.ge.s32.totalorder %s14_s17, 4   ;;  %s3623_s16 = smov %s3625_s18 }
 0x1a8   :  { %13 = sbr.rel (!%p11_p5) target bundleno = 2 (0x2), region = 83 }

// kernel: _lambda_.16
= control target key start
LH: loop header
LB: loop body
LE: loop exit
PB: predicated region body
PF: predicated region fallthrough
CT: control target
= control target key end

     0   :  { %s1878_s1 = inlined_call_operand.vmem [shape: bf16[640,128], index: 1, kind: input, shape index: {}]   ;;  %s1879_s0 = inlined_call_operand.vmem [shape: bf16[128,640], index: 0, kind: input, shape index: {}]   ;;  %s1880_s2 = inlined_call_operand.vmem [shape: f32[1,128], index: 2, kind: input, shape index: {}]   ;;  %s1881_s3 = inlined_call_operand.vmem [shape: bf16[128,128], index: 3, kind: output, shape index: {}]  }
   0x1   :  { %v1444_v0 = vld [vmem:[%s1878_s1 + $0x40] sm:$0xff]   ;;  %v1448_v4 = vld [vmem:[%s1878_s1 + $0x48] sm:$0xff]   ;;  %v1452_v8 = vld [vmem:[%s1878_s1 + $0x50] sm:$0xff]  }
   0x2   :  { %v1445_v1 = vld [vmem:[%s1878_s1 + $0xc0] sm:$0xff]   ;;  %1252 = vmatprep.subr.bf16.mxu0 %v1444_v0  ;;  %v1449_v5 = vld [vmem:[%s1878_s1 + $0xc8] sm:$0xff]   ;;  %v1453_v9 = vld [vmem:[%s1878_s1 + $0xd0] sm:$0xff]  }
   0x3   :  { %v1446_v2 = vld [vmem:[%s1878_s1] sm:$0xff]   ;;  %1316 = vmatprep.subr.bf16.mxu1 %v1445_v1  ;;  %v1450_v6 = vld [vmem:[%s1878_s1 + $0x8] sm:$0xff]   ;;  %v1454_v10 = vld [vmem:[%s1878_s1 + $0x10] sm:$0xff]  }
   0x4   :  { %v1447_v3 = vld [vmem:[%s1878_s1 + $0x80] sm:$0xff]   ;;  %1253 = vmatpush3.bf16.msra.mxu0 %v1446_v2  ;;  %v1451_v7 = vld [vmem:[%s1878_s1 + $0x88] sm:$0xff]   ;;  %v1455_v11 = vld [vmem:[%s1878_s1 + $0x90] sm:$0xff]  }
   0x5   :  { %1317 = vmatpush3.bf16.msra.mxu1 %v1447_v3  ;;  %1254 = vmatprep.subr.bf16.mxu0 %v1448_v4  ;;  %v1456_v12 = vld [vmem:[%s1878_s1 + $0x58] sm:$0xff]   ;;  %v1460_v16 = vld [vmem:[%s1878_s1 + $0x60] sm:$0xff]   ;;  %v1464_v20 = vld [vmem:[%s1878_s1 + $0x68] sm:$0xff]  }
   0x6   :  { %1318 = vmatprep.subr.bf16.mxu1 %v1449_v5  ;;  %v1457_v13 = vld [vmem:[%s1878_s1 + $0xd8] sm:$0xff]   ;;  %v1461_v17 = vld [vmem:[%s1878_s1 + $0xe0] sm:$0xff]   ;;  %v1465_v21 = vld [vmem:[%s1878_s1 + $0xe8] sm:$0xff]  }
   0x7   :  { %v1458_v14 = vld [vmem:[%s1878_s1 + $0x18] sm:$0xff]   ;;  %v1462_v18 = vld [vmem:[%s1878_s1 + $0x20] sm:$0xff]   ;;  %v1466_v22 = vld [vmem:[%s1878_s1 + $0x28] sm:$0xff]  }
   0x8   :  { %1255 = vmatpush3.bf16.msra.mxu0 %v1450_v6  ;;  %v1459_v15 = vld [vmem:[%s1878_s1 + $0x98] sm:$0xff]   ;;  %v1463_v19 = vld [vmem:[%s1878_s1 + $0xa0] sm:$0xff]   ;;  %v1467_v23 = vld [vmem:[%s1878_s1 + $0xa8] sm:$0xff]  }
   0x9   :  { %1319 = vmatpush3.bf16.msra.mxu1 %v1451_v7  ;;  %1256 = vmatprep.subr.bf16.mxu0 %v1452_v8  ;;  %v1468_v24 = vld [vmem:[%s1878_s1 + $0x70] sm:$0xff]   ;;  %v1472_v28 = vld [vmem:[%s1878_s1 + $0x78] sm:$0xff]   ;;  %v1481_v35 = vld [vmem:[%s1879_s0 + $0xc] ss:$20 sps:$4 sm:$0xff]  }
   0xa   :  { %1320 = vmatprep.subr.bf16.mxu1 %v1453_v9  ;;  %v1469_v25 = vld [vmem:[%s1878_s1 + $0xf0] sm:$0xff]   ;;  %v1473_v29 = vld [vmem:[%s1878_s1 + $0xf8] sm:$0xff]   ;;  %v1482_v36 = vld [vmem:[%s1878_s1 + $0x100] sm:$0xff]   ;;  %756 = vmatprep.mubr.bf16.mxu1 %v1481_v35 }
   0xb   :  { %v1470_v26 = vld [vmem:[%s1878_s1 + $0x30] sm:$0xff]   ;;  %v1474_v30 = vld [vmem:[%s1878_s1 + $0x38] sm:$0xff]   ;;  %v1483_v37 = vld [vmem:[%s1879_s0 + $0x2c] ss:$20 sps:$4 sm:$0xff]  }
   0xc   :  { %1257 = vmatpush3.bf16.msra.mxu0 %v1454_v10  ;;  %v1471_v27 = vld [vmem:[%s1878_s1 + $0xb0] sm:$0xff]   ;;  %v1475_v31 = vld [vmem:[%s1878_s1 + $0xb8] sm:$0xff]   ;;  %v1489_v39 = vld [vmem:[%s1878_s1 + $0x108] sm:$0xff]  }
   0xd   :  { %1321 = vmatpush3.bf16.msra.mxu1 %v1455_v11  ;;  %1258 = vmatprep.subr.bf16.mxu0 %v1456_v12  ;;  %v1476_v32 = vld [vmem:[%s1879_s0] ss:$20 sps:$4 sm:$0xff]   ;;  %v1478_v33 = vld [vmem:[%s1879_s0 + $0x4] ss:$20 sps:$4 sm:$0xff]   ;;  %v1479_v34 = vld [vmem:[%s1879_s0 + $0x8] ss:$20 sps:$4 sm:$0xff]  }
   0xe   :  { %1322 = vmatprep.subr.bf16.mxu1 %v1457_v13  ;;  %659 = vmatprep.mubr.bf16.mxu0 %v1478_v33  ;;  %v1485_v38 = vld [vmem:[%s1879_s0 + $0x34] ss:$20 sps:$4 sm:$0xff]   ;;  %v1488_v41 = vld [vmem:[%s1879_s0 + $0x30] ss:$20 sps:$4 sm:$0xff]   ;;  %v1503_v45 = vld [vmem:[%s1878_s1 + $0x118] sm:$0xff]  }
   0xf   :  { %v1487_v40 = vld [vmem:[%s1879_s0 + $0x28] ss:$20 sps:$4 sm:$0xff]   ;;  %v1496_v44 = vld [vmem:[%s1878_s1 + $0x110] sm:$0xff]   ;;  %v1495_v47 = vld [vmem:[%s1879_s0 + $0x58] ss:$20 sps:$4 sm:$0xff]  }
  0x10   :  { %1259 = vmatpush3.bf16.msra.mxu0 %v1458_v14  ;;  %v1490_v42 = vld [vmem:[%s1879_s0 + $0x54] ss:$20 sps:$4 sm:$0xff]   ;;  %v1492_v43 = vld [vmem:[%s1879_s0 + $0x5c] ss:$20 sps:$4 sm:$0xff]   ;;  %v1499_v49 = vld [vmem:[%s1879_s0 + $0x84] ss:$20 sps:$4 sm:$0xff]  }
  0x11   :  { %1323 = vmatpush3.bf16.msra.mxu1 %v1459_v15  ;;  %1260 = vmatprep.subr.bf16.mxu0 %v1460_v16  ;;  %v1494_v46 = vld [vmem:[%s1879_s0 + $0x50] ss:$20 sps:$4 sm:$0xff]   ;;  %v1517_v51 = vld [vmem:[%s1878_s1 + $0x128] sm:$0xff]   ;;  %v1502_v53 = vld [vmem:[%s1879_s0 + $0x80] ss:$20 sps:$4 sm:$0xff]  }
  0x12   :  { %1324 = vmatprep.subr.bf16.mxu1 %v1461_v17  ;;  %v1497_v48 = vld [vmem:[%s1879_s0 + $0x7c] ss:$20 sps:$4 sm:$0xff]   ;;  %v1510_v50 = vld [vmem:[%s1878_s1 + $0x120] sm:$0xff]   ;;  %v1501_v52 = vld [vmem:[%s1879_s0 + $0x78] ss:$20 sps:$4 sm:$0xff]  }
  0x13   :  { %v1504_v54 = vld [vmem:[%s1879_s0 + $0xa4] ss:$20 sps:$4 sm:$0xff]   ;;  %v1524_v55 = vld [vmem:[%s1878_s1 + $0x130] sm:$0xff]   ;;  %v1506_v56 = vld [vmem:[%s1879_s0 + $0xac] ss:$20 sps:$4 sm:$0xff]  }
  0x14   :  { %1261 = vmatpush3.bf16.msra.mxu0 %v1462_v18  ;;  %v1531_v57 = vld [vmem:[%s1878_s1 + $0x138] sm:$0xff]   ;;  %v1508_v58 = vld [vmem:[%s1879_s0 + $0xa0] ss:$20 sps:$4 sm:$0xff]   ;;  %v1516_v63 = vld [vmem:[%s1879_s0 + $0xd0] ss:$20 sps:$4 sm:$0xff]  }
  0x15   :  { %1325 = vmatpush3.bf16.msra.mxu1 %v1463_v19  ;;  %1262 = vmatprep.subr.bf16.mxu0 %v1464_v20  ;;  %v1509_v59 = vld [vmem:[%s1879_s0 + $0xa8] ss:$20 sps:$4 sm:$0xff]   ;;  %v1511_v60 = vld [vmem:[%s1879_s0 + $0xcc] ss:$20 sps:$4 sm:$0xff]   ;;  %v1522_v2 = vld [vmem:[%s1879_s0 + $0xf0] ss:$20 sps:$4 sm:$0xff]  }
  0x16   :  { %1326 = vmatprep.subr.bf16.mxu1 %v1465_v21  ;;  %v1513_v61 = vld [vmem:[%s1879_s0 + $0xd4] ss:$20 sps:$4 sm:$0xff]   ;;  %v1520_v1 = vld [vmem:[%s1879_s0 + $0xfc] ss:$20 sps:$4 sm:$0xff]   ;;  %v1523_v3 = vld [vmem:[%s1879_s0 + $0xf8] ss:$20 sps:$4 sm:$0xff]  }
  0x17   :  { %v1515_v62 = vld [vmem:[%s1879_s0 + $0xc8] ss:$20 sps:$4 sm:$0xff]   ;;  %v1527_v5 = vld [vmem:[%s1879_s0 + $0x124] ss:$20 sps:$4 sm:$0xff]   ;;  %v1530_v7 = vld [vmem:[%s1879_s0 + $0x120] ss:$20 sps:$4 sm:$0xff]  }
  0x18   :  { %1263 = vmatpush3.bf16.msra.mxu0 %v1466_v22  ;;  %v1518_v0 = vld [vmem:[%s1879_s0 + $0xf4] ss:$20 sps:$4 sm:$0xff]   ;;  %v1525_v4 = vld [vmem:[%s1879_s0 + $0x11c] ss:$20 sps:$4 sm:$0xff]   ;;  %v1529_v6 = vld [vmem:[%s1879_s0 + $0x118] ss:$20 sps:$4 sm:$0xff]  }
  0x19   :  { %1327 = vmatpush3.bf16.msra.mxu1 %v1467_v23  ;;  %1264 = vmatprep.subr.bf16.mxu0 %v1468_v24  ;;  %v1532_v8 = vld [vmem:[%s1879_s0 + $0x10] ss:$20 sps:$4 sm:$0xff]   ;;  %v1534_v10 = vld [vmem:[%s1879_s0 + $0x38] ss:$20 sps:$4 sm:$0xff]   ;;  %v1536_v12 = vld [vmem:[%s1879_s0 + $0x60] ss:$20 sps:$4 sm:$0xff]  }
  0x1a   :  { %1328 = vmatprep.subr.bf16.mxu1 %v1469_v25  ;;  %v1533_v9 = vld [vmem:[%s1879_s0 + $0xb0] ss:$20 sps:$4 sm:$0xff]   ;;  %v1535_v11 = vld [vmem:[%s1879_s0 + $0xd8] ss:$20 sps:$4 sm:$0xff]   ;;  %v1537_v13 = vld [vmem:[%s1879_s0 + $0x100] ss:$20 sps:$4 sm:$0xff]  }
  0x1b   :  { %v1538_v14 = vld [vmem:[%s1879_s0 + $0x88] ss:$20 sps:$4 sm:$0xff]  }
  0x1c   :  { %1265 = vmatpush3.bf16.msra.mxu0 %v1470_v26  ;;  %v1539_v15 = vld [vmem:[%s1879_s0 + $0x128] ss:$20 sps:$4 sm:$0xff]  }
  0x1d   :  { %1329 = vmatpush3.bf16.msra.mxu1 %v1471_v27  ;;  %1266 = vmatprep.subr.bf16.mxu0 %v1472_v28 }
  0x1e   :  { %1330 = vmatprep.subr.bf16.mxu1 %v1473_v29 }
  0x20   :  { %1267 = vmatpush3.bf16.msra.mxu0 %v1474_v30 }
  0x21   :  { %1331 = vmatpush3.bf16.msra.mxu1 %v1475_v31  ;;  %1396 = vmatprep.subr.bf16.mxu0 %v1482_v36 }
  0x22   :  { %1428 = vmatprep.subr.bf16.mxu1 %v1482_v36 }
  0x23   :  { %660 = vmatmul.mubr.bf16.vlgmr.msra.gmra.mrb[0].mxu0 %v1476_v32 }
  0x24   :  { %757 = vmatmul.mubr.bf16.vlgmr.msra.gmra.mrb[0].mxu1 %v1479_v34  ;;  %1397 = vmatpush3.bf16.msra.mxu0 %v1482_v36 }
  0x25   :  { %1436 = vmatpush3.bf16.msra.mxu1 %v1482_v36  ;;  %667 = vmatprep.mubr.bf16.mxu0 %v1483_v37 }
  0x26   :  { %764 = vmatprep.mubr.bf16.mxu1 %v1485_v38  ;;  %1398 = vmatprep.subr.bf16.mxu0 %v1489_v39 }
  0x27   :  { %1429 = vmatprep.subr.bf16.mxu1 %v1489_v39 }
  0x28   :  { %1399 = vmatpush3.bf16.msra.mxu0 %v1489_v39 }
  0x29   :  { %1437 = vmatpush3.bf16.msra.mxu1 %v1489_v39  ;;  %1400 = vmatprep.subr.bf16.mxu0 %v1496_v44 }
  0x2a   :  { %1430 = vmatprep.subr.bf16.mxu1 %v1496_v44 }
  0x2b   :  { %668 = vmatmul.mubr.bf16.gmra.mrb[4].mxu0 %v1487_v40 }
  0x2c   :  { %765 = vmatmul.mubr.bf16.gmra.mrb[4].mxu1 %v1488_v41  ;;  %675 = vmatprep.mubr.bf16.mxu0 %v1490_v42 }
  0x2d   :  { %772 = vmatprep.mubr.bf16.mxu1 %v1492_v43  ;;  %1401 = vmatpush3.bf16.msra.mxu0 %v1496_v44 }
  0x2e   :  { %1438 = vmatpush3.bf16.msra.mxu1 %v1496_v44  ;;  %1402 = vmatprep.subr.bf16.mxu0 %v1503_v45 }
  0x2f   :  { %1431 = vmatprep.subr.bf16.mxu1 %v1503_v45 }
  0x31   :  { %1403 = vmatpush3.bf16.msra.mxu0 %v1503_v45 }
  0x32   :  { %1439 = vmatpush3.bf16.msra.mxu1 %v1503_v45  ;;  %1404 = vmatprep.subr.bf16.mxu0 %v1510_v50 }
  0x33   :  { %676 = vmatmul.mubr.bf16.gmra.mrb[8].mxu0 %v1494_v46  ;;  %1432 = vmatprep.subr.bf16.mxu1 %v1510_v50 }
  0x34   :  { %773 = vmatmul.mubr.bf16.gmra.mrb[8].mxu1 %v1495_v47  ;;  %683 = vmatprep.mubr.bf16.mxu0 %v1497_v48 }
  0x35   :  { %780 = vmatprep.mubr.bf16.mxu1 %v1499_v49  ;;  %1405 = vmatpush3.bf16.msra.mxu0 %v1510_v50 }
  0x36   :  { %1440 = vmatpush3.bf16.msra.mxu1 %v1510_v50  ;;  %1406 = vmatprep.subr.bf16.mxu0 %v1517_v51 }
  0x37   :  { %1433 = vmatprep.subr.bf16.mxu1 %v1517_v51 }
  0x39   :  { %1407 = vmatpush3.bf16.msra.mxu0 %v1517_v51 }
  0x3a   :  { %1441 = vmatpush3.bf16.msra.mxu1 %v1517_v51  ;;  %1408 = vmatprep.subr.bf16.mxu0 %v1524_v55 }
  0x3b   :  { %684 = vmatmul.mubr.bf16.gmra.mrb[12].mxu0 %v1501_v52  ;;  %1434 = vmatprep.subr.bf16.mxu1 %v1524_v55 }
  0x3c   :  { %781 = vmatmul.mubr.bf16.gmra.mrb[12].mxu1 %v1502_v53  ;;  %691 = vmatprep.mubr.bf16.mxu0 %v1504_v54 }
  0x3d   :  { %788 = vmatprep.mubr.bf16.mxu1 %v1506_v56  ;;  %1409 = vmatpush3.bf16.msra.mxu0 %v1524_v55 }
  0x3e   :  { %1442 = vmatpush3.bf16.msra.mxu1 %v1524_v55  ;;  %1410 = vmatprep.subr.bf16.mxu0 %v1531_v57 }
  0x3f   :  { %1435 = vmatprep.subr.bf16.mxu1 %v1531_v57 }
  0x41   :  { %1411 = vmatpush3.bf16.msra.mxu0 %v1531_v57 }
  0x42   :  { %1443 = vmatpush3.bf16.msra.mxu1 %v1531_v57 }
  0x43   :  { %692 = vmatmul.mubr.bf16.gmra.mrb[16].mxu0 %v1508_v58 }
  0x44   :  { %789 = vmatmul.mubr.bf16.gmra.mrb[16].mxu1 %v1509_v59  ;;  %699 = vmatprep.mubr.bf16.mxu0 %v1511_v60 }
  0x45   :  { %796 = vmatprep.mubr.bf16.mxu1 %v1513_v61 }
  0x4b   :  { %700 = vmatmul.mubr.bf16.gmra.mrb[20].mxu0 %v1515_v62 }
  0x4c   :  { %797 = vmatmul.mubr.bf16.gmra.mrb[20].mxu1 %v1516_v63  ;;  %707 = vmatprep.mubr.bf16.mxu0 %v1518_v0 }
  0x4d   :  { %804 = vmatprep.mubr.bf16.mxu1 %v1520_v1 }
  0x53   :  { %708 = vmatmul.mubr.bf16.gmra.mrb[24].mxu0 %v1522_v2 }
  0x54   :  { %805 = vmatmul.mubr.bf16.gmra.mrb[24].mxu1 %v1523_v3  ;;  %715 = vmatprep.mubr.bf16.mxu0 %v1525_v4 }
  0x55   :  { %812 = vmatprep.mubr.bf16.mxu1 %v1527_v5 }
  0x5b   :  { %716 = vmatmul.mubr.bf16.gmra.mrb[28].mxu0 %v1529_v6 }
  0x5c   :  { %813 = vmatmul.mubr.bf16.gmra.mrb[28].mxu1 %v1530_v7  ;;  %1412 = vmatprep.mubr.bf16.mxu0 %v1532_v8 }
  0x5d   :  { %1420 = vmatprep.mubr.bf16.mxu1 %v1533_v9 }
  0x63   :  { %1413 = vmatmul.mubr.bf16.vlgmr.msra.gmra.mrb[32].mxu0 %v1534_v10 }
  0x64   :  { %1421 = vmatmul.mubr.bf16.vlgmr.msra.gmra.mrb[32].mxu1 %v1535_v11  ;;  %1416 = vmatprep.mubr.bf16.mxu0 %v1536_v12 }
  0x65   :  { %1424 = vmatprep.mubr.bf16.mxu1 %v1537_v13 }
  0x6b   :  { %1417 = vmatmul.mubr.bf16.gmra.mrb[36].mxu0 %v1538_v14 }
  0x6c   :  { %1425 = vmatmul.mubr.bf16.gmra.mrb[36].mxu1 %v1539_v15 }
  0xf6   :  { %v1268_v16 = vpop.f32.mrb[0].mxu0 }
  0xf7   :  { %v1332_v17 = vpop.f32.mrb[0].mxu1  ;;  %v1269_v18 = vpop.f32.mrb[1].mxu0 }
  0xf8   :  { %v1270_v19 = vadd.f32 %v1269_v18, %v1268_v16  ;;  %v1333_v20 = vpop.f32.mrb[1].mxu1  ;;  %v1271_v21 = vpop.f32.mrb[2].mxu0 }
  0xf9   :  { %v1334_v22 = vadd.f32 %v1333_v20, %v1332_v17  ;;  %v1335_v23 = vpop.f32.mrb[2].mxu1  ;;  %v1272_v24 = vpop.f32.mrb[3].mxu0 }
  0xfa   :  { %v1273_v25 = vadd.f32 %v1272_v24, %v1271_v21  ;;  %v1336_v26 = vpop.f32.mrb[3].mxu1 }
  0xfb   :  { %v1337_v27 = vadd.f32 %v1336_v26, %v1335_v23  ;;  %v1800_v28 = vadd.f32 %v1334_v22, %v1270_v19 }
  0xfd   :  { %v1802_v29 = vadd.f32 %v1337_v27, %v1273_v25 }
  0xfe   :  { %v1274_v30 = vpop.f32.mrb[4].mxu0 }
  0xff   :  { %v1338_v31 = vpop.f32.mrb[4].mxu1  ;;  %v1275_v32 = vpop.f32.mrb[5].mxu0 }
 0x100   :  { %v1276_v33 = vadd.f32 %v1275_v32, %v1274_v30  ;;  %v1339_v34 = vpop.f32.mrb[5].mxu1  ;;  %v1277_v35 = vpop.f32.mrb[6].mxu0 }
 0x101   :  { %v1340_v36 = vadd.f32 %v1339_v34, %v1338_v31  ;;  %v1341_v37 = vpop.f32.mrb[6].mxu1  ;;  %v1278_v38 = vpop.f32.mrb[7].mxu0 }
 0x102   :  { %v1279_v39 = vadd.f32 %v1278_v38, %v1277_v35  ;;  %v1342_v40 = vpop.f32.mrb[7].mxu1 }
 0x103   :  { %v1343_v41 = vadd.f32 %v1342_v40, %v1341_v37  ;;  %v1804_v42 = vadd.f32 %v1340_v36, %v1276_v33 }
 0x105   :  { %v1806_v43 = vadd.f32 %v1343_v41, %v1279_v39 }
 0x106   :  { %v1280_v44 = vpop.f32.mrb[8].mxu0 }
 0x107   :  { %v1344_v45 = vpop.f32.mrb[8].mxu1  ;;  %v1281_v46 = vpop.f32.mrb[9].mxu0 }
 0x108   :  { %v1282_v47 = vadd.f32 %v1281_v46, %v1280_v44  ;;  %v1345_v48 = vpop.f32.mrb[9].mxu1  ;;  %v1283_v49 = vpop.f32.mrb[10].mxu0 }
 0x109   :  { %v1346_v50 = vadd.f32 %v1345_v48, %v1344_v45  ;;  %v1347_v51 = vpop.f32.mrb[10].mxu1  ;;  %v1284_v52 = vpop.f32.mrb[11].mxu0 }
 0x10a   :  { %v1285_v53 = vadd.f32 %v1284_v52, %v1283_v49  ;;  %v1348_v54 = vpop.f32.mrb[11].mxu1 }
 0x10b   :  { %v1349_v55 = vadd.f32 %v1348_v54, %v1347_v51  ;;  %v1808_v56 = vadd.f32 %v1346_v50, %v1282_v47 }
 0x10d   :  { %v1810_v57 = vadd.f32 %v1349_v55, %v1285_v53 }
 0x10e   :  { %v1286_v58 = vpop.f32.mrb[12].mxu0 }
 0x10f   :  { %v1350_v59 = vpop.f32.mrb[12].mxu1  ;;  %v1287_v60 = vpop.f32.mrb[13].mxu0 }
 0x110   :  { %v1288_v61 = vadd.f32 %v1287_v60, %v1286_v58  ;;  %v1351_v62 = vpop.f32.mrb[13].mxu1  ;;  %v1289_v63 = vpop.f32.mrb[14].mxu0 }
 0x111   :  { %v1352_v0 = vadd.f32 %v1351_v62, %v1350_v59  ;;  %v1353_v1 = vpop.f32.mrb[14].mxu1  ;;  %v1290_v2 = vpop.f32.mrb[15].mxu0 }
 0x112   :  { %v1291_v3 = vadd.f32 %v1290_v2, %v1289_v63  ;;  %v1354_v4 = vpop.f32.mrb[15].mxu1 }
 0x113   :  { %v1355_v5 = vadd.f32 %v1354_v4, %v1353_v1  ;;  %v1812_v6 = vadd.f32 %v1352_v0, %v1288_v61 }
 0x115   :  { %v1814_v7 = vadd.f32 %v1355_v5, %v1291_v3 }
 0x116   :  { %v1292_v8 = vpop.f32.mrb[16].mxu0 }
 0x117   :  { %v1356_v9 = vpop.f32.mrb[16].mxu1  ;;  %v1293_v10 = vpop.f32.mrb[17].mxu0 }
 0x118   :  { %v1294_v11 = vadd.f32 %v1293_v10, %v1292_v8  ;;  %v1357_v12 = vpop.f32.mrb[17].mxu1  ;;  %v1295_v13 = vpop.f32.mrb[18].mxu0 }
 0x119   :  { %v1358_v14 = vadd.f32 %v1357_v12, %v1356_v9  ;;  %v1359_v15 = vpop.f32.mrb[18].mxu1  ;;  %v1296_v16 = vpop.f32.mrb[19].mxu0  ;;  %v1825_v9 = vld [vmem:[%s1880_s2] ss:$0 sm:$0xff] }
 0x11a   :  { %v1297_v17 = vadd.f32 %v1296_v16, %v1295_v13  ;;  %v1360_v18 = vpop.f32.mrb[19].mxu1 }
 0x11b   :  { %v1361_v19 = vadd.f32 %v1360_v18, %v1359_v15  ;;  %v791_v20 = vadd.f32 %v1358_v14, %v1294_v11 }
 0x11d   :  { %v1816_v21 = vadd.f32 %v1361_v19, %v1297_v17 }
 0x11e   :  { %v1298_v22 = vpop.f32.mrb[20].mxu0 }
 0x11f   :  { %v1362_v23 = vpop.f32.mrb[20].mxu1  ;;  %v1299_v24 = vpop.f32.mrb[21].mxu0 }
 0x120   :  { %v1300_v25 = vadd.f32 %v1299_v24, %v1298_v22  ;;  %v1363_v26 = vpop.f32.mrb[21].mxu1  ;;  %v1301_v27 = vpop.f32.mrb[22].mxu0 }
 0x121   :  { %v1364_v30 = vadd.f32 %v1363_v26, %v1362_v23  ;;  %v1365_v31 = vpop.f32.mrb[22].mxu1  ;;  %v1302_v32 = vpop.f32.mrb[23].mxu0 }
 0x122   :  { %v1303_v33 = vadd.f32 %v1302_v32, %v1301_v27  ;;  %v1366_v34 = vpop.f32.mrb[23].mxu1 }
 0x123   :  { %v1367_v35 = vadd.f32 %v1366_v34, %v1365_v31  ;;  %v799_v36 = vadd.f32 %v1364_v30, %v1300_v25 }
 0x125   :  { %v802_v37 = vadd.f32 %v1367_v35, %v1303_v33 }
 0x126   :  { %v1304_v38 = vpop.f32.mrb[24].mxu0 }
 0x127   :  { %v1368_v39 = vpop.f32.mrb[24].mxu1  ;;  %v1305_v40 = vpop.f32.mrb[25].mxu0 }
 0x128   :  { %v1306_v41 = vadd.f32 %v1305_v40, %v1304_v38  ;;  %v1369_v44 = vpop.f32.mrb[25].mxu1  ;;  %v1307_v45 = vpop.f32.mrb[26].mxu0 }
 0x129   :  { %v1370_v46 = vadd.f32 %v1369_v44, %v1368_v39  ;;  %v1371_v47 = vpop.f32.mrb[26].mxu1  ;;  %v1308_v48 = vpop.f32.mrb[27].mxu0 }
 0x12a   :  { %v1309_v49 = vadd.f32 %v1308_v48, %v1307_v45  ;;  %v1372_v50 = vpop.f32.mrb[27].mxu1 }
 0x12b   :  { %v1373_v51 = vadd.f32 %v1372_v50, %v1371_v47  ;;  %v1818_v52 = vadd.f32 %v1370_v46, %v1306_v41 }
 0x12d   :  { %v1820_v53 = vadd.f32 %v1373_v51, %v1309_v49 }
 0x12e   :  { %v1310_v54 = vpop.f32.mrb[28].mxu0 }
 0x12f   :  { %v1374_v55 = vpop.f32.mrb[28].mxu1  ;;  %v1311_v58 = vpop.f32.mrb[29].mxu0 }
 0x130   :  { %v1312_v59 = vadd.f32 %v1311_v58, %v1310_v54  ;;  %v1375_v60 = vpop.f32.mrb[29].mxu1  ;;  %v1313_v61 = vpop.f32.mrb[30].mxu0 }
 0x131   :  { %v1376_v62 = vadd.f32 %v1375_v60, %v1374_v55  ;;  %v1377_v63 = vpop.f32.mrb[30].mxu1  ;;  %v1314_v0 = vpop.f32.mrb[31].mxu0 }
 0x132   :  { %v1315_v1 = vadd.f32 %v1314_v0, %v1313_v61  ;;  %v1378_v2 = vpop.f32.mrb[31].mxu1 }
 0x133   :  { %v1379_v3 = vadd.f32 %v1378_v2, %v1377_v63  ;;  %v815_v4 = vadd.f32 %v1376_v62, %v1312_v59 }
 0x135   :  { %v818_v5 = vadd.f32 %v1379_v3, %v1315_v1 }
 0x136   :  { %v1414_v8 = vpop.f32.mrb[32].mxu0 }
 0x137   :  { %v864_v10 = vadd.f32 %v1414_v8, %v1804_v42  ;;  %v1422_v11 = vpop.f32.mrb[32].mxu1  ;;  %v855_v12 = vpop.f32.mrb[33].mxu0 }
 0x138   :  { %v896_v13 = vadd.f32 %v1422_v11, %v799_v36  ;;  %v856_v14 = vadd.f32 %v855_v12, %v1800_v28  ;;  %v887_v15 = vpop.f32.mrb[33].mxu1  ;;  %v1415_v16 = vpop.f32.mrb[34].mxu0 }
 0x139   :  { %v978_v17 = vadd.f32 %v1825_v9, %v864_v10  ;;  %v888_v18 = vadd.f32 %v887_v15, %v791_v20  ;;  %v867_v19 = vadd.f32 %v1415_v16, %v1806_v43  ;;  %v1423_v22 = vpop.f32.mrb[34].mxu1  ;;  %v858_v23 = vpop.f32.mrb[35].mxu0 }
 0x13a   :  { %v986_v24 = vadd.f32 %v1825_v9, %v896_v13  ;;  %v976_v25 = vadd.f32 %v1825_v9, %v856_v14  ;;  %v899_v26 = vadd.f32 %v1423_v22, %v802_v37  ;;  %v859_v42 = vadd.f32 %v858_v23, %v1802_v29  ;;  %v890_v27 = vpop.f32.mrb[35].mxu1 }
 0x13b   :  { %v984_v30 = vadd.f32 %v1825_v9, %v888_v18  ;;  %v979_v28 = vadd.f32 %v1825_v9, %v867_v19  ;;  %v891_v31 = vadd.f32 %v890_v27, %v1816_v21  ;;  %v994_v32 = vmax.f32 %v978_v17, 0.0 }
 0x13c   :  { %v987_v20 = vadd.f32 %v1825_v9, %v899_v26  ;;  %v977_v43 = vadd.f32 %v1825_v9, %v859_v42  ;;  %v1002_v35 = vmax.f32 %v986_v24, 0.0  ;;  %v992_v36 = vmax.f32 %v976_v25, 0.0 }
 0x13d   :  { %v995_v33 = vmax.f32 %v979_v28, 0.0  ;;  %v985_v34 = vadd.f32 %v1825_v9, %v891_v31  ;;  %v1000_v39 = vmax.f32 %v984_v30, 0.0 }
 0x13e   :  { %v1003_v37 = vmax.f32 %v987_v20, 0.0  ;;  %v993_v38 = vmax.f32 %v977_v43, 0.0  ;;  %v1418_v29 = vpop.f32.mrb[36].mxu0 }
 0x13f   :  { %v1213_v40 = vpack.c.bf16 %v995_v33, %v994_v32  ;;  %v1001_v41 = vmax.f32 %v985_v34, 0.0  ;;  %v880_v44 = vadd.f32 %v1418_v29, %v1812_v6  ;;  %v1426_v45 = vpop.f32.mrb[36].mxu1  ;;  %v871_v21 = vpop.f32.mrb[37].mxu0 }
 0x140   :  { %v1233_v46 = vpack.c.bf16 %v1003_v37, %v1002_v35  ;;  %v1208_v47 = vpack.c.bf16 %v993_v38, %v992_v36  ;;  %v912_v48 = vadd.f32 %v1426_v45, %v815_v4  ;;  %v872_v49 = vadd.f32 %v871_v21, %v1808_v56  ;;  %v903_v50 = vpop.f32.mrb[37].mxu1  ;;  %v1419_v51 = vpop.f32.mrb[38].mxu0 }
 0x141   :  { %1245 = vst [vmem:[%s1881_s3 + $0x8] sm:$0xff] %v1213_v40   ;;  %v1228_v54 = vpack.c.bf16 %v1001_v41, %v1000_v39  ;;  %v982_v55 = vadd.f32 %v1825_v9, %v880_v44  ;;  %v904_v58 = vadd.f32 %v903_v50, %v1818_v52  ;;  %v883_v6 = vadd.f32 %v1419_v51, %v1814_v7  ;;  %v1427_v59 = vpop.f32.mrb[38].mxu1  ;;  %v874_v60 = vpop.f32.mrb[39].mxu0 }
 0x142   :  { %1249 = vst [vmem:[%s1881_s3 + $0x28] sm:$0xff] %v1233_v46   ;;  %1209 = vst [vmem:[%s1881_s3] sm:$0xff] %v1208_v47   ;;  %v990_v56 = vadd.f32 %v1825_v9, %v912_v48  ;;  %v980_v61 = vadd.f32 %v1825_v9, %v872_v49  ;;  %v915_v62 = vadd.f32 %v1427_v59, %v818_v5  ;;  %v906_v52 = vpop.f32.mrb[39].mxu1 }
 0x143   :  { %v875_v63 = vadd.f32 %v874_v60, %v1810_v57  ;;  %1248 = vst [vmem:[%s1881_s3 + $0x20] sm:$0xff] %v1228_v54   ;;  %v988_v7 = vadd.f32 %v1825_v9, %v904_v58  ;;  %v983_v0 = vadd.f32 %v1825_v9, %v883_v6  ;;  %v907_v1 = vadd.f32 %v906_v52, %v1820_v53 }
 0x144   :  { %v991_v2 = vadd.f32 %v1825_v9, %v915_v62  ;;  %v998_v4 = vmax.f32 %v982_v55, 0.0  ;;  %v1006_v57 = vmax.f32 %v990_v56, 0.0  ;;  %v996_v10 = vmax.f32 %v980_v61, 0.0 }
 0x145   :  { %v981_v3 = vadd.f32 %v1825_v9, %v875_v63  ;;  %v999_v8 = vmax.f32 %v983_v0, 0.0  ;;  %v989_v5 = vadd.f32 %v1825_v9, %v907_v1  ;;  %v1004_v13 = vmax.f32 %v988_v7, 0.0 }
 0x146   :  { %v1007_v11 = vmax.f32 %v991_v2, 0.0 }
 0x147   :  { %v997_v12 = vmax.f32 %v981_v3, 0.0  ;;  %v1223_v14 = vpack.c.bf16 %v999_v8, %v998_v4  ;;  %v1005_v15 = vmax.f32 %v989_v5, 0.0 }
 0x148   :  { %v1243_v16 = vpack.c.bf16 %v1007_v11, %v1006_v57 }
 0x149   :  { %v1218_v17 = vpack.c.bf16 %v997_v12, %v996_v10  ;;  %1247 = vst [vmem:[%s1881_s3 + $0x18] sm:$0xff] %v1223_v14   ;;  %v1238_v53 = vpack.c.bf16 %v1005_v15, %v1004_v13 }
 0x14a   :  { %1251 = vst [vmem:[%s1881_s3 + $0x38] sm:$0xff] %v1243_v16  }
 0x14b   :  { %1246 = vst [vmem:[%s1881_s3 + $0x10] sm:$0xff] %v1218_v17   ;;  %1250 = vst [vmem:[%s1881_s3 + $0x30] sm:$0xff] %v1238_v53  }

// kernel: _lambda_.17
= control target key start
LH: loop header
LB: loop body
LE: loop exit
PB: predicated region body
PF: predicated region fallthrough
CT: control target
= control target key end

     0   :  { %s705_s1 = inlined_call_operand.vmem [shape: bf16[128,128], index: 1, kind: input, shape index: {}]   ;;  %s706_s0 = inlined_call_operand.vmem [shape: bf16[128,128], index: 0, kind: input, shape index: {}]   ;;  %s707_s2 = inlined_call_operand.vmem [shape: f32[1,128], index: 2, kind: input, shape index: {}]   ;;  %s708_s3 = inlined_call_operand.vmem [shape: bf16[128,128], index: 3, kind: output, shape index: {}]  }
   0x1   :  { %v594_v0 = vld [vmem:[%s705_s1] sm:$0xff]   ;;  %v595_v1 = vld [vmem:[%s705_s1 + $0x8] sm:$0xff]   ;;  %v596_v2 = vld [vmem:[%s705_s1 + $0x10] sm:$0xff]  }
   0x2   :  { %546 = vmatprep.subr.bf16.mxu0 %v594_v0  ;;  %578 = vmatprep.subr.bf16.mxu1 %v594_v0  ;;  %v597_v3 = vld [vmem:[%s705_s1 + $0x18] sm:$0xff]   ;;  %v602_v4 = vld [vmem:[%s706_s0] sm:$0xff]   ;;  %v599_v7 = vld [vmem:[%s705_s1 + $0x28] sm:$0xff]  }
   0x3   :  { %547 = vmatpush3.bf16.msra.mxu0 %v594_v0  ;;  %586 = vmatpush3.bf16.msra.mxu1 %v594_v0  ;;  %v603_v5 = vld [vmem:[%s706_s0 + $0x20] sm:$0xff]   ;;  %v600_v8 = vld [vmem:[%s705_s1 + $0x30] sm:$0xff]   ;;  %v601_v9 = vld [vmem:[%s705_s1 + $0x38] sm:$0xff]  }
   0x4   :  { %548 = vmatprep.subr.bf16.mxu0 %v595_v1  ;;  %579 = vmatprep.subr.bf16.mxu1 %v595_v1  ;;  %v598_v6 = vld [vmem:[%s705_s1 + $0x20] sm:$0xff]   ;;  %v604_v10 = vld [vmem:[%s706_s0 + $0x8] sm:$0xff]   ;;  %v606_v12 = vld [vmem:[%s706_s0 + $0x10] sm:$0xff]  }
   0x5   :  { %562 = vmatprep.mubr.bf16.mxu0 %v602_v4  ;;  %570 = vmatprep.mubr.bf16.mxu1 %v603_v5  ;;  %v605_v11 = vld [vmem:[%s706_s0 + $0x28] sm:$0xff]   ;;  %v607_v13 = vld [vmem:[%s706_s0 + $0x30] sm:$0xff]   ;;  %v608_v14 = vld [vmem:[%s706_s0 + $0x18] sm:$0xff]  }
   0x6   :  { %v609_v15 = vld [vmem:[%s706_s0 + $0x38] sm:$0xff]   ;;  %v450_v17 = vld [vmem:[%s707_s2] ss:$0 sm:$0xff] }
   0x7   :  { %549 = vmatpush3.bf16.msra.mxu0 %v595_v1  ;;  %587 = vmatpush3.bf16.msra.mxu1 %v595_v1 }
   0x8   :  { %550 = vmatprep.subr.bf16.mxu0 %v596_v2  ;;  %580 = vmatprep.subr.bf16.mxu1 %v596_v2 }
   0xb   :  { %551 = vmatpush3.bf16.msra.mxu0 %v596_v2  ;;  %588 = vmatpush3.bf16.msra.mxu1 %v596_v2 }
   0xc   :  { %552 = vmatprep.subr.bf16.mxu0 %v597_v3  ;;  %581 = vmatprep.subr.bf16.mxu1 %v597_v3 }
   0xf   :  { %553 = vmatpush3.bf16.msra.mxu0 %v597_v3  ;;  %589 = vmatpush3.bf16.msra.mxu1 %v597_v3 }
  0x10   :  { %554 = vmatprep.subr.bf16.mxu0 %v598_v6  ;;  %582 = vmatprep.subr.bf16.mxu1 %v598_v6 }
  0x13   :  { %555 = vmatpush3.bf16.msra.mxu0 %v598_v6  ;;  %590 = vmatpush3.bf16.msra.mxu1 %v598_v6 }
  0x14   :  { %556 = vmatprep.subr.bf16.mxu0 %v599_v7  ;;  %583 = vmatprep.subr.bf16.mxu1 %v599_v7 }
  0x17   :  { %557 = vmatpush3.bf16.msra.mxu0 %v599_v7  ;;  %591 = vmatpush3.bf16.msra.mxu1 %v599_v7 }
  0x18   :  { %558 = vmatprep.subr.bf16.mxu0 %v600_v8  ;;  %584 = vmatprep.subr.bf16.mxu1 %v600_v8 }
  0x1b   :  { %559 = vmatpush3.bf16.msra.mxu0 %v600_v8  ;;  %592 = vmatpush3.bf16.msra.mxu1 %v600_v8 }
  0x1c   :  { %560 = vmatprep.subr.bf16.mxu0 %v601_v9  ;;  %585 = vmatprep.subr.bf16.mxu1 %v601_v9 }
  0x1f   :  { %561 = vmatpush3.bf16.msra.mxu0 %v601_v9  ;;  %593 = vmatpush3.bf16.msra.mxu1 %v601_v9 }
  0x22   :  { %563 = vmatmul.mubr.bf16.vlgmr.msra.gmra.mrb[0].mxu0 %v604_v10  ;;  %571 = vmatmul.mubr.bf16.vlgmr.msra.gmra.mrb[0].mxu1 %v605_v11 }
  0x23   :  { %566 = vmatprep.mubr.bf16.mxu0 %v606_v12  ;;  %574 = vmatprep.mubr.bf16.mxu1 %v607_v13 }
  0x2a   :  { %567 = vmatmul.mubr.bf16.gmra.mrb[4].mxu0 %v608_v14  ;;  %575 = vmatmul.mubr.bf16.gmra.mrb[4].mxu1 %v609_v15 }
  0xf5   :  { %v564_v16 = vpop.f32.mrb[0].mxu0  ;;  %v572_v18 = vpop.f32.mrb[0].mxu1 }
  0xf6   :  { %v213_v19 = vpop.f32.mrb[1].mxu0  ;;  %v245_v20 = vpop.f32.mrb[1].mxu1  ;;  %v336_v23 = vadd.f32 %v564_v16, %v450_v17  ;;  %v344_v24 = vadd.f32 %v572_v18, %v450_v17 }
  0xf7   :  { %v565_v21 = vpop.f32.mrb[2].mxu0  ;;  %v573_v22 = vpop.f32.mrb[2].mxu1  ;;  %v334_v29 = vadd.f32 %v450_v17, %v213_v19  ;;  %v342_v30 = vadd.f32 %v450_v17, %v245_v20 }
  0xf8   :  { %v337_v25 = vadd.f32 %v565_v21, %v450_v17  ;;  %v345_v26 = vadd.f32 %v573_v22, %v450_v17  ;;  %v216_v27 = vpop.f32.mrb[3].mxu0  ;;  %v248_v28 = vpop.f32.mrb[3].mxu1 }
  0xf9   :  { %v335_v31 = vadd.f32 %v450_v17, %v216_v27  ;;  %v343_v32 = vadd.f32 %v450_v17, %v248_v28 }
  0xfa   :  { %v491_v33 = vpack.c.bf16 %v337_v25, %v336_v23  ;;  %v511_v34 = vpack.c.bf16 %v345_v26, %v344_v24 }
  0xfb   :  { %v486_v35 = vpack.c.bf16 %v335_v31, %v334_v29  ;;  %v506_v36 = vpack.c.bf16 %v343_v32, %v342_v30 }
  0xfc   :  { %523 = vst [vmem:[%s708_s3 + $0x8] sm:$0xff] %v491_v33   ;;  %527 = vst [vmem:[%s708_s3 + $0x28] sm:$0xff] %v511_v34  }
  0xfd   :  { %487 = vst [vmem:[%s708_s3] sm:$0xff] %v486_v35   ;;  %526 = vst [vmem:[%s708_s3 + $0x20] sm:$0xff] %v506_v36   ;;  %v568_v37 = vpop.f32.mrb[4].mxu0  ;;  %v576_v38 = vpop.f32.mrb[4].mxu1 }
  0xfe   :  { %v229_v39 = vpop.f32.mrb[5].mxu0  ;;  %v261_v40 = vpop.f32.mrb[5].mxu1  ;;  %v340_v43 = vadd.f32 %v568_v37, %v450_v17  ;;  %v348_v44 = vadd.f32 %v576_v38, %v450_v17 }
  0xff   :  { %v569_v41 = vpop.f32.mrb[6].mxu0  ;;  %v577_v42 = vpop.f32.mrb[6].mxu1  ;;  %v338_v49 = vadd.f32 %v450_v17, %v229_v39  ;;  %v346_v50 = vadd.f32 %v450_v17, %v261_v40 }
 0x100   :  { %v341_v45 = vadd.f32 %v569_v41, %v450_v17  ;;  %v349_v46 = vadd.f32 %v577_v42, %v450_v17  ;;  %v232_v47 = vpop.f32.mrb[7].mxu0  ;;  %v264_v48 = vpop.f32.mrb[7].mxu1 }
 0x101   :  { %v339_v51 = vadd.f32 %v450_v17, %v232_v47  ;;  %v347_v52 = vadd.f32 %v450_v17, %v264_v48 }
 0x102   :  { %v501_v53 = vpack.c.bf16 %v341_v45, %v340_v43  ;;  %v521_v54 = vpack.c.bf16 %v349_v46, %v348_v44 }
 0x103   :  { %v496_v55 = vpack.c.bf16 %v339_v51, %v338_v49  ;;  %v516_v56 = vpack.c.bf16 %v347_v52, %v346_v50 }
 0x104   :  { %525 = vst [vmem:[%s708_s3 + $0x18] sm:$0xff] %v501_v53   ;;  %529 = vst [vmem:[%s708_s3 + $0x38] sm:$0xff] %v521_v54  }
 0x105   :  { %524 = vst [vmem:[%s708_s3 + $0x10] sm:$0xff] %v496_v55   ;;  %528 = vst [vmem:[%s708_s3 + $0x30] sm:$0xff] %v516_v56  }

// kernel: _lambda_.18
= control target key start
LH: loop header
LB: loop body
LE: loop exit
PB: predicated region body
PF: predicated region fallthrough
CT: control target
= control target key end

     0   :  { %s3184_s1 = inlined_call_operand.vmem [shape: bf16[1152,128], index: 1, kind: input, shape index: {}]   ;;  %s3185_s0 = inlined_call_operand.vmem [shape: bf16[128,1152], index: 0, kind: input, shape index: {}]   ;;  %s3186_s3 = inlined_call_operand.vmem [shape: bf16[128,128], index: 3, kind: input, shape index: {}]   ;;  %s3187_s2 = inlined_call_operand.vmem [shape: f32[1,128], index: 2, kind: input, shape index: {}]   ;;  %s3188_s4 = inlined_call_operand.vmem [shape: bf16[128,128], index: 4, kind: output, shape index: {}]  }
   0x1   :  { %v2368_v0 = vld [vmem:[%s3184_s1 + $0x40] sm:$0xff]   ;;  %v2372_v4 = vld [vmem:[%s3184_s1 + $0x48] sm:$0xff]   ;;  %v2376_v8 = vld [vmem:[%s3184_s1 + $0x50] sm:$0xff]  }
   0x2   :  { %v2369_v1 = vld [vmem:[%s3184_s1 + $0xc0] sm:$0xff]   ;;  %2048 = vmatprep.subr.bf16.mxu0 %v2368_v0  ;;  %v2373_v5 = vld [vmem:[%s3184_s1 + $0xc8] sm:$0xff]   ;;  %v2377_v9 = vld [vmem:[%s3184_s1 + $0xd0] sm:$0xff]  }
   0x3   :  { %v2370_v2 = vld [vmem:[%s3184_s1] sm:$0xff]   ;;  %2112 = vmatprep.subr.bf16.mxu1 %v2369_v1  ;;  %v2374_v6 = vld [vmem:[%s3184_s1 + $0x8] sm:$0xff]   ;;  %v2378_v10 = vld [vmem:[%s3184_s1 + $0x10] sm:$0xff]  }
   0x4   :  { %v2371_v3 = vld [vmem:[%s3184_s1 + $0x80] sm:$0xff]   ;;  %2049 = vmatpush3.bf16.msra.mxu0 %v2370_v2  ;;  %v2375_v7 = vld [vmem:[%s3184_s1 + $0x88] sm:$0xff]   ;;  %v2379_v11 = vld [vmem:[%s3184_s1 + $0x90] sm:$0xff]  }
   0x5   :  { %2113 = vmatpush3.bf16.msra.mxu1 %v2371_v3  ;;  %2050 = vmatprep.subr.bf16.mxu0 %v2372_v4  ;;  %v2380_v12 = vld [vmem:[%s3184_s1 + $0x58] sm:$0xff]   ;;  %v2384_v16 = vld [vmem:[%s3184_s1 + $0x60] sm:$0xff]   ;;  %v2388_v20 = vld [vmem:[%s3184_s1 + $0x68] sm:$0xff]  }
   0x6   :  { %2114 = vmatprep.subr.bf16.mxu1 %v2373_v5  ;;  %v2381_v13 = vld [vmem:[%s3184_s1 + $0xd8] sm:$0xff]   ;;  %v2385_v17 = vld [vmem:[%s3184_s1 + $0xe0] sm:$0xff]   ;;  %v2389_v21 = vld [vmem:[%s3184_s1 + $0xe8] sm:$0xff]  }
   0x7   :  { %v2382_v14 = vld [vmem:[%s3184_s1 + $0x18] sm:$0xff]   ;;  %v2386_v18 = vld [vmem:[%s3184_s1 + $0x20] sm:$0xff]   ;;  %v2390_v22 = vld [vmem:[%s3184_s1 + $0x28] sm:$0xff]  }
   0x8   :  { %2051 = vmatpush3.bf16.msra.mxu0 %v2374_v6  ;;  %v2383_v15 = vld [vmem:[%s3184_s1 + $0x98] sm:$0xff]   ;;  %v2387_v19 = vld [vmem:[%s3184_s1 + $0xa0] sm:$0xff]   ;;  %v2391_v23 = vld [vmem:[%s3184_s1 + $0xa8] sm:$0xff]  }
   0x9   :  { %2115 = vmatpush3.bf16.msra.mxu1 %v2375_v7  ;;  %2052 = vmatprep.subr.bf16.mxu0 %v2376_v8  ;;  %v2392_v24 = vld [vmem:[%s3184_s1 + $0x70] sm:$0xff]   ;;  %v2396_v28 = vld [vmem:[%s3184_s1 + $0x78] sm:$0xff]   ;;  %v2400_v32 = vld [vmem:[%s3185_s0] ss:$36 sps:$4 sm:$0xff]  }
   0xa   :  { %2116 = vmatprep.subr.bf16.mxu1 %v2377_v9  ;;  %v2393_v25 = vld [vmem:[%s3184_s1 + $0xf0] sm:$0xff]   ;;  %v2397_v29 = vld [vmem:[%s3184_s1 + $0xf8] sm:$0xff]   ;;  %v2402_v33 = vld [vmem:[%s3185_s0 + $0x4] ss:$36 sps:$4 sm:$0xff]  }
   0xb   :  { %v2394_v26 = vld [vmem:[%s3184_s1 + $0x30] sm:$0xff]   ;;  %v2398_v30 = vld [vmem:[%s3184_s1 + $0x38] sm:$0xff]   ;;  %v2403_v34 = vld [vmem:[%s3185_s0 + $0x8] ss:$36 sps:$4 sm:$0xff]   ;;  %1110 = vmatprep.mubr.bf16.mxu0 %v2402_v33 }
   0xc   :  { %2053 = vmatpush3.bf16.msra.mxu0 %v2378_v10  ;;  %v2395_v27 = vld [vmem:[%s3184_s1 + $0xb0] sm:$0xff]   ;;  %v2399_v31 = vld [vmem:[%s3184_s1 + $0xb8] sm:$0xff]   ;;  %v2406_v36 = vld [vmem:[%s3184_s1 + $0x140] sm:$0xff]  }
   0xd   :  { %2117 = vmatpush3.bf16.msra.mxu1 %v2379_v11  ;;  %2054 = vmatprep.subr.bf16.mxu0 %v2380_v12  ;;  %v2405_v35 = vld [vmem:[%s3185_s0 + $0xc] ss:$36 sps:$4 sm:$0xff]   ;;  %v2407_v37 = vld [vmem:[%s3184_s1 + $0x1c0] sm:$0xff]   ;;  %v2412_v41 = vld [vmem:[%s3185_s0 + $0x54] ss:$36 sps:$4 sm:$0xff]  }
   0xe   :  { %2118 = vmatprep.subr.bf16.mxu1 %v2381_v13  ;;  %1207 = vmatprep.mubr.bf16.mxu1 %v2405_v35  ;;  %v2408_v38 = vld [vmem:[%s3184_s1 + $0x100] sm:$0xff]   ;;  %v2410_v40 = vld [vmem:[%s3185_s0 + $0x4c] ss:$36 sps:$4 sm:$0xff]   ;;  %v2420_v48 = vld [vmem:[%s3185_s0 + $0x94] ss:$36 sps:$4 sm:$0xff]  }
   0xf   :  { %v2409_v39 = vld [vmem:[%s3184_s1 + $0x180] sm:$0xff]   ;;  %v2414_v42 = vld [vmem:[%s3185_s0 + $0x48] ss:$36 sps:$4 sm:$0xff]   ;;  %v2415_v43 = vld [vmem:[%s3185_s0 + $0x50] ss:$36 sps:$4 sm:$0xff]  }
  0x10   :  { %2055 = vmatpush3.bf16.msra.mxu0 %v2382_v14  ;;  %v2416_v44 = vld [vmem:[%s3184_s1 + $0x148] sm:$0xff]   ;;  %v2422_v49 = vld [vmem:[%s3185_s0 + $0x9c] ss:$36 sps:$4 sm:$0xff]   ;;  %v2424_v50 = vld [vmem:[%s3185_s0 + $0x90] ss:$36 sps:$4 sm:$0xff]  }
  0x11   :  { %2119 = vmatpush3.bf16.msra.mxu1 %v2383_v15  ;;  %2056 = vmatprep.subr.bf16.mxu0 %v2384_v16  ;;  %v2417_v45 = vld [vmem:[%s3184_s1 + $0x1c8] sm:$0xff]   ;;  %v2425_v51 = vld [vmem:[%s3185_s0 + $0x98] ss:$36 sps:$4 sm:$0xff]   ;;  %v2426_v52 = vld [vmem:[%s3184_s1 + $0x150] sm:$0xff]  }
  0x12   :  { %2120 = vmatprep.subr.bf16.mxu1 %v2385_v17  ;;  %v2418_v46 = vld [vmem:[%s3184_s1 + $0x108] sm:$0xff]   ;;  %v2427_v53 = vld [vmem:[%s3184_s1 + $0x1d0] sm:$0xff]   ;;  %v2430_v56 = vld [vmem:[%s3185_s0 + $0xdc] ss:$36 sps:$4 sm:$0xff]  }
  0x13   :  { %v2419_v47 = vld [vmem:[%s3184_s1 + $0x188] sm:$0xff]   ;;  %v2428_v54 = vld [vmem:[%s3184_s1 + $0x110] sm:$0xff]   ;;  %v2434_v58 = vld [vmem:[%s3185_s0 + $0xd8] ss:$36 sps:$4 sm:$0xff]  }
  0x14   :  { %2057 = vmatpush3.bf16.msra.mxu0 %v2386_v18  ;;  %v2429_v55 = vld [vmem:[%s3184_s1 + $0x190] sm:$0xff]   ;;  %v2432_v57 = vld [vmem:[%s3185_s0 + $0xe4] ss:$36 sps:$4 sm:$0xff]   ;;  %v2436_v60 = vld [vmem:[%s3184_s1 + $0x158] sm:$0xff]  }
  0x15   :  { %2121 = vmatpush3.bf16.msra.mxu1 %v2387_v19  ;;  %2058 = vmatprep.subr.bf16.mxu0 %v2388_v20  ;;  %v2435_v59 = vld [vmem:[%s3185_s0 + $0xe0] ss:$36 sps:$4 sm:$0xff]   ;;  %v2437_v61 = vld [vmem:[%s3184_s1 + $0x1d8] sm:$0xff]   ;;  %v2442_v1 = vld [vmem:[%s3185_s0 + $0x12c] ss:$36 sps:$4 sm:$0xff]  }
  0x16   :  { %2122 = vmatprep.subr.bf16.mxu1 %v2389_v21  ;;  %v2438_v62 = vld [vmem:[%s3184_s1 + $0x118] sm:$0xff]   ;;  %v2440_v0 = vld [vmem:[%s3185_s0 + $0x124] ss:$36 sps:$4 sm:$0xff]   ;;  %v2450_v8 = vld [vmem:[%s3185_s0 + $0x16c] ss:$36 sps:$4 sm:$0xff]  }
  0x17   :  { %v2439_v63 = vld [vmem:[%s3184_s1 + $0x198] sm:$0xff]   ;;  %v2444_v2 = vld [vmem:[%s3185_s0 + $0x120] ss:$36 sps:$4 sm:$0xff]   ;;  %v2445_v4 = vld [vmem:[%s3185_s0 + $0x128] ss:$36 sps:$4 sm:$0xff]  }
  0x18   :  { %2059 = vmatpush3.bf16.msra.mxu0 %v2390_v22  ;;  %v2446_v3 = vld [vmem:[%s3184_s1 + $0x160] sm:$0xff]   ;;  %v2452_v9 = vld [vmem:[%s3185_s0 + $0x174] ss:$36 sps:$4 sm:$0xff]   ;;  %v2456_v10 = vld [vmem:[%s3184_s1 + $0x168] sm:$0xff]  }
  0x19   :  { %2123 = vmatpush3.bf16.msra.mxu1 %v2391_v23  ;;  %2060 = vmatprep.subr.bf16.mxu0 %v2392_v24  ;;  %v2447_v5 = vld [vmem:[%s3184_s1 + $0x1e0] sm:$0xff]   ;;  %v2457_v11 = vld [vmem:[%s3184_s1 + $0x1e8] sm:$0xff]   ;;  %v2455_v15 = vld [vmem:[%s3185_s0 + $0x170] ss:$36 sps:$4 sm:$0xff]  }
  0x1a   :  { %2124 = vmatprep.subr.bf16.mxu1 %v2393_v25  ;;  %v2448_v6 = vld [vmem:[%s3184_s1 + $0x120] sm:$0xff]   ;;  %v2454_v12 = vld [vmem:[%s3185_s0 + $0x168] ss:$36 sps:$4 sm:$0xff]   ;;  %v2460_v16 = vld [vmem:[%s3185_s0 + $0x1b4] ss:$36 sps:$4 sm:$0xff]  }
  0x1b   :  { %v2449_v7 = vld [vmem:[%s3184_s1 + $0x1a0] sm:$0xff]   ;;  %v2458_v13 = vld [vmem:[%s3184_s1 + $0x128] sm:$0xff]   ;;  %v2466_v18 = vld [vmem:[%s3184_s1 + $0x170] sm:$0xff]  }
  0x1c   :  { %2061 = vmatpush3.bf16.msra.mxu0 %v2394_v26  ;;  %v2459_v14 = vld [vmem:[%s3184_s1 + $0x1a8] sm:$0xff]   ;;  %v2462_v17 = vld [vmem:[%s3185_s0 + $0x1bc] ss:$36 sps:$4 sm:$0xff]   ;;  %v2467_v19 = vld [vmem:[%s3184_s1 + $0x1f0] sm:$0xff]  }
  0x1d   :  { %2125 = vmatpush3.bf16.msra.mxu1 %v2395_v27  ;;  %2062 = vmatprep.subr.bf16.mxu0 %v2396_v28  ;;  %v2468_v20 = vld [vmem:[%s3184_s1 + $0x130] sm:$0xff]   ;;  %v2465_v23 = vld [vmem:[%s3185_s0 + $0x1b8] ss:$36 sps:$4 sm:$0xff]   ;;  %v2472_v25 = vld [vmem:[%s3185_s0 + $0x204] ss:$36 sps:$4 sm:$0xff]  }
  0x1e   :  { %2126 = vmatprep.subr.bf16.mxu1 %v2397_v29  ;;  %v2469_v21 = vld [vmem:[%s3184_s1 + $0x1b0] sm:$0xff]   ;;  %v2470_v24 = vld [vmem:[%s3185_s0 + $0x1fc] ss:$36 sps:$4 sm:$0xff]  }
  0x1f   :  { %v2464_v22 = vld [vmem:[%s3185_s0 + $0x1b0] ss:$36 sps:$4 sm:$0xff]   ;;  %v2476_v26 = vld [vmem:[%s3184_s1 + $0x178] sm:$0xff]  }
  0x20   :  { %2063 = vmatpush3.bf16.msra.mxu0 %v2398_v30  ;;  %v2477_v27 = vld [vmem:[%s3184_s1 + $0x1f8] sm:$0xff]   ;;  %v2480_v35 = vld [vmem:[%s3185_s0 + $0x10] ss:$36 sps:$4 sm:$0xff]  }
  0x21   :  { %2127 = vmatpush3.bf16.msra.mxu1 %v2399_v31  ;;  %2176 = vmatprep.subr.bf16.mxu0 %v2406_v36  ;;  %v2478_v28 = vld [vmem:[%s3184_s1 + $0x138] sm:$0xff]   ;;  %v2475_v31 = vld [vmem:[%s3185_s0 + $0x200] ss:$36 sps:$4 sm:$0xff]  }
  0x22   :  { %2240 = vmatprep.subr.bf16.mxu1 %v2407_v37  ;;  %v2479_v29 = vld [vmem:[%s3184_s1 + $0x1b8] sm:$0xff]  }
  0x23   :  { %1111 = vmatmul.mubr.bf16.vlgmr.msra.gmra.mrb[0].mxu0 %v2400_v32  ;;  %v2474_v30 = vld [vmem:[%s3185_s0 + $0x1f8] ss:$36 sps:$4 sm:$0xff]   ;;  %v2486_v32 = vld [vmem:[%s3184_s1 + $0x200] sm:$0xff]  }
  0x24   :  { %1208 = vmatmul.mubr.bf16.vlgmr.msra.gmra.mrb[0].mxu1 %v2403_v34  ;;  %2177 = vmatpush3.bf16.msra.mxu0 %v2408_v38  ;;  %v2482_v33 = vld [vmem:[%s3185_s0 + $0x14] ss:$36 sps:$4 sm:$0xff]   ;;  %v2485_v34 = vld [vmem:[%s3185_s0 + $0x1c] ss:$36 sps:$4 sm:$0xff]   ;;  %v2489_v38 = vld [vmem:[%s3185_s0 + $0x64] ss:$36 sps:$4 sm:$0xff]  }
  0x25   :  { %2241 = vmatpush3.bf16.msra.mxu1 %v2409_v39  ;;  %1118 = vmatprep.mubr.bf16.mxu0 %v2410_v40  ;;  %v2483_v36 = vld [vmem:[%s3185_s0 + $0x18] ss:$36 sps:$4 sm:$0xff]   ;;  %v2493_v39 = vld [vmem:[%s3184_s1 + $0x208] sm:$0xff]   ;;  %v2500_v40 = vld [vmem:[%s3184_s1 + $0x210] sm:$0xff]  }
  0x26   :  { %1215 = vmatprep.mubr.bf16.mxu1 %v2412_v41  ;;  %2178 = vmatprep.subr.bf16.mxu0 %v2416_v44  ;;  %v2487_v37 = vld [vmem:[%s3185_s0 + $0x5c] ss:$36 sps:$4 sm:$0xff]   ;;  %v2496_v44 = vld [vmem:[%s3185_s0 + $0xac] ss:$36 sps:$4 sm:$0xff]  }
  0x27   :  { %2242 = vmatprep.subr.bf16.mxu1 %v2417_v45  ;;  %v2491_v41 = vld [vmem:[%s3185_s0 + $0x58] ss:$36 sps:$4 sm:$0xff]  }
  0x28   :  { %2179 = vmatpush3.bf16.msra.mxu0 %v2418_v46  ;;  %v2507_v45 = vld [vmem:[%s3184_s1 + $0x218] sm:$0xff]   ;;  %v2514_v46 = vld [vmem:[%s3184_s1 + $0x220] sm:$0xff]  }
  0x29   :  { %2243 = vmatpush3.bf16.msra.mxu1 %v2419_v47  ;;  %2180 = vmatprep.subr.bf16.mxu0 %v2426_v52  ;;  %v2498_v47 = vld [vmem:[%s3185_s0 + $0xa0] ss:$36 sps:$4 sm:$0xff]   ;;  %v2505_v52 = vld [vmem:[%s3185_s0 + $0xe8] ss:$36 sps:$4 sm:$0xff]  }
  0x2a   :  { %2244 = vmatprep.subr.bf16.mxu1 %v2427_v53  ;;  %v2528_v53 = vld [vmem:[%s3184_s1 + $0x230] sm:$0xff]  }
  0x2b   :  { %1119 = vmatmul.mubr.bf16.gmra.mrb[4].mxu0 %v2414_v42  ;;  %v2492_v42 = vld [vmem:[%s3185_s0 + $0x60] ss:$36 sps:$4 sm:$0xff]  }
  0x2c   :  { %1216 = vmatmul.mubr.bf16.gmra.mrb[4].mxu1 %v2415_v43  ;;  %1126 = vmatprep.mubr.bf16.mxu0 %v2420_v48  ;;  %v2494_v43 = vld [vmem:[%s3185_s0 + $0xa4] ss:$36 sps:$4 sm:$0xff]  }
  0x2d   :  { %1223 = vmatprep.mubr.bf16.mxu1 %v2422_v49  ;;  %2181 = vmatpush3.bf16.msra.mxu0 %v2428_v54  ;;  %v2499_v48 = vld [vmem:[%s3185_s0 + $0xa8] ss:$36 sps:$4 sm:$0xff]   ;;  %v2506_v54 = vld [vmem:[%s3185_s0 + $0xf0] ss:$36 sps:$4 sm:$0xff]  }
  0x2e   :  { %2245 = vmatpush3.bf16.msra.mxu1 %v2429_v55  ;;  %2182 = vmatprep.subr.bf16.mxu0 %v2436_v60  ;;  %v2501_v49 = vld [vmem:[%s3185_s0 + $0xec] ss:$36 sps:$4 sm:$0xff]   ;;  %v2508_v55 = vld [vmem:[%s3185_s0 + $0x134] ss:$36 sps:$4 sm:$0xff]   ;;  %v2515_v60 = vld [vmem:[%s3185_s0 + $0x17c] ss:$36 sps:$4 sm:$0xff]  }
  0x2f   :  { %2246 = vmatprep.subr.bf16.mxu1 %v2437_v61  ;;  %v2517_v61 = vld [vmem:[%s3185_s0 + $0x184] ss:$36 sps:$4 sm:$0xff]  }
  0x31   :  { %2183 = vmatpush3.bf16.msra.mxu0 %v2438_v62  ;;  %v2519_v62 = vld [vmem:[%s3185_s0 + $0x178] ss:$36 sps:$4 sm:$0xff]  }
  0x32   :  { %2247 = vmatpush3.bf16.msra.mxu1 %v2439_v63  ;;  %2184 = vmatprep.subr.bf16.mxu0 %v2446_v3  ;;  %v2520_v63 = vld [vmem:[%s3185_s0 + $0x180] ss:$36 sps:$4 sm:$0xff]   ;;  %v2527_v3 = vld [vmem:[%s3185_s0 + $0x1c8] ss:$36 sps:$4 sm:$0xff]  }
  0x33   :  { %1127 = vmatmul.mubr.bf16.gmra.mrb[8].mxu0 %v2424_v50  ;;  %2248 = vmatprep.subr.bf16.mxu1 %v2447_v5  ;;  %v2503_v50 = vld [vmem:[%s3185_s0 + $0xf4] ss:$36 sps:$4 sm:$0xff]  }
  0x34   :  { %1224 = vmatmul.mubr.bf16.gmra.mrb[8].mxu1 %v2425_v51  ;;  %1134 = vmatprep.mubr.bf16.mxu0 %v2430_v56  ;;  %v2521_v51 = vld [vmem:[%s3184_s1 + $0x228] sm:$0xff]   ;;  %v2510_v56 = vld [vmem:[%s3185_s0 + $0x13c] ss:$36 sps:$4 sm:$0xff]   ;;  %v2531_v5 = vld [vmem:[%s3185_s0 + $0x214] ss:$36 sps:$4 sm:$0xff]  }
  0x35   :  { %1231 = vmatprep.mubr.bf16.mxu1 %v2432_v57  ;;  %2185 = vmatpush3.bf16.msra.mxu0 %v2448_v6  ;;  %v2535_v57 = vld [vmem:[%s3184_s1 + $0x238] sm:$0xff]   ;;  %v2533_v6 = vld [vmem:[%s3185_s0 + $0x208] ss:$36 sps:$4 sm:$0xff]  }
  0x36   :  { %2249 = vmatpush3.bf16.msra.mxu1 %v2449_v7  ;;  %2186 = vmatprep.subr.bf16.mxu0 %v2456_v10  ;;  %v2534_v7 = vld [vmem:[%s3185_s0 + $0x210] ss:$36 sps:$4 sm:$0xff]   ;;  %v2538_v10 = vld [vmem:[%s3185_s0 + $0x68] ss:$36 sps:$4 sm:$0xff]  }
  0x37   :  { %2250 = vmatprep.subr.bf16.mxu1 %v2457_v11  ;;  %v2539_v11 = vld [vmem:[%s3185_s0 + $0x188] ss:$36 sps:$4 sm:$0xff]  }
  0x39   :  { %2187 = vmatpush3.bf16.msra.mxu0 %v2458_v13  ;;  %v2541_v13 = vld [vmem:[%s3185_s0 + $0x1d0] ss:$36 sps:$4 sm:$0xff]  }
  0x3a   :  { %2251 = vmatpush3.bf16.msra.mxu1 %v2459_v14  ;;  %2188 = vmatprep.subr.bf16.mxu0 %v2466_v18  ;;  %v2542_v14 = vld [vmem:[%s3185_s0 + $0xf8] ss:$36 sps:$4 sm:$0xff]  }
  0x3b   :  { %1135 = vmatmul.mubr.bf16.gmra.mrb[12].mxu0 %v2434_v58  ;;  %2252 = vmatprep.subr.bf16.mxu1 %v2467_v19  ;;  %v2512_v58 = vld [vmem:[%s3185_s0 + $0x130] ss:$36 sps:$4 sm:$0xff]  }
  0x3c   :  { %1232 = vmatmul.mubr.bf16.gmra.mrb[12].mxu1 %v2435_v59  ;;  %1142 = vmatprep.mubr.bf16.mxu0 %v2440_v0  ;;  %v2513_v59 = vld [vmem:[%s3185_s0 + $0x138] ss:$36 sps:$4 sm:$0xff]   ;;  %v2522_v0 = vld [vmem:[%s3185_s0 + $0x1c4] ss:$36 sps:$4 sm:$0xff]  }
  0x3d   :  { %1239 = vmatprep.mubr.bf16.mxu1 %v2442_v1  ;;  %2189 = vmatpush3.bf16.msra.mxu0 %v2468_v20  ;;  %v2524_v1 = vld [vmem:[%s3185_s0 + $0x1cc] ss:$36 sps:$4 sm:$0xff]  }
  0x3e   :  { %2253 = vmatpush3.bf16.msra.mxu1 %v2469_v21  ;;  %2190 = vmatprep.subr.bf16.mxu0 %v2476_v26 }
  0x3f   :  { %2254 = vmatprep.subr.bf16.mxu1 %v2477_v27 }
  0x41   :  { %2191 = vmatpush3.bf16.msra.mxu0 %v2478_v28 }
  0x42   :  { %2255 = vmatpush3.bf16.msra.mxu1 %v2479_v29  ;;  %2320 = vmatprep.subr.bf16.mxu0 %v2486_v32 }
  0x43   :  { %1143 = vmatmul.mubr.bf16.gmra.mrb[16].mxu0 %v2444_v2  ;;  %2352 = vmatprep.subr.bf16.mxu1 %v2486_v32  ;;  %v2526_v2 = vld [vmem:[%s3185_s0 + $0x1c0] ss:$36 sps:$4 sm:$0xff]  }
  0x44   :  { %1240 = vmatmul.mubr.bf16.gmra.mrb[16].mxu1 %v2445_v4  ;;  %1150 = vmatprep.mubr.bf16.mxu0 %v2450_v8  ;;  %v2529_v4 = vld [vmem:[%s3185_s0 + $0x20c] ss:$36 sps:$4 sm:$0xff]   ;;  %v2536_v8 = vld [vmem:[%s3185_s0 + $0x20] ss:$36 sps:$4 sm:$0xff]  }
  0x45   :  { %1247 = vmatprep.mubr.bf16.mxu1 %v2452_v9  ;;  %v2537_v9 = vld [vmem:[%s3185_s0 + $0x140] ss:$36 sps:$4 sm:$0xff]  }
  0x4b   :  { %1151 = vmatmul.mubr.bf16.gmra.mrb[20].mxu0 %v2454_v12  ;;  %v2540_v12 = vld [vmem:[%s3185_s0 + $0xb0] ss:$36 sps:$4 sm:$0xff]  }
  0x4c   :  { %1248 = vmatmul.mubr.bf16.gmra.mrb[20].mxu1 %v2455_v15  ;;  %1158 = vmatprep.mubr.bf16.mxu0 %v2460_v16  ;;  %v2543_v15 = vld [vmem:[%s3185_s0 + $0x218] ss:$36 sps:$4 sm:$0xff]  }
  0x4d   :  { %1255 = vmatprep.mubr.bf16.mxu1 %v2462_v17 }
  0x53   :  { %1159 = vmatmul.mubr.bf16.gmra.mrb[24].mxu0 %v2464_v22 }
  0x54   :  { %1256 = vmatmul.mubr.bf16.gmra.mrb[24].mxu1 %v2465_v23  ;;  %1166 = vmatprep.mubr.bf16.mxu0 %v2470_v24 }
  0x55   :  { %1263 = vmatprep.mubr.bf16.mxu1 %v2472_v25 }
  0x5b   :  { %1167 = vmatmul.mubr.bf16.gmra.mrb[28].mxu0 %v2474_v30 }
  0x5c   :  { %1264 = vmatmul.mubr.bf16.gmra.mrb[28].mxu1 %v2475_v31  ;;  %1304 = vmatprep.mubr.bf16.mxu0 %v2482_v33 }
  0x5d   :  { %1401 = vmatprep.mubr.bf16.mxu1 %v2485_v34 }
  0x63   :  { %1305 = vmatmul.mubr.bf16.vlgmr.msra.gmra.mrb[32].mxu0 %v2480_v35 }
  0x64   :  { %1402 = vmatmul.mubr.bf16.vlgmr.msra.gmra.mrb[32].mxu1 %v2483_v36  ;;  %2321 = vmatpush3.bf16.msra.mxu0 %v2486_v32 }
  0x65   :  { %2360 = vmatpush3.bf16.msra.mxu1 %v2486_v32  ;;  %1312 = vmatprep.mubr.bf16.mxu0 %v2487_v37 }
  0x66   :  { %1409 = vmatprep.mubr.bf16.mxu1 %v2489_v38  ;;  %2322 = vmatprep.subr.bf16.mxu0 %v2493_v39 }
  0x67   :  { %2353 = vmatprep.subr.bf16.mxu1 %v2493_v39 }
  0x68   :  { %2323 = vmatpush3.bf16.msra.mxu0 %v2493_v39 }
  0x69   :  { %2361 = vmatpush3.bf16.msra.mxu1 %v2493_v39  ;;  %2324 = vmatprep.subr.bf16.mxu0 %v2500_v40 }
  0x6a   :  { %2354 = vmatprep.subr.bf16.mxu1 %v2500_v40 }
  0x6b   :  { %1313 = vmatmul.mubr.bf16.gmra.mrb[36].mxu0 %v2491_v41 }
  0x6c   :  { %1410 = vmatmul.mubr.bf16.gmra.mrb[36].mxu1 %v2492_v42  ;;  %1320 = vmatprep.mubr.bf16.mxu0 %v2494_v43 }
  0x6d   :  { %1417 = vmatprep.mubr.bf16.mxu1 %v2496_v44  ;;  %2325 = vmatpush3.bf16.msra.mxu0 %v2500_v40 }
  0x6e   :  { %2362 = vmatpush3.bf16.msra.mxu1 %v2500_v40  ;;  %2326 = vmatprep.subr.bf16.mxu0 %v2507_v45 }
  0x6f   :  { %2355 = vmatprep.subr.bf16.mxu1 %v2507_v45 }
  0x71   :  { %2327 = vmatpush3.bf16.msra.mxu0 %v2507_v45 }
  0x72   :  { %2363 = vmatpush3.bf16.msra.mxu1 %v2507_v45  ;;  %2328 = vmatprep.subr.bf16.mxu0 %v2514_v46 }
  0x73   :  { %1321 = vmatmul.mubr.bf16.gmra.mrb[40].mxu0 %v2498_v47  ;;  %2356 = vmatprep.subr.bf16.mxu1 %v2514_v46 }
  0x74   :  { %1418 = vmatmul.mubr.bf16.gmra.mrb[40].mxu1 %v2499_v48  ;;  %1328 = vmatprep.mubr.bf16.mxu0 %v2501_v49 }
  0x75   :  { %1425 = vmatprep.mubr.bf16.mxu1 %v2503_v50  ;;  %2329 = vmatpush3.bf16.msra.mxu0 %v2514_v46 }
  0x76   :  { %2364 = vmatpush3.bf16.msra.mxu1 %v2514_v46  ;;  %2330 = vmatprep.subr.bf16.mxu0 %v2521_v51 }
  0x77   :  { %2357 = vmatprep.subr.bf16.mxu1 %v2521_v51 }
  0x79   :  { %2331 = vmatpush3.bf16.msra.mxu0 %v2521_v51 }
  0x7a   :  { %2365 = vmatpush3.bf16.msra.mxu1 %v2521_v51  ;;  %2332 = vmatprep.subr.bf16.mxu0 %v2528_v53 }
  0x7b   :  { %1329 = vmatmul.mubr.bf16.gmra.mrb[44].mxu0 %v2505_v52  ;;  %2358 = vmatprep.subr.bf16.mxu1 %v2528_v53 }
  0x7c   :  { %1426 = vmatmul.mubr.bf16.gmra.mrb[44].mxu1 %v2506_v54  ;;  %1336 = vmatprep.mubr.bf16.mxu0 %v2508_v55 }
  0x7d   :  { %1433 = vmatprep.mubr.bf16.mxu1 %v2510_v56  ;;  %2333 = vmatpush3.bf16.msra.mxu0 %v2528_v53 }
  0x7e   :  { %2366 = vmatpush3.bf16.msra.mxu1 %v2528_v53  ;;  %2334 = vmatprep.subr.bf16.mxu0 %v2535_v57 }
  0x7f   :  { %2359 = vmatprep.subr.bf16.mxu1 %v2535_v57 }
  0x81   :  { %2335 = vmatpush3.bf16.msra.mxu0 %v2535_v57 }
  0x82   :  { %2367 = vmatpush3.bf16.msra.mxu1 %v2535_v57 }
  0x83   :  { %1337 = vmatmul.mubr.bf16.gmra.mrb[48].mxu0 %v2512_v58 }
  0x84   :  { %1434 = vmatmul.mubr.bf16.gmra.mrb[48].mxu1 %v2513_v59  ;;  %1344 = vmatprep.mubr.bf16.mxu0 %v2515_v60 }
  0x85   :  { %1441 = vmatprep.mubr.bf16.mxu1 %v2517_v61 }
  0x8b   :  { %1345 = vmatmul.mubr.bf16.gmra.mrb[52].mxu0 %v2519_v62 }
  0x8c   :  { %1442 = vmatmul.mubr.bf16.gmra.mrb[52].mxu1 %v2520_v63  ;;  %1352 = vmatprep.mubr.bf16.mxu0 %v2522_v0 }
  0x8d   :  { %1449 = vmatprep.mubr.bf16.mxu1 %v2524_v1 }
  0x93   :  { %1353 = vmatmul.mubr.bf16.gmra.mrb[56].mxu0 %v2526_v2 }
  0x94   :  { %1450 = vmatmul.mubr.bf16.gmra.mrb[56].mxu1 %v2527_v3  ;;  %1360 = vmatprep.mubr.bf16.mxu0 %v2529_v4 }
  0x95   :  { %1457 = vmatprep.mubr.bf16.mxu1 %v2531_v5 }
  0x9b   :  { %1361 = vmatmul.mubr.bf16.gmra.mrb[60].mxu0 %v2533_v6 }
  0x9c   :  { %1458 = vmatmul.mubr.bf16.gmra.mrb[60].mxu1 %v2534_v7  ;;  %2336 = vmatprep.mubr.bf16.mxu0 %v2536_v8 }
  0x9d   :  { %2344 = vmatprep.mubr.bf16.mxu1 %v2537_v9 }
  0xa3   :  { %2337 = vmatmul.mubr.bf16.vlgmr.msra.gmra.mrb[64].mxu0 %v2538_v10 }
  0xa4   :  { %2345 = vmatmul.mubr.bf16.vlgmr.msra.gmra.mrb[64].mxu1 %v2539_v11  ;;  %2340 = vmatprep.mubr.bf16.mxu0 %v2540_v12 }
  0xa5   :  { %2348 = vmatprep.mubr.bf16.mxu1 %v2541_v13 }
  0xab   :  { %2341 = vmatmul.mubr.bf16.gmra.mrb[68].mxu0 %v2542_v14 }
  0xac   :  { %2349 = vmatmul.mubr.bf16.gmra.mrb[68].mxu1 %v2543_v15 }
  0xf6   :  { %v2064_v16 = vpop.f32.mrb[0].mxu0 }
  0xf7   :  { %v2128_v17 = vpop.f32.mrb[0].mxu1  ;;  %v2065_v18 = vpop.f32.mrb[1].mxu0 }
  0xf8   :  { %v2066_v19 = vadd.f32 %v2065_v18, %v2064_v16  ;;  %v2129_v20 = vpop.f32.mrb[1].mxu1  ;;  %v2067_v21 = vpop.f32.mrb[2].mxu0 }
  0xf9   :  { %v2130_v22 = vadd.f32 %v2129_v20, %v2128_v17  ;;  %v2131_v23 = vpop.f32.mrb[2].mxu1  ;;  %v2068_v24 = vpop.f32.mrb[3].mxu0 }
  0xfa   :  { %v2069_v25 = vadd.f32 %v2068_v24, %v2067_v21  ;;  %v2132_v26 = vpop.f32.mrb[3].mxu1 }
  0xfb   :  { %v3001_v27 = vadd.f32 %v2130_v22, %v2066_v19  ;;  %v2133_v28 = vadd.f32 %v2132_v26, %v2131_v23 }
  0xfd   :  { %v3003_v29 = vadd.f32 %v2133_v28, %v2069_v25 }
  0xfe   :  { %v2070_v30 = vpop.f32.mrb[4].mxu0 }
  0xff   :  { %v2134_v31 = vpop.f32.mrb[4].mxu1  ;;  %v2071_v32 = vpop.f32.mrb[5].mxu0 }
 0x100   :  { %v2072_v33 = vadd.f32 %v2071_v32, %v2070_v30  ;;  %v2135_v34 = vpop.f32.mrb[5].mxu1  ;;  %v2073_v35 = vpop.f32.mrb[6].mxu0 }
 0x101   :  { %v2136_v36 = vadd.f32 %v2135_v34, %v2134_v31  ;;  %v2137_v37 = vpop.f32.mrb[6].mxu1  ;;  %v2074_v38 = vpop.f32.mrb[7].mxu0 }
 0x102   :  { %v2075_v39 = vadd.f32 %v2074_v38, %v2073_v35  ;;  %v2138_v40 = vpop.f32.mrb[7].mxu1 }
 0x103   :  { %v3005_v41 = vadd.f32 %v2136_v36, %v2072_v33  ;;  %v2139_v42 = vadd.f32 %v2138_v40, %v2137_v37 }
 0x105   :  { %v3007_v43 = vadd.f32 %v2139_v42, %v2075_v39 }
 0x106   :  { %v2076_v44 = vpop.f32.mrb[8].mxu0 }
 0x107   :  { %v2140_v45 = vpop.f32.mrb[8].mxu1  ;;  %v2077_v46 = vpop.f32.mrb[9].mxu0 }
 0x108   :  { %v2078_v47 = vadd.f32 %v2077_v46, %v2076_v44  ;;  %v2141_v48 = vpop.f32.mrb[9].mxu1  ;;  %v2079_v49 = vpop.f32.mrb[10].mxu0 }
 0x109   :  { %v2142_v50 = vadd.f32 %v2141_v48, %v2140_v45  ;;  %v2143_v51 = vpop.f32.mrb[10].mxu1  ;;  %v2080_v52 = vpop.f32.mrb[11].mxu0 }
 0x10a   :  { %v2081_v53 = vadd.f32 %v2080_v52, %v2079_v49  ;;  %v2144_v54 = vpop.f32.mrb[11].mxu1 }
 0x10b   :  { %v3009_v55 = vadd.f32 %v2142_v50, %v2078_v47  ;;  %v2145_v56 = vadd.f32 %v2144_v54, %v2143_v51 }
 0x10d   :  { %v3011_v57 = vadd.f32 %v2145_v56, %v2081_v53 }
 0x10e   :  { %v2082_v58 = vpop.f32.mrb[12].mxu0 }
 0x10f   :  { %v2146_v59 = vpop.f32.mrb[12].mxu1  ;;  %v2083_v60 = vpop.f32.mrb[13].mxu0 }
 0x110   :  { %v2084_v61 = vadd.f32 %v2083_v60, %v2082_v58  ;;  %v2147_v62 = vpop.f32.mrb[13].mxu1  ;;  %v2085_v63 = vpop.f32.mrb[14].mxu0 }
 0x111   :  { %v2148_v0 = vadd.f32 %v2147_v62, %v2146_v59  ;;  %v2149_v1 = vpop.f32.mrb[14].mxu1  ;;  %v2086_v2 = vpop.f32.mrb[15].mxu0 }
 0x112   :  { %v2087_v3 = vadd.f32 %v2086_v2, %v2085_v63  ;;  %v2150_v4 = vpop.f32.mrb[15].mxu1 }
 0x113   :  { %v3013_v5 = vadd.f32 %v2148_v0, %v2084_v61  ;;  %v2151_v6 = vadd.f32 %v2150_v4, %v2149_v1 }
 0x115   :  { %v3015_v7 = vadd.f32 %v2151_v6, %v2087_v3 }
 0x116   :  { %v2088_v8 = vpop.f32.mrb[16].mxu0 }
 0x117   :  { %v2152_v9 = vpop.f32.mrb[16].mxu1  ;;  %v2089_v10 = vpop.f32.mrb[17].mxu0 }
 0x118   :  { %v2090_v11 = vadd.f32 %v2089_v10, %v2088_v8  ;;  %v2153_v12 = vpop.f32.mrb[17].mxu1  ;;  %v2091_v13 = vpop.f32.mrb[18].mxu0 }
 0x119   :  { %v2154_v14 = vadd.f32 %v2153_v12, %v2152_v9  ;;  %v2155_v15 = vpop.f32.mrb[18].mxu1  ;;  %v2092_v16 = vpop.f32.mrb[19].mxu0 }
 0x11a   :  { %v2093_v17 = vadd.f32 %v2092_v16, %v2091_v13  ;;  %v2156_v18 = vpop.f32.mrb[19].mxu1 }
 0x11b   :  { %v3017_v19 = vadd.f32 %v2154_v14, %v2090_v11  ;;  %v2157_v20 = vadd.f32 %v2156_v18, %v2155_v15 }
 0x11d   :  { %v3019_v21 = vadd.f32 %v2157_v20, %v2093_v17 }
 0x11e   :  { %v2094_v22 = vpop.f32.mrb[20].mxu0 }
 0x11f   :  { %v2158_v23 = vpop.f32.mrb[20].mxu1  ;;  %v2095_v24 = vpop.f32.mrb[21].mxu0 }
 0x120   :  { %v2096_v25 = vadd.f32 %v2095_v24, %v2094_v22  ;;  %v2159_v26 = vpop.f32.mrb[21].mxu1  ;;  %v2097_v28 = vpop.f32.mrb[22].mxu0 }
 0x121   :  { %v2160_v30 = vadd.f32 %v2159_v26, %v2158_v23  ;;  %v2161_v31 = vpop.f32.mrb[22].mxu1  ;;  %v2098_v32 = vpop.f32.mrb[23].mxu0 }
 0x122   :  { %v2099_v33 = vadd.f32 %v2098_v32, %v2097_v28  ;;  %v2162_v34 = vpop.f32.mrb[23].mxu1 }
 0x123   :  { %v3021_v35 = vadd.f32 %v2160_v30, %v2096_v25  ;;  %v2163_v36 = vadd.f32 %v2162_v34, %v2161_v31 }
 0x125   :  { %v3023_v37 = vadd.f32 %v2163_v36, %v2099_v33 }
 0x126   :  { %v2100_v38 = vpop.f32.mrb[24].mxu0 }
 0x127   :  { %v2164_v39 = vpop.f32.mrb[24].mxu1  ;;  %v2101_v40 = vpop.f32.mrb[25].mxu0 }
 0x128   :  { %v2102_v42 = vadd.f32 %v2101_v40, %v2100_v38  ;;  %v2165_v44 = vpop.f32.mrb[25].mxu1  ;;  %v2103_v45 = vpop.f32.mrb[26].mxu0 }
 0x129   :  { %v2166_v46 = vadd.f32 %v2165_v44, %v2164_v39  ;;  %v2167_v47 = vpop.f32.mrb[26].mxu1  ;;  %v2104_v48 = vpop.f32.mrb[27].mxu0 }
 0x12a   :  { %v2105_v49 = vadd.f32 %v2104_v48, %v2103_v45  ;;  %v2168_v50 = vpop.f32.mrb[27].mxu1 }
 0x12b   :  { %v3025_v51 = vadd.f32 %v2166_v46, %v2102_v42  ;;  %v2169_v52 = vadd.f32 %v2168_v50, %v2167_v47 }
 0x12d   :  { %v3027_v53 = vadd.f32 %v2169_v52, %v2105_v49 }
 0x12e   :  { %v2106_v54 = vpop.f32.mrb[28].mxu0 }
 0x12f   :  { %v2170_v56 = vpop.f32.mrb[28].mxu1  ;;  %v2107_v58 = vpop.f32.mrb[29].mxu0 }
 0x130   :  { %v2108_v59 = vadd.f32 %v2107_v58, %v2106_v54  ;;  %v2171_v60 = vpop.f32.mrb[29].mxu1  ;;  %v2109_v61 = vpop.f32.mrb[30].mxu0 }
 0x131   :  { %v2172_v62 = vadd.f32 %v2171_v60, %v2170_v56  ;;  %v2173_v63 = vpop.f32.mrb[30].mxu1  ;;  %v2110_v0 = vpop.f32.mrb[31].mxu0 }
 0x132   :  { %v2111_v1 = vadd.f32 %v2110_v0, %v2109_v61  ;;  %v2174_v2 = vpop.f32.mrb[31].mxu1 }
 0x133   :  { %v3029_v3 = vadd.f32 %v2172_v62, %v2108_v59  ;;  %v2175_v4 = vadd.f32 %v2174_v2, %v2173_v63 }
 0x135   :  { %v3031_v6 = vadd.f32 %v2175_v4, %v2111_v1 }
 0x136   :  { %v2192_v8 = vpop.f32.mrb[32].mxu0 }
 0x137   :  { %v2256_v9 = vpop.f32.mrb[32].mxu1  ;;  %v2193_v10 = vpop.f32.mrb[33].mxu0 }
 0x138   :  { %v2194_v11 = vadd.f32 %v2193_v10, %v2192_v8  ;;  %v2257_v12 = vpop.f32.mrb[33].mxu1  ;;  %v2195_v13 = vpop.f32.mrb[34].mxu0 }
 0x139   :  { %v2258_v14 = vadd.f32 %v2257_v12, %v2256_v9  ;;  %v2259_v15 = vpop.f32.mrb[34].mxu1  ;;  %v2196_v16 = vpop.f32.mrb[35].mxu0 }
 0x13a   :  { %v1307_v17 = vadd.f32 %v2194_v11, %v3001_v27  ;;  %v2197_v18 = vadd.f32 %v2196_v16, %v2195_v13  ;;  %v2260_v20 = vpop.f32.mrb[35].mxu1 }
 0x13b   :  { %v2261_v22 = vadd.f32 %v2260_v20, %v2259_v15 }
 0x13c   :  { %v1310_v23 = vadd.f32 %v2197_v18, %v3003_v29  ;;  %v3035_v24 = vadd.f32 %v2258_v14, %v1307_v17 }
 0x13e   :  { %v2198_v25 = vpop.f32.mrb[36].mxu0  ;;  %v3037_v26 = vadd.f32 %v2261_v22, %v1310_v23 }
 0x13f   :  { %v2262_v28 = vpop.f32.mrb[36].mxu1  ;;  %v2199_v30 = vpop.f32.mrb[37].mxu0 }
 0x140   :  { %v2200_v31 = vadd.f32 %v2199_v30, %v2198_v25  ;;  %v2263_v32 = vpop.f32.mrb[37].mxu1  ;;  %v2201_v33 = vpop.f32.mrb[38].mxu0 }
 0x141   :  { %v2264_v34 = vadd.f32 %v2263_v32, %v2262_v28  ;;  %v2265_v36 = vpop.f32.mrb[38].mxu1  ;;  %v2202_v38 = vpop.f32.mrb[39].mxu0 }
 0x142   :  { %v1315_v27 = vadd.f32 %v2200_v31, %v3005_v41  ;;  %v2203_v39 = vadd.f32 %v2202_v38, %v2201_v33  ;;  %v2266_v40 = vpop.f32.mrb[39].mxu1 }
 0x143   :  { %v2267_v42 = vadd.f32 %v2266_v40, %v2265_v36 }
 0x144   :  { %v1318_v29 = vadd.f32 %v2203_v39, %v3007_v43  ;;  %v3041_v44 = vadd.f32 %v2264_v34, %v1315_v27 }
 0x146   :  { %v2204_v45 = vpop.f32.mrb[40].mxu0  ;;  %v3043_v46 = vadd.f32 %v2267_v42, %v1318_v29 }
 0x147   :  { %v2268_v47 = vpop.f32.mrb[40].mxu1  ;;  %v2205_v48 = vpop.f32.mrb[41].mxu0 }
 0x148   :  { %v2206_v49 = vadd.f32 %v2205_v48, %v2204_v45  ;;  %v2269_v50 = vpop.f32.mrb[41].mxu1  ;;  %v2207_v52 = vpop.f32.mrb[42].mxu0 }
 0x149   :  { %v2270_v54 = vadd.f32 %v2269_v50, %v2268_v47  ;;  %v2271_v56 = vpop.f32.mrb[42].mxu1  ;;  %v2208_v58 = vpop.f32.mrb[43].mxu0 }
 0x14a   :  { %v1323_v41 = vadd.f32 %v2206_v49, %v3009_v55  ;;  %v2209_v59 = vadd.f32 %v2208_v58, %v2207_v52  ;;  %v2272_v60 = vpop.f32.mrb[43].mxu1 }
 0x14b   :  { %v2273_v61 = vadd.f32 %v2272_v60, %v2271_v56 }
 0x14c   :  { %v1326_v43 = vadd.f32 %v2209_v59, %v3011_v57  ;;  %v3047_v62 = vadd.f32 %v2270_v54, %v1323_v41 }
 0x14e   :  { %v2210_v63 = vpop.f32.mrb[44].mxu0  ;;  %v3049_v0 = vadd.f32 %v2273_v61, %v1326_v43 }
 0x14f   :  { %v2274_v1 = vpop.f32.mrb[44].mxu1  ;;  %v2211_v2 = vpop.f32.mrb[45].mxu0 }
 0x150   :  { %v2212_v4 = vadd.f32 %v2211_v2, %v2210_v63  ;;  %v2275_v8 = vpop.f32.mrb[45].mxu1  ;;  %v2213_v9 = vpop.f32.mrb[46].mxu0 }
 0x151   :  { %v2276_v10 = vadd.f32 %v2275_v8, %v2274_v1  ;;  %v2277_v11 = vpop.f32.mrb[46].mxu1  ;;  %v2214_v12 = vpop.f32.mrb[47].mxu0 }
 0x152   :  { %v1331_v55 = vadd.f32 %v2212_v4, %v3013_v5  ;;  %v2215_v13 = vadd.f32 %v2214_v12, %v2213_v9  ;;  %v2278_v14 = vpop.f32.mrb[47].mxu1 }
 0x153   :  { %v2279_v15 = vadd.f32 %v2278_v14, %v2277_v11 }
 0x154   :  { %v1334_v57 = vadd.f32 %v2215_v13, %v3015_v7  ;;  %v3053_v16 = vadd.f32 %v2276_v10, %v1331_v55 }
 0x156   :  { %v2216_v17 = vpop.f32.mrb[48].mxu0  ;;  %v3055_v18 = vadd.f32 %v2279_v15, %v1334_v57 }
 0x157   :  { %v2280_v20 = vpop.f32.mrb[48].mxu1  ;;  %v2217_v22 = vpop.f32.mrb[49].mxu0 }
 0x158   :  { %v2218_v23 = vadd.f32 %v2217_v22, %v2216_v17  ;;  %v2281_v25 = vpop.f32.mrb[49].mxu1  ;;  %v2219_v28 = vpop.f32.mrb[50].mxu0 }
 0x159   :  { %v2282_v30 = vadd.f32 %v2281_v25, %v2280_v20  ;;  %v2283_v31 = vpop.f32.mrb[50].mxu1  ;;  %v2220_v32 = vpop.f32.mrb[51].mxu0 }
 0x15a   :  { %v1339_v5 = vadd.f32 %v2218_v23, %v3017_v19  ;;  %v2221_v33 = vadd.f32 %v2220_v32, %v2219_v28  ;;  %v2284_v34 = vpop.f32.mrb[51].mxu1  ;;  %v1963_v32 = vld [vmem:[%s3186_s3] sm:$0xff]  }
 0x15b   :  { %v2285_v36 = vadd.f32 %v2284_v34, %v2283_v31  ;;  %v2038_v31 = vld [vmem:[%s3186_s3 + $0x28] sm:$0xff]   ;;  %v3090_v34 = vld [vmem:[%s3186_s3 + $0x18] sm:$0xff]  }
 0x15c   :  { %v1342_v7 = vadd.f32 %v2221_v33, %v3019_v21  ;;  %v3059_v38 = vadd.f32 %v2282_v30, %v1339_v5  ;;  %v2037_v33 = vld [vmem:[%s3186_s3 + $0x20] sm:$0xff]  }
 0x15e   :  { %v2222_v27 = vpop.f32.mrb[52].mxu0  ;;  %v3061_v39 = vadd.f32 %v2285_v36, %v1342_v7 }
 0x15f   :  { %v2286_v40 = vpop.f32.mrb[52].mxu1  ;;  %v2223_v42 = vpop.f32.mrb[53].mxu0 }
 0x160   :  { %v2224_v29 = vadd.f32 %v2223_v42, %v2222_v27  ;;  %v2287_v45 = vpop.f32.mrb[53].mxu1  ;;  %v2225_v47 = vpop.f32.mrb[54].mxu0  ;;  %v1984_v27 = vunpack.c.l.bf16 %v2038_v31  ;;  %v3095_v42 = vld [vmem:[%s3186_s3 + $0x38] sm:$0xff]  }
 0x161   :  { %v2288_v48 = vadd.f32 %v2287_v45, %v2286_v40  ;;  %v2289_v49 = vpop.f32.mrb[54].mxu1  ;;  %v2226_v50 = vpop.f32.mrb[55].mxu0  ;;  %v1964_v40 = vunpack.c.l.bf16 %v1963_v32  ;;  %v3105_v45 = vld [vmem:[%s3187_s2] ss:$0 sm:$0xff] }
 0x162   :  { %v1347_v19 = vadd.f32 %v2224_v29, %v3021_v35  ;;  %v2227_v52 = vadd.f32 %v2226_v50, %v2225_v47  ;;  %v2290_v54 = vpop.f32.mrb[55].mxu1  ;;  %v3100_v29 = vld [vmem:[%s3186_s3 + $0x10] sm:$0xff]   ;;  %v1980_v47 = vunpack.c.l.bf16 %v2037_v33 }
 0x163   :  { %v2291_v56 = vadd.f32 %v2290_v54, %v2289_v49  ;;  %v1985_v49 = vunpack.c.h.bf16 %v2038_v31  ;;  %v3110_v50 = vld [vmem:[%s3186_s3 + $0x30] sm:$0xff]  }
 0x164   :  { %v1350_v21 = vadd.f32 %v2227_v52, %v3023_v37  ;;  %v1444_v58 = vadd.f32 %v2288_v48, %v1347_v19 }
 0x166   :  { %v2228_v41 = vpop.f32.mrb[56].mxu0  ;;  %v3065_v59 = vadd.f32 %v2291_v56, %v1350_v21  ;;  %v1965_v21 = vunpack.c.h.bf16 %v1963_v32 }
 0x167   :  { %v2292_v60 = vpop.f32.mrb[56].mxu1  ;;  %v2229_v61 = vpop.f32.mrb[57].mxu0 }
 0x168   :  { %v2230_v43 = vadd.f32 %v2229_v61, %v2228_v41  ;;  %v2293_v63 = vpop.f32.mrb[57].mxu1  ;;  %v2231_v1 = vpop.f32.mrb[58].mxu0  ;;  %v1981_v41 = vunpack.c.h.bf16 %v2037_v33 }
 0x169   :  { %v2294_v2 = vadd.f32 %v2293_v63, %v2292_v60  ;;  %v2295_v4 = vpop.f32.mrb[58].mxu1  ;;  %v2232_v8 = vpop.f32.mrb[59].mxu0  ;;  %v1976_v60 = vunpack.c.l.bf16 %v3090_v34 }
 0x16a   :  { %v1355_v9 = vadd.f32 %v2230_v43, %v3025_v51  ;;  %v2233_v35 = vadd.f32 %v2232_v8, %v2231_v1  ;;  %v2296_v10 = vpop.f32.mrb[59].mxu1 }
 0x16b   :  { %v2297_v11 = vadd.f32 %v2296_v10, %v2295_v4  ;;  %v1972_v4 = vunpack.c.l.bf16 %v3100_v29 }
 0x16c   :  { %v1358_v12 = vadd.f32 %v2233_v35, %v3027_v53  ;;  %v3069_v37 = vadd.f32 %v2294_v2, %v1355_v9  ;;  %v2034_v53 = vld [vmem:[%s3186_s3 + $0x8] sm:$0xff]   ;;  %v1992_v2 = vunpack.c.l.bf16 %v3095_v42 }
 0x16d   :  { %v1968_v7 = vunpack.c.l.bf16 %v2034_v53  ;;  %v1969_v48 = vunpack.c.h.bf16 %v2034_v53 }
 0x16e   :  { %v2234_v55 = vpop.f32.mrb[60].mxu0  ;;  %v3071_v13 = vadd.f32 %v2297_v11, %v1358_v12  ;;  %v1988_v11 = vunpack.c.l.bf16 %v3110_v50 }
 0x16f   :  { %v2298_v14 = vpop.f32.mrb[60].mxu1  ;;  %v2235_v15 = vpop.f32.mrb[61].mxu0 }
 0x170   :  { %v2236_v57 = vadd.f32 %v2235_v15, %v2234_v55  ;;  %v2299_v17 = vpop.f32.mrb[61].mxu1  ;;  %v2237_v20 = vpop.f32.mrb[62].mxu0 }
 0x171   :  { %v2300_v22 = vadd.f32 %v2299_v17, %v2298_v14  ;;  %v2301_v23 = vpop.f32.mrb[62].mxu1  ;;  %v2238_v25 = vpop.f32.mrb[63].mxu0 }
 0x172   :  { %v1363_v51 = vadd.f32 %v2236_v57, %v3029_v3  ;;  %v2239_v28 = vadd.f32 %v2238_v25, %v2237_v20  ;;  %v2302_v30 = vpop.f32.mrb[63].mxu1 }
 0x173   :  { %v2303_v5 = vadd.f32 %v2302_v30, %v2301_v23 }
 0x174   :  { %v1366_v3 = vadd.f32 %v2239_v28, %v3031_v6  ;;  %v1460_v36 = vadd.f32 %v2300_v22, %v1363_v51 }
 0x176   :  { %v2338_v6 = vpop.f32.mrb[64].mxu0  ;;  %v3112_v19 = vadd.f32 %v2303_v5, %v1366_v3 }
 0x177   :  { %v1509_v52 = vadd.f32 %v2338_v6, %v3041_v44  ;;  %v2346_v54 = vpop.f32.mrb[64].mxu1  ;;  %v1500_v56 = vpop.f32.mrb[65].mxu0 }
 0x178   :  { %v1541_v61 = vadd.f32 %v2346_v54, %v1444_v58  ;;  %v1501_v43 = vadd.f32 %v1500_v56, %v3035_v24  ;;  %v1532_v63 = vpop.f32.mrb[65].mxu1  ;;  %v2339_v1 = vpop.f32.mrb[66].mxu0 }
 0x179   :  { %v1623_v8 = vadd.f32 %v3105_v45, %v1509_v52  ;;  %v1533_v9 = vadd.f32 %v1532_v63, %v3059_v38  ;;  %v1512_v44 = vadd.f32 %v2339_v1, %v3043_v46  ;;  %v2347_v35 = vpop.f32.mrb[66].mxu1  ;;  %v1503_v10 = vpop.f32.mrb[67].mxu0 }
 0x17a   :  { %v1631_v58 = vadd.f32 %v3105_v45, %v1541_v61  ;;  %v1621_v24 = vadd.f32 %v3105_v45, %v1501_v43  ;;  %v1544_v12 = vadd.f32 %v2347_v35, %v3065_v59  ;;  %v1504_v55 = vadd.f32 %v1503_v10, %v3037_v26  ;;  %v1535_v14 = vpop.f32.mrb[67].mxu1 }
 0x17b   :  { %v1671_v15 = vadd.f32 %v1968_v7, %v1623_v8  ;;  %v1629_v57 = vadd.f32 %v3105_v45, %v1533_v9  ;;  %v1624_v38 = vadd.f32 %v3105_v45, %v1512_v44  ;;  %v1536_v46 = vadd.f32 %v1535_v14, %v3061_v39 }
 0x17c   :  { %v1679_v17 = vadd.f32 %v1984_v27, %v1631_v58  ;;  %v1669_v20 = vadd.f32 %v1964_v40, %v1621_v24  ;;  %v1632_v22 = vadd.f32 %v3105_v45, %v1544_v12  ;;  %v1622_v23 = vadd.f32 %v3105_v45, %v1504_v55 }
 0x17d   :  { %v1687_v25 = vmax.f32 %v1671_v15, 0.0  ;;  %v1677_v51 = vadd.f32 %v1980_v47, %v1629_v57  ;;  %v1672_v28 = vadd.f32 %v1969_v48, %v1624_v38  ;;  %v1630_v59 = vadd.f32 %v3105_v45, %v1536_v46 }
 0x17e   :  { %v1695_v26 = vmax.f32 %v1679_v17, 0.0  ;;  %v1685_v30 = vmax.f32 %v1669_v20, 0.0  ;;  %v1680_v53 = vadd.f32 %v1985_v49, %v1632_v22  ;;  %v1670_v31 = vadd.f32 %v1965_v21, %v1622_v23  ;;  %v2342_v32 = vpop.f32.mrb[68].mxu0 }
 0x17f   :  { %v1693_v5 = vmax.f32 %v1677_v51, 0.0  ;;  %v1688_v33 = vmax.f32 %v1672_v28, 0.0  ;;  %v1678_v3 = vadd.f32 %v1981_v41, %v1630_v59  ;;  %v1525_v39 = vadd.f32 %v2342_v32, %v3053_v16  ;;  %v2350_v7 = vpop.f32.mrb[68].mxu1  ;;  %v1516_v27 = vpop.f32.mrb[69].mxu0 }
 0x180   :  { %v1696_v40 = vmax.f32 %v1680_v53, 0.0  ;;  %v1686_v6 = vmax.f32 %v1670_v31, 0.0  ;;  %v1557_v52 = vadd.f32 %v2350_v7, %v1460_v36  ;;  %v1517_v47 = vadd.f32 %v1516_v27, %v3047_v62  ;;  %v1548_v48 = vpop.f32.mrb[69].mxu1  ;;  %v2343_v54 = vpop.f32.mrb[70].mxu0 }
 0x181   :  { %v2002_v56 = vpack.c.bf16 %v1688_v33, %v1687_v25  ;;  %v1694_v61 = vmax.f32 %v1678_v3, 0.0  ;;  %v1627_v49 = vadd.f32 %v3105_v45, %v1525_v39  ;;  %v1549_v21 = vadd.f32 %v1548_v48, %v3069_v37  ;;  %v2351_v43 = vpop.f32.mrb[70].mxu1  ;;  %v1519_v63 = vpop.f32.mrb[71].mxu0 }
 0x182   :  { %v2022_v41 = vpack.c.bf16 %v1696_v40, %v1695_v26  ;;  %v1997_v1 = vpack.c.bf16 %v1686_v6, %v1685_v30  ;;  %v1635_v16 = vadd.f32 %v3105_v45, %v1557_v52  ;;  %v1625_v8 = vadd.f32 %v3105_v45, %v1517_v47  ;;  %v1551_v9 = vpop.f32.mrb[71].mxu1 }
 0x183   :  { %2041 = vst [vmem:[%s3188_s4 + $0x8] sm:$0xff] %v2002_v56   ;;  %v2017_v62 = vpack.c.bf16 %v1694_v61, %v1693_v5  ;;  %v1633_v36 = vadd.f32 %v3105_v45, %v1549_v21  ;;  %v1528_v44 = vadd.f32 %v2343_v54, %v3055_v18  ;;  %v1977_v37 = vunpack.c.h.bf16 %v3090_v34 }
 0x184   :  { %2045 = vst [vmem:[%s3188_s4 + $0x28] sm:$0xff] %v2022_v41   ;;  %1998 = vst [vmem:[%s3188_s4] sm:$0xff] %v1997_v1   ;;  %v1560_v35 = vadd.f32 %v2351_v43, %v3112_v19  ;;  %v1993_v10 = vunpack.c.h.bf16 %v3095_v42  ;;  %v1520_v58 = vadd.f32 %v1519_v63, %v3049_v0  ;;  %v1973_v24 = vunpack.c.h.bf16 %v3100_v29 }
 0x185   :  { %2044 = vst [vmem:[%s3188_s4 + $0x20] sm:$0xff] %v2017_v62   ;;  %v1675_v18 = vadd.f32 %v1976_v60, %v1627_v49  ;;  %v1628_v12 = vadd.f32 %v3105_v45, %v1528_v44  ;;  %v1552_v55 = vadd.f32 %v1551_v9, %v3071_v13  ;;  %v1989_v14 = vunpack.c.h.bf16 %v3110_v50 }
 0x186   :  { %v1683_v19 = vadd.f32 %v1992_v2, %v1635_v16  ;;  %v1673_v0 = vadd.f32 %v1972_v4, %v1625_v8  ;;  %v1636_v15 = vadd.f32 %v3105_v45, %v1560_v35  ;;  %v1626_v57 = vadd.f32 %v3105_v45, %v1520_v58 }
 0x187   :  { %v1681_v34 = vadd.f32 %v1988_v11, %v1633_v36  ;;  %v1676_v60 = vadd.f32 %v1977_v37, %v1628_v12  ;;  %v1634_v38 = vadd.f32 %v3105_v45, %v1552_v55  ;;  %v1691_v17 = vmax.f32 %v1675_v18, 0.0 }
 0x188   :  { %v1684_v46 = vadd.f32 %v1993_v10, %v1636_v15  ;;  %v1674_v13 = vadd.f32 %v1973_v24, %v1626_v57  ;;  %v1699_v42 = vmax.f32 %v1683_v19, 0.0  ;;  %v1689_v2 = vmax.f32 %v1673_v0, 0.0 }
 0x189   :  { %v1692_v20 = vmax.f32 %v1676_v60, 0.0  ;;  %v1682_v22 = vadd.f32 %v1989_v14, %v1634_v38  ;;  %v1697_v4 = vmax.f32 %v1681_v34, 0.0 }
 0x18a   :  { %v1700_v23 = vmax.f32 %v1684_v46, 0.0  ;;  %v1690_v29 = vmax.f32 %v1674_v13, 0.0 }
 0x18b   :  { %v2012_v25 = vpack.c.bf16 %v1692_v20, %v1691_v17  ;;  %v1698_v51 = vmax.f32 %v1682_v22, 0.0 }
 0x18c   :  { %v2032_v28 = vpack.c.bf16 %v1700_v23, %v1699_v42  ;;  %v2007_v59 = vpack.c.bf16 %v1690_v29, %v1689_v2 }
 0x18d   :  { %2043 = vst [vmem:[%s3188_s4 + $0x18] sm:$0xff] %v2012_v25   ;;  %v2027_v50 = vpack.c.bf16 %v1698_v51, %v1697_v4 }
 0x18e   :  { %2047 = vst [vmem:[%s3188_s4 + $0x38] sm:$0xff] %v2032_v28   ;;  %2042 = vst [vmem:[%s3188_s4 + $0x10] sm:$0xff] %v2007_v59  }
 0x18f   :  { %2046 = vst [vmem:[%s3188_s4 + $0x30] sm:$0xff] %v2027_v50  }

// kernel: _lambda_.19
= control target key start
LH: loop header
LB: loop body
LE: loop exit
PB: predicated region body
PF: predicated region fallthrough
CT: control target
= control target key end

     0   :  { %s2346_s1 = inlined_call_operand.vmem [shape: bf16[1152,256], index: 1, kind: input, shape index: {}]   ;;  %s2347_s0 = inlined_call_operand.vmem [shape: bf16[32,1152], index: 0, kind: input, shape index: {}]   ;;  %s2348_s2 = inlined_call_operand.vmem [shape: f32[1,256], index: 2, kind: input, shape index: {}]   ;;  %s2349_s3 = inlined_call_operand.vmem [shape: bf16[32,256], index: 3, kind: output, shape index: {}]  }
   0x1   :  { %v1582_v0 = vld [vmem:[%s2346_s1 + $0x4] ss:$8 sps:$4 sm:$0xff]   ;;  %v1586_v2 = vld [vmem:[%s2346_s1] ss:$8 sps:$4 sm:$0xff]   ;;  %v1588_v4 = vld [vmem:[%s2346_s1 + $0x14] ss:$8 sps:$4 sm:$0xff]  }
   0x2   :  { %v1584_v1 = vld [vmem:[%s2346_s1 + $0x204] ss:$8 sps:$4 sm:$0xff]   ;;  %1011 = vmatprep.subr.bf16.mxu1 %v1582_v0  ;;  %v1587_v3 = vld [vmem:[%s2346_s1 + $0x200] ss:$8 sps:$4 sm:$0xff]   ;;  %v1590_v5 = vld [vmem:[%s2346_s1 + $0x214] ss:$8 sps:$4 sm:$0xff]  }
   0x3   :  { %1117 = vmatprep.subr.bf16.mxu0 %v1584_v1  ;;  %1012 = vmatpush1.bf16.msra.mxu1 %v1586_v2  ;;  %v1592_v6 = vld [vmem:[%s2346_s1 + $0x10] ss:$8 sps:$4 sm:$0xff]   ;;  %v1594_v8 = vld [vmem:[%s2346_s1 + $0x24] ss:$8 sps:$4 sm:$0xff]   ;;  %v1598_v10 = vld [vmem:[%s2346_s1 + $0x20] ss:$8 sps:$4 sm:$0xff]  }
   0x4   :  { %1118 = vmatpush1.bf16.msra.mxu0 %v1587_v3  ;;  %1013 = vmatprep.subr.bf16.mxu1 %v1588_v4  ;;  %v1593_v7 = vld [vmem:[%s2346_s1 + $0x210] ss:$8 sps:$4 sm:$0xff]   ;;  %v1596_v9 = vld [vmem:[%s2346_s1 + $0x224] ss:$8 sps:$4 sm:$0xff]   ;;  %v1599_v11 = vld [vmem:[%s2346_s1 + $0x220] ss:$8 sps:$4 sm:$0xff]  }
   0x5   :  { %1119 = vmatprep.subr.bf16.mxu0 %v1590_v5  ;;  %v1600_v12 = vld [vmem:[%s2346_s1 + $0x34] ss:$8 sps:$4 sm:$0xff]   ;;  %v1604_v14 = vld [vmem:[%s2346_s1 + $0x30] ss:$8 sps:$4 sm:$0xff]   ;;  %v1606_v16 = vld [vmem:[%s2346_s1 + $0x44] ss:$8 sps:$4 sm:$0xff]  }
   0x6   :  { %v1602_v13 = vld [vmem:[%s2346_s1 + $0x234] ss:$8 sps:$4 sm:$0xff]   ;;  %v1605_v15 = vld [vmem:[%s2346_s1 + $0x230] ss:$8 sps:$4 sm:$0xff]   ;;  %v1608_v17 = vld [vmem:[%s2346_s1 + $0x244] ss:$8 sps:$4 sm:$0xff]  }
   0x7   :  { %1014 = vmatpush1.bf16.msra.mxu1 %v1592_v6  ;;  %v1610_v18 = vld [vmem:[%s2346_s1 + $0x40] ss:$8 sps:$4 sm:$0xff]   ;;  %v1612_v20 = vld [vmem:[%s2346_s1 + $0x54] ss:$8 sps:$4 sm:$0xff]   ;;  %v1616_v22 = vld [vmem:[%s2346_s1 + $0x50] ss:$8 sps:$4 sm:$0xff]  }
   0x8   :  { %1120 = vmatpush1.bf16.msra.mxu0 %v1593_v7  ;;  %1015 = vmatprep.subr.bf16.mxu1 %v1594_v8  ;;  %v1611_v19 = vld [vmem:[%s2346_s1 + $0x240] ss:$8 sps:$4 sm:$0xff]   ;;  %v1614_v21 = vld [vmem:[%s2346_s1 + $0x254] ss:$8 sps:$4 sm:$0xff]   ;;  %v1617_v23 = vld [vmem:[%s2346_s1 + $0x250] ss:$8 sps:$4 sm:$0xff]  }
   0x9   :  { %1121 = vmatprep.subr.bf16.mxu0 %v1596_v9  ;;  %v1618_v24 = vld [vmem:[%s2346_s1 + $0x64] ss:$8 sps:$4 sm:$0xff]   ;;  %v1622_v26 = vld [vmem:[%s2346_s1 + $0x60] ss:$8 sps:$4 sm:$0xff]   ;;  %v1624_v28 = vld [vmem:[%s2346_s1 + $0x74] ss:$8 sps:$4 sm:$0xff]  }
   0xa   :  { %v1620_v25 = vld [vmem:[%s2346_s1 + $0x264] ss:$8 sps:$4 sm:$0xff]   ;;  %v1623_v27 = vld [vmem:[%s2346_s1 + $0x260] ss:$8 sps:$4 sm:$0xff]   ;;  %v1626_v29 = vld [vmem:[%s2346_s1 + $0x274] ss:$8 sps:$4 sm:$0xff]  }
   0xb   :  { %1016 = vmatpush1.bf16.msra.mxu1 %v1598_v10  ;;  %v1628_v30 = vld [vmem:[%s2346_s1 + $0x70] ss:$8 sps:$4 sm:$0xff]   ;;  %v1630_v32 = vld [vmem:[%s2346_s1 + $0x84] ss:$8 sps:$4 sm:$0xff]   ;;  %v1634_v34 = vld [vmem:[%s2346_s1 + $0x80] ss:$8 sps:$4 sm:$0xff]  }
   0xc   :  { %1122 = vmatpush1.bf16.msra.mxu0 %v1599_v11  ;;  %1017 = vmatprep.subr.bf16.mxu1 %v1600_v12  ;;  %v1629_v31 = vld [vmem:[%s2346_s1 + $0x270] ss:$8 sps:$4 sm:$0xff]   ;;  %v1632_v33 = vld [vmem:[%s2346_s1 + $0x284] ss:$8 sps:$4 sm:$0xff]   ;;  %v1635_v35 = vld [vmem:[%s2346_s1 + $0x280] ss:$8 sps:$4 sm:$0xff]  }
   0xd   :  { %1123 = vmatprep.subr.bf16.mxu0 %v1602_v13  ;;  %v1636_v36 = vld [vmem:[%s2346_s1 + $0x94] ss:$8 sps:$4 sm:$0xff]   ;;  %v1640_v38 = vld [vmem:[%s2346_s1 + $0x90] ss:$8 sps:$4 sm:$0xff]   ;;  %v1642_v40 = vld [vmem:[%s2346_s1 + $0xa4] ss:$8 sps:$4 sm:$0xff]  }
   0xe   :  { %v1638_v37 = vld [vmem:[%s2346_s1 + $0x294] ss:$8 sps:$4 sm:$0xff]   ;;  %v1641_v39 = vld [vmem:[%s2346_s1 + $0x290] ss:$8 sps:$4 sm:$0xff]   ;;  %v1644_v41 = vld [vmem:[%s2346_s1 + $0x2a4] ss:$8 sps:$4 sm:$0xff]  }
   0xf   :  { %1018 = vmatpush1.bf16.msra.mxu1 %v1604_v14  ;;  %v1646_v42 = vld [vmem:[%s2346_s1 + $0xa0] ss:$8 sps:$4 sm:$0xff]   ;;  %v1648_v44 = vld [vmem:[%s2346_s1 + $0xb4] ss:$8 sps:$4 sm:$0xff]   ;;  %v1652_v46 = vld [vmem:[%s2346_s1 + $0xb0] ss:$8 sps:$4 sm:$0xff]  }
  0x10   :  { %1124 = vmatpush1.bf16.msra.mxu0 %v1605_v15  ;;  %1019 = vmatprep.subr.bf16.mxu1 %v1606_v16  ;;  %v1647_v43 = vld [vmem:[%s2346_s1 + $0x2a0] ss:$8 sps:$4 sm:$0xff]   ;;  %v1650_v45 = vld [vmem:[%s2346_s1 + $0x2b4] ss:$8 sps:$4 sm:$0xff]   ;;  %v1653_v47 = vld [vmem:[%s2346_s1 + $0x2b0] ss:$8 sps:$4 sm:$0xff]  }
  0x11   :  { %1125 = vmatprep.subr.bf16.mxu0 %v1608_v17  ;;  %v1680_v48 = vld [vmem:[%s2347_s0 + $0x4] ss:$36 sps:$4 sm:$0xff]   ;;  %v1686_v51 = vld [vmem:[%s2347_s0 + $0x14] ss:$36 sps:$4 sm:$0xff]  }
  0x12   :  { %v1654_v49 = vld [vmem:[%s2346_s1 + $0xc4] ss:$8 sps:$4 sm:$0xff]   ;;  %1043 = vmatprep.mubr.bf16.mxu1 %v1680_v48  ;;  %v1658_v52 = vld [vmem:[%s2346_s1 + $0xc0] ss:$8 sps:$4 sm:$0xff]   ;;  %v1660_v54 = vld [vmem:[%s2346_s1 + $0xd4] ss:$8 sps:$4 sm:$0xff]   ;;  %1149 = vmatprep.mubr.bf16.mxu0 %v1686_v51 }
  0x13   :  { %1020 = vmatpush1.bf16.msra.mxu1 %v1610_v18  ;;  %v1656_v50 = vld [vmem:[%s2346_s1 + $0x2c4] ss:$8 sps:$4 sm:$0xff]   ;;  %v1659_v53 = vld [vmem:[%s2346_s1 + $0x2c0] ss:$8 sps:$4 sm:$0xff]   ;;  %v1662_v55 = vld [vmem:[%s2346_s1 + $0x2d4] ss:$8 sps:$4 sm:$0xff]  }
  0x14   :  { %1126 = vmatpush1.bf16.msra.mxu0 %v1611_v19  ;;  %1021 = vmatprep.subr.bf16.mxu1 %v1612_v20  ;;  %v1664_v56 = vld [vmem:[%s2346_s1 + $0xd0] ss:$8 sps:$4 sm:$0xff]   ;;  %v1666_v58 = vld [vmem:[%s2346_s1 + $0xe4] ss:$8 sps:$4 sm:$0xff]   ;;  %v1670_v60 = vld [vmem:[%s2346_s1 + $0xe0] ss:$8 sps:$4 sm:$0xff]  }
  0x15   :  { %1127 = vmatprep.subr.bf16.mxu0 %v1614_v21  ;;  %v1665_v57 = vld [vmem:[%s2346_s1 + $0x2d0] ss:$8 sps:$4 sm:$0xff]   ;;  %v1668_v59 = vld [vmem:[%s2346_s1 + $0x2e4] ss:$8 sps:$4 sm:$0xff]   ;;  %v1671_v61 = vld [vmem:[%s2346_s1 + $0x2e0] ss:$8 sps:$4 sm:$0xff]  }
  0x16   :  { %v1672_v62 = vld [vmem:[%s2346_s1 + $0xf4] ss:$8 sps:$4 sm:$0xff]   ;;  %v1676_v0 = vld [vmem:[%s2346_s1 + $0xf0] ss:$8 sps:$4 sm:$0xff]   ;;  %v1683_v2 = vld [vmem:[%s2346_s1 + $0x104] ss:$8 sps:$4 sm:$0xff]  }
  0x17   :  { %1022 = vmatpush1.bf16.msra.mxu1 %v1616_v22  ;;  %v1674_v63 = vld [vmem:[%s2346_s1 + $0x2f4] ss:$8 sps:$4 sm:$0xff]   ;;  %v1677_v1 = vld [vmem:[%s2346_s1 + $0x2f0] ss:$8 sps:$4 sm:$0xff]   ;;  %v1689_v3 = vld [vmem:[%s2346_s1 + $0x304] ss:$8 sps:$4 sm:$0xff]  }
  0x18   :  { %1128 = vmatpush1.bf16.msra.mxu0 %v1617_v23  ;;  %1023 = vmatprep.subr.bf16.mxu1 %v1618_v24  ;;  %v1678_v4 = vld [vmem:[%s2347_s0] ss:$36 sps:$4 sm:$0xff]   ;;  %v1684_v6 = vld [vmem:[%s2347_s0 + $0x10] ss:$36 sps:$4 sm:$0xff]  }
  0x19   :  { %1129 = vmatprep.subr.bf16.mxu0 %v1620_v25  ;;  %v1681_v5 = vld [vmem:[%s2346_s1 + $0x100] ss:$8 sps:$4 sm:$0xff]   ;;  %v1692_v8 = vld [vmem:[%s2346_s1 + $0x114] ss:$8 sps:$4 sm:$0xff]   ;;  %v1690_v10 = vld [vmem:[%s2346_s1 + $0x110] ss:$8 sps:$4 sm:$0xff]  }
  0x1a   :  { %v1687_v7 = vld [vmem:[%s2346_s1 + $0x300] ss:$8 sps:$4 sm:$0xff]   ;;  %v1695_v9 = vld [vmem:[%s2346_s1 + $0x314] ss:$8 sps:$4 sm:$0xff]   ;;  %v1693_v11 = vld [vmem:[%s2346_s1 + $0x310] ss:$8 sps:$4 sm:$0xff]  }
  0x1b   :  { %1024 = vmatpush1.bf16.msra.mxu1 %v1622_v26  ;;  %v1698_v12 = vld [vmem:[%s2346_s1 + $0x124] ss:$8 sps:$4 sm:$0xff]   ;;  %v1696_v14 = vld [vmem:[%s2346_s1 + $0x120] ss:$8 sps:$4 sm:$0xff]   ;;  %v1704_v16 = vld [vmem:[%s2346_s1 + $0x134] ss:$8 sps:$4 sm:$0xff]  }
  0x1c   :  { %1130 = vmatpush1.bf16.msra.mxu0 %v1623_v27  ;;  %1025 = vmatprep.subr.bf16.mxu1 %v1624_v28  ;;  %v1701_v13 = vld [vmem:[%s2346_s1 + $0x324] ss:$8 sps:$4 sm:$0xff]   ;;  %v1699_v15 = vld [vmem:[%s2346_s1 + $0x320] ss:$8 sps:$4 sm:$0xff]   ;;  %v1707_v17 = vld [vmem:[%s2346_s1 + $0x334] ss:$8 sps:$4 sm:$0xff]  }
  0x1d   :  { %1131 = vmatprep.subr.bf16.mxu0 %v1626_v29  ;;  %v1702_v18 = vld [vmem:[%s2346_s1 + $0x130] ss:$8 sps:$4 sm:$0xff]   ;;  %v1710_v20 = vld [vmem:[%s2346_s1 + $0x144] ss:$8 sps:$4 sm:$0xff]   ;;  %v1708_v22 = vld [vmem:[%s2346_s1 + $0x140] ss:$8 sps:$4 sm:$0xff]  }
  0x1e   :  { %v1705_v19 = vld [vmem:[%s2346_s1 + $0x330] ss:$8 sps:$4 sm:$0xff]   ;;  %v1713_v21 = vld [vmem:[%s2346_s1 + $0x344] ss:$8 sps:$4 sm:$0xff]   ;;  %v1711_v23 = vld [vmem:[%s2346_s1 + $0x340] ss:$8 sps:$4 sm:$0xff]  }
  0x1f   :  { %1026 = vmatpush1.bf16.msra.mxu1 %v1628_v30  ;;  %v1716_v24 = vld [vmem:[%s2346_s1 + $0x154] ss:$8 sps:$4 sm:$0xff]   ;;  %v1714_v26 = vld [vmem:[%s2346_s1 + $0x150] ss:$8 sps:$4 sm:$0xff]   ;;  %v1722_v28 = vld [vmem:[%s2346_s1 + $0x164] ss:$8 sps:$4 sm:$0xff]  }
  0x20   :  { %1132 = vmatpush1.bf16.msra.mxu0 %v1629_v31  ;;  %1027 = vmatprep.subr.bf16.mxu1 %v1630_v32  ;;  %v1719_v25 = vld [vmem:[%s2346_s1 + $0x354] ss:$8 sps:$4 sm:$0xff]   ;;  %v1717_v27 = vld [vmem:[%s2346_s1 + $0x350] ss:$8 sps:$4 sm:$0xff]   ;;  %v1772_v31 = vld [vmem:[%s2347_s0 + $0x48] ss:$36 sps:$4 sm:$0xff]  }
  0x21   :  { %1133 = vmatprep.subr.bf16.mxu0 %v1632_v33  ;;  %v1768_v29 = vld [vmem:[%s2347_s0 + $0x4c] ss:$36 sps:$4 sm:$0xff]   ;;  %v1770_v30 = vld [vmem:[%s2347_s0 + $0x5c] ss:$36 sps:$4 sm:$0xff]  }
  0x22   :  { %v1725_v32 = vld [vmem:[%s2346_s1 + $0x364] ss:$8 sps:$4 sm:$0xff]   ;;  %v1776_v33 = vld [vmem:[%s2347_s0 + $0x58] ss:$36 sps:$4 sm:$0xff]  }
  0x23   :  { %1028 = vmatpush1.bf16.msra.mxu1 %v1634_v34  ;;  %v1720_v34 = vld [vmem:[%s2346_s1 + $0x160] ss:$8 sps:$4 sm:$0xff]   ;;  %v1738_v48 = vld [vmem:[%s2346_s1 + $0x190] ss:$8 sps:$4 sm:$0xff]   ;;  %v1749_v51 = vld [vmem:[%s2346_s1 + $0x3a4] ss:$8 sps:$4 sm:$0xff]  }
  0x24   :  { %1134 = vmatpush1.bf16.msra.mxu0 %v1635_v35  ;;  %1029 = vmatprep.subr.bf16.mxu1 %v1636_v36  ;;  %v1723_v35 = vld [vmem:[%s2346_s1 + $0x360] ss:$8 sps:$4 sm:$0xff]   ;;  %v1728_v36 = vld [vmem:[%s2346_s1 + $0x174] ss:$8 sps:$4 sm:$0xff]  }
  0x25   :  { %1135 = vmatprep.subr.bf16.mxu0 %v1638_v37  ;;  %v1731_v37 = vld [vmem:[%s2346_s1 + $0x374] ss:$8 sps:$4 sm:$0xff]  }
  0x27   :  { %1030 = vmatpush1.bf16.msra.mxu1 %v1640_v38  ;;  %v1726_v38 = vld [vmem:[%s2346_s1 + $0x170] ss:$8 sps:$4 sm:$0xff]  }
  0x28   :  { %1136 = vmatpush1.bf16.msra.mxu0 %v1641_v39  ;;  %1031 = vmatprep.subr.bf16.mxu1 %v1642_v40  ;;  %v1729_v39 = vld [vmem:[%s2346_s1 + $0x370] ss:$8 sps:$4 sm:$0xff]   ;;  %v1734_v40 = vld [vmem:[%s2346_s1 + $0x184] ss:$8 sps:$4 sm:$0xff]  }
  0x29   :  { %1137 = vmatprep.subr.bf16.mxu0 %v1644_v41  ;;  %v1788_v41 = vld [vmem:[%s2347_s0 + $0xc] ss:$36 sps:$4 sm:$0xff]  }
  0x2b   :  { %1032 = vmatpush1.bf16.msra.mxu1 %v1646_v42  ;;  %v1737_v42 = vld [vmem:[%s2346_s1 + $0x384] ss:$8 sps:$4 sm:$0xff]  }
  0x2c   :  { %1138 = vmatpush1.bf16.msra.mxu0 %v1647_v43  ;;  %1033 = vmatprep.subr.bf16.mxu1 %v1648_v44  ;;  %v1791_v43 = vld [vmem:[%s2347_s0 + $0x1c] ss:$36 sps:$4 sm:$0xff]  }
  0x2d   :  { %1139 = vmatprep.subr.bf16.mxu0 %v1650_v45  ;;  %v1732_v44 = vld [vmem:[%s2346_s1 + $0x180] ss:$8 sps:$4 sm:$0xff]  }
  0x2e   :  { %v1735_v45 = vld [vmem:[%s2346_s1 + $0x380] ss:$8 sps:$4 sm:$0xff]  }
  0x2f   :  { %1034 = vmatpush1.bf16.msra.mxu1 %v1652_v46  ;;  %v1740_v46 = vld [vmem:[%s2346_s1 + $0x194] ss:$8 sps:$4 sm:$0xff]  }
  0x30   :  { %1140 = vmatpush1.bf16.msra.mxu0 %v1653_v47  ;;  %1035 = vmatprep.subr.bf16.mxu1 %v1654_v49  ;;  %v1743_v47 = vld [vmem:[%s2346_s1 + $0x394] ss:$8 sps:$4 sm:$0xff]   ;;  %v1741_v49 = vld [vmem:[%s2346_s1 + $0x390] ss:$8 sps:$4 sm:$0xff]  }
  0x31   :  { %1141 = vmatprep.subr.bf16.mxu0 %v1656_v50  ;;  %v1746_v50 = vld [vmem:[%s2346_s1 + $0x1a4] ss:$8 sps:$4 sm:$0xff]  }
  0x33   :  { %1036 = vmatpush1.bf16.msra.mxu1 %v1658_v52  ;;  %v1744_v52 = vld [vmem:[%s2346_s1 + $0x1a0] ss:$8 sps:$4 sm:$0xff]  }
  0x34   :  { %1142 = vmatpush1.bf16.msra.mxu0 %v1659_v53  ;;  %1037 = vmatprep.subr.bf16.mxu1 %v1660_v54  ;;  %v1747_v53 = vld [vmem:[%s2346_s1 + $0x3a0] ss:$8 sps:$4 sm:$0xff]   ;;  %v1752_v54 = vld [vmem:[%s2346_s1 + $0x1b4] ss:$8 sps:$4 sm:$0xff]  }
  0x35   :  { %1143 = vmatprep.subr.bf16.mxu0 %v1662_v55  ;;  %v1755_v55 = vld [vmem:[%s2346_s1 + $0x3b4] ss:$8 sps:$4 sm:$0xff]  }
  0x37   :  { %1038 = vmatpush1.bf16.msra.mxu1 %v1664_v56  ;;  %v1750_v56 = vld [vmem:[%s2346_s1 + $0x1b0] ss:$8 sps:$4 sm:$0xff]  }
  0x38   :  { %1144 = vmatpush1.bf16.msra.mxu0 %v1665_v57  ;;  %1039 = vmatprep.subr.bf16.mxu1 %v1666_v58  ;;  %v1753_v57 = vld [vmem:[%s2346_s1 + $0x3b0] ss:$8 sps:$4 sm:$0xff]   ;;  %v1758_v58 = vld [vmem:[%s2346_s1 + $0x1c4] ss:$8 sps:$4 sm:$0xff]  }
  0x39   :  { %1145 = vmatprep.subr.bf16.mxu0 %v1668_v59  ;;  %v1761_v59 = vld [vmem:[%s2346_s1 + $0x3c4] ss:$8 sps:$4 sm:$0xff]  }
  0x3b   :  { %1040 = vmatpush1.bf16.msra.mxu1 %v1670_v60  ;;  %v1756_v60 = vld [vmem:[%s2346_s1 + $0x1c0] ss:$8 sps:$4 sm:$0xff]  }
  0x3c   :  { %1146 = vmatpush1.bf16.msra.mxu0 %v1671_v61  ;;  %1041 = vmatprep.subr.bf16.mxu1 %v1672_v62  ;;  %v1759_v61 = vld [vmem:[%s2346_s1 + $0x3c0] ss:$8 sps:$4 sm:$0xff]   ;;  %v1764_v62 = vld [vmem:[%s2346_s1 + $0x1d4] ss:$8 sps:$4 sm:$0xff]  }
  0x3d   :  { %1147 = vmatprep.subr.bf16.mxu0 %v1674_v63  ;;  %v1767_v63 = vld [vmem:[%s2346_s1 + $0x3d4] ss:$8 sps:$4 sm:$0xff]  }
  0x3f   :  { %1042 = vmatpush1.bf16.msra.mxu1 %v1676_v0  ;;  %v1762_v0 = vld [vmem:[%s2346_s1 + $0x1d0] ss:$8 sps:$4 sm:$0xff]  }
  0x40   :  { %1148 = vmatpush1.bf16.msra.mxu0 %v1677_v1  ;;  %1064 = vmatprep.subr.bf16.mxu1 %v1683_v2  ;;  %v1765_v1 = vld [vmem:[%s2346_s1 + $0x3d0] ss:$8 sps:$4 sm:$0xff]   ;;  %v1775_v2 = vld [vmem:[%s2346_s1 + $0x1e4] ss:$8 sps:$4 sm:$0xff]  }
  0x41   :  { %1170 = vmatprep.subr.bf16.mxu0 %v1689_v3  ;;  %v1779_v3 = vld [vmem:[%s2346_s1 + $0x3e4] ss:$8 sps:$4 sm:$0xff]  }
  0x42   :  { %1044 = vmatmul.mubr.bf16.vlgmr.msra.gmra.mrb[0].mxu1 %v1678_v4  ;;  %v1773_v4 = vld [vmem:[%s2346_s1 + $0x1e0] ss:$8 sps:$4 sm:$0xff]  }
  0x43   :  { %1150 = vmatmul.mubr.bf16.vlgmr.msra.gmra.mrb[0].mxu0 %v1684_v6  ;;  %1065 = vmatpush1.bf16.msra.mxu1 %v1681_v5  ;;  %v1777_v5 = vld [vmem:[%s2346_s1 + $0x3e0] ss:$8 sps:$4 sm:$0xff]   ;;  %v1782_v6 = vld [vmem:[%s2346_s1 + $0x1f4] ss:$8 sps:$4 sm:$0xff]  }
  0x44   :  { %1171 = vmatpush1.bf16.msra.mxu0 %v1687_v7  ;;  %1066 = vmatprep.subr.bf16.mxu1 %v1692_v8  ;;  %v1785_v7 = vld [vmem:[%s2346_s1 + $0x3f4] ss:$8 sps:$4 sm:$0xff]   ;;  %v1780_v8 = vld [vmem:[%s2346_s1 + $0x1f0] ss:$8 sps:$4 sm:$0xff]  }
  0x45   :  { %1172 = vmatprep.subr.bf16.mxu0 %v1695_v9  ;;  %1053 = vmatprep.mubr.bf16.mxu1 %v1768_v29  ;;  %v1783_v9 = vld [vmem:[%s2346_s1 + $0x3f0] ss:$8 sps:$4 sm:$0xff]   ;;  %v1818_v29 = vld [vmem:[%s2346_s1 + $0x464] ss:$8 sps:$4 sm:$0xff]  }
  0x46   :  { %1159 = vmatprep.mubr.bf16.mxu0 %v1770_v30  ;;  %v1816_v30 = vld [vmem:[%s2346_s1 + $0x460] ss:$8 sps:$4 sm:$0xff]  }
  0x47   :  { %1067 = vmatpush1.bf16.msra.mxu1 %v1690_v10  ;;  %v1794_v10 = vld [vmem:[%s2346_s1 + $0x404] ss:$8 sps:$4 sm:$0xff]  }
  0x48   :  { %1173 = vmatpush1.bf16.msra.mxu0 %v1693_v11  ;;  %1068 = vmatprep.subr.bf16.mxu1 %v1698_v12  ;;  %v1786_v11 = vld [vmem:[%s2347_s0 + $0x8] ss:$36 sps:$4 sm:$0xff]   ;;  %v1789_v12 = vld [vmem:[%s2347_s0 + $0x18] ss:$36 sps:$4 sm:$0xff]  }
  0x49   :  { %1174 = vmatprep.subr.bf16.mxu0 %v1701_v13  ;;  %v1792_v13 = vld [vmem:[%s2346_s1 + $0x400] ss:$8 sps:$4 sm:$0xff]  }
  0x4a   :  { %1054 = vmatmul.mubr.bf16.gmra.mrb[4].mxu1 %v1772_v31  ;;  %v1821_v31 = vld [vmem:[%s2346_s1 + $0x474] ss:$8 sps:$4 sm:$0xff]  }
  0x4b   :  { %1069 = vmatpush1.bf16.msra.mxu1 %v1696_v14  ;;  %1160 = vmatmul.mubr.bf16.gmra.mrb[4].mxu0 %v1776_v33  ;;  %v1797_v14 = vld [vmem:[%s2346_s1 + $0x414] ss:$8 sps:$4 sm:$0xff]   ;;  %v1822_v33 = vld [vmem:[%s2347_s0 + $0x20] ss:$36 sps:$4 sm:$0xff]  }
  0x4c   :  { %1175 = vmatpush1.bf16.msra.mxu0 %v1699_v15  ;;  %1070 = vmatprep.subr.bf16.mxu1 %v1704_v16  ;;  %v1798_v15 = vld [vmem:[%s2347_s0 + $0x54] ss:$36 sps:$4 sm:$0xff]   ;;  %v1800_v16 = vld [vmem:[%s2347_s0 + $0x64] ss:$36 sps:$4 sm:$0xff]  }
  0x4d   :  { %1176 = vmatprep.subr.bf16.mxu0 %v1707_v17  ;;  %1096 = vmatprep.mubr.bf16.mxu1 %v1788_v41  ;;  %v1795_v17 = vld [vmem:[%s2346_s1 + $0x410] ss:$8 sps:$4 sm:$0xff]  }
  0x4e   :  { %1202 = vmatprep.mubr.bf16.mxu0 %v1791_v43 }
  0x4f   :  { %1071 = vmatpush1.bf16.msra.mxu1 %v1702_v18  ;;  %v1806_v18 = vld [vmem:[%s2346_s1 + $0x424] ss:$8 sps:$4 sm:$0xff]  }
  0x50   :  { %1177 = vmatpush1.bf16.msra.mxu0 %v1705_v19  ;;  %1072 = vmatprep.subr.bf16.mxu1 %v1710_v20  ;;  %v1802_v19 = vld [vmem:[%s2347_s0 + $0x50] ss:$36 sps:$4 sm:$0xff]   ;;  %v1803_v20 = vld [vmem:[%s2347_s0 + $0x60] ss:$36 sps:$4 sm:$0xff]  }
  0x51   :  { %1178 = vmatprep.subr.bf16.mxu0 %v1713_v21  ;;  %v1804_v21 = vld [vmem:[%s2346_s1 + $0x420] ss:$8 sps:$4 sm:$0xff]  }
  0x53   :  { %1073 = vmatpush1.bf16.msra.mxu1 %v1708_v22  ;;  %v1809_v22 = vld [vmem:[%s2346_s1 + $0x434] ss:$8 sps:$4 sm:$0xff]  }
  0x54   :  { %1179 = vmatpush1.bf16.msra.mxu0 %v1711_v23  ;;  %1074 = vmatprep.subr.bf16.mxu1 %v1716_v24  ;;  %v1807_v23 = vld [vmem:[%s2346_s1 + $0x430] ss:$8 sps:$4 sm:$0xff]   ;;  %v1812_v24 = vld [vmem:[%s2346_s1 + $0x444] ss:$8 sps:$4 sm:$0xff]  }
  0x55   :  { %1180 = vmatprep.subr.bf16.mxu0 %v1719_v25  ;;  %v1824_v25 = vmov 0  }
  0x57   :  { %1075 = vmatpush1.bf16.msra.mxu1 %v1714_v26  ;;  %v1810_v26 = vld [vmem:[%s2346_s1 + $0x440] ss:$8 sps:$4 sm:$0xff]  }
  0x58   :  { %1181 = vmatpush1.bf16.msra.mxu0 %v1717_v27  ;;  %1076 = vmatprep.subr.bf16.mxu1 %v1722_v28  ;;  %v1815_v27 = vld [vmem:[%s2346_s1 + $0x454] ss:$8 sps:$4 sm:$0xff]   ;;  %v1813_v28 = vld [vmem:[%s2346_s1 + $0x450] ss:$8 sps:$4 sm:$0xff]  }
  0x59   :  { %1182 = vmatprep.subr.bf16.mxu0 %v1725_v32  ;;  %v1819_v32 = vld [vmem:[%s2346_s1 + $0x470] ss:$8 sps:$4 sm:$0xff]  }
  0x5b   :  { %1077 = vmatpush1.bf16.msra.mxu1 %v1720_v34  ;;  %v1823_v34 = vld [vmem:[%s2347_s0 + $0x68] ss:$36 sps:$4 sm:$0xff]  }
  0x5c   :  { %1183 = vmatpush1.bf16.msra.mxu0 %v1723_v35  ;;  %1078 = vmatprep.subr.bf16.mxu1 %v1728_v36 }
  0x5d   :  { %1184 = vmatprep.subr.bf16.mxu0 %v1731_v37 }
  0x5f   :  { %1079 = vmatpush1.bf16.msra.mxu1 %v1726_v38 }
  0x60   :  { %1185 = vmatpush1.bf16.msra.mxu0 %v1729_v39  ;;  %1080 = vmatprep.subr.bf16.mxu1 %v1734_v40 }
  0x61   :  { %1186 = vmatprep.subr.bf16.mxu0 %v1737_v42 }
  0x63   :  { %1081 = vmatpush1.bf16.msra.mxu1 %v1732_v44 }
  0x64   :  { %1187 = vmatpush1.bf16.msra.mxu0 %v1735_v45  ;;  %1082 = vmatprep.subr.bf16.mxu1 %v1740_v46 }
  0x65   :  { %1188 = vmatprep.subr.bf16.mxu0 %v1743_v47 }
  0x67   :  { %1083 = vmatpush1.bf16.msra.mxu1 %v1738_v48 }
  0x68   :  { %1189 = vmatpush1.bf16.msra.mxu0 %v1741_v49  ;;  %1084 = vmatprep.subr.bf16.mxu1 %v1746_v50 }
  0x69   :  { %1190 = vmatprep.subr.bf16.mxu0 %v1749_v51  ;;  %v1305_v51 = vlaneseq }
  0x6b   :  { %1085 = vmatpush1.bf16.msra.mxu1 %v1744_v52  ;;  %v1306_v52 = vshrl.u32 %v1305_v51, 7 }
  0x6c   :  { %1191 = vmatpush1.bf16.msra.mxu0 %v1747_v53  ;;  %1086 = vmatprep.subr.bf16.mxu1 %v1752_v54  ;;  %v1303_v54 = vld [vmem:[%s2348_s2] sm:$0x3] }
  0x6d   :  { %1192 = vmatprep.subr.bf16.mxu0 %v1755_v55  ;;  %v1307_v53 = vsub.s32 0, %v1306_v52  ;;  %v1311_v55 = vsub.s32 1, %v1306_v52 }
  0x6f   :  { %1087 = vmatpush1.bf16.msra.mxu1 %v1750_v56  ;;  %v1308_v56 = vrot.slane %v1303_v54, %v1307_v53 }
  0x70   :  { %1193 = vmatpush1.bf16.msra.mxu0 %v1753_v57  ;;  %1088 = vmatprep.subr.bf16.mxu1 %v1758_v58 }
  0x71   :  { %1194 = vmatprep.subr.bf16.mxu0 %v1761_v59  ;;  %v1312_v59 = vrot.slane %v1303_v54, %v1311_v55 }
  0x73   :  { %1089 = vmatpush1.bf16.msra.mxu1 %v1756_v60 }
  0x74   :  { %1195 = vmatpush1.bf16.msra.mxu0 %v1759_v61  ;;  %1090 = vmatprep.subr.bf16.mxu1 %v1764_v62 }
  0x75   :  { %1196 = vmatprep.subr.bf16.mxu0 %v1767_v63 }
  0x77   :  { %1091 = vmatpush1.bf16.msra.mxu1 %v1762_v0 }
  0x78   :  { %1197 = vmatpush1.bf16.msra.mxu0 %v1765_v1  ;;  %1092 = vmatprep.subr.bf16.mxu1 %v1775_v2 }
  0x79   :  { %1198 = vmatprep.subr.bf16.mxu0 %v1779_v3 }
  0x7b   :  { %1093 = vmatpush1.bf16.msra.mxu1 %v1773_v4 }
  0x7c   :  { %1199 = vmatpush1.bf16.msra.mxu0 %v1777_v5  ;;  %1094 = vmatprep.subr.bf16.mxu1 %v1782_v6 }
  0x7d   :  { %1200 = vmatprep.subr.bf16.mxu0 %v1785_v7 }
  0x7f   :  { %1095 = vmatpush1.bf16.msra.mxu1 %v1780_v8 }
  0x80   :  { %1201 = vmatpush1.bf16.msra.mxu0 %v1783_v9  ;;  %1533 = vmatprep.subr.bf16.mxu1 %v1794_v10 }
  0x81   :  { %1223 = vmatprep.subr.bf16.mxu0 %v1794_v10 }
  0x82   :  { %1097 = vmatmul.mubr.bf16.vlgmr.msra.gmra.mrb[0].mxu1 %v1786_v11 }
  0x83   :  { %1203 = vmatmul.mubr.bf16.vlgmr.msra.gmra.mrb[0].mxu0 %v1789_v12  ;;  %1541 = vmatpush1.bf16.msra.mxu1 %v1792_v13 }
  0x84   :  { %1224 = vmatpush1.bf16.msra.mxu0 %v1792_v13  ;;  %1534 = vmatprep.subr.bf16.mxu1 %v1797_v14 }
  0x85   :  { %1225 = vmatprep.subr.bf16.mxu0 %v1797_v14  ;;  %1106 = vmatprep.mubr.bf16.mxu1 %v1798_v15 }
  0x86   :  { %1212 = vmatprep.mubr.bf16.mxu0 %v1800_v16 }
  0x87   :  { %1542 = vmatpush1.bf16.msra.mxu1 %v1795_v17 }
  0x88   :  { %1226 = vmatpush1.bf16.msra.mxu0 %v1795_v17  ;;  %1535 = vmatprep.subr.bf16.mxu1 %v1806_v18 }
  0x89   :  { %1227 = vmatprep.subr.bf16.mxu0 %v1806_v18 }
  0x8a   :  { %1107 = vmatmul.mubr.bf16.gmra.mrb[4].mxu1 %v1802_v19 }
  0x8b   :  { %1213 = vmatmul.mubr.bf16.gmra.mrb[4].mxu0 %v1803_v20  ;;  %1543 = vmatpush1.bf16.msra.mxu1 %v1804_v21 }
  0x8c   :  { %1228 = vmatpush1.bf16.msra.mxu0 %v1804_v21  ;;  %1536 = vmatprep.subr.bf16.mxu1 %v1809_v22 }
  0x8d   :  { %1229 = vmatprep.subr.bf16.mxu0 %v1809_v22  ;;  %1255 = vmatprep.mubr.bf16.mxu0 %v1824_v25 }
  0x8e   :  { %1265 = vmatprep.mubr.bf16.mxu1 %v1824_v25 }
  0x8f   :  { %1544 = vmatpush1.bf16.msra.mxu1 %v1807_v23 }
  0x90   :  { %1230 = vmatpush1.bf16.msra.mxu0 %v1807_v23  ;;  %1537 = vmatprep.subr.bf16.mxu1 %v1812_v24 }
  0x91   :  { %1231 = vmatprep.subr.bf16.mxu0 %v1812_v24 }
  0x93   :  { %1545 = vmatpush1.bf16.msra.mxu1 %v1810_v26 }
  0x94   :  { %1232 = vmatpush1.bf16.msra.mxu0 %v1810_v26  ;;  %1538 = vmatprep.subr.bf16.mxu1 %v1815_v27 }
  0x95   :  { %1233 = vmatprep.subr.bf16.mxu0 %v1815_v27 }
  0x97   :  { %1546 = vmatpush1.bf16.msra.mxu1 %v1813_v28 }
  0x98   :  { %1234 = vmatpush1.bf16.msra.mxu0 %v1813_v28  ;;  %1539 = vmatprep.subr.bf16.mxu1 %v1818_v29 }
  0x99   :  { %1235 = vmatprep.subr.bf16.mxu0 %v1818_v29 }
  0x9b   :  { %1547 = vmatpush1.bf16.msra.mxu1 %v1816_v30 }
  0x9c   :  { %1236 = vmatpush1.bf16.msra.mxu0 %v1816_v30  ;;  %1540 = vmatprep.subr.bf16.mxu1 %v1821_v31 }
  0x9d   :  { %1237 = vmatprep.subr.bf16.mxu0 %v1821_v31 }
  0x9f   :  { %1548 = vmatpush1.bf16.msra.mxu1 %v1819_v32 }
  0xa0   :  { %1238 = vmatpush1.bf16.msra.mxu0 %v1819_v32 }
  0xa2   :  { %1266 = vmatmul.mubr.bf16.vlgmr.msra.gmra.mrb[8].mxu1 %v1823_v34 }
  0xa3   :  { %1256 = vmatmul.mubr.bf16.vlgmr.msra.gmra.mrb[0].mxu0 %v1822_v33 }
 0x155   :  { %v1098_v35 = vpop.f32.mrb[0].mxu1 }
 0x156   :  { %v1100_v36 = vpop.f32.mrb[1].mxu1 }
 0x157   :  { %v1102_v37 = vpop.f32.mrb[2].mxu1 }
 0x158   :  { %v1104_v38 = vpop.f32.mrb[3].mxu1 }
 0x15d   :  { %v1108_v39 = vpop.f32.mrb[4].mxu1 }
 0x15e   :  { %v1214_v40 = vpop.f32.mrb[4].mxu0  ;;  %v1110_v42 = vpop.f32.mrb[5].mxu1 }
 0x15f   :  { %v1553_v41 = vadd.f32 %v1214_v40, %v1108_v39  ;;  %v1216_v43 = vpop.f32.mrb[5].mxu0  ;;  %v1112_v45 = vpop.f32.mrb[6].mxu1 }
 0x160   :  { %v1555_v44 = vadd.f32 %v1216_v43, %v1110_v42  ;;  %v1218_v46 = vpop.f32.mrb[6].mxu0  ;;  %v1114_v48 = vpop.f32.mrb[7].mxu1 }
 0x161   :  { %v1557_v47 = vadd.f32 %v1218_v46, %v1112_v45  ;;  %v1220_v49 = vpop.f32.mrb[7].mxu0 }
 0x162   :  { %v1559_v50 = vadd.f32 %v1220_v49, %v1114_v48 }
 0x175   :  { %v1267_v58 = vpop.f32.mrb[8].mxu1 }
 0x176   :  { %v1257_v57 = vpop.f32.mrb[0].mxu0  ;;  %v1554_v61 = vadd.f32 %v1553_v41, %v1267_v58  ;;  %v1269_v63 = vpop.f32.mrb[9].mxu1 }
 0x177   :  { %v1549_v60 = vadd.f32 %v1257_v57, %v1098_v35  ;;  %v1259_v62 = vpop.f32.mrb[1].mxu0  ;;  %v1556_v1 = vadd.f32 %v1555_v44, %v1269_v63  ;;  %v1271_v3 = vpop.f32.mrb[10].mxu1 }
 0x178   :  { %v1550_v0 = vadd.f32 %v1259_v62, %v1100_v36  ;;  %v1261_v2 = vpop.f32.mrb[2].mxu0  ;;  %v1319_v5 = vadd.f32 %v1554_v61, %v1308_v56  ;;  %v1558_v7 = vadd.f32 %v1557_v47, %v1271_v3  ;;  %v1273_v9 = vpop.f32.mrb[11].mxu1 }
 0x179   :  { %v1315_v4 = vadd.f32 %v1549_v60, %v1308_v56  ;;  %v1551_v6 = vadd.f32 %v1261_v2, %v1102_v37  ;;  %v1263_v8 = vpop.f32.mrb[3].mxu0  ;;  %v1320_v11 = vadd.f32 %v1556_v1, %v1312_v59  ;;  %v1560_v13 = vadd.f32 %v1559_v50, %v1273_v9 }
 0x17a   :  { %v1316_v10 = vadd.f32 %v1550_v0, %v1312_v59  ;;  %v1552_v12 = vadd.f32 %v1263_v8, %v1104_v38  ;;  %v1327_v15 = vmax.f32 %v1319_v5, 0.0  ;;  %v1321_v17 = vadd.f32 %v1558_v7, %v1308_v56 }
 0x17b   :  { %v1323_v14 = vmax.f32 %v1315_v4, 0.0  ;;  %v1317_v16 = vadd.f32 %v1551_v6, %v1308_v56  ;;  %v1328_v19 = vmax.f32 %v1320_v11, 0.0  ;;  %v1322_v21 = vadd.f32 %v1560_v13, %v1312_v59 }
 0x17c   :  { %v1324_v18 = vmax.f32 %v1316_v10, 0.0  ;;  %v1318_v20 = vadd.f32 %v1552_v12, %v1312_v59  ;;  %v1329_v23 = vmax.f32 %v1321_v17, 0.0 }
 0x17d   :  { %v1325_v22 = vmax.f32 %v1317_v16, 0.0  ;;  %v1531_v25 = vpack.c.bf16 %v1328_v19, %v1327_v15  ;;  %v1330_v27 = vmax.f32 %v1322_v21, 0.0 }
 0x17e   :  { %v1529_v24 = vpack.c.bf16 %v1324_v18, %v1323_v14  ;;  %v1326_v26 = vmax.f32 %v1318_v20, 0.0 }
 0x17f   :  { %1357 = vst [vmem:[%s2349_s3 + $0x10] sm:$0xff] %v1531_v25  ;;  %v1532_v29 = vpack.c.bf16 %v1330_v27, %v1329_v23 }
 0x180   :  { %1355 = vst [vmem:[%s2349_s3] sm:$0xff] %v1529_v24  ;;  %v1530_v28 = vpack.c.bf16 %v1326_v26, %v1325_v22 }
 0x181   :  { %1358 = vst [vmem:[%s2349_s3 + $0x18] sm:$0xff] %v1532_v29 }
 0x182   :  { %1356 = vst [vmem:[%s2349_s3 + $0x8] sm:$0xff] %v1530_v28 }

// kernel: _lambda_.20
= control target key start
LH: loop header
LB: loop body
LE: loop exit
PB: predicated region body
PF: predicated region fallthrough
CT: control target
= control target key end

     0   :  { %v348_v1 = vmov 0   ;;  %v229_v19 = vlaneseq  ;;  %s438_s1 = inlined_call_operand.vmem [shape: bf16[128,256], index: 1, kind: input, shape index: {}]   ;;  %s439_s0 = inlined_call_operand.vmem [shape: bf16[32,128], index: 0, kind: input, shape index: {}]   ;;  %s440_s2 = inlined_call_operand.vmem [shape: f32[1,256], index: 2, kind: input, shape index: {}]   ;;  %s441_s3 = inlined_call_operand.vmem [shape: bf16[32,256], index: 3, kind: output, shape index: {}]  }
   0x1   :  { %v322_v0 = vld [vmem:[%s438_s1 + $0x4] ss:$8 sps:$4 sm:$0xff]   ;;  %179 = vmatprep.mubr.bf16.mxu0 %v348_v1  ;;  %189 = vmatprep.mubr.bf16.mxu1 %v348_v1  ;;  %v324_v2 = vld [vmem:[%s438_s1] ss:$8 sps:$4 sm:$0xff]   ;;  %v325_v3 = vld [vmem:[%s438_s1 + $0x14] ss:$8 sps:$4 sm:$0xff]  }
   0x2   :  { %147 = vmatprep.subr.bf16.mxu0 %v322_v0  ;;  %305 = vmatprep.subr.bf16.mxu1 %v322_v0  ;;  %v327_v4 = vld [vmem:[%s438_s1 + $0x10] ss:$8 sps:$4 sm:$0xff]   ;;  %v328_v5 = vld [vmem:[%s438_s1 + $0x24] ss:$8 sps:$4 sm:$0xff]   ;;  %v330_v6 = vld [vmem:[%s438_s1 + $0x20] ss:$8 sps:$4 sm:$0xff]  }
   0x3   :  { %148 = vmatpush1.bf16.msra.mxu0 %v324_v2  ;;  %313 = vmatpush1.bf16.msra.mxu1 %v324_v2  ;;  %v331_v7 = vld [vmem:[%s438_s1 + $0x34] ss:$8 sps:$4 sm:$0xff]   ;;  %v333_v8 = vld [vmem:[%s438_s1 + $0x30] ss:$8 sps:$4 sm:$0xff]   ;;  %v334_v9 = vld [vmem:[%s438_s1 + $0x44] ss:$8 sps:$4 sm:$0xff]  }
   0x4   :  { %149 = vmatprep.subr.bf16.mxu0 %v325_v3  ;;  %306 = vmatprep.subr.bf16.mxu1 %v325_v3  ;;  %v336_v10 = vld [vmem:[%s438_s1 + $0x40] ss:$8 sps:$4 sm:$0xff]   ;;  %v337_v11 = vld [vmem:[%s438_s1 + $0x54] ss:$8 sps:$4 sm:$0xff]   ;;  %v339_v12 = vld [vmem:[%s438_s1 + $0x50] ss:$8 sps:$4 sm:$0xff]  }
   0x5   :  { %v340_v13 = vld [vmem:[%s438_s1 + $0x64] ss:$8 sps:$4 sm:$0xff]   ;;  %v342_v14 = vld [vmem:[%s438_s1 + $0x60] ss:$8 sps:$4 sm:$0xff]   ;;  %v343_v15 = vld [vmem:[%s438_s1 + $0x74] ss:$8 sps:$4 sm:$0xff]  }
   0x6   :  { %v345_v16 = vld [vmem:[%s438_s1 + $0x70] ss:$8 sps:$4 sm:$0xff]   ;;  %v346_v17 = vld [vmem:[%s439_s0] sm:$0xff]   ;;  %v347_v18 = vld [vmem:[%s439_s0 + $0x8] sm:$0xff]   ;;  %v230_v20 = vshrl.u32 %v229_v19, 7 }
   0x7   :  { %150 = vmatpush1.bf16.msra.mxu0 %v327_v4  ;;  %314 = vmatpush1.bf16.msra.mxu1 %v327_v4  ;;  %v227_v22 = vld [vmem:[%s440_s2] sm:$0x3] }
   0x8   :  { %151 = vmatprep.subr.bf16.mxu0 %v328_v5  ;;  %307 = vmatprep.subr.bf16.mxu1 %v328_v5  ;;  %v231_v21 = vsub.s32 0, %v230_v20  ;;  %v235_v23 = vsub.s32 1, %v230_v20 }
   0xa   :  { %v232_v24 = vrot.slane %v227_v22, %v231_v21  ;;  %v236_v25 = vrot.slane %v227_v22, %v235_v23 }
   0xb   :  { %152 = vmatpush1.bf16.msra.mxu0 %v330_v6  ;;  %315 = vmatpush1.bf16.msra.mxu1 %v330_v6 }
   0xc   :  { %153 = vmatprep.subr.bf16.mxu0 %v331_v7  ;;  %308 = vmatprep.subr.bf16.mxu1 %v331_v7 }
   0xf   :  { %154 = vmatpush1.bf16.msra.mxu0 %v333_v8  ;;  %316 = vmatpush1.bf16.msra.mxu1 %v333_v8 }
  0x10   :  { %155 = vmatprep.subr.bf16.mxu0 %v334_v9  ;;  %309 = vmatprep.subr.bf16.mxu1 %v334_v9 }
  0x13   :  { %156 = vmatpush1.bf16.msra.mxu0 %v336_v10  ;;  %317 = vmatpush1.bf16.msra.mxu1 %v336_v10 }
  0x14   :  { %157 = vmatprep.subr.bf16.mxu0 %v337_v11  ;;  %310 = vmatprep.subr.bf16.mxu1 %v337_v11 }
  0x17   :  { %158 = vmatpush1.bf16.msra.mxu0 %v339_v12  ;;  %318 = vmatpush1.bf16.msra.mxu1 %v339_v12 }
  0x18   :  { %159 = vmatprep.subr.bf16.mxu0 %v340_v13  ;;  %311 = vmatprep.subr.bf16.mxu1 %v340_v13 }
  0x1b   :  { %160 = vmatpush1.bf16.msra.mxu0 %v342_v14  ;;  %319 = vmatpush1.bf16.msra.mxu1 %v342_v14 }
  0x1c   :  { %161 = vmatprep.subr.bf16.mxu0 %v343_v15  ;;  %312 = vmatprep.subr.bf16.mxu1 %v343_v15 }
  0x1f   :  { %162 = vmatpush1.bf16.msra.mxu0 %v345_v16  ;;  %320 = vmatpush1.bf16.msra.mxu1 %v345_v16 }
  0x22   :  { %180 = vmatmul.mubr.bf16.vlgmr.msra.gmra.mrb[0].mxu0 %v346_v17  ;;  %190 = vmatmul.mubr.bf16.vlgmr.msra.gmra.mrb[0].mxu1 %v347_v18 }
  0xf5   :  { %v181_v26 = vpop.f32.mrb[0].mxu0  ;;  %v191_v27 = vpop.f32.mrb[0].mxu1 }
  0xf6   :  { %v239_v28 = vadd.f32 %v232_v24, %v181_v26  ;;  %v243_v29 = vadd.f32 %v232_v24, %v191_v27  ;;  %v183_v30 = vpop.f32.mrb[1].mxu0  ;;  %v193_v31 = vpop.f32.mrb[1].mxu1 }
  0xf7   :  { %v240_v32 = vadd.f32 %v236_v25, %v183_v30  ;;  %v244_v33 = vadd.f32 %v236_v25, %v193_v31  ;;  %v185_v34 = vpop.f32.mrb[2].mxu0  ;;  %v195_v35 = vpop.f32.mrb[2].mxu1 }
  0xf8   :  { %v241_v36 = vadd.f32 %v232_v24, %v185_v34  ;;  %v245_v37 = vadd.f32 %v232_v24, %v195_v35  ;;  %v187_v38 = vpop.f32.mrb[3].mxu0  ;;  %v197_v39 = vpop.f32.mrb[3].mxu1 }
  0xf9   :  { %v301_v40 = vpack.c.bf16 %v240_v32, %v239_v28  ;;  %v303_v41 = vpack.c.bf16 %v244_v33, %v243_v29  ;;  %v242_v42 = vadd.f32 %v236_v25, %v187_v38  ;;  %v246_v43 = vadd.f32 %v236_v25, %v197_v39 }
  0xfb   :  { %271 = vst [vmem:[%s441_s3] sm:$0xff] %v301_v40  ;;  %273 = vst [vmem:[%s441_s3 + $0x10] sm:$0xff] %v303_v41  ;;  %v302_v44 = vpack.c.bf16 %v242_v42, %v241_v36  ;;  %v304_v45 = vpack.c.bf16 %v246_v43, %v245_v37 }
  0xfd   :  { %272 = vst [vmem:[%s441_s3 + $0x8] sm:$0xff] %v302_v44  ;;  %274 = vst [vmem:[%s441_s3 + $0x18] sm:$0xff] %v304_v45 }

// kernel: _lambda_.21
= control target key start
LH: loop header
LB: loop body
LE: loop exit
PB: predicated region body
PF: predicated region fallthrough
CT: control target
= control target key end

     0   :  { %s2516_s15 = smov 0   ;;  %s2518_s16 = smov 0   ;;  %s2820_s0 = inlined_call_operand.vmem [shape: bf16[32,2304], index: 0, kind: input, shape index: {}]   ;;  %s2821_s1 = inlined_call_operand.vmem [shape: bf16[2304,256], index: 1, kind: input, shape index: {}]   ;;  %s2822_s2 = inlined_call_operand.vmem [shape: f32[1,256], index: 2, kind: input, shape index: {}]   ;;  %s2823_s3 = inlined_call_operand.vmem [shape: bf16[32,256], index: 3, kind: input, shape index: {}]   ;;  %s2824_s4 = inlined_call_operand.vmem [shape: bf16[32,256], index: 4, kind: output, shape index: {}]  }
   0x1   :  { %s2520_s17 = smov 0   ;;  %s2522_s18 = smov 0  }
   0x2   :  { %s2524_s19 = smov 0  }
   0x3 LB: > { %s26_s20 = sadd.s32 1, %s2483_s18  ;;  %p49_p1 = scmp.ne.s32.totalorder %s2475_s16, %s2471_s15  ;;  %s2487_s19 = sphi %s2524_s19, %s14_s19   ;;  %s2483_s18 = sphi %s2522_s18, %s2828_s18   ;;  %s2479_s17 = sphi %s2520_s17, %s2827_s17   ;;  %s2475_s16 = sphi %s2518_s16, %s2826_s16   ;;  %s2471_s15 = sphi %s2516_s15, %s2825_s15  }
   0x4   : > { %p27_p0 = scmp.ge.s32.totalorder %s26_s20, 2  ;;  %p50_p2 = scmp.eq.s32.totalorder %s2487_s19, 0 }
   0x5   : > { %s42_s22 = sadd.s32 1, %s2475_s16  ;;  %p1924_p5 = scmp.ge.s32.totalorder %s2487_s19, 2 }
   0x6   : > { %s2830_s20 = smov (%p27_p0, %s26_s20), 0  ;;  %p51_p3 = por %p50_p2, %p49_p1 }
   0x7   : > { %s38_s21 = ssub.s32 %s2483_s18, %s2830_s20  ;;  %208 = sbr.rel (%p1924_p5) target bundleno = 29 (0x1d), region = 24 }
   0x8   : > { %p40_p4 = scmp.eq.s32.totalorder %s38_s21, 0 }
   0xa   : > { %s2551_s23 = scalar_select %p40_p4, %s2475_s16, %s42_s22  }
   0xe   : > { %211 = sbr.rel (!%p51_p3) target bundleno = 29 (0x1d), region = 28  ;;  %s213_s24 = sand.u32 (%p51_p3), 1, %s2475_s16  }
   0xf   : > { %s2109_s25 = smul.u32 (%p51_p3), 36, %s2483_s18 }
  0x10   : > { %s2163_s26 = smul.u32 (%p51_p3), 144, %s213_s24 }
  0x11   : > { %s2559_s29 = scalar_lea.vmem (%p51_p3), %s2820_s0, %s2109_s25 }
  0x12   : > { %v236_v0 = vld [vmem:[%s2559_s29] sm:$0xff] (%p51_p3)  ;;  %v238_v1 = vld [vmem:[%s2559_s29 + $0x8] sm:$0xff] (%p51_p3)  ;;  %v240_v2 = vld [vmem:[%s2559_s29 + $0x10] sm:$0xff] (%p51_p3)  ;;  %s2564_s30 = scalar_lea.vmem (%p51_p3), [#allocation3], %s2163_s26 }
  0x13   : > { %237 = vst [vmem:[%s2564_s30] sm:$0xff] (%p51_p3), %v236_v0  ;;  %239 = vst [vmem:[%s2564_s30 + $0x8] sm:$0xff] (%p51_p3), %v238_v1  ;;  %v242_v3 = vld [vmem:[%s2559_s29 + $0x18] sm:$0xff] (%p51_p3)  ;;  %v244_v4 = vld [vmem:[%s2559_s29 + $0x48] sm:$0xff] (%p51_p3) }
  0x14   : > { %241 = vst [vmem:[%s2564_s30 + $0x10] sm:$0xff] (%p51_p3), %v240_v2  ;;  %v246_v5 = vld [vmem:[%s2559_s29 + $0x50] sm:$0xff] (%p51_p3)  ;;  %243 = vst [vmem:[%s2564_s30 + $0x18] sm:$0xff] (%p51_p3), %v242_v3  ;;  %v248_v6 = vld [vmem:[%s2559_s29 + $0x58] sm:$0xff] (%p51_p3) }
  0x15   : > { %245 = vst [vmem:[%s2564_s30 + $0x24] sm:$0xff] %v244_v4  ;;  %247 = vst [vmem:[%s2564_s30 + $0x2c] sm:$0xff] %v246_v5  ;;  %v250_v7 = vld [vmem:[%s2559_s29 + $0x60] sm:$0xff]  ;;  %v252_v8 = vld [vmem:[%s2559_s29 + $0x90] sm:$0xff] }
  0x16   : > { %249 = vst [vmem:[%s2564_s30 + $0x34] sm:$0xff] %v248_v6  ;;  %251 = vst [vmem:[%s2564_s30 + $0x3c] sm:$0xff] %v250_v7  ;;  %v254_v9 = vld [vmem:[%s2559_s29 + $0x98] sm:$0xff]  ;;  %v256_v10 = vld [vmem:[%s2559_s29 + $0xa0] sm:$0xff] }
  0x17   : > { %253 = vst [vmem:[%s2564_s30 + $0x48] sm:$0xff] %v252_v8  ;;  %v258_v11 = vld [vmem:[%s2559_s29 + $0xa8] sm:$0xff]  ;;  %255 = vst [vmem:[%s2564_s30 + $0x50] sm:$0xff] %v254_v9  ;;  %v260_v12 = vld [vmem:[%s2559_s29 + $0xd8] sm:$0xff] }
  0x18   : > { %257 = vst [vmem:[%s2564_s30 + $0x58] sm:$0xff] %v256_v10  ;;  %259 = vst [vmem:[%s2564_s30 + $0x60] sm:$0xff] %v258_v11  ;;  %v262_v13 = vld [vmem:[%s2559_s29 + $0xe0] sm:$0xff]  ;;  %v264_v14 = vld [vmem:[%s2559_s29 + $0xe8] sm:$0xff] }
  0x19   : > { %261 = vst [vmem:[%s2564_s30 + $0x6c] sm:$0xff] %v260_v12  ;;  %263 = vst [vmem:[%s2564_s30 + $0x74] sm:$0xff] %v262_v13  ;;  %v266_v15 = vld [vmem:[%s2559_s29 + $0xf0] sm:$0xff]  ;;  %v1926_v16 = vld [vmem:[%s2559_s29 + $0x20] sm:$0xf] }
  0x1a   : > { %265 = vst [vmem:[%s2564_s30 + $0x7c] sm:$0xff] %v264_v14  ;;  %v1928_v17 = vld [vmem:[%s2559_s29 + $0x68] sm:$0xf]  ;;  %267 = vst [vmem:[%s2564_s30 + $0x84] sm:$0xff] %v266_v15  ;;  %v1930_v18 = vld [vmem:[%s2559_s29 + $0xb0] sm:$0xf] }
  0x1b   : > { %1927 = vst [vmem:[%s2564_s30 + $0x20] sm:$0xf] %v1926_v16  ;;  %1929 = vst [vmem:[%s2564_s30 + $0x44] sm:$0xf] %v1928_v17  ;;  %v1932_v19 = vld [vmem:[%s2559_s29 + $0xf8] sm:$0xf] }
  0x1c   : > { %1931 = vst [vmem:[%s2564_s30 + $0x68] sm:$0xf] %v1930_v18  ;;  %1933 = vst [vmem:[%s2564_s30 + $0x8c] sm:$0xf] %v1932_v19 }
  0x1d PF: > { %p1934_p6 = scmp.ge.s32.totalorder %s2487_s19, 1  ;;  %p302_p7 = scmp.lt.s32.totalorder %s2487_s19, 3 }
  0x1f   : > { %p303_p8 = pnand %p1934_p6, %p302_p7 }
  0x20   : > { %s309_s5 = sand.u32 (!%p303_p8), 1, %s2471_s15   ;;  %s365_s6 = smul.u32 (!%p303_p8), 144, %s2479_s17 }
  0x21   : > { %306 = sbr.rel (%p303_p8) target bundleno = 445 (0x1bd), region = 58  ;;  %p1937_p10 = scmp.ne.s32.totalorder (!%p303_p8), %s2479_s17, 0 }
  0x22   : > { %s2164_s7 = smul.u32 (!%p303_p8), 144, %s309_s5  ;;  %p367_p9 = scmp.lt.s32.totalorder (!%p303_p8), %s365_s6, 287 }
  0x24   : > { %s2612_s12 = scalar_lea.vmem (!%p303_p8), [#allocation3], %s2164_s7 }
  0x28   : > { %s2832_s6 = smov (!%p367_p9, %s365_s6), 287  ;;  %410 = sbr.rel (%p1937_p10) target bundleno = 47 (0x2f), region = 66 }
  0x29   : > { %s2110_s8 = sshll.u32 %s2832_s6, 3  ;;  %v2489_v20 = vmov (!%p1937_p10), 0.0  }
  0x2a   : > { %s2610_s11 = scalar_lea.vmem %s2821_s1, %s2110_s8  ;;  %411 = vst [vmem:[#allocation2] sm:$0xff] (!%p1937_p10), %v2489_v20  ;;  %412 = vst [vmem:[#allocation2 + $0x8] sm:$0xff] (!%p1937_p10), %v2489_v20 }
  0x2b   : > { %413 = vst [vmem:[#allocation2 + $0x10] sm:$0xff] (!%p1937_p10), %v2489_v20  ;;  %414 = vst [vmem:[#allocation2 + $0x18] sm:$0xff] (!%p1937_p10), %v2489_v20 }
  0x2c   : > { %415 = vst [vmem:[#allocation2 + $0x20] sm:$0xff] (!%p1937_p10), %v2489_v20  ;;  %416 = vst [vmem:[#allocation2 + $0x28] sm:$0xff] (!%p1937_p10), %v2489_v20 }
  0x2d   : > { %417 = vst [vmem:[#allocation2 + $0x30] sm:$0xff] (!%p1937_p10), %v2489_v20  ;;  %418 = vst [vmem:[#allocation2 + $0x38] sm:$0xff] (!%p1937_p10), %v2489_v20 }
  0x2f PF: > { %v2207_v21 = vld [vmem:[%s2610_s11 + $0x4] ss:$8 sps:$4 sm:$0xff]   ;;  %v2211_v23 = vld [vmem:[%s2610_s11] ss:$8 sps:$4 sm:$0xff]   ;;  %v2213_v25 = vld [vmem:[%s2610_s11 + $0x14] ss:$8 sps:$4 sm:$0xff]  }
  0x30   : > { %v2209_v22 = vld [vmem:[%s2610_s11 + $0x204] ss:$8 sps:$4 sm:$0xff]   ;;  %1403 = vmatprep.subr.bf16.mxu1 %v2207_v21  ;;  %v2212_v24 = vld [vmem:[%s2610_s11 + $0x200] ss:$8 sps:$4 sm:$0xff]   ;;  %v2215_v26 = vld [vmem:[%s2610_s11 + $0x214] ss:$8 sps:$4 sm:$0xff]  }
  0x31   : > { %1509 = vmatprep.subr.bf16.mxu0 %v2209_v22  ;;  %1404 = vmatpush1.bf16.msra.mxu1 %v2211_v23  ;;  %v2217_v27 = vld [vmem:[%s2610_s11 + $0x10] ss:$8 sps:$4 sm:$0xff]   ;;  %v2219_v29 = vld [vmem:[%s2610_s11 + $0x24] ss:$8 sps:$4 sm:$0xff]   ;;  %v2223_v31 = vld [vmem:[%s2610_s11 + $0x20] ss:$8 sps:$4 sm:$0xff]  }
  0x32   : > { %1510 = vmatpush1.bf16.msra.mxu0 %v2212_v24  ;;  %1405 = vmatprep.subr.bf16.mxu1 %v2213_v25  ;;  %v2218_v28 = vld [vmem:[%s2610_s11 + $0x210] ss:$8 sps:$4 sm:$0xff]   ;;  %v2221_v30 = vld [vmem:[%s2610_s11 + $0x224] ss:$8 sps:$4 sm:$0xff]   ;;  %v2224_v32 = vld [vmem:[%s2610_s11 + $0x220] ss:$8 sps:$4 sm:$0xff]  }
  0x33   : > { %1511 = vmatprep.subr.bf16.mxu0 %v2215_v26  ;;  %v2225_v33 = vld [vmem:[%s2610_s11 + $0x34] ss:$8 sps:$4 sm:$0xff]   ;;  %v2229_v35 = vld [vmem:[%s2610_s11 + $0x30] ss:$8 sps:$4 sm:$0xff]   ;;  %v2231_v37 = vld [vmem:[%s2610_s11 + $0x44] ss:$8 sps:$4 sm:$0xff]  }
  0x34   : > { %v2227_v34 = vld [vmem:[%s2610_s11 + $0x234] ss:$8 sps:$4 sm:$0xff]   ;;  %v2230_v36 = vld [vmem:[%s2610_s11 + $0x230] ss:$8 sps:$4 sm:$0xff]   ;;  %v2233_v38 = vld [vmem:[%s2610_s11 + $0x244] ss:$8 sps:$4 sm:$0xff]  }
  0x35   : > { %1406 = vmatpush1.bf16.msra.mxu1 %v2217_v27  ;;  %v2235_v39 = vld [vmem:[%s2610_s11 + $0x40] ss:$8 sps:$4 sm:$0xff]   ;;  %v2237_v41 = vld [vmem:[%s2610_s11 + $0x54] ss:$8 sps:$4 sm:$0xff]   ;;  %v2241_v43 = vld [vmem:[%s2610_s11 + $0x50] ss:$8 sps:$4 sm:$0xff]  }
  0x36   : > { %1512 = vmatpush1.bf16.msra.mxu0 %v2218_v28  ;;  %1407 = vmatprep.subr.bf16.mxu1 %v2219_v29  ;;  %v2236_v40 = vld [vmem:[%s2610_s11 + $0x240] ss:$8 sps:$4 sm:$0xff]   ;;  %v2239_v42 = vld [vmem:[%s2610_s11 + $0x254] ss:$8 sps:$4 sm:$0xff]   ;;  %v2242_v44 = vld [vmem:[%s2610_s11 + $0x250] ss:$8 sps:$4 sm:$0xff]  }
  0x37   : > { %1513 = vmatprep.subr.bf16.mxu0 %v2221_v30  ;;  %v2243_v45 = vld [vmem:[%s2610_s11 + $0x64] ss:$8 sps:$4 sm:$0xff]   ;;  %v2247_v47 = vld [vmem:[%s2610_s11 + $0x60] ss:$8 sps:$4 sm:$0xff]   ;;  %v2249_v49 = vld [vmem:[%s2610_s11 + $0x74] ss:$8 sps:$4 sm:$0xff]  }
  0x38   : > { %v2245_v46 = vld [vmem:[%s2610_s11 + $0x264] ss:$8 sps:$4 sm:$0xff]   ;;  %v2248_v48 = vld [vmem:[%s2610_s11 + $0x260] ss:$8 sps:$4 sm:$0xff]   ;;  %v2251_v50 = vld [vmem:[%s2610_s11 + $0x274] ss:$8 sps:$4 sm:$0xff]  }
  0x39   : > { %1408 = vmatpush1.bf16.msra.mxu1 %v2223_v31  ;;  %v2253_v51 = vld [vmem:[%s2610_s11 + $0x70] ss:$8 sps:$4 sm:$0xff]   ;;  %v2255_v53 = vld [vmem:[%s2610_s11 + $0x84] ss:$8 sps:$4 sm:$0xff]   ;;  %v2259_v55 = vld [vmem:[%s2610_s11 + $0x80] ss:$8 sps:$4 sm:$0xff]  }
  0x3a   : > { %1514 = vmatpush1.bf16.msra.mxu0 %v2224_v32  ;;  %1409 = vmatprep.subr.bf16.mxu1 %v2225_v33  ;;  %v2254_v52 = vld [vmem:[%s2610_s11 + $0x270] ss:$8 sps:$4 sm:$0xff]   ;;  %v2257_v54 = vld [vmem:[%s2610_s11 + $0x284] ss:$8 sps:$4 sm:$0xff]   ;;  %v2260_v56 = vld [vmem:[%s2610_s11 + $0x280] ss:$8 sps:$4 sm:$0xff]  }
  0x3b   : > { %1515 = vmatprep.subr.bf16.mxu0 %v2227_v34  ;;  %v2261_v57 = vld [vmem:[%s2610_s11 + $0x94] ss:$8 sps:$4 sm:$0xff]   ;;  %v2265_v59 = vld [vmem:[%s2610_s11 + $0x90] ss:$8 sps:$4 sm:$0xff]   ;;  %v2267_v61 = vld [vmem:[%s2610_s11 + $0xa4] ss:$8 sps:$4 sm:$0xff]  }
  0x3c   : > { %v2263_v58 = vld [vmem:[%s2610_s11 + $0x294] ss:$8 sps:$4 sm:$0xff]   ;;  %v2266_v60 = vld [vmem:[%s2610_s11 + $0x290] ss:$8 sps:$4 sm:$0xff]   ;;  %v2269_v62 = vld [vmem:[%s2610_s11 + $0x2a4] ss:$8 sps:$4 sm:$0xff]  }
  0x3d   : > { %1410 = vmatpush1.bf16.msra.mxu1 %v2229_v35  ;;  %v2271_v63 = vld [vmem:[%s2610_s11 + $0xa0] ss:$8 sps:$4 sm:$0xff]   ;;  %v2273_v1 = vld [vmem:[%s2610_s11 + $0xb4] ss:$8 sps:$4 sm:$0xff]   ;;  %v2277_v3 = vld [vmem:[%s2610_s11 + $0xb0] ss:$8 sps:$4 sm:$0xff]  }
  0x3e   : > { %1516 = vmatpush1.bf16.msra.mxu0 %v2230_v36  ;;  %1411 = vmatprep.subr.bf16.mxu1 %v2231_v37  ;;  %v2272_v0 = vld [vmem:[%s2610_s11 + $0x2a0] ss:$8 sps:$4 sm:$0xff]   ;;  %v2275_v2 = vld [vmem:[%s2610_s11 + $0x2b4] ss:$8 sps:$4 sm:$0xff]   ;;  %v2278_v4 = vld [vmem:[%s2610_s11 + $0x2b0] ss:$8 sps:$4 sm:$0xff]  }
  0x3f   : > { %1517 = vmatprep.subr.bf16.mxu0 %v2233_v38  ;;  %v2305_v5 = vld [vmem:[%s2612_s12 + $0x4] ss:$36 sps:$4 sm:$0xff]   ;;  %v2311_v8 = vld [vmem:[%s2612_s12 + $0x14] ss:$36 sps:$4 sm:$0xff]   ;;  %p2100_p11 = scmp.ne.s32.totalorder %s2479_s17, 1 }
  0x40   : > { %v2279_v6 = vld [vmem:[%s2610_s11 + $0xc4] ss:$8 sps:$4 sm:$0xff]   ;;  %1435 = vmatprep.mubr.bf16.mxu1 %v2305_v5  ;;  %v2283_v9 = vld [vmem:[%s2610_s11 + $0xc0] ss:$8 sps:$4 sm:$0xff]   ;;  %v2285_v11 = vld [vmem:[%s2610_s11 + $0xd4] ss:$8 sps:$4 sm:$0xff]   ;;  %1541 = vmatprep.mubr.bf16.mxu0 %v2311_v8 }
  0x41   : > { %1412 = vmatpush1.bf16.msra.mxu1 %v2235_v39  ;;  %v2281_v7 = vld [vmem:[%s2610_s11 + $0x2c4] ss:$8 sps:$4 sm:$0xff]   ;;  %v2284_v10 = vld [vmem:[%s2610_s11 + $0x2c0] ss:$8 sps:$4 sm:$0xff]   ;;  %v2287_v12 = vld [vmem:[%s2610_s11 + $0x2d4] ss:$8 sps:$4 sm:$0xff]  }
  0x42   : > { %1518 = vmatpush1.bf16.msra.mxu0 %v2236_v40  ;;  %1413 = vmatprep.subr.bf16.mxu1 %v2237_v41  ;;  %v2289_v13 = vld [vmem:[%s2610_s11 + $0xd0] ss:$8 sps:$4 sm:$0xff]   ;;  %v2291_v15 = vld [vmem:[%s2610_s11 + $0xe4] ss:$8 sps:$4 sm:$0xff]   ;;  %v2295_v17 = vld [vmem:[%s2610_s11 + $0xe0] ss:$8 sps:$4 sm:$0xff]  }
  0x43   : > { %1519 = vmatprep.subr.bf16.mxu0 %v2239_v42  ;;  %v2290_v14 = vld [vmem:[%s2610_s11 + $0x2d0] ss:$8 sps:$4 sm:$0xff]   ;;  %v2293_v16 = vld [vmem:[%s2610_s11 + $0x2e4] ss:$8 sps:$4 sm:$0xff]   ;;  %v2296_v18 = vld [vmem:[%s2610_s11 + $0x2e0] ss:$8 sps:$4 sm:$0xff]  }
  0x44   : > { %v2297_v19 = vld [vmem:[%s2610_s11 + $0xf4] ss:$8 sps:$4 sm:$0xff]   ;;  %v2301_v21 = vld [vmem:[%s2610_s11 + $0xf0] ss:$8 sps:$4 sm:$0xff]   ;;  %v2308_v23 = vld [vmem:[%s2610_s11 + $0x104] ss:$8 sps:$4 sm:$0xff]  }
  0x45   : > { %1414 = vmatpush1.bf16.msra.mxu1 %v2241_v43  ;;  %v2299_v20 = vld [vmem:[%s2610_s11 + $0x2f4] ss:$8 sps:$4 sm:$0xff]   ;;  %v2302_v22 = vld [vmem:[%s2610_s11 + $0x2f0] ss:$8 sps:$4 sm:$0xff]   ;;  %v2314_v24 = vld [vmem:[%s2610_s11 + $0x304] ss:$8 sps:$4 sm:$0xff]  }
  0x46   : > { %1520 = vmatpush1.bf16.msra.mxu0 %v2242_v44  ;;  %1415 = vmatprep.subr.bf16.mxu1 %v2243_v45  ;;  %v2303_v25 = vld [vmem:[%s2612_s12] ss:$36 sps:$4 sm:$0xff]   ;;  %v2309_v27 = vld [vmem:[%s2612_s12 + $0x10] ss:$36 sps:$4 sm:$0xff]  }
  0x47   : > { %1521 = vmatprep.subr.bf16.mxu0 %v2245_v46  ;;  %v2306_v26 = vld [vmem:[%s2610_s11 + $0x100] ss:$8 sps:$4 sm:$0xff]   ;;  %v2317_v29 = vld [vmem:[%s2610_s11 + $0x114] ss:$8 sps:$4 sm:$0xff]   ;;  %v2315_v31 = vld [vmem:[%s2610_s11 + $0x110] ss:$8 sps:$4 sm:$0xff]  }
  0x48   : > { %v2312_v28 = vld [vmem:[%s2610_s11 + $0x300] ss:$8 sps:$4 sm:$0xff]   ;;  %v2320_v30 = vld [vmem:[%s2610_s11 + $0x314] ss:$8 sps:$4 sm:$0xff]   ;;  %v2318_v32 = vld [vmem:[%s2610_s11 + $0x310] ss:$8 sps:$4 sm:$0xff]  }
  0x49   : > { %1416 = vmatpush1.bf16.msra.mxu1 %v2247_v47  ;;  %v2323_v33 = vld [vmem:[%s2610_s11 + $0x124] ss:$8 sps:$4 sm:$0xff]   ;;  %v2321_v35 = vld [vmem:[%s2610_s11 + $0x120] ss:$8 sps:$4 sm:$0xff]   ;;  %v2329_v37 = vld [vmem:[%s2610_s11 + $0x134] ss:$8 sps:$4 sm:$0xff]  }
  0x4a   : > { %1522 = vmatpush1.bf16.msra.mxu0 %v2248_v48  ;;  %1417 = vmatprep.subr.bf16.mxu1 %v2249_v49  ;;  %v2326_v34 = vld [vmem:[%s2610_s11 + $0x324] ss:$8 sps:$4 sm:$0xff]   ;;  %v2324_v36 = vld [vmem:[%s2610_s11 + $0x320] ss:$8 sps:$4 sm:$0xff]   ;;  %v2332_v38 = vld [vmem:[%s2610_s11 + $0x334] ss:$8 sps:$4 sm:$0xff]  }
  0x4b   : > { %1523 = vmatprep.subr.bf16.mxu0 %v2251_v50  ;;  %v2327_v39 = vld [vmem:[%s2610_s11 + $0x130] ss:$8 sps:$4 sm:$0xff]   ;;  %v2335_v41 = vld [vmem:[%s2610_s11 + $0x144] ss:$8 sps:$4 sm:$0xff]   ;;  %v2333_v43 = vld [vmem:[%s2610_s11 + $0x140] ss:$8 sps:$4 sm:$0xff]  }
  0x4c   : > { %v2330_v40 = vld [vmem:[%s2610_s11 + $0x330] ss:$8 sps:$4 sm:$0xff]   ;;  %v2338_v42 = vld [vmem:[%s2610_s11 + $0x344] ss:$8 sps:$4 sm:$0xff]   ;;  %v2336_v44 = vld [vmem:[%s2610_s11 + $0x340] ss:$8 sps:$4 sm:$0xff]  }
  0x4d   : > { %1418 = vmatpush1.bf16.msra.mxu1 %v2253_v51  ;;  %v2341_v45 = vld [vmem:[%s2610_s11 + $0x154] ss:$8 sps:$4 sm:$0xff]   ;;  %v2339_v47 = vld [vmem:[%s2610_s11 + $0x150] ss:$8 sps:$4 sm:$0xff]   ;;  %v2347_v49 = vld [vmem:[%s2610_s11 + $0x164] ss:$8 sps:$4 sm:$0xff]  }
  0x4e   : > { %1524 = vmatpush1.bf16.msra.mxu0 %v2254_v52  ;;  %1419 = vmatprep.subr.bf16.mxu1 %v2255_v53  ;;  %v2344_v46 = vld [vmem:[%s2610_s11 + $0x354] ss:$8 sps:$4 sm:$0xff]   ;;  %v2342_v48 = vld [vmem:[%s2610_s11 + $0x350] ss:$8 sps:$4 sm:$0xff]   ;;  %v2350_v53 = vld [vmem:[%s2610_s11 + $0x364] ss:$8 sps:$4 sm:$0xff]  }
  0x4f   : > { %1525 = vmatprep.subr.bf16.mxu0 %v2257_v54  ;;  %v2393_v50 = vld [vmem:[%s2612_s12 + $0x4c] ss:$36 sps:$4 sm:$0xff]   ;;  %v2395_v51 = vld [vmem:[%s2612_s12 + $0x5c] ss:$36 sps:$4 sm:$0xff]  }
  0x50   : > { %v2397_v52 = vld [vmem:[%s2612_s12 + $0x48] ss:$36 sps:$4 sm:$0xff]   ;;  %v2401_v54 = vld [vmem:[%s2612_s12 + $0x58] ss:$36 sps:$4 sm:$0xff]  }
  0x51   : > { %1420 = vmatpush1.bf16.msra.mxu1 %v2259_v55  ;;  %v2345_v55 = vld [vmem:[%s2610_s11 + $0x160] ss:$8 sps:$4 sm:$0xff]   ;;  %v2363_v5 = vld [vmem:[%s2610_s11 + $0x190] ss:$8 sps:$4 sm:$0xff]   ;;  %v2374_v8 = vld [vmem:[%s2610_s11 + $0x3a4] ss:$8 sps:$4 sm:$0xff]  }
  0x52   : > { %1526 = vmatpush1.bf16.msra.mxu0 %v2260_v56  ;;  %1421 = vmatprep.subr.bf16.mxu1 %v2261_v57  ;;  %v2348_v56 = vld [vmem:[%s2610_s11 + $0x360] ss:$8 sps:$4 sm:$0xff]   ;;  %v2353_v57 = vld [vmem:[%s2610_s11 + $0x174] ss:$8 sps:$4 sm:$0xff]  }
  0x53   : > { %1527 = vmatprep.subr.bf16.mxu0 %v2263_v58  ;;  %v2356_v58 = vld [vmem:[%s2610_s11 + $0x374] ss:$8 sps:$4 sm:$0xff]  }
  0x55   : > { %1422 = vmatpush1.bf16.msra.mxu1 %v2265_v59  ;;  %v2351_v59 = vld [vmem:[%s2610_s11 + $0x170] ss:$8 sps:$4 sm:$0xff]  }
  0x56   : > { %1528 = vmatpush1.bf16.msra.mxu0 %v2266_v60  ;;  %1423 = vmatprep.subr.bf16.mxu1 %v2267_v61  ;;  %v2354_v60 = vld [vmem:[%s2610_s11 + $0x370] ss:$8 sps:$4 sm:$0xff]   ;;  %v2359_v61 = vld [vmem:[%s2610_s11 + $0x184] ss:$8 sps:$4 sm:$0xff]  }
  0x57   : > { %1529 = vmatprep.subr.bf16.mxu0 %v2269_v62  ;;  %v2413_v62 = vld [vmem:[%s2612_s12 + $0xc] ss:$36 sps:$4 sm:$0xff]  }
  0x59   : > { %1424 = vmatpush1.bf16.msra.mxu1 %v2271_v63  ;;  %v2362_v63 = vld [vmem:[%s2610_s11 + $0x384] ss:$8 sps:$4 sm:$0xff]  }
  0x5a   : > { %1530 = vmatpush1.bf16.msra.mxu0 %v2272_v0  ;;  %1425 = vmatprep.subr.bf16.mxu1 %v2273_v1  ;;  %v2416_v0 = vld [vmem:[%s2612_s12 + $0x1c] ss:$36 sps:$4 sm:$0xff]  }
  0x5b   : > { %1531 = vmatprep.subr.bf16.mxu0 %v2275_v2  ;;  %v2357_v1 = vld [vmem:[%s2610_s11 + $0x180] ss:$8 sps:$4 sm:$0xff]  }
  0x5c   : > { %v2360_v2 = vld [vmem:[%s2610_s11 + $0x380] ss:$8 sps:$4 sm:$0xff]  }
  0x5d   : > { %1426 = vmatpush1.bf16.msra.mxu1 %v2277_v3  ;;  %v2365_v3 = vld [vmem:[%s2610_s11 + $0x194] ss:$8 sps:$4 sm:$0xff]  }
  0x5e   : > { %1532 = vmatpush1.bf16.msra.mxu0 %v2278_v4  ;;  %1427 = vmatprep.subr.bf16.mxu1 %v2279_v6  ;;  %v2368_v4 = vld [vmem:[%s2610_s11 + $0x394] ss:$8 sps:$4 sm:$0xff]   ;;  %v2366_v6 = vld [vmem:[%s2610_s11 + $0x390] ss:$8 sps:$4 sm:$0xff]  }
  0x5f   : > { %1533 = vmatprep.subr.bf16.mxu0 %v2281_v7  ;;  %v2371_v7 = vld [vmem:[%s2610_s11 + $0x1a4] ss:$8 sps:$4 sm:$0xff]  }
  0x61   : > { %1428 = vmatpush1.bf16.msra.mxu1 %v2283_v9  ;;  %v2369_v9 = vld [vmem:[%s2610_s11 + $0x1a0] ss:$8 sps:$4 sm:$0xff]  }
  0x62   : > { %1534 = vmatpush1.bf16.msra.mxu0 %v2284_v10  ;;  %1429 = vmatprep.subr.bf16.mxu1 %v2285_v11  ;;  %v2372_v10 = vld [vmem:[%s2610_s11 + $0x3a0] ss:$8 sps:$4 sm:$0xff]   ;;  %v2377_v11 = vld [vmem:[%s2610_s11 + $0x1b4] ss:$8 sps:$4 sm:$0xff]  }
  0x63   : > { %1535 = vmatprep.subr.bf16.mxu0 %v2287_v12  ;;  %v2380_v12 = vld [vmem:[%s2610_s11 + $0x3b4] ss:$8 sps:$4 sm:$0xff]  }
  0x65   : > { %1430 = vmatpush1.bf16.msra.mxu1 %v2289_v13  ;;  %v2375_v13 = vld [vmem:[%s2610_s11 + $0x1b0] ss:$8 sps:$4 sm:$0xff]  }
  0x66   : > { %1536 = vmatpush1.bf16.msra.mxu0 %v2290_v14  ;;  %1431 = vmatprep.subr.bf16.mxu1 %v2291_v15  ;;  %v2378_v14 = vld [vmem:[%s2610_s11 + $0x3b0] ss:$8 sps:$4 sm:$0xff]   ;;  %v2383_v15 = vld [vmem:[%s2610_s11 + $0x1c4] ss:$8 sps:$4 sm:$0xff]  }
  0x67   : > { %1537 = vmatprep.subr.bf16.mxu0 %v2293_v16  ;;  %v2386_v16 = vld [vmem:[%s2610_s11 + $0x3c4] ss:$8 sps:$4 sm:$0xff]  }
  0x69   : > { %1432 = vmatpush1.bf16.msra.mxu1 %v2295_v17  ;;  %v2381_v17 = vld [vmem:[%s2610_s11 + $0x1c0] ss:$8 sps:$4 sm:$0xff]  }
  0x6a   : > { %1538 = vmatpush1.bf16.msra.mxu0 %v2296_v18  ;;  %1433 = vmatprep.subr.bf16.mxu1 %v2297_v19  ;;  %v2384_v18 = vld [vmem:[%s2610_s11 + $0x3c0] ss:$8 sps:$4 sm:$0xff]   ;;  %v2389_v19 = vld [vmem:[%s2610_s11 + $0x1d4] ss:$8 sps:$4 sm:$0xff]  }
  0x6b   : > { %1539 = vmatprep.subr.bf16.mxu0 %v2299_v20  ;;  %v2392_v20 = vld [vmem:[%s2610_s11 + $0x3d4] ss:$8 sps:$4 sm:$0xff]  }
  0x6d   : > { %1434 = vmatpush1.bf16.msra.mxu1 %v2301_v21  ;;  %v2387_v21 = vld [vmem:[%s2610_s11 + $0x1d0] ss:$8 sps:$4 sm:$0xff]  }
  0x6e   : > { %1540 = vmatpush1.bf16.msra.mxu0 %v2302_v22  ;;  %1456 = vmatprep.subr.bf16.mxu1 %v2308_v23  ;;  %v2390_v22 = vld [vmem:[%s2610_s11 + $0x3d0] ss:$8 sps:$4 sm:$0xff]   ;;  %v2400_v23 = vld [vmem:[%s2610_s11 + $0x1e4] ss:$8 sps:$4 sm:$0xff]  }
  0x6f   : > { %1562 = vmatprep.subr.bf16.mxu0 %v2314_v24  ;;  %v2404_v24 = vld [vmem:[%s2610_s11 + $0x3e4] ss:$8 sps:$4 sm:$0xff]  }
  0x70   : > { %1436 = vmatmul.mubr.bf16.vlgmr.msra.gmra.mrb[0].mxu1 %v2303_v25  ;;  %v2398_v25 = vld [vmem:[%s2610_s11 + $0x1e0] ss:$8 sps:$4 sm:$0xff]  }
  0x71   : > { %1542 = vmatmul.mubr.bf16.vlgmr.msra.gmra.mrb[0].mxu0 %v2309_v27  ;;  %1457 = vmatpush1.bf16.msra.mxu1 %v2306_v26  ;;  %v2402_v26 = vld [vmem:[%s2610_s11 + $0x3e0] ss:$8 sps:$4 sm:$0xff]   ;;  %v2407_v27 = vld [vmem:[%s2610_s11 + $0x1f4] ss:$8 sps:$4 sm:$0xff]  }
  0x72   : > { %1563 = vmatpush1.bf16.msra.mxu0 %v2312_v28  ;;  %1458 = vmatprep.subr.bf16.mxu1 %v2317_v29  ;;  %v2410_v28 = vld [vmem:[%s2610_s11 + $0x3f4] ss:$8 sps:$4 sm:$0xff]   ;;  %v2405_v29 = vld [vmem:[%s2610_s11 + $0x1f0] ss:$8 sps:$4 sm:$0xff]  }
  0x73   : > { %1564 = vmatprep.subr.bf16.mxu0 %v2320_v30  ;;  %1445 = vmatprep.mubr.bf16.mxu1 %v2393_v50  ;;  %v2408_v30 = vld [vmem:[%s2610_s11 + $0x3f0] ss:$8 sps:$4 sm:$0xff]   ;;  %v2443_v50 = vld [vmem:[%s2610_s11 + $0x464] ss:$8 sps:$4 sm:$0xff]  }
  0x74   : > { %1551 = vmatprep.mubr.bf16.mxu0 %v2395_v51  ;;  %v2441_v51 = vld [vmem:[%s2610_s11 + $0x460] ss:$8 sps:$4 sm:$0xff]  }
  0x75   : > { %1459 = vmatpush1.bf16.msra.mxu1 %v2315_v31  ;;  %v2419_v31 = vld [vmem:[%s2610_s11 + $0x404] ss:$8 sps:$4 sm:$0xff]  }
  0x76   : > { %1565 = vmatpush1.bf16.msra.mxu0 %v2318_v32  ;;  %1460 = vmatprep.subr.bf16.mxu1 %v2323_v33  ;;  %v2411_v32 = vld [vmem:[%s2612_s12 + $0x8] ss:$36 sps:$4 sm:$0xff]   ;;  %v2414_v33 = vld [vmem:[%s2612_s12 + $0x18] ss:$36 sps:$4 sm:$0xff]  }
  0x77   : > { %1566 = vmatprep.subr.bf16.mxu0 %v2326_v34  ;;  %v2417_v34 = vld [vmem:[%s2610_s11 + $0x400] ss:$8 sps:$4 sm:$0xff]  }
  0x78   : > { %1446 = vmatmul.mubr.bf16.gmra.mrb[4].mxu1 %v2397_v52  ;;  %v2446_v52 = vld [vmem:[%s2610_s11 + $0x474] ss:$8 sps:$4 sm:$0xff]  }
  0x79   : > { %1461 = vmatpush1.bf16.msra.mxu1 %v2321_v35  ;;  %1552 = vmatmul.mubr.bf16.gmra.mrb[4].mxu0 %v2401_v54  ;;  %v2422_v35 = vld [vmem:[%s2610_s11 + $0x414] ss:$8 sps:$4 sm:$0xff]  }
  0x7a   : > { %1567 = vmatpush1.bf16.msra.mxu0 %v2324_v36  ;;  %1462 = vmatprep.subr.bf16.mxu1 %v2329_v37  ;;  %v2423_v36 = vld [vmem:[%s2612_s12 + $0x54] ss:$36 sps:$4 sm:$0xff]   ;;  %v2425_v37 = vld [vmem:[%s2612_s12 + $0x64] ss:$36 sps:$4 sm:$0xff]  }
  0x7b   : > { %1568 = vmatprep.subr.bf16.mxu0 %v2332_v38  ;;  %1488 = vmatprep.mubr.bf16.mxu1 %v2413_v62  ;;  %v2420_v38 = vld [vmem:[%s2610_s11 + $0x410] ss:$8 sps:$4 sm:$0xff]  }
  0x7c   : > { %1594 = vmatprep.mubr.bf16.mxu0 %v2416_v0  ;;  %v2447_v54 = vld [vmem:[%s2612_s12 + $0x20] ss:$36 sps:$4 sm:$0xff]  }
  0x7d   : > { %1463 = vmatpush1.bf16.msra.mxu1 %v2327_v39  ;;  %v2431_v39 = vld [vmem:[%s2610_s11 + $0x424] ss:$8 sps:$4 sm:$0xff]  }
  0x7e   : > { %1569 = vmatpush1.bf16.msra.mxu0 %v2330_v40  ;;  %1464 = vmatprep.subr.bf16.mxu1 %v2335_v41  ;;  %v2427_v40 = vld [vmem:[%s2612_s12 + $0x50] ss:$36 sps:$4 sm:$0xff]   ;;  %v2428_v41 = vld [vmem:[%s2612_s12 + $0x60] ss:$36 sps:$4 sm:$0xff]  }
  0x7f   : > { %1570 = vmatprep.subr.bf16.mxu0 %v2338_v42  ;;  %v2429_v42 = vld [vmem:[%s2610_s11 + $0x420] ss:$8 sps:$4 sm:$0xff]  }
  0x81   : > { %1465 = vmatpush1.bf16.msra.mxu1 %v2333_v43  ;;  %v2434_v43 = vld [vmem:[%s2610_s11 + $0x434] ss:$8 sps:$4 sm:$0xff]  }
  0x82   : > { %1571 = vmatpush1.bf16.msra.mxu0 %v2336_v44  ;;  %1466 = vmatprep.subr.bf16.mxu1 %v2341_v45  ;;  %v2432_v44 = vld [vmem:[%s2610_s11 + $0x430] ss:$8 sps:$4 sm:$0xff]   ;;  %v2437_v45 = vld [vmem:[%s2610_s11 + $0x444] ss:$8 sps:$4 sm:$0xff]  }
  0x83   : > { %1572 = vmatprep.subr.bf16.mxu0 %v2344_v46  ;;  %v2490_v46 = vmov 0  }
  0x85   : > { %1467 = vmatpush1.bf16.msra.mxu1 %v2339_v47  ;;  %v2435_v47 = vld [vmem:[%s2610_s11 + $0x440] ss:$8 sps:$4 sm:$0xff]  }
  0x86   : > { %1573 = vmatpush1.bf16.msra.mxu0 %v2342_v48  ;;  %1468 = vmatprep.subr.bf16.mxu1 %v2347_v49  ;;  %v2440_v48 = vld [vmem:[%s2610_s11 + $0x454] ss:$8 sps:$4 sm:$0xff]   ;;  %v2438_v49 = vld [vmem:[%s2610_s11 + $0x450] ss:$8 sps:$4 sm:$0xff]  }
  0x87   : > { %1574 = vmatprep.subr.bf16.mxu0 %v2350_v53  ;;  %v2444_v53 = vld [vmem:[%s2610_s11 + $0x470] ss:$8 sps:$4 sm:$0xff]  }
  0x89   : > { %1469 = vmatpush1.bf16.msra.mxu1 %v2345_v55  ;;  %v2448_v55 = vld [vmem:[%s2612_s12 + $0x68] ss:$36 sps:$4 sm:$0xff]  }
  0x8a   : > { %1575 = vmatpush1.bf16.msra.mxu0 %v2348_v56  ;;  %1470 = vmatprep.subr.bf16.mxu1 %v2353_v57 }
  0x8b   : > { %1576 = vmatprep.subr.bf16.mxu0 %v2356_v58 }
  0x8d   : > { %1471 = vmatpush1.bf16.msra.mxu1 %v2351_v59 }
  0x8e   : > { %1577 = vmatpush1.bf16.msra.mxu0 %v2354_v60  ;;  %1472 = vmatprep.subr.bf16.mxu1 %v2359_v61 }
  0x8f   : > { %1578 = vmatprep.subr.bf16.mxu0 %v2362_v63 }
  0x91   : > { %1473 = vmatpush1.bf16.msra.mxu1 %v2357_v1 }
  0x92   : > { %1579 = vmatpush1.bf16.msra.mxu0 %v2360_v2  ;;  %1474 = vmatprep.subr.bf16.mxu1 %v2365_v3 }
  0x93   : > { %1580 = vmatprep.subr.bf16.mxu0 %v2368_v4 }
  0x95   : > { %1475 = vmatpush1.bf16.msra.mxu1 %v2363_v5 }
  0x96   : > { %1581 = vmatpush1.bf16.msra.mxu0 %v2366_v6  ;;  %1476 = vmatprep.subr.bf16.mxu1 %v2371_v7 }
  0x97   : > { %1582 = vmatprep.subr.bf16.mxu0 %v2374_v8  ;;  %v419_v8 = vld [vmem:[#allocation2] sm:$0xff] }
  0x99   : > { %1477 = vmatpush1.bf16.msra.mxu1 %v2369_v9 }
  0x9a   : > { %1583 = vmatpush1.bf16.msra.mxu0 %v2372_v10  ;;  %1478 = vmatprep.subr.bf16.mxu1 %v2377_v11  ;;  %v423_v10 = vld [vmem:[#allocation2 + $0x20] sm:$0xff] }
  0x9b   : > { %1584 = vmatprep.subr.bf16.mxu0 %v2380_v12 }
  0x9d   : > { %1479 = vmatpush1.bf16.msra.mxu1 %v2375_v13 }
  0x9e   : > { %1585 = vmatpush1.bf16.msra.mxu0 %v2378_v14  ;;  %1480 = vmatprep.subr.bf16.mxu1 %v2383_v15  ;;  %v420_v14 = vld [vmem:[#allocation2 + $0x8] sm:$0xff] }
  0x9f   : > { %1586 = vmatprep.subr.bf16.mxu0 %v2386_v16  ;;  %v424_v16 = vld [vmem:[#allocation2 + $0x28] sm:$0xff] }
  0xa1   : > { %1481 = vmatpush1.bf16.msra.mxu1 %v2381_v17 }
  0xa2   : > { %1587 = vmatpush1.bf16.msra.mxu0 %v2384_v18  ;;  %1482 = vmatprep.subr.bf16.mxu1 %v2389_v19 }
  0xa3   : > { %1588 = vmatprep.subr.bf16.mxu0 %v2392_v20  ;;  %v421_v20 = vld [vmem:[#allocation2 + $0x10] sm:$0xff] }
  0xa5   : > { %1483 = vmatpush1.bf16.msra.mxu1 %v2387_v21 }
  0xa6   : > { %1589 = vmatpush1.bf16.msra.mxu0 %v2390_v22  ;;  %1484 = vmatprep.subr.bf16.mxu1 %v2400_v23  ;;  %v425_v22 = vld [vmem:[#allocation2 + $0x30] sm:$0xff] }
  0xa7   : > { %1590 = vmatprep.subr.bf16.mxu0 %v2404_v24 }
  0xa9   : > { %1485 = vmatpush1.bf16.msra.mxu1 %v2398_v25 }
  0xaa   : > { %1591 = vmatpush1.bf16.msra.mxu0 %v2402_v26  ;;  %1486 = vmatprep.subr.bf16.mxu1 %v2407_v27 }
  0xab   : > { %1592 = vmatprep.subr.bf16.mxu0 %v2410_v28  ;;  %v422_v28 = vld [vmem:[#allocation2 + $0x18] sm:$0xff] }
  0xad   : > { %1487 = vmatpush1.bf16.msra.mxu1 %v2405_v29 }
  0xae   : > { %1593 = vmatpush1.bf16.msra.mxu0 %v2408_v30  ;;  %2115 = vmatprep.subr.bf16.mxu1 %v2419_v31  ;;  %v426_v30 = vld [vmem:[#allocation2 + $0x38] sm:$0xff] }
  0xaf   : > { %1615 = vmatprep.subr.bf16.mxu0 %v2419_v31 }
  0xb0   : > { %1489 = vmatmul.mubr.bf16.vlgmr.msra.gmra.mrb[0].mxu1 %v2411_v32 }
  0xb1   : > { %1595 = vmatmul.mubr.bf16.vlgmr.msra.gmra.mrb[0].mxu0 %v2414_v33  ;;  %2123 = vmatpush1.bf16.msra.mxu1 %v2417_v34 }
  0xb2   : > { %1616 = vmatpush1.bf16.msra.mxu0 %v2417_v34  ;;  %2116 = vmatprep.subr.bf16.mxu1 %v2422_v35 }
  0xb3   : > { %1617 = vmatprep.subr.bf16.mxu0 %v2422_v35  ;;  %1498 = vmatprep.mubr.bf16.mxu1 %v2423_v36 }
  0xb4   : > { %1604 = vmatprep.mubr.bf16.mxu0 %v2425_v37 }
  0xb5   : > { %2124 = vmatpush1.bf16.msra.mxu1 %v2420_v38 }
  0xb6   : > { %1618 = vmatpush1.bf16.msra.mxu0 %v2420_v38  ;;  %2117 = vmatprep.subr.bf16.mxu1 %v2431_v39 }
  0xb7   : > { %1619 = vmatprep.subr.bf16.mxu0 %v2431_v39 }
  0xb8   : > { %1499 = vmatmul.mubr.bf16.gmra.mrb[4].mxu1 %v2427_v40  ;;  %v1698_v40 = vlaneseq (!%p2100_p11) }
  0xb9   : > { %1605 = vmatmul.mubr.bf16.gmra.mrb[4].mxu0 %v2428_v41  ;;  %2125 = vmatpush1.bf16.msra.mxu1 %v2429_v42 }
  0xba   : > { %1620 = vmatpush1.bf16.msra.mxu0 %v2429_v42  ;;  %2118 = vmatprep.subr.bf16.mxu1 %v2434_v43  ;;  %v1699_v41 = vshrl.u32 (!%p2100_p11), %v1698_v40, 7  ;;  %v1716_v42 = vld [vmem:[%s2823_s3] sm:$0xff] (!%p2100_p11) }
  0xbb   : > { %1621 = vmatprep.subr.bf16.mxu0 %v2434_v43  ;;  %1647 = vmatprep.mubr.bf16.mxu0 %v2490_v46 }
  0xbc   : > { %1657 = vmatprep.mubr.bf16.mxu1 %v2490_v46 }
  0xbd   : > { %2126 = vmatpush1.bf16.msra.mxu1 %v2432_v44 }
  0xbe   : > { %1622 = vmatpush1.bf16.msra.mxu0 %v2432_v44  ;;  %2119 = vmatprep.subr.bf16.mxu1 %v2437_v45  ;;  %v1696_v44 = vld [vmem:[%s2822_s2] sm:$0x3] (!%p2100_p11) }
  0xbf   : > { %1623 = vmatprep.subr.bf16.mxu0 %v2437_v45  ;;  %v1717_v45 = vld [vmem:[%s2823_s3 + $0x8] sm:$0xff] (!%p2100_p11) }
  0xc1   : > { %2127 = vmatpush1.bf16.msra.mxu1 %v2435_v47 }
  0xc2   : > { %1624 = vmatpush1.bf16.msra.mxu0 %v2435_v47  ;;  %2120 = vmatprep.subr.bf16.mxu1 %v2440_v48  ;;  %v1700_v47 = vsub.s32 (!%p2100_p11), 0, %v1699_v41 }
  0xc3   : > { %1625 = vmatprep.subr.bf16.mxu0 %v2440_v48  ;;  %v1704_v48 = vsub.s32 (!%p2100_p11), 1, %v1699_v41 }
  0xc5   : > { %2128 = vmatpush1.bf16.msra.mxu1 %v2438_v49 }
  0xc6   : > { %1626 = vmatpush1.bf16.msra.mxu0 %v2438_v49  ;;  %2121 = vmatprep.subr.bf16.mxu1 %v2443_v50  ;;  %v1718_v49 = vld [vmem:[%s2823_s3 + $0x10] sm:$0xff] (!%p2100_p11) }
  0xc7   : > { %1627 = vmatprep.subr.bf16.mxu0 %v2443_v50  ;;  %v1719_v50 = vld [vmem:[%s2823_s3 + $0x18] sm:$0xff] (!%p2100_p11) }
  0xc9   : > { %2129 = vmatpush1.bf16.msra.mxu1 %v2441_v51 }
  0xca   : > { %1628 = vmatpush1.bf16.msra.mxu0 %v2441_v51  ;;  %2122 = vmatprep.subr.bf16.mxu1 %v2446_v52  ;;  %v1720_v51 = vunpack.c.l.bf16 (!%p2100_p11), %v1716_v42 }
  0xcb   : > { %1629 = vmatprep.subr.bf16.mxu0 %v2446_v52  ;;  %v1721_v52 = vunpack.c.h.bf16 (!%p2100_p11), %v1716_v42 }
  0xcd   : > { %2130 = vmatpush1.bf16.msra.mxu1 %v2444_v53 }
  0xce   : > { %1630 = vmatpush1.bf16.msra.mxu0 %v2444_v53 }
  0xd0   : > { %1658 = vmatmul.mubr.bf16.vlgmr.msra.gmra.mrb[8].mxu1 %v2448_v55 }
  0xd1   : > { %1648 = vmatmul.mubr.bf16.vlgmr.msra.gmra.mrb[0].mxu0 %v2447_v54 }
 0x183   : > { %v1490_v56 = vpop.f32.mrb[0].mxu1 }
 0x184   : > { %v1492_v57 = vpop.f32.mrb[1].mxu1 }
 0x185   : > { %v1494_v58 = vpop.f32.mrb[2].mxu1 }
 0x186   : > { %v1496_v59 = vpop.f32.mrb[3].mxu1 }
 0x18b   : > { %v1500_v60 = vpop.f32.mrb[4].mxu1 }
 0x18c   : > { %v1606_v61 = vpop.f32.mrb[4].mxu0  ;;  %v1502_v63 = vpop.f32.mrb[5].mxu1 }
 0x18d   : > { %v2135_v62 = vadd.f32 %v1606_v61, %v1500_v60  ;;  %v1608_v0 = vpop.f32.mrb[5].mxu0  ;;  %v1504_v2 = vpop.f32.mrb[6].mxu1 }
 0x18e   : > { %v2137_v1 = vadd.f32 %v1608_v0, %v1502_v63  ;;  %v1610_v3 = vpop.f32.mrb[6].mxu0  ;;  %v1506_v5 = vpop.f32.mrb[7].mxu1  ;;  %v1724_v63 = vunpack.c.l.bf16 (!%p2100_p11), %v1718_v49  ;;  %v1725_v0 = vunpack.c.h.bf16 (!%p2100_p11), %v1718_v49 }
 0x18f   : > { %v2139_v4 = vadd.f32 %v1610_v3, %v1504_v2  ;;  %v1612_v6 = vpop.f32.mrb[7].mxu0  ;;  %v1727_v2 = vunpack.c.h.bf16 (!%p2100_p11), %v1719_v50 }
 0x190   : > { %v2141_v7 = vadd.f32 %v1612_v6, %v1506_v5 }
 0x1a3   : > { %v1659_v11 = vpop.f32.mrb[8].mxu1 }
 0x1a4   : > { %v1649_v9 = vpop.f32.mrb[0].mxu0  ;;  %v2136_v13 = vadd.f32 %v2135_v62, %v1659_v11  ;;  %v1661_v17 = vpop.f32.mrb[9].mxu1 }
 0x1a5   : > { %v2131_v12 = vadd.f32 %v1649_v9, %v1490_v56  ;;  %v1651_v15 = vpop.f32.mrb[1].mxu0  ;;  %v2138_v19 = vadd.f32 %v2137_v1, %v1661_v17  ;;  %v1663_v23 = vpop.f32.mrb[10].mxu1  ;;  %v1701_v56 = vrot.slane (!%p2100_p11), %v1696_v44, %v1700_v47  ;;  %v1726_v1 = vunpack.c.l.bf16 (!%p2100_p11), %v1719_v50 }
 0x1a6   : > { %v2132_v18 = vadd.f32 %v1651_v15, %v1492_v57  ;;  %v1653_v21 = vpop.f32.mrb[2].mxu0  ;;  %v1672_v25 = vadd.f32 %v2136_v13, %v423_v10  ;;  %v2140_v27 = vadd.f32 %v2139_v4, %v1663_v23  ;;  %v1665_v31 = vpop.f32.mrb[11].mxu1  ;;  %1687 = sbr.rel (%p2100_p11) target bundleno = 445 (0x1bd), region = 70  ;;  %v1705_v57 = vrot.slane (!%p2100_p11), %v1696_v44, %v1704_v48 }
 0x1a7   : > { %v1668_v24 = vadd.f32 %v2131_v12, %v419_v8  ;;  %v2133_v26 = vadd.f32 %v1653_v21, %v1494_v58  ;;  %v1655_v29 = vpop.f32.mrb[3].mxu0  ;;  %v1673_v33 = vadd.f32 %v2138_v19, %v424_v16  ;;  %v2142_v35 = vadd.f32 %v2141_v7, %v1665_v31 }
 0x1a8   : > { %v1669_v32 = vadd.f32 %v2132_v18, %v420_v14  ;;  %v2134_v34 = vadd.f32 %v1655_v29, %v1496_v59  ;;  %1680 = vst [vmem:[#allocation2 + $0x20] sm:$0xff] %v1672_v25  ;;  %v1674_v37 = vadd.f32 %v2140_v27, %v425_v22  ;;  %v1722_v58 = vunpack.c.l.bf16 (!%p2100_p11), %v1717_v45 }
 0x1a9   : > { %1676 = vst [vmem:[#allocation2] sm:$0xff] %v1668_v24  ;;  %v1670_v36 = vadd.f32 %v2133_v26, %v421_v20  ;;  %1681 = vst [vmem:[#allocation2 + $0x28] sm:$0xff] %v1673_v33  ;;  %v1675_v39 = vadd.f32 %v2142_v35, %v426_v30  ;;  %v1723_v59 = vunpack.c.h.bf16 (!%p2100_p11), %v1717_v45 }
 0x1aa   : > { %1677 = vst [vmem:[#allocation2 + $0x8] sm:$0xff] %v1669_v32  ;;  %v1671_v38 = vadd.f32 %v2134_v34, %v422_v28  ;;  %1682 = vst [vmem:[#allocation2 + $0x30] sm:$0xff] %v1674_v37 }
 0x1ab   : > { %1678 = vst [vmem:[#allocation2 + $0x10] sm:$0xff] %v1670_v36  ;;  %1683 = vst [vmem:[#allocation2 + $0x38] sm:$0xff] %v1675_v39 }
 0x1ac   : > { %1679 = vst [vmem:[#allocation2 + $0x18] sm:$0xff] %v1671_v38 }
 0x1af   : > { %v1692_v55 = vld [vmem:[#allocation2 + $0x20] sm:$0xff] }
 0x1b0   : > { %v1688_v43 = vld [vmem:[#allocation2] sm:$0xff]  ;;  %v1693_v60 = vld [vmem:[#allocation2 + $0x28] sm:$0xff]  ;;  %v1712_v7 = vadd.f32 %v1701_v56, %v1692_v55 }
 0x1b1   : > { %v1689_v46 = vld [vmem:[#allocation2 + $0x8] sm:$0xff]  ;;  %v1694_v61 = vld [vmem:[#allocation2 + $0x30] sm:$0xff]  ;;  %v1708_v3 = vadd.f32 %v1701_v56, %v1688_v43  ;;  %v1713_v8 = vadd.f32 %v1705_v57, %v1693_v60 }
 0x1b2   : > { %v1690_v53 = vld [vmem:[#allocation2 + $0x10] sm:$0xff]  ;;  %v1695_v62 = vld [vmem:[#allocation2 + $0x38] sm:$0xff]  ;;  %v1709_v4 = vadd.f32 %v1705_v57, %v1689_v46  ;;  %v1714_v9 = vadd.f32 %v1701_v56, %v1694_v61  ;;  %v1732_v15 = vadd.f32 %v1724_v63, %v1712_v7 }
 0x1b3   : > { %v1691_v54 = vld [vmem:[#allocation2 + $0x18] sm:$0xff]  ;;  %v1710_v5 = vadd.f32 %v1701_v56, %v1690_v53  ;;  %v1715_v10 = vadd.f32 %v1705_v57, %v1695_v62  ;;  %v1728_v11 = vadd.f32 %v1720_v51, %v1708_v3  ;;  %v1733_v16 = vadd.f32 %v1725_v0, %v1713_v8 }
 0x1b4   : > { %v1711_v6 = vadd.f32 %v1705_v57, %v1691_v54  ;;  %v1729_v12 = vadd.f32 %v1721_v52, %v1709_v4  ;;  %v1734_v17 = vadd.f32 %v1726_v1, %v1714_v9  ;;  %v1740_v23 = vmax.f32 %v1732_v15, 0.0 }
 0x1b5   : > { %v1730_v13 = vadd.f32 %v1722_v58, %v1710_v5  ;;  %v1735_v18 = vadd.f32 %v1727_v2, %v1715_v10  ;;  %v1736_v19 = vmax.f32 %v1728_v11, 0.0  ;;  %v1741_v24 = vmax.f32 %v1733_v16, 0.0 }
 0x1b6   : > { %v1731_v14 = vadd.f32 %v1723_v59, %v1711_v6  ;;  %v1737_v20 = vmax.f32 %v1729_v12, 0.0  ;;  %v1742_v25 = vmax.f32 %v1734_v17, 0.0 }
 0x1b7   : > { %v1738_v21 = vmax.f32 %v1730_v13, 0.0  ;;  %v1743_v26 = vmax.f32 %v1735_v18, 0.0  ;;  %v2113_v29 = vpack.c.bf16 %v1741_v24, %v1740_v23 }
 0x1b8   : > { %v1739_v22 = vmax.f32 %v1731_v14, 0.0  ;;  %v2111_v27 = vpack.c.bf16 %v1737_v20, %v1736_v19 }
 0x1b9   : > { %v2114_v30 = vpack.c.bf16 %v1743_v26, %v1742_v25  ;;  %1770 = vst [vmem:[%s2824_s4 + $0x10] sm:$0xff] %v2113_v29 }
 0x1ba   : > { %v2112_v28 = vpack.c.bf16 %v1739_v22, %v1738_v21  ;;  %1768 = vst [vmem:[%s2824_s4] sm:$0xff] %v2111_v27 }
 0x1bb   : > { %1771 = vst [vmem:[%s2824_s4 + $0x18] sm:$0xff] %v2114_v30 }
 0x1bc   : > { %1769 = vst [vmem:[%s2824_s4 + $0x8] sm:$0xff] %v2112_v28 }
 0x1bd PF: > { %s14_s19 = sadd.s32 1, %s2487_s19   ;;  %s2825_s15 = smov %s2475_s16 }
 0x1be   : > { %p11_p12 = scmp.ge.s32.totalorder %s14_s19, 4   ;;  %s2826_s16 = smov %s2551_s23 }
 0x1bf   : > { %s2827_s17 = smov %s2483_s18  ;;  %s2828_s18 = smov %s2830_s20 }
 0x1c0   :  { %13 = sbr.rel (!%p11_p12) target bundleno = 3 (0x3), region = 120 }

// kernel: _lambda_.22
= control target key start
LH: loop header
LB: loop body
LE: loop exit
PB: predicated region body
PF: predicated region fallthrough
CT: control target
= control target key end

     0   :  { %s3682_s12 = smov 0   ;;  %s3684_s13 = smov 0   ;;  %s4065_s0 = inlined_call_operand.vmem [shape: bf16[16,2304], index: 0, kind: input, shape index: {}]   ;;  %s4066_s1 = inlined_call_operand.vmem [shape: bf16[2304,512], index: 1, kind: input, shape index: {}]   ;;  %s4067_s2 = inlined_call_operand.vmem [shape: f32[1,512], index: 2, kind: input, shape index: {}]   ;;  %s4068_s3 = inlined_call_operand.vmem [shape: bf16[16,512], index: 3, kind: output, shape index: {}]  }
   0x1   :  { %s3686_s14 = smov 0   ;;  %s3688_s15 = smov 0  }
   0x2   :  { %s3690_s16 = smov 0  }
   0x3 LB: > { %s25_s17 = sadd.s32 1, %s3654_s15  ;;  %p48_p1 = scmp.ne.s32.totalorder %s3646_s13, %s3642_s12  ;;  %s3658_s16 = sphi %s3690_s16, %s13_s16   ;;  %s3654_s15 = sphi %s3688_s15, %s4072_s15   ;;  %s3650_s14 = sphi %s3686_s14, %s4071_s14   ;;  %s3646_s13 = sphi %s3684_s13, %s4070_s13   ;;  %s3642_s12 = sphi %s3682_s12, %s4069_s12  }
   0x4   : > { %p26_p0 = scmp.ge.s32.totalorder %s25_s17, 2  ;;  %p49_p2 = scmp.eq.s32.totalorder %s3658_s16, 0 }
   0x5   : > { %s41_s19 = sadd.s32 1, %s3646_s13  ;;  %p2777_p5 = scmp.ge.s32.totalorder %s3658_s16, 2 }
   0x6   : > { %s4074_s17 = smov (%p26_p0, %s25_s17), 0  ;;  %p50_p3 = por %p49_p2, %p48_p1 }
   0x7   : > { %s37_s18 = ssub.s32 %s3654_s15, %s4074_s17  ;;  %164 = sbr.rel (%p2777_p5) target bundleno = 24 (0x18), region = 20 }
   0x8   : > { %p39_p4 = scmp.eq.s32.totalorder %s37_s18, 0 }
   0xa   : > { %s3717_s20 = scalar_select %p39_p4, %s3646_s13, %s41_s19  }
   0xe   : > { %167 = sbr.rel (!%p50_p3) target bundleno = 24 (0x18), region = 24  ;;  %s169_s21 = sand.u32 (%p50_p3), 1, %s3646_s13  }
   0xf   : > { %s3093_s22 = smul.u32 (%p50_p3), 36, %s3654_s15 }
  0x10   : > { %s3131_s23 = smul.u32 (%p50_p3), 72, %s169_s21 }
  0x11   : > { %s177_s26 = scalar_lea.vmem (%p50_p3), %s4065_s0, %s3093_s22 }
  0x12   : > { %v192_v0 = vld [vmem:[%s177_s26] sm:$0xff] (%p50_p3)  ;;  %v194_v1 = vld [vmem:[%s177_s26 + $0x8] sm:$0xff] (%p50_p3)  ;;  %v196_v2 = vld [vmem:[%s177_s26 + $0x10] sm:$0xff] (%p50_p3)  ;;  %s171_s27 = scalar_lea.vmem (%p50_p3), [#allocation3], %s3131_s23 }
  0x13   : > { %193 = vst [vmem:[%s171_s27] sm:$0xff] (%p50_p3), %v192_v0  ;;  %195 = vst [vmem:[%s171_s27 + $0x8] sm:$0xff] (%p50_p3), %v194_v1  ;;  %v198_v3 = vld [vmem:[%s177_s26 + $0x18] sm:$0xff] (%p50_p3)  ;;  %v200_v4 = vld [vmem:[%s177_s26 + $0x48] sm:$0xff] (%p50_p3) }
  0x14   : > { %197 = vst [vmem:[%s171_s27 + $0x10] sm:$0xff] (%p50_p3), %v196_v2  ;;  %v202_v5 = vld [vmem:[%s177_s26 + $0x50] sm:$0xff] (%p50_p3)  ;;  %199 = vst [vmem:[%s171_s27 + $0x18] sm:$0xff] (%p50_p3), %v198_v3  ;;  %v204_v6 = vld [vmem:[%s177_s26 + $0x58] sm:$0xff] (%p50_p3) }
  0x15   : > { %201 = vst [vmem:[%s171_s27 + $0x24] sm:$0xff] %v200_v4  ;;  %203 = vst [vmem:[%s171_s27 + $0x2c] sm:$0xff] %v202_v5  ;;  %v206_v7 = vld [vmem:[%s177_s26 + $0x60] sm:$0xff]  ;;  %v2781_v9 = vld [vmem:[%s177_s26 + $0x68] sm:$0xf] }
  0x16   : > { %v2779_v8 = vld [vmem:[%s177_s26 + $0x20] sm:$0xf]  ;;  %205 = vst [vmem:[%s171_s27 + $0x34] sm:$0xff] %v204_v6  ;;  %207 = vst [vmem:[%s171_s27 + $0x3c] sm:$0xff] %v206_v7 }
  0x17   : > { %2780 = vst [vmem:[%s171_s27 + $0x20] sm:$0xf] %v2779_v8  ;;  %2782 = vst [vmem:[%s171_s27 + $0x44] sm:$0xf] %v2781_v9 }
  0x18 PF: > { %p2783_p6 = scmp.ge.s32.totalorder %s3658_s16, 1  ;;  %p238_p7 = scmp.lt.s32.totalorder %s3658_s16, 3 }
  0x1a   : > { %p239_p8 = pnand %p2783_p6, %p238_p7 }
  0x1b   : > { %s245_s28 = sand.u32 (!%p239_p8), 1, %s3642_s12   ;;  %s289_s29 = smul.u32 (!%p239_p8), 144, %s3650_s14 }
  0x1c   : > { %242 = sbr.rel (%p239_p8) target bundleno = 563 (0x233), region = 54  ;;  %p2786_p10 = scmp.ne.s32.totalorder (!%p239_p8), %s3650_s14, 0 }
  0x1d   : > { %s3132_s30 = smul.u32 (!%p239_p8), 72, %s245_s28  ;;  %p291_p9 = scmp.lt.s32.totalorder (!%p239_p8), %s289_s29, 287 }
  0x1f   : > { %s3734_s8 = scalar_lea.vmem (!%p239_p8), [#allocation3], %s3132_s30 }
  0x23   : > { %s4076_s29 = smov (!%p291_p9, %s289_s29), 287  ;;  %322 = sbr.rel (%p2786_p10) target bundleno = 42 (0x2a), region = 62 }
  0x24   : > { %s3094_s4 = sshll.u32 %s4076_s29, 4  ;;  %v3660_v10 = vmov (!%p2786_p10), 0.0  }
  0x25   : > { %s3732_s7 = scalar_lea.vmem %s4066_s1, %s3094_s4  ;;  %323 = vst [vmem:[#allocation2] sm:$0xff] (!%p2786_p10), %v3660_v10  ;;  %324 = vst [vmem:[#allocation2 + $0x8] sm:$0xff] (!%p2786_p10), %v3660_v10 }
  0x26   : > { %325 = vst [vmem:[#allocation2 + $0x10] sm:$0xff] (!%p2786_p10), %v3660_v10  ;;  %326 = vst [vmem:[#allocation2 + $0x18] sm:$0xff] (!%p2786_p10), %v3660_v10 }
  0x27   : > { %327 = vst [vmem:[#allocation2 + $0x20] sm:$0xff] (!%p2786_p10), %v3660_v10  ;;  %328 = vst [vmem:[#allocation2 + $0x28] sm:$0xff] (!%p2786_p10), %v3660_v10 }
  0x28   : > { %329 = vst [vmem:[#allocation2 + $0x30] sm:$0xff] (!%p2786_p10), %v3660_v10  ;;  %330 = vst [vmem:[#allocation2 + $0x38] sm:$0xff] (!%p2786_p10), %v3660_v10 }
  0x2a PF: > { %v3175_v11 = vld [vmem:[%s3732_s7 + $0x4] ss:$16 sps:$4 sm:$0xff]   ;;  %v3177_v12 = vld [vmem:[%s3732_s7 + $0xc] ss:$16 sps:$4 sm:$0xff]   ;;  %v3179_v13 = vld [vmem:[%s3732_s7] ss:$16 sps:$4 sm:$0xff]  }
  0x2b   : > { %2123 = vmatprep.subr.bf16.mxu0 %v3175_v11  ;;  %v3180_v14 = vld [vmem:[%s3732_s7 + $0x8] ss:$16 sps:$4 sm:$0xff]   ;;  %2338 = vmatprep.subr.bf16.mxu1 %v3177_v12  ;;  %v3181_v15 = vld [vmem:[%s3732_s7 + $0x24] ss:$16 sps:$4 sm:$0xff]   ;;  %v3183_v16 = vld [vmem:[%s3732_s7 + $0x2c] ss:$16 sps:$4 sm:$0xff]  }
  0x2c   : > { %2124 = vmatpush1.bf16.msra.mxu0 %v3179_v13  ;;  %2339 = vmatpush1.bf16.msra.mxu1 %v3180_v14  ;;  %v3185_v17 = vld [vmem:[%s3732_s7 + $0x20] ss:$16 sps:$4 sm:$0xff]   ;;  %v3186_v18 = vld [vmem:[%s3732_s7 + $0x28] ss:$16 sps:$4 sm:$0xff]   ;;  %v3187_v19 = vld [vmem:[%s3732_s7 + $0x44] ss:$16 sps:$4 sm:$0xff]  }
  0x2d   : > { %2125 = vmatprep.subr.bf16.mxu0 %v3181_v15  ;;  %2340 = vmatprep.subr.bf16.mxu1 %v3183_v16  ;;  %v3189_v20 = vld [vmem:[%s3732_s7 + $0x4c] ss:$16 sps:$4 sm:$0xff]   ;;  %v3191_v21 = vld [vmem:[%s3732_s7 + $0x40] ss:$16 sps:$4 sm:$0xff]   ;;  %v3192_v22 = vld [vmem:[%s3732_s7 + $0x48] ss:$16 sps:$4 sm:$0xff]  }
  0x2e   : > { %v3193_v23 = vld [vmem:[%s3732_s7 + $0x64] ss:$16 sps:$4 sm:$0xff]   ;;  %v3195_v24 = vld [vmem:[%s3732_s7 + $0x6c] ss:$16 sps:$4 sm:$0xff]   ;;  %v3197_v25 = vld [vmem:[%s3732_s7 + $0x60] ss:$16 sps:$4 sm:$0xff]  }
  0x2f   : > { %v3198_v26 = vld [vmem:[%s3732_s7 + $0x68] ss:$16 sps:$4 sm:$0xff]   ;;  %v3199_v27 = vld [vmem:[%s3732_s7 + $0x84] ss:$16 sps:$4 sm:$0xff]   ;;  %v3201_v28 = vld [vmem:[%s3732_s7 + $0x8c] ss:$16 sps:$4 sm:$0xff]  }
  0x30   : > { %2126 = vmatpush1.bf16.msra.mxu0 %v3185_v17  ;;  %2341 = vmatpush1.bf16.msra.mxu1 %v3186_v18  ;;  %v3203_v29 = vld [vmem:[%s3732_s7 + $0x80] ss:$16 sps:$4 sm:$0xff]   ;;  %v3204_v30 = vld [vmem:[%s3732_s7 + $0x88] ss:$16 sps:$4 sm:$0xff]   ;;  %v3205_v31 = vld [vmem:[%s3732_s7 + $0xa4] ss:$16 sps:$4 sm:$0xff]  }
  0x31   : > { %2127 = vmatprep.subr.bf16.mxu0 %v3187_v19  ;;  %2342 = vmatprep.subr.bf16.mxu1 %v3189_v20  ;;  %v3207_v32 = vld [vmem:[%s3732_s7 + $0xac] ss:$16 sps:$4 sm:$0xff]   ;;  %v3209_v33 = vld [vmem:[%s3732_s7 + $0xa0] ss:$16 sps:$4 sm:$0xff]   ;;  %v3210_v34 = vld [vmem:[%s3732_s7 + $0xa8] ss:$16 sps:$4 sm:$0xff]  }
  0x32   : > { %v3211_v35 = vld [vmem:[%s3732_s7 + $0xc4] ss:$16 sps:$4 sm:$0xff]   ;;  %v3213_v36 = vld [vmem:[%s3732_s7 + $0xcc] ss:$16 sps:$4 sm:$0xff]   ;;  %v3215_v37 = vld [vmem:[%s3732_s7 + $0xc0] ss:$16 sps:$4 sm:$0xff]  }
  0x33   : > { %v3216_v38 = vld [vmem:[%s3732_s7 + $0xc8] ss:$16 sps:$4 sm:$0xff]   ;;  %v3217_v39 = vld [vmem:[%s3732_s7 + $0xe4] ss:$16 sps:$4 sm:$0xff]   ;;  %v3219_v40 = vld [vmem:[%s3732_s7 + $0xec] ss:$16 sps:$4 sm:$0xff]  }
  0x34   : > { %2128 = vmatpush1.bf16.msra.mxu0 %v3191_v21  ;;  %2343 = vmatpush1.bf16.msra.mxu1 %v3192_v22  ;;  %v3221_v41 = vld [vmem:[%s3732_s7 + $0xe0] ss:$16 sps:$4 sm:$0xff]   ;;  %v3222_v42 = vld [vmem:[%s3732_s7 + $0xe8] ss:$16 sps:$4 sm:$0xff]   ;;  %v3223_v43 = vld [vmem:[%s3732_s7 + $0x104] ss:$16 sps:$4 sm:$0xff]  }
  0x35   : > { %2129 = vmatprep.subr.bf16.mxu0 %v3193_v23  ;;  %2344 = vmatprep.subr.bf16.mxu1 %v3195_v24  ;;  %v3225_v44 = vld [vmem:[%s3732_s7 + $0x10c] ss:$16 sps:$4 sm:$0xff]   ;;  %v3227_v45 = vld [vmem:[%s3732_s7 + $0x100] ss:$16 sps:$4 sm:$0xff]   ;;  %v3228_v46 = vld [vmem:[%s3732_s7 + $0x108] ss:$16 sps:$4 sm:$0xff]  }
  0x36   : > { %v3229_v47 = vld [vmem:[%s3732_s7 + $0x124] ss:$16 sps:$4 sm:$0xff]   ;;  %v3231_v48 = vld [vmem:[%s3732_s7 + $0x12c] ss:$16 sps:$4 sm:$0xff]   ;;  %v3233_v49 = vld [vmem:[%s3732_s7 + $0x120] ss:$16 sps:$4 sm:$0xff]  }
  0x37   : > { %v3234_v50 = vld [vmem:[%s3732_s7 + $0x128] ss:$16 sps:$4 sm:$0xff]   ;;  %v3235_v51 = vld [vmem:[%s3732_s7 + $0x144] ss:$16 sps:$4 sm:$0xff]   ;;  %v3237_v52 = vld [vmem:[%s3732_s7 + $0x14c] ss:$16 sps:$4 sm:$0xff]  }
  0x38   : > { %2130 = vmatpush1.bf16.msra.mxu0 %v3197_v25  ;;  %2345 = vmatpush1.bf16.msra.mxu1 %v3198_v26  ;;  %v3239_v53 = vld [vmem:[%s3732_s7 + $0x140] ss:$16 sps:$4 sm:$0xff]   ;;  %v3240_v54 = vld [vmem:[%s3732_s7 + $0x148] ss:$16 sps:$4 sm:$0xff]   ;;  %v3241_v55 = vld [vmem:[%s3732_s7 + $0x164] ss:$16 sps:$4 sm:$0xff]  }
  0x39   : > { %2131 = vmatprep.subr.bf16.mxu0 %v3199_v27  ;;  %2346 = vmatprep.subr.bf16.mxu1 %v3201_v28  ;;  %v3243_v56 = vld [vmem:[%s3732_s7 + $0x16c] ss:$16 sps:$4 sm:$0xff]   ;;  %v3245_v57 = vld [vmem:[%s3732_s7 + $0x160] ss:$16 sps:$4 sm:$0xff]   ;;  %v3246_v58 = vld [vmem:[%s3732_s7 + $0x168] ss:$16 sps:$4 sm:$0xff]  }
  0x3a   : > { %v3273_v59 = vld [vmem:[%s3734_s8 + $0x4] ss:$36 sps:$4 sm:$0xff]   ;;  %p3084_p11 = scmp.ne.s32.totalorder %s3650_s14, 1 }
  0x3b   : > { %v3247_v60 = vld [vmem:[%s3732_s7 + $0x184] ss:$16 sps:$4 sm:$0xff]   ;;  %v3249_v61 = vld [vmem:[%s3732_s7 + $0x18c] ss:$16 sps:$4 sm:$0xff]   ;;  %2155 = vmatprep.mubr.bf16.mxu0 %v3273_v59  ;;  %2370 = vmatprep.mubr.bf16.mxu1 %v3273_v59  ;;  %v3251_v62 = vld [vmem:[%s3732_s7 + $0x180] ss:$16 sps:$4 sm:$0xff]  }
  0x3c   : > { %2132 = vmatpush1.bf16.msra.mxu0 %v3203_v29  ;;  %2347 = vmatpush1.bf16.msra.mxu1 %v3204_v30  ;;  %v3252_v63 = vld [vmem:[%s3732_s7 + $0x188] ss:$16 sps:$4 sm:$0xff]   ;;  %v3253_v0 = vld [vmem:[%s3732_s7 + $0x1a4] ss:$16 sps:$4 sm:$0xff]   ;;  %v3255_v1 = vld [vmem:[%s3732_s7 + $0x1ac] ss:$16 sps:$4 sm:$0xff]  }
  0x3d   : > { %2133 = vmatprep.subr.bf16.mxu0 %v3205_v31  ;;  %2348 = vmatprep.subr.bf16.mxu1 %v3207_v32  ;;  %v3257_v2 = vld [vmem:[%s3732_s7 + $0x1a0] ss:$16 sps:$4 sm:$0xff]   ;;  %v3258_v3 = vld [vmem:[%s3732_s7 + $0x1a8] ss:$16 sps:$4 sm:$0xff]   ;;  %v3259_v4 = vld [vmem:[%s3732_s7 + $0x1c4] ss:$16 sps:$4 sm:$0xff]  }
  0x3e   : > { %v3261_v5 = vld [vmem:[%s3732_s7 + $0x1cc] ss:$16 sps:$4 sm:$0xff]   ;;  %v3263_v6 = vld [vmem:[%s3732_s7 + $0x1c0] ss:$16 sps:$4 sm:$0xff]   ;;  %v3264_v7 = vld [vmem:[%s3732_s7 + $0x1c8] ss:$16 sps:$4 sm:$0xff]  }
  0x3f   : > { %v3265_v8 = vld [vmem:[%s3732_s7 + $0x1e4] ss:$16 sps:$4 sm:$0xff]   ;;  %v3267_v9 = vld [vmem:[%s3732_s7 + $0x1ec] ss:$16 sps:$4 sm:$0xff]   ;;  %v3269_v10 = vld [vmem:[%s3732_s7 + $0x1e0] ss:$16 sps:$4 sm:$0xff]  }
  0x40   : > { %2134 = vmatpush1.bf16.msra.mxu0 %v3209_v33  ;;  %2349 = vmatpush1.bf16.msra.mxu1 %v3210_v34  ;;  %v3270_v11 = vld [vmem:[%s3732_s7 + $0x1e8] ss:$16 sps:$4 sm:$0xff]   ;;  %v3276_v12 = vld [vmem:[%s3732_s7 + $0x204] ss:$16 sps:$4 sm:$0xff]   ;;  %v3279_v13 = vld [vmem:[%s3732_s7 + $0x20c] ss:$16 sps:$4 sm:$0xff]  }
  0x41   : > { %2135 = vmatprep.subr.bf16.mxu0 %v3211_v35  ;;  %2350 = vmatprep.subr.bf16.mxu1 %v3213_v36  ;;  %v3271_v14 = vld [vmem:[%s3734_s8] ss:$36 sps:$4 sm:$0xff]  }
  0x42   : > { %v3274_v15 = vld [vmem:[%s3732_s7 + $0x200] ss:$16 sps:$4 sm:$0xff]   ;;  %v3277_v16 = vld [vmem:[%s3732_s7 + $0x208] ss:$16 sps:$4 sm:$0xff]   ;;  %v3282_v17 = vld [vmem:[%s3732_s7 + $0x224] ss:$16 sps:$4 sm:$0xff]  }
  0x43   : > { %v3285_v18 = vld [vmem:[%s3732_s7 + $0x22c] ss:$16 sps:$4 sm:$0xff]   ;;  %v3280_v19 = vld [vmem:[%s3732_s7 + $0x220] ss:$16 sps:$4 sm:$0xff]   ;;  %v3283_v20 = vld [vmem:[%s3732_s7 + $0x228] ss:$16 sps:$4 sm:$0xff]  }
  0x44   : > { %2136 = vmatpush1.bf16.msra.mxu0 %v3215_v37  ;;  %2351 = vmatpush1.bf16.msra.mxu1 %v3216_v38  ;;  %v3288_v21 = vld [vmem:[%s3732_s7 + $0x244] ss:$16 sps:$4 sm:$0xff]   ;;  %v3291_v22 = vld [vmem:[%s3732_s7 + $0x24c] ss:$16 sps:$4 sm:$0xff]   ;;  %v3286_v23 = vld [vmem:[%s3732_s7 + $0x240] ss:$16 sps:$4 sm:$0xff]  }
  0x45   : > { %2137 = vmatprep.subr.bf16.mxu0 %v3217_v39  ;;  %2352 = vmatprep.subr.bf16.mxu1 %v3219_v40  ;;  %v3289_v24 = vld [vmem:[%s3732_s7 + $0x248] ss:$16 sps:$4 sm:$0xff]   ;;  %v3294_v25 = vld [vmem:[%s3732_s7 + $0x264] ss:$16 sps:$4 sm:$0xff]   ;;  %v3297_v26 = vld [vmem:[%s3732_s7 + $0x26c] ss:$16 sps:$4 sm:$0xff]  }
  0x46   : > { %v3292_v27 = vld [vmem:[%s3732_s7 + $0x260] ss:$16 sps:$4 sm:$0xff]   ;;  %v3295_v28 = vld [vmem:[%s3732_s7 + $0x268] ss:$16 sps:$4 sm:$0xff]   ;;  %v3300_v29 = vld [vmem:[%s3732_s7 + $0x284] ss:$16 sps:$4 sm:$0xff]  }
  0x47   : > { %v3303_v30 = vld [vmem:[%s3732_s7 + $0x28c] ss:$16 sps:$4 sm:$0xff]   ;;  %v3298_v31 = vld [vmem:[%s3732_s7 + $0x280] ss:$16 sps:$4 sm:$0xff]   ;;  %v3301_v32 = vld [vmem:[%s3732_s7 + $0x288] ss:$16 sps:$4 sm:$0xff]  }
  0x48   : > { %2138 = vmatpush1.bf16.msra.mxu0 %v3221_v41  ;;  %2353 = vmatpush1.bf16.msra.mxu1 %v3222_v42  ;;  %v3306_v33 = vld [vmem:[%s3732_s7 + $0x2a4] ss:$16 sps:$4 sm:$0xff]   ;;  %v3309_v34 = vld [vmem:[%s3732_s7 + $0x2ac] ss:$16 sps:$4 sm:$0xff]   ;;  %v3304_v35 = vld [vmem:[%s3732_s7 + $0x2a0] ss:$16 sps:$4 sm:$0xff]  }
  0x49   : > { %2139 = vmatprep.subr.bf16.mxu0 %v3223_v43  ;;  %2354 = vmatprep.subr.bf16.mxu1 %v3225_v44  ;;  %v3307_v36 = vld [vmem:[%s3732_s7 + $0x2a8] ss:$16 sps:$4 sm:$0xff]   ;;  %v3312_v37 = vld [vmem:[%s3732_s7 + $0x2c4] ss:$16 sps:$4 sm:$0xff]   ;;  %v3315_v38 = vld [vmem:[%s3732_s7 + $0x2cc] ss:$16 sps:$4 sm:$0xff]  }
  0x4a   : > { %v3310_v39 = vld [vmem:[%s3732_s7 + $0x2c0] ss:$16 sps:$4 sm:$0xff]   ;;  %v3313_v40 = vld [vmem:[%s3732_s7 + $0x2c8] ss:$16 sps:$4 sm:$0xff]   ;;  %v3318_v42 = vld [vmem:[%s3732_s7 + $0x2e4] ss:$16 sps:$4 sm:$0xff]  }
  0x4b   : > { %v3372_v41 = vld [vmem:[%s3734_s8 + $0xc] ss:$36 sps:$4 sm:$0xff]  }
  0x4c   : > { %2140 = vmatpush1.bf16.msra.mxu0 %v3227_v45  ;;  %2355 = vmatpush1.bf16.msra.mxu1 %v3228_v46  ;;  %v3321_v43 = vld [vmem:[%s3732_s7 + $0x2ec] ss:$16 sps:$4 sm:$0xff]   ;;  %v3316_v44 = vld [vmem:[%s3732_s7 + $0x2e0] ss:$16 sps:$4 sm:$0xff]   ;;  %v3319_v45 = vld [vmem:[%s3732_s7 + $0x2e8] ss:$16 sps:$4 sm:$0xff]  }
  0x4d   : > { %2141 = vmatprep.subr.bf16.mxu0 %v3229_v47  ;;  %2356 = vmatprep.subr.bf16.mxu1 %v3231_v48  ;;  %v3324_v46 = vld [vmem:[%s3732_s7 + $0x304] ss:$16 sps:$4 sm:$0xff]   ;;  %v3327_v47 = vld [vmem:[%s3732_s7 + $0x30c] ss:$16 sps:$4 sm:$0xff]   ;;  %v3322_v48 = vld [vmem:[%s3732_s7 + $0x300] ss:$16 sps:$4 sm:$0xff]  }
  0x4e   : > { %v3345_v59 = vld [vmem:[%s3732_s7 + $0x36c] ss:$16 sps:$4 sm:$0xff]  }
  0x50   : > { %2142 = vmatpush1.bf16.msra.mxu0 %v3233_v49  ;;  %2357 = vmatpush1.bf16.msra.mxu1 %v3234_v50  ;;  %v3325_v49 = vld [vmem:[%s3732_s7 + $0x308] ss:$16 sps:$4 sm:$0xff]   ;;  %v3330_v50 = vld [vmem:[%s3732_s7 + $0x324] ss:$16 sps:$4 sm:$0xff]  }
  0x51   : > { %2143 = vmatprep.subr.bf16.mxu0 %v3235_v51  ;;  %2358 = vmatprep.subr.bf16.mxu1 %v3237_v52  ;;  %v3333_v51 = vld [vmem:[%s3732_s7 + $0x32c] ss:$16 sps:$4 sm:$0xff]   ;;  %v3328_v52 = vld [vmem:[%s3732_s7 + $0x320] ss:$16 sps:$4 sm:$0xff]  }
  0x54   : > { %2144 = vmatpush1.bf16.msra.mxu0 %v3239_v53  ;;  %2359 = vmatpush1.bf16.msra.mxu1 %v3240_v54  ;;  %v3331_v53 = vld [vmem:[%s3732_s7 + $0x328] ss:$16 sps:$4 sm:$0xff]   ;;  %v3336_v54 = vld [vmem:[%s3732_s7 + $0x344] ss:$16 sps:$4 sm:$0xff]  }
  0x55   : > { %2145 = vmatprep.subr.bf16.mxu0 %v3241_v55  ;;  %2360 = vmatprep.subr.bf16.mxu1 %v3243_v56  ;;  %v3339_v55 = vld [vmem:[%s3732_s7 + $0x34c] ss:$16 sps:$4 sm:$0xff]   ;;  %v3334_v56 = vld [vmem:[%s3732_s7 + $0x340] ss:$16 sps:$4 sm:$0xff]  }
  0x58   : > { %2146 = vmatpush1.bf16.msra.mxu0 %v3245_v57  ;;  %2361 = vmatpush1.bf16.msra.mxu1 %v3246_v58  ;;  %v3337_v57 = vld [vmem:[%s3732_s7 + $0x348] ss:$16 sps:$4 sm:$0xff]   ;;  %v3342_v58 = vld [vmem:[%s3732_s7 + $0x364] ss:$16 sps:$4 sm:$0xff]  }
  0x59   : > { %2147 = vmatprep.subr.bf16.mxu0 %v3247_v60  ;;  %2362 = vmatprep.subr.bf16.mxu1 %v3249_v61  ;;  %v3340_v60 = vld [vmem:[%s3732_s7 + $0x360] ss:$16 sps:$4 sm:$0xff]   ;;  %v3343_v61 = vld [vmem:[%s3732_s7 + $0x368] ss:$16 sps:$4 sm:$0xff]  }
  0x5c   : > { %2148 = vmatpush1.bf16.msra.mxu0 %v3251_v62  ;;  %2363 = vmatpush1.bf16.msra.mxu1 %v3252_v63  ;;  %v3348_v62 = vld [vmem:[%s3732_s7 + $0x384] ss:$16 sps:$4 sm:$0xff]   ;;  %v3351_v63 = vld [vmem:[%s3732_s7 + $0x38c] ss:$16 sps:$4 sm:$0xff]  }
  0x5d   : > { %2149 = vmatprep.subr.bf16.mxu0 %v3253_v0  ;;  %2364 = vmatprep.subr.bf16.mxu1 %v3255_v1  ;;  %v3346_v0 = vld [vmem:[%s3732_s7 + $0x380] ss:$16 sps:$4 sm:$0xff]   ;;  %v3349_v1 = vld [vmem:[%s3732_s7 + $0x388] ss:$16 sps:$4 sm:$0xff]  }
  0x60   : > { %2150 = vmatpush1.bf16.msra.mxu0 %v3257_v2  ;;  %2365 = vmatpush1.bf16.msra.mxu1 %v3258_v3  ;;  %v3354_v2 = vld [vmem:[%s3732_s7 + $0x3a4] ss:$16 sps:$4 sm:$0xff]   ;;  %v3357_v3 = vld [vmem:[%s3732_s7 + $0x3ac] ss:$16 sps:$4 sm:$0xff]  }
  0x61   : > { %2151 = vmatprep.subr.bf16.mxu0 %v3259_v4  ;;  %2366 = vmatprep.subr.bf16.mxu1 %v3261_v5  ;;  %v3352_v4 = vld [vmem:[%s3732_s7 + $0x3a0] ss:$16 sps:$4 sm:$0xff]   ;;  %v3355_v5 = vld [vmem:[%s3732_s7 + $0x3a8] ss:$16 sps:$4 sm:$0xff]  }
  0x64   : > { %2152 = vmatpush1.bf16.msra.mxu0 %v3263_v6  ;;  %2367 = vmatpush1.bf16.msra.mxu1 %v3264_v7  ;;  %v3360_v6 = vld [vmem:[%s3732_s7 + $0x3c4] ss:$16 sps:$4 sm:$0xff]   ;;  %v3363_v7 = vld [vmem:[%s3732_s7 + $0x3cc] ss:$16 sps:$4 sm:$0xff]  }
  0x65   : > { %2153 = vmatprep.subr.bf16.mxu0 %v3265_v8  ;;  %2368 = vmatprep.subr.bf16.mxu1 %v3267_v9  ;;  %v3358_v8 = vld [vmem:[%s3732_s7 + $0x3c0] ss:$16 sps:$4 sm:$0xff]   ;;  %v3361_v9 = vld [vmem:[%s3732_s7 + $0x3c8] ss:$16 sps:$4 sm:$0xff]  }
  0x68   : > { %2154 = vmatpush1.bf16.msra.mxu0 %v3269_v10  ;;  %2369 = vmatpush1.bf16.msra.mxu1 %v3270_v11  ;;  %v3366_v10 = vld [vmem:[%s3732_s7 + $0x3e4] ss:$16 sps:$4 sm:$0xff]   ;;  %v3369_v11 = vld [vmem:[%s3732_s7 + $0x3ec] ss:$16 sps:$4 sm:$0xff]  }
  0x69   : > { %2166 = vmatprep.subr.bf16.mxu0 %v3276_v12  ;;  %2381 = vmatprep.subr.bf16.mxu1 %v3279_v13  ;;  %v3364_v12 = vld [vmem:[%s3732_s7 + $0x3e0] ss:$16 sps:$4 sm:$0xff]   ;;  %v3367_v13 = vld [vmem:[%s3732_s7 + $0x3e8] ss:$16 sps:$4 sm:$0xff]  }
  0x6b   : > { %2156 = vmatmul.mubr.bf16.vlgmr.msra.gmra.mrb[0].mxu0 %v3271_v14  ;;  %2371 = vmatmul.mubr.bf16.vlgmr.msra.gmra.mrb[0].mxu1 %v3271_v14  ;;  %v3375_v14 = vld [vmem:[%s3732_s7 + $0x404] ss:$16 sps:$4 sm:$0xff]  }
  0x6c   : > { %2167 = vmatpush1.bf16.msra.mxu0 %v3274_v15  ;;  %2382 = vmatpush1.bf16.msra.mxu1 %v3277_v16  ;;  %v3378_v15 = vld [vmem:[%s3732_s7 + $0x40c] ss:$16 sps:$4 sm:$0xff]  }
  0x6d   : > { %2168 = vmatprep.subr.bf16.mxu0 %v3282_v17  ;;  %2383 = vmatprep.subr.bf16.mxu1 %v3285_v18  ;;  %v3370_v16 = vld [vmem:[%s3734_s8 + $0x8] ss:$36 sps:$4 sm:$0xff]  }
  0x6e   : > { %2198 = vmatprep.mubr.bf16.mxu0 %v3372_v41  ;;  %2413 = vmatprep.mubr.bf16.mxu1 %v3372_v41  ;;  %v3373_v17 = vld [vmem:[%s3732_s7 + $0x400] ss:$16 sps:$4 sm:$0xff]   ;;  %v3376_v18 = vld [vmem:[%s3732_s7 + $0x408] ss:$16 sps:$4 sm:$0xff]   ;;  %v3414_v41 = vld [vmem:[%s3732_s7 + $0x4cc] ss:$16 sps:$4 sm:$0xff]  }
  0x70   : > { %2169 = vmatpush1.bf16.msra.mxu0 %v3280_v19  ;;  %2384 = vmatpush1.bf16.msra.mxu1 %v3283_v20  ;;  %v3381_v19 = vld [vmem:[%s3732_s7 + $0x424] ss:$16 sps:$4 sm:$0xff]   ;;  %v3384_v20 = vld [vmem:[%s3732_s7 + $0x42c] ss:$16 sps:$4 sm:$0xff]  }
  0x71   : > { %2170 = vmatprep.subr.bf16.mxu0 %v3288_v21  ;;  %2385 = vmatprep.subr.bf16.mxu1 %v3291_v22  ;;  %v3379_v21 = vld [vmem:[%s3732_s7 + $0x420] ss:$16 sps:$4 sm:$0xff]   ;;  %v3382_v22 = vld [vmem:[%s3732_s7 + $0x428] ss:$16 sps:$4 sm:$0xff]  }
  0x74   : > { %2171 = vmatpush1.bf16.msra.mxu0 %v3286_v23  ;;  %2386 = vmatpush1.bf16.msra.mxu1 %v3289_v24  ;;  %v3471_v23 = vld [vmem:[%s3734_s8 + $0x14] ss:$36 sps:$4 sm:$0xff]  }
  0x75   : > { %2172 = vmatprep.subr.bf16.mxu0 %v3294_v25  ;;  %2387 = vmatprep.subr.bf16.mxu1 %v3297_v26  ;;  %v3387_v24 = vld [vmem:[%s3732_s7 + $0x444] ss:$16 sps:$4 sm:$0xff]   ;;  %v3390_v25 = vld [vmem:[%s3732_s7 + $0x44c] ss:$16 sps:$4 sm:$0xff]   ;;  %v3385_v26 = vld [vmem:[%s3732_s7 + $0x440] ss:$16 sps:$4 sm:$0xff]  }
  0x78   : > { %2173 = vmatpush1.bf16.msra.mxu0 %v3292_v27  ;;  %2388 = vmatpush1.bf16.msra.mxu1 %v3295_v28  ;;  %v3388_v27 = vld [vmem:[%s3732_s7 + $0x448] ss:$16 sps:$4 sm:$0xff]   ;;  %v3393_v28 = vld [vmem:[%s3732_s7 + $0x464] ss:$16 sps:$4 sm:$0xff]  }
  0x79   : > { %2174 = vmatprep.subr.bf16.mxu0 %v3300_v29  ;;  %2389 = vmatprep.subr.bf16.mxu1 %v3303_v30  ;;  %v3396_v29 = vld [vmem:[%s3732_s7 + $0x46c] ss:$16 sps:$4 sm:$0xff]   ;;  %v3391_v30 = vld [vmem:[%s3732_s7 + $0x460] ss:$16 sps:$4 sm:$0xff]  }
  0x7c   : > { %2175 = vmatpush1.bf16.msra.mxu0 %v3298_v31  ;;  %2390 = vmatpush1.bf16.msra.mxu1 %v3301_v32  ;;  %v3394_v31 = vld [vmem:[%s3732_s7 + $0x468] ss:$16 sps:$4 sm:$0xff]   ;;  %v3399_v32 = vld [vmem:[%s3732_s7 + $0x484] ss:$16 sps:$4 sm:$0xff]  }
  0x7d   : > { %2176 = vmatprep.subr.bf16.mxu0 %v3306_v33  ;;  %2391 = vmatprep.subr.bf16.mxu1 %v3309_v34  ;;  %v3402_v33 = vld [vmem:[%s3732_s7 + $0x48c] ss:$16 sps:$4 sm:$0xff]   ;;  %v3397_v34 = vld [vmem:[%s3732_s7 + $0x480] ss:$16 sps:$4 sm:$0xff]  }
  0x80   : > { %2177 = vmatpush1.bf16.msra.mxu0 %v3304_v35  ;;  %2392 = vmatpush1.bf16.msra.mxu1 %v3307_v36  ;;  %v3400_v35 = vld [vmem:[%s3732_s7 + $0x488] ss:$16 sps:$4 sm:$0xff]   ;;  %v3405_v36 = vld [vmem:[%s3732_s7 + $0x4a4] ss:$16 sps:$4 sm:$0xff]  }
  0x81   : > { %2178 = vmatprep.subr.bf16.mxu0 %v3312_v37  ;;  %2393 = vmatprep.subr.bf16.mxu1 %v3315_v38  ;;  %v3408_v37 = vld [vmem:[%s3732_s7 + $0x4ac] ss:$16 sps:$4 sm:$0xff]   ;;  %v3403_v38 = vld [vmem:[%s3732_s7 + $0x4a0] ss:$16 sps:$4 sm:$0xff]  }
  0x84   : > { %2179 = vmatpush1.bf16.msra.mxu0 %v3310_v39  ;;  %2394 = vmatpush1.bf16.msra.mxu1 %v3313_v40  ;;  %v3406_v39 = vld [vmem:[%s3732_s7 + $0x4a8] ss:$16 sps:$4 sm:$0xff]   ;;  %v3411_v40 = vld [vmem:[%s3732_s7 + $0x4c4] ss:$16 sps:$4 sm:$0xff]  }
  0x85   : > { %2180 = vmatprep.subr.bf16.mxu0 %v3318_v42  ;;  %2395 = vmatprep.subr.bf16.mxu1 %v3321_v43  ;;  %v3409_v42 = vld [vmem:[%s3732_s7 + $0x4c0] ss:$16 sps:$4 sm:$0xff]   ;;  %v3412_v43 = vld [vmem:[%s3732_s7 + $0x4c8] ss:$16 sps:$4 sm:$0xff]  }
  0x88   : > { %2181 = vmatpush1.bf16.msra.mxu0 %v3316_v44  ;;  %2396 = vmatpush1.bf16.msra.mxu1 %v3319_v45  ;;  %v3417_v44 = vld [vmem:[%s3732_s7 + $0x4e4] ss:$16 sps:$4 sm:$0xff]   ;;  %v3420_v45 = vld [vmem:[%s3732_s7 + $0x4ec] ss:$16 sps:$4 sm:$0xff]  }
  0x89   : > { %2182 = vmatprep.subr.bf16.mxu0 %v3324_v46  ;;  %2397 = vmatprep.subr.bf16.mxu1 %v3327_v47  ;;  %v3415_v46 = vld [vmem:[%s3732_s7 + $0x4e0] ss:$16 sps:$4 sm:$0xff]   ;;  %v3418_v47 = vld [vmem:[%s3732_s7 + $0x4e8] ss:$16 sps:$4 sm:$0xff]  }
  0x8c   : > { %2183 = vmatpush1.bf16.msra.mxu0 %v3322_v48  ;;  %2398 = vmatpush1.bf16.msra.mxu1 %v3325_v49  ;;  %v3423_v48 = vld [vmem:[%s3732_s7 + $0x504] ss:$16 sps:$4 sm:$0xff]   ;;  %v3426_v49 = vld [vmem:[%s3732_s7 + $0x50c] ss:$16 sps:$4 sm:$0xff]  }
  0x8d   : > { %2184 = vmatprep.subr.bf16.mxu0 %v3330_v50  ;;  %2399 = vmatprep.subr.bf16.mxu1 %v3333_v51  ;;  %v3421_v50 = vld [vmem:[%s3732_s7 + $0x500] ss:$16 sps:$4 sm:$0xff]   ;;  %v3424_v51 = vld [vmem:[%s3732_s7 + $0x508] ss:$16 sps:$4 sm:$0xff]  }
  0x90   : > { %2185 = vmatpush1.bf16.msra.mxu0 %v3328_v52  ;;  %2400 = vmatpush1.bf16.msra.mxu1 %v3331_v53  ;;  %v3429_v52 = vld [vmem:[%s3732_s7 + $0x524] ss:$16 sps:$4 sm:$0xff]   ;;  %v3432_v53 = vld [vmem:[%s3732_s7 + $0x52c] ss:$16 sps:$4 sm:$0xff]  }
  0x91   : > { %2186 = vmatprep.subr.bf16.mxu0 %v3336_v54  ;;  %2401 = vmatprep.subr.bf16.mxu1 %v3339_v55  ;;  %v3427_v54 = vld [vmem:[%s3732_s7 + $0x520] ss:$16 sps:$4 sm:$0xff]   ;;  %v3430_v55 = vld [vmem:[%s3732_s7 + $0x528] ss:$16 sps:$4 sm:$0xff]  }
  0x94   : > { %2187 = vmatpush1.bf16.msra.mxu0 %v3334_v56  ;;  %2402 = vmatpush1.bf16.msra.mxu1 %v3337_v57  ;;  %v3435_v56 = vld [vmem:[%s3732_s7 + $0x544] ss:$16 sps:$4 sm:$0xff]   ;;  %v3438_v57 = vld [vmem:[%s3732_s7 + $0x54c] ss:$16 sps:$4 sm:$0xff]  }
  0x95   : > { %2188 = vmatprep.subr.bf16.mxu0 %v3342_v58  ;;  %2403 = vmatprep.subr.bf16.mxu1 %v3345_v59  ;;  %v3433_v58 = vld [vmem:[%s3732_s7 + $0x540] ss:$16 sps:$4 sm:$0xff]   ;;  %v3436_v59 = vld [vmem:[%s3732_s7 + $0x548] ss:$16 sps:$4 sm:$0xff]  }
  0x98   : > { %2189 = vmatpush1.bf16.msra.mxu0 %v3340_v60  ;;  %2404 = vmatpush1.bf16.msra.mxu1 %v3343_v61  ;;  %v3441_v60 = vld [vmem:[%s3732_s7 + $0x564] ss:$16 sps:$4 sm:$0xff]   ;;  %v3444_v61 = vld [vmem:[%s3732_s7 + $0x56c] ss:$16 sps:$4 sm:$0xff]  }
  0x99   : > { %2190 = vmatprep.subr.bf16.mxu0 %v3348_v62  ;;  %2405 = vmatprep.subr.bf16.mxu1 %v3351_v63  ;;  %v3439_v62 = vld [vmem:[%s3732_s7 + $0x560] ss:$16 sps:$4 sm:$0xff]   ;;  %v3442_v63 = vld [vmem:[%s3732_s7 + $0x568] ss:$16 sps:$4 sm:$0xff]  }
  0x9c   : > { %2191 = vmatpush1.bf16.msra.mxu0 %v3346_v0  ;;  %2406 = vmatpush1.bf16.msra.mxu1 %v3349_v1  ;;  %v3447_v0 = vld [vmem:[%s3732_s7 + $0x584] ss:$16 sps:$4 sm:$0xff]   ;;  %v3450_v1 = vld [vmem:[%s3732_s7 + $0x58c] ss:$16 sps:$4 sm:$0xff]  }
  0x9d   : > { %2192 = vmatprep.subr.bf16.mxu0 %v3354_v2  ;;  %2407 = vmatprep.subr.bf16.mxu1 %v3357_v3  ;;  %v3445_v2 = vld [vmem:[%s3732_s7 + $0x580] ss:$16 sps:$4 sm:$0xff]   ;;  %v3448_v3 = vld [vmem:[%s3732_s7 + $0x588] ss:$16 sps:$4 sm:$0xff]  }
  0xa0   : > { %2193 = vmatpush1.bf16.msra.mxu0 %v3352_v4  ;;  %2408 = vmatpush1.bf16.msra.mxu1 %v3355_v5  ;;  %v3453_v4 = vld [vmem:[%s3732_s7 + $0x5a4] ss:$16 sps:$4 sm:$0xff]   ;;  %v3456_v5 = vld [vmem:[%s3732_s7 + $0x5ac] ss:$16 sps:$4 sm:$0xff]  }
  0xa1   : > { %2194 = vmatprep.subr.bf16.mxu0 %v3360_v6  ;;  %2409 = vmatprep.subr.bf16.mxu1 %v3363_v7  ;;  %v3451_v6 = vld [vmem:[%s3732_s7 + $0x5a0] ss:$16 sps:$4 sm:$0xff]   ;;  %v3454_v7 = vld [vmem:[%s3732_s7 + $0x5a8] ss:$16 sps:$4 sm:$0xff]  }
  0xa4   : > { %2195 = vmatpush1.bf16.msra.mxu0 %v3358_v8  ;;  %2410 = vmatpush1.bf16.msra.mxu1 %v3361_v9  ;;  %v3459_v8 = vld [vmem:[%s3732_s7 + $0x5c4] ss:$16 sps:$4 sm:$0xff]   ;;  %v3462_v9 = vld [vmem:[%s3732_s7 + $0x5cc] ss:$16 sps:$4 sm:$0xff]  }
  0xa5   : > { %2196 = vmatprep.subr.bf16.mxu0 %v3366_v10  ;;  %2411 = vmatprep.subr.bf16.mxu1 %v3369_v11  ;;  %v3457_v10 = vld [vmem:[%s3732_s7 + $0x5c0] ss:$16 sps:$4 sm:$0xff]   ;;  %v3460_v11 = vld [vmem:[%s3732_s7 + $0x5c8] ss:$16 sps:$4 sm:$0xff]  }
  0xa8   : > { %2197 = vmatpush1.bf16.msra.mxu0 %v3364_v12  ;;  %2412 = vmatpush1.bf16.msra.mxu1 %v3367_v13  ;;  %v3465_v12 = vld [vmem:[%s3732_s7 + $0x5e4] ss:$16 sps:$4 sm:$0xff]   ;;  %v3468_v13 = vld [vmem:[%s3732_s7 + $0x5ec] ss:$16 sps:$4 sm:$0xff]  }
  0xa9   : > { %2209 = vmatprep.subr.bf16.mxu0 %v3375_v14  ;;  %2424 = vmatprep.subr.bf16.mxu1 %v3378_v15  ;;  %v3463_v14 = vld [vmem:[%s3732_s7 + $0x5e0] ss:$16 sps:$4 sm:$0xff]   ;;  %v3466_v15 = vld [vmem:[%s3732_s7 + $0x5e8] ss:$16 sps:$4 sm:$0xff]  }
  0xab   : > { %2199 = vmatmul.mubr.bf16.vlgmr.msra.gmra.mrb[0].mxu0 %v3370_v16  ;;  %2414 = vmatmul.mubr.bf16.vlgmr.msra.gmra.mrb[0].mxu1 %v3370_v16  ;;  %v3474_v16 = vld [vmem:[%s3732_s7 + $0x604] ss:$16 sps:$4 sm:$0xff]  }
  0xac   : > { %2210 = vmatpush1.bf16.msra.mxu0 %v3373_v17  ;;  %2425 = vmatpush1.bf16.msra.mxu1 %v3376_v18  ;;  %v3477_v17 = vld [vmem:[%s3732_s7 + $0x60c] ss:$16 sps:$4 sm:$0xff]  }
  0xad   : > { %2211 = vmatprep.subr.bf16.mxu0 %v3381_v19  ;;  %2426 = vmatprep.subr.bf16.mxu1 %v3384_v20  ;;  %v3469_v18 = vld [vmem:[%s3734_s8 + $0x10] ss:$36 sps:$4 sm:$0xff]  }
  0xae   : > { %2241 = vmatprep.mubr.bf16.mxu0 %v3471_v23  ;;  %2456 = vmatprep.mubr.bf16.mxu1 %v3471_v23  ;;  %v3472_v19 = vld [vmem:[%s3732_s7 + $0x600] ss:$16 sps:$4 sm:$0xff]   ;;  %v3475_v20 = vld [vmem:[%s3732_s7 + $0x608] ss:$16 sps:$4 sm:$0xff]  }
  0xaf   : > { %v3570_v23 = vld [vmem:[%s3734_s8 + $0x1c] ss:$36 sps:$4 sm:$0xff]  }
  0xb0   : > { %2212 = vmatpush1.bf16.msra.mxu0 %v3379_v21  ;;  %2427 = vmatpush1.bf16.msra.mxu1 %v3382_v22  ;;  %v3480_v21 = vld [vmem:[%s3732_s7 + $0x624] ss:$16 sps:$4 sm:$0xff]   ;;  %v3483_v22 = vld [vmem:[%s3732_s7 + $0x62c] ss:$16 sps:$4 sm:$0xff]  }
  0xb1   : > { %2213 = vmatprep.subr.bf16.mxu0 %v3387_v24  ;;  %2428 = vmatprep.subr.bf16.mxu1 %v3390_v25  ;;  %v3478_v24 = vld [vmem:[%s3732_s7 + $0x620] ss:$16 sps:$4 sm:$0xff]   ;;  %v3481_v25 = vld [vmem:[%s3732_s7 + $0x628] ss:$16 sps:$4 sm:$0xff]  }
  0xb4   : > { %2214 = vmatpush1.bf16.msra.mxu0 %v3385_v26  ;;  %2429 = vmatpush1.bf16.msra.mxu1 %v3388_v27  ;;  %v3486_v26 = vld [vmem:[%s3732_s7 + $0x644] ss:$16 sps:$4 sm:$0xff]   ;;  %v3489_v27 = vld [vmem:[%s3732_s7 + $0x64c] ss:$16 sps:$4 sm:$0xff]  }
  0xb5   : > { %2215 = vmatprep.subr.bf16.mxu0 %v3393_v28  ;;  %2430 = vmatprep.subr.bf16.mxu1 %v3396_v29  ;;  %v3484_v28 = vld [vmem:[%s3732_s7 + $0x640] ss:$16 sps:$4 sm:$0xff]   ;;  %v3487_v29 = vld [vmem:[%s3732_s7 + $0x648] ss:$16 sps:$4 sm:$0xff]  }
  0xb8   : > { %2216 = vmatpush1.bf16.msra.mxu0 %v3391_v30  ;;  %2431 = vmatpush1.bf16.msra.mxu1 %v3394_v31  ;;  %v3492_v30 = vld [vmem:[%s3732_s7 + $0x664] ss:$16 sps:$4 sm:$0xff]   ;;  %v3495_v31 = vld [vmem:[%s3732_s7 + $0x66c] ss:$16 sps:$4 sm:$0xff]  }
  0xb9   : > { %2217 = vmatprep.subr.bf16.mxu0 %v3399_v32  ;;  %2432 = vmatprep.subr.bf16.mxu1 %v3402_v33  ;;  %v3490_v32 = vld [vmem:[%s3732_s7 + $0x660] ss:$16 sps:$4 sm:$0xff]   ;;  %v3493_v33 = vld [vmem:[%s3732_s7 + $0x668] ss:$16 sps:$4 sm:$0xff]  }
  0xbc   : > { %2218 = vmatpush1.bf16.msra.mxu0 %v3397_v34  ;;  %2433 = vmatpush1.bf16.msra.mxu1 %v3400_v35  ;;  %v3498_v34 = vld [vmem:[%s3732_s7 + $0x684] ss:$16 sps:$4 sm:$0xff]   ;;  %v3501_v35 = vld [vmem:[%s3732_s7 + $0x68c] ss:$16 sps:$4 sm:$0xff]  }
  0xbd   : > { %2219 = vmatprep.subr.bf16.mxu0 %v3405_v36  ;;  %2434 = vmatprep.subr.bf16.mxu1 %v3408_v37  ;;  %v3496_v36 = vld [vmem:[%s3732_s7 + $0x680] ss:$16 sps:$4 sm:$0xff]   ;;  %v3499_v37 = vld [vmem:[%s3732_s7 + $0x688] ss:$16 sps:$4 sm:$0xff]  }
  0xc0   : > { %2220 = vmatpush1.bf16.msra.mxu0 %v3403_v38  ;;  %2435 = vmatpush1.bf16.msra.mxu1 %v3406_v39  ;;  %v3504_v38 = vld [vmem:[%s3732_s7 + $0x6a4] ss:$16 sps:$4 sm:$0xff]   ;;  %v3507_v39 = vld [vmem:[%s3732_s7 + $0x6ac] ss:$16 sps:$4 sm:$0xff]  }
  0xc1   : > { %2221 = vmatprep.subr.bf16.mxu0 %v3411_v40  ;;  %2436 = vmatprep.subr.bf16.mxu1 %v3414_v41  ;;  %v3502_v40 = vld [vmem:[%s3732_s7 + $0x6a0] ss:$16 sps:$4 sm:$0xff]   ;;  %v3505_v41 = vld [vmem:[%s3732_s7 + $0x6a8] ss:$16 sps:$4 sm:$0xff]  }
  0xc4   : > { %2222 = vmatpush1.bf16.msra.mxu0 %v3409_v42  ;;  %2437 = vmatpush1.bf16.msra.mxu1 %v3412_v43  ;;  %v3510_v42 = vld [vmem:[%s3732_s7 + $0x6c4] ss:$16 sps:$4 sm:$0xff]   ;;  %v3513_v43 = vld [vmem:[%s3732_s7 + $0x6cc] ss:$16 sps:$4 sm:$0xff]  }
  0xc5   : > { %2223 = vmatprep.subr.bf16.mxu0 %v3417_v44  ;;  %2438 = vmatprep.subr.bf16.mxu1 %v3420_v45  ;;  %v3508_v44 = vld [vmem:[%s3732_s7 + $0x6c0] ss:$16 sps:$4 sm:$0xff]   ;;  %v3511_v45 = vld [vmem:[%s3732_s7 + $0x6c8] ss:$16 sps:$4 sm:$0xff]  }
  0xc8   : > { %2224 = vmatpush1.bf16.msra.mxu0 %v3415_v46  ;;  %2439 = vmatpush1.bf16.msra.mxu1 %v3418_v47  ;;  %v3516_v46 = vld [vmem:[%s3732_s7 + $0x6e4] ss:$16 sps:$4 sm:$0xff]   ;;  %v3519_v47 = vld [vmem:[%s3732_s7 + $0x6ec] ss:$16 sps:$4 sm:$0xff]  }
  0xc9   : > { %2225 = vmatprep.subr.bf16.mxu0 %v3423_v48  ;;  %2440 = vmatprep.subr.bf16.mxu1 %v3426_v49  ;;  %v3514_v48 = vld [vmem:[%s3732_s7 + $0x6e0] ss:$16 sps:$4 sm:$0xff]   ;;  %v3517_v49 = vld [vmem:[%s3732_s7 + $0x6e8] ss:$16 sps:$4 sm:$0xff]  }
  0xcc   : > { %2226 = vmatpush1.bf16.msra.mxu0 %v3421_v50  ;;  %2441 = vmatpush1.bf16.msra.mxu1 %v3424_v51  ;;  %v3522_v50 = vld [vmem:[%s3732_s7 + $0x704] ss:$16 sps:$4 sm:$0xff]   ;;  %v3525_v51 = vld [vmem:[%s3732_s7 + $0x70c] ss:$16 sps:$4 sm:$0xff]  }
  0xcd   : > { %2227 = vmatprep.subr.bf16.mxu0 %v3429_v52  ;;  %2442 = vmatprep.subr.bf16.mxu1 %v3432_v53  ;;  %v3520_v52 = vld [vmem:[%s3732_s7 + $0x700] ss:$16 sps:$4 sm:$0xff]   ;;  %v3523_v53 = vld [vmem:[%s3732_s7 + $0x708] ss:$16 sps:$4 sm:$0xff]  }
  0xd0   : > { %2228 = vmatpush1.bf16.msra.mxu0 %v3427_v54  ;;  %2443 = vmatpush1.bf16.msra.mxu1 %v3430_v55  ;;  %v3528_v54 = vld [vmem:[%s3732_s7 + $0x724] ss:$16 sps:$4 sm:$0xff]   ;;  %v3531_v55 = vld [vmem:[%s3732_s7 + $0x72c] ss:$16 sps:$4 sm:$0xff]  }
  0xd1   : > { %2229 = vmatprep.subr.bf16.mxu0 %v3435_v56  ;;  %2444 = vmatprep.subr.bf16.mxu1 %v3438_v57  ;;  %v3526_v56 = vld [vmem:[%s3732_s7 + $0x720] ss:$16 sps:$4 sm:$0xff]   ;;  %v3529_v57 = vld [vmem:[%s3732_s7 + $0x728] ss:$16 sps:$4 sm:$0xff]  }
  0xd4   : > { %2230 = vmatpush1.bf16.msra.mxu0 %v3433_v58  ;;  %2445 = vmatpush1.bf16.msra.mxu1 %v3436_v59  ;;  %v3534_v58 = vld [vmem:[%s3732_s7 + $0x744] ss:$16 sps:$4 sm:$0xff]   ;;  %v3537_v59 = vld [vmem:[%s3732_s7 + $0x74c] ss:$16 sps:$4 sm:$0xff]  }
  0xd5   : > { %2231 = vmatprep.subr.bf16.mxu0 %v3441_v60  ;;  %2446 = vmatprep.subr.bf16.mxu1 %v3444_v61  ;;  %v3532_v60 = vld [vmem:[%s3732_s7 + $0x740] ss:$16 sps:$4 sm:$0xff]   ;;  %v3535_v61 = vld [vmem:[%s3732_s7 + $0x748] ss:$16 sps:$4 sm:$0xff]  }
  0xd8   : > { %2232 = vmatpush1.bf16.msra.mxu0 %v3439_v62  ;;  %2447 = vmatpush1.bf16.msra.mxu1 %v3442_v63  ;;  %v3540_v62 = vld [vmem:[%s3732_s7 + $0x764] ss:$16 sps:$4 sm:$0xff]   ;;  %v3543_v63 = vld [vmem:[%s3732_s7 + $0x76c] ss:$16 sps:$4 sm:$0xff]  }
  0xd9   : > { %2233 = vmatprep.subr.bf16.mxu0 %v3447_v0  ;;  %2448 = vmatprep.subr.bf16.mxu1 %v3450_v1  ;;  %v3538_v0 = vld [vmem:[%s3732_s7 + $0x760] ss:$16 sps:$4 sm:$0xff]   ;;  %v3541_v1 = vld [vmem:[%s3732_s7 + $0x768] ss:$16 sps:$4 sm:$0xff]  }
  0xdc   : > { %2234 = vmatpush1.bf16.msra.mxu0 %v3445_v2  ;;  %2449 = vmatpush1.bf16.msra.mxu1 %v3448_v3  ;;  %v3546_v2 = vld [vmem:[%s3732_s7 + $0x784] ss:$16 sps:$4 sm:$0xff]   ;;  %v3549_v3 = vld [vmem:[%s3732_s7 + $0x78c] ss:$16 sps:$4 sm:$0xff]  }
  0xdd   : > { %2235 = vmatprep.subr.bf16.mxu0 %v3453_v4  ;;  %2450 = vmatprep.subr.bf16.mxu1 %v3456_v5  ;;  %v3544_v4 = vld [vmem:[%s3732_s7 + $0x780] ss:$16 sps:$4 sm:$0xff]   ;;  %v3547_v5 = vld [vmem:[%s3732_s7 + $0x788] ss:$16 sps:$4 sm:$0xff]  }
  0xe0   : > { %2236 = vmatpush1.bf16.msra.mxu0 %v3451_v6  ;;  %2451 = vmatpush1.bf16.msra.mxu1 %v3454_v7  ;;  %v3552_v6 = vld [vmem:[%s3732_s7 + $0x7a4] ss:$16 sps:$4 sm:$0xff]   ;;  %v3555_v7 = vld [vmem:[%s3732_s7 + $0x7ac] ss:$16 sps:$4 sm:$0xff]  }
  0xe1   : > { %2237 = vmatprep.subr.bf16.mxu0 %v3459_v8  ;;  %2452 = vmatprep.subr.bf16.mxu1 %v3462_v9  ;;  %v3550_v8 = vld [vmem:[%s3732_s7 + $0x7a0] ss:$16 sps:$4 sm:$0xff]   ;;  %v3553_v9 = vld [vmem:[%s3732_s7 + $0x7a8] ss:$16 sps:$4 sm:$0xff]  }
  0xe4   : > { %2238 = vmatpush1.bf16.msra.mxu0 %v3457_v10  ;;  %2453 = vmatpush1.bf16.msra.mxu1 %v3460_v11  ;;  %v3558_v10 = vld [vmem:[%s3732_s7 + $0x7c4] ss:$16 sps:$4 sm:$0xff]   ;;  %v3561_v11 = vld [vmem:[%s3732_s7 + $0x7cc] ss:$16 sps:$4 sm:$0xff]  }
  0xe5   : > { %2239 = vmatprep.subr.bf16.mxu0 %v3465_v12  ;;  %2454 = vmatprep.subr.bf16.mxu1 %v3468_v13  ;;  %v3556_v12 = vld [vmem:[%s3732_s7 + $0x7c0] ss:$16 sps:$4 sm:$0xff]   ;;  %v3559_v13 = vld [vmem:[%s3732_s7 + $0x7c8] ss:$16 sps:$4 sm:$0xff]  }
  0xe8   : > { %2240 = vmatpush1.bf16.msra.mxu0 %v3463_v14  ;;  %2455 = vmatpush1.bf16.msra.mxu1 %v3466_v15  ;;  %v3564_v14 = vld [vmem:[%s3732_s7 + $0x7e4] ss:$16 sps:$4 sm:$0xff]   ;;  %v3567_v15 = vld [vmem:[%s3732_s7 + $0x7ec] ss:$16 sps:$4 sm:$0xff]  }
  0xe9   : > { %2252 = vmatprep.subr.bf16.mxu0 %v3474_v16  ;;  %2467 = vmatprep.subr.bf16.mxu1 %v3477_v17  ;;  %v3562_v16 = vld [vmem:[%s3732_s7 + $0x7e0] ss:$16 sps:$4 sm:$0xff]   ;;  %v3565_v17 = vld [vmem:[%s3732_s7 + $0x7e8] ss:$16 sps:$4 sm:$0xff]  }
  0xeb   : > { %2242 = vmatmul.mubr.bf16.vlgmr.msra.gmra.mrb[0].mxu0 %v3469_v18  ;;  %2457 = vmatmul.mubr.bf16.vlgmr.msra.gmra.mrb[0].mxu1 %v3469_v18  ;;  %v3573_v18 = vld [vmem:[%s3732_s7 + $0x804] ss:$16 sps:$4 sm:$0xff]  }
  0xec   : > { %2253 = vmatpush1.bf16.msra.mxu0 %v3472_v19  ;;  %2468 = vmatpush1.bf16.msra.mxu1 %v3475_v20  ;;  %v3576_v19 = vld [vmem:[%s3732_s7 + $0x80c] ss:$16 sps:$4 sm:$0xff]  }
  0xed   : > { %2254 = vmatprep.subr.bf16.mxu0 %v3480_v21  ;;  %2469 = vmatprep.subr.bf16.mxu1 %v3483_v22  ;;  %v3568_v20 = vld [vmem:[%s3734_s8 + $0x18] ss:$36 sps:$4 sm:$0xff]  }
  0xee   : > { %2284 = vmatprep.mubr.bf16.mxu0 %v3570_v23  ;;  %2499 = vmatprep.mubr.bf16.mxu1 %v3570_v23  ;;  %v3571_v21 = vld [vmem:[%s3732_s7 + $0x800] ss:$16 sps:$4 sm:$0xff]   ;;  %v3574_v22 = vld [vmem:[%s3732_s7 + $0x808] ss:$16 sps:$4 sm:$0xff]   ;;  %v3579_v23 = vld [vmem:[%s3732_s7 + $0x824] ss:$16 sps:$4 sm:$0xff]  }
  0xf0   : > { %2255 = vmatpush1.bf16.msra.mxu0 %v3478_v24  ;;  %2470 = vmatpush1.bf16.msra.mxu1 %v3481_v25  ;;  %v3582_v24 = vld [vmem:[%s3732_s7 + $0x82c] ss:$16 sps:$4 sm:$0xff]   ;;  %v3577_v25 = vld [vmem:[%s3732_s7 + $0x820] ss:$16 sps:$4 sm:$0xff]  }
  0xf1   : > { %2256 = vmatprep.subr.bf16.mxu0 %v3486_v26  ;;  %2471 = vmatprep.subr.bf16.mxu1 %v3489_v27  ;;  %v3580_v26 = vld [vmem:[%s3732_s7 + $0x828] ss:$16 sps:$4 sm:$0xff]   ;;  %v3585_v27 = vld [vmem:[%s3732_s7 + $0x844] ss:$16 sps:$4 sm:$0xff]  }
  0xf4   : > { %2257 = vmatpush1.bf16.msra.mxu0 %v3484_v28  ;;  %2472 = vmatpush1.bf16.msra.mxu1 %v3487_v29  ;;  %v3588_v28 = vld [vmem:[%s3732_s7 + $0x84c] ss:$16 sps:$4 sm:$0xff]   ;;  %v3661_v29 = vmov 0  }
  0xf5   : > { %2258 = vmatprep.subr.bf16.mxu0 %v3492_v30  ;;  %2473 = vmatprep.subr.bf16.mxu1 %v3495_v31  ;;  %v3583_v30 = vld [vmem:[%s3732_s7 + $0x840] ss:$16 sps:$4 sm:$0xff]   ;;  %v3586_v31 = vld [vmem:[%s3732_s7 + $0x848] ss:$16 sps:$4 sm:$0xff]  }
  0xf8   : > { %2259 = vmatpush1.bf16.msra.mxu0 %v3490_v32  ;;  %2474 = vmatpush1.bf16.msra.mxu1 %v3493_v33  ;;  %v3591_v32 = vld [vmem:[%s3732_s7 + $0x864] ss:$16 sps:$4 sm:$0xff]   ;;  %v3594_v33 = vld [vmem:[%s3732_s7 + $0x86c] ss:$16 sps:$4 sm:$0xff]  }
  0xf9   : > { %2260 = vmatprep.subr.bf16.mxu0 %v3498_v34  ;;  %2475 = vmatprep.subr.bf16.mxu1 %v3501_v35  ;;  %v3589_v34 = vld [vmem:[%s3732_s7 + $0x860] ss:$16 sps:$4 sm:$0xff]   ;;  %v3592_v35 = vld [vmem:[%s3732_s7 + $0x868] ss:$16 sps:$4 sm:$0xff]  }
  0xfc   : > { %2261 = vmatpush1.bf16.msra.mxu0 %v3496_v36  ;;  %2476 = vmatpush1.bf16.msra.mxu1 %v3499_v37  ;;  %v3597_v36 = vld [vmem:[%s3732_s7 + $0x884] ss:$16 sps:$4 sm:$0xff]   ;;  %v3600_v37 = vld [vmem:[%s3732_s7 + $0x88c] ss:$16 sps:$4 sm:$0xff]  }
  0xfd   : > { %2262 = vmatprep.subr.bf16.mxu0 %v3504_v38  ;;  %2477 = vmatprep.subr.bf16.mxu1 %v3507_v39  ;;  %v3595_v38 = vld [vmem:[%s3732_s7 + $0x880] ss:$16 sps:$4 sm:$0xff]   ;;  %v3598_v39 = vld [vmem:[%s3732_s7 + $0x888] ss:$16 sps:$4 sm:$0xff]  }
 0x100   : > { %2263 = vmatpush1.bf16.msra.mxu0 %v3502_v40  ;;  %2478 = vmatpush1.bf16.msra.mxu1 %v3505_v41  ;;  %v3603_v40 = vld [vmem:[%s3732_s7 + $0x8a4] ss:$16 sps:$4 sm:$0xff]   ;;  %v3606_v41 = vld [vmem:[%s3732_s7 + $0x8ac] ss:$16 sps:$4 sm:$0xff]  }
 0x101   : > { %2264 = vmatprep.subr.bf16.mxu0 %v3510_v42  ;;  %2479 = vmatprep.subr.bf16.mxu1 %v3513_v43  ;;  %v3601_v42 = vld [vmem:[%s3732_s7 + $0x8a0] ss:$16 sps:$4 sm:$0xff]   ;;  %v3604_v43 = vld [vmem:[%s3732_s7 + $0x8a8] ss:$16 sps:$4 sm:$0xff]  }
 0x104   : > { %2265 = vmatpush1.bf16.msra.mxu0 %v3508_v44  ;;  %2480 = vmatpush1.bf16.msra.mxu1 %v3511_v45  ;;  %v3609_v44 = vld [vmem:[%s3732_s7 + $0x8c4] ss:$16 sps:$4 sm:$0xff]   ;;  %v3612_v45 = vld [vmem:[%s3732_s7 + $0x8cc] ss:$16 sps:$4 sm:$0xff]  }
 0x105   : > { %2266 = vmatprep.subr.bf16.mxu0 %v3516_v46  ;;  %2481 = vmatprep.subr.bf16.mxu1 %v3519_v47  ;;  %v3607_v46 = vld [vmem:[%s3732_s7 + $0x8c0] ss:$16 sps:$4 sm:$0xff]   ;;  %v3610_v47 = vld [vmem:[%s3732_s7 + $0x8c8] ss:$16 sps:$4 sm:$0xff]  }
 0x108   : > { %2267 = vmatpush1.bf16.msra.mxu0 %v3514_v48  ;;  %2482 = vmatpush1.bf16.msra.mxu1 %v3517_v49  ;;  %v3615_v48 = vld [vmem:[%s3732_s7 + $0x8e4] ss:$16 sps:$4 sm:$0xff]   ;;  %v3618_v49 = vld [vmem:[%s3732_s7 + $0x8ec] ss:$16 sps:$4 sm:$0xff]  }
 0x109   : > { %2268 = vmatprep.subr.bf16.mxu0 %v3522_v50  ;;  %2483 = vmatprep.subr.bf16.mxu1 %v3525_v51  ;;  %v3613_v50 = vld [vmem:[%s3732_s7 + $0x8e0] ss:$16 sps:$4 sm:$0xff]   ;;  %v3616_v51 = vld [vmem:[%s3732_s7 + $0x8e8] ss:$16 sps:$4 sm:$0xff]  }
 0x10c   : > { %2269 = vmatpush1.bf16.msra.mxu0 %v3520_v52  ;;  %2484 = vmatpush1.bf16.msra.mxu1 %v3523_v53  ;;  %v3619_v52 = vld [vmem:[%s3734_s8 + $0x20] ss:$36 sps:$4 sm:$0xff]  }
 0x10d   : > { %2270 = vmatprep.subr.bf16.mxu0 %v3528_v54  ;;  %2485 = vmatprep.subr.bf16.mxu1 %v3531_v55  ;;  %v331_v53 = vld [vmem:[#allocation2] sm:$0xff]  ;;  %v333_v54 = vld [vmem:[#allocation2 + $0x10] sm:$0xff]  ;;  %v332_v55 = vld [vmem:[#allocation2 + $0x8] sm:$0xff] }
 0x110   : > { %2271 = vmatpush1.bf16.msra.mxu0 %v3526_v56  ;;  %2486 = vmatpush1.bf16.msra.mxu1 %v3529_v57  ;;  %v334_v56 = vld [vmem:[#allocation2 + $0x18] sm:$0xff] }
 0x111   : > { %2272 = vmatprep.subr.bf16.mxu0 %v3534_v58  ;;  %2487 = vmatprep.subr.bf16.mxu1 %v3537_v59  ;;  %v335_v59 = vld [vmem:[#allocation2 + $0x20] sm:$0xff] }
 0x114   : > { %2273 = vmatpush1.bf16.msra.mxu0 %v3532_v60  ;;  %2488 = vmatpush1.bf16.msra.mxu1 %v3535_v61  ;;  %v337_v60 = vld [vmem:[#allocation2 + $0x30] sm:$0xff] }
 0x115   : > { %2274 = vmatprep.subr.bf16.mxu0 %v3540_v62  ;;  %2489 = vmatprep.subr.bf16.mxu1 %v3543_v63 }
 0x118   : > { %2275 = vmatpush1.bf16.msra.mxu0 %v3538_v0  ;;  %2490 = vmatpush1.bf16.msra.mxu1 %v3541_v1  ;;  %v336_v1 = vld [vmem:[#allocation2 + $0x28] sm:$0xff] }
 0x119   : > { %2276 = vmatprep.subr.bf16.mxu0 %v3546_v2  ;;  %2491 = vmatprep.subr.bf16.mxu1 %v3549_v3  ;;  %v338_v2 = vld [vmem:[#allocation2 + $0x38] sm:$0xff] }
 0x11c   : > { %2277 = vmatpush1.bf16.msra.mxu0 %v3544_v4  ;;  %2492 = vmatpush1.bf16.msra.mxu1 %v3547_v5 }
 0x11d   : > { %2278 = vmatprep.subr.bf16.mxu0 %v3552_v6  ;;  %2493 = vmatprep.subr.bf16.mxu1 %v3555_v7 }
 0x120   : > { %2279 = vmatpush1.bf16.msra.mxu0 %v3550_v8  ;;  %2494 = vmatpush1.bf16.msra.mxu1 %v3553_v9 }
 0x121   : > { %2280 = vmatprep.subr.bf16.mxu0 %v3558_v10  ;;  %2495 = vmatprep.subr.bf16.mxu1 %v3561_v11 }
 0x124   : > { %2281 = vmatpush1.bf16.msra.mxu0 %v3556_v12  ;;  %2496 = vmatpush1.bf16.msra.mxu1 %v3559_v13  ;;  %v2583_v13 = vlaneseq (!%p3084_p11) }
 0x125   : > { %2282 = vmatprep.subr.bf16.mxu0 %v3564_v14  ;;  %2497 = vmatprep.subr.bf16.mxu1 %v3567_v15  ;;  %v2581_v15 = vld [vmem:[%s4067_s2] sm:$0xf] (!%p3084_p11) }
 0x126   : > { %v2584_v14 = vshrl.u32 (!%p3084_p11), %v2583_v13, 7 }
 0x128   : > { %2283 = vmatpush1.bf16.msra.mxu0 %v3562_v16  ;;  %2498 = vmatpush1.bf16.msra.mxu1 %v3565_v17 }
 0x129   : > { %2295 = vmatprep.subr.bf16.mxu0 %v3573_v18  ;;  %2510 = vmatprep.subr.bf16.mxu1 %v3576_v19  ;;  %v2585_v18 = vsub.s32 (!%p3084_p11), 0, %v2584_v14  ;;  %v2589_v19 = vsub.s32 (!%p3084_p11), 1, %v2584_v14 }
 0x12b   : > { %2285 = vmatmul.mubr.bf16.vlgmr.msra.gmra.mrb[0].mxu0 %v3568_v20  ;;  %2500 = vmatmul.mubr.bf16.vlgmr.msra.gmra.mrb[0].mxu1 %v3568_v20  ;;  %v2593_v20 = vsub.s32 (!%p3084_p11), 2, %v2584_v14 }
 0x12c   : > { %2296 = vmatpush1.bf16.msra.mxu0 %v3571_v21  ;;  %2511 = vmatpush1.bf16.msra.mxu1 %v3574_v22  ;;  %v2597_v21 = vsub.s32 (!%p3084_p11), 3, %v2584_v14 }
 0x12d   : > { %2297 = vmatprep.subr.bf16.mxu0 %v3579_v23  ;;  %2512 = vmatprep.subr.bf16.mxu1 %v3582_v24 }
 0x12e   : > { %2327 = vmatprep.mubr.bf16.mxu0 %v3661_v29  ;;  %2542 = vmatprep.mubr.bf16.mxu1 %v3661_v29 }
 0x130   : > { %2298 = vmatpush1.bf16.msra.mxu0 %v3577_v25  ;;  %2513 = vmatpush1.bf16.msra.mxu1 %v3580_v26  ;;  %v2586_v25 = vrot.slane (!%p3084_p11), %v2581_v15, %v2585_v18  ;;  %v2590_v26 = vrot.slane (!%p3084_p11), %v2581_v15, %v2589_v19 }
 0x131   : > { %2299 = vmatprep.subr.bf16.mxu0 %v3585_v27  ;;  %2514 = vmatprep.subr.bf16.mxu1 %v3588_v28  ;;  %v2594_v27 = vrot.slane (!%p3084_p11), %v2581_v15, %v2593_v20  ;;  %v2598_v28 = vrot.slane (!%p3084_p11), %v2581_v15, %v2597_v21 }
 0x134   : > { %2300 = vmatpush1.bf16.msra.mxu0 %v3583_v30  ;;  %2515 = vmatpush1.bf16.msra.mxu1 %v3586_v31 }
 0x135   : > { %2301 = vmatprep.subr.bf16.mxu0 %v3591_v32  ;;  %2516 = vmatprep.subr.bf16.mxu1 %v3594_v33 }
 0x138   : > { %2302 = vmatpush1.bf16.msra.mxu0 %v3589_v34  ;;  %2517 = vmatpush1.bf16.msra.mxu1 %v3592_v35 }
 0x139   : > { %2303 = vmatprep.subr.bf16.mxu0 %v3597_v36  ;;  %2518 = vmatprep.subr.bf16.mxu1 %v3600_v37 }
 0x13c   : > { %2304 = vmatpush1.bf16.msra.mxu0 %v3595_v38  ;;  %2519 = vmatpush1.bf16.msra.mxu1 %v3598_v39 }
 0x13d   : > { %2305 = vmatprep.subr.bf16.mxu0 %v3603_v40  ;;  %2520 = vmatprep.subr.bf16.mxu1 %v3606_v41 }
 0x140   : > { %2306 = vmatpush1.bf16.msra.mxu0 %v3601_v42  ;;  %2521 = vmatpush1.bf16.msra.mxu1 %v3604_v43 }
 0x141   : > { %2307 = vmatprep.subr.bf16.mxu0 %v3609_v44  ;;  %2522 = vmatprep.subr.bf16.mxu1 %v3612_v45 }
 0x144   : > { %2308 = vmatpush1.bf16.msra.mxu0 %v3607_v46  ;;  %2523 = vmatpush1.bf16.msra.mxu1 %v3610_v47 }
 0x145   : > { %2309 = vmatprep.subr.bf16.mxu0 %v3615_v48  ;;  %2524 = vmatprep.subr.bf16.mxu1 %v3618_v49 }
 0x148   : > { %2310 = vmatpush1.bf16.msra.mxu0 %v3613_v50  ;;  %2525 = vmatpush1.bf16.msra.mxu1 %v3616_v51 }
 0x14b   : > { %2328 = vmatmul.mubr.bf16.vlgmr.msra.gmra.mrb[0].mxu0 %v3619_v52  ;;  %2543 = vmatmul.mubr.bf16.vlgmr.msra.gmra.mrb[0].mxu1 %v3619_v52 }
 0x21e   : > { %v2329_v57 = vpop.f32.mrb[0].mxu0  ;;  %v2544_v58 = vpop.f32.mrb[0].mxu1  ;;  %2572 = sbr.rel (%p3084_p11) target bundleno = 563 (0x233), region = 66 }
 0x21f   : > { %v2553_v61 = vadd.f32 %v2329_v57, %v331_v53  ;;  %v2555_v62 = vadd.f32 %v2544_v58, %v333_v54  ;;  %v2331_v63 = vpop.f32.mrb[1].mxu0  ;;  %v2546_v0 = vpop.f32.mrb[1].mxu1 }
 0x220   : > { %v2554_v3 = vadd.f32 %v2331_v63, %v332_v55  ;;  %v2556_v4 = vadd.f32 %v2546_v0, %v334_v56  ;;  %v2333_v5 = vpop.f32.mrb[2].mxu0  ;;  %v2548_v6 = vpop.f32.mrb[2].mxu1 }
 0x221   : > { %2561 = vst [vmem:[#allocation2] sm:$0xff] %v2553_v61  ;;  %2563 = vst [vmem:[#allocation2 + $0x10] sm:$0xff] %v2555_v62  ;;  %v2557_v7 = vadd.f32 %v2333_v5, %v335_v59  ;;  %v2559_v8 = vadd.f32 %v2548_v6, %v337_v60  ;;  %v2335_v9 = vpop.f32.mrb[3].mxu0  ;;  %v2550_v10 = vpop.f32.mrb[3].mxu1 }
 0x222   : > { %2562 = vst [vmem:[#allocation2 + $0x8] sm:$0xff] %v2554_v3  ;;  %2564 = vst [vmem:[#allocation2 + $0x18] sm:$0xff] %v2556_v4  ;;  %v2558_v11 = vadd.f32 %v2335_v9, %v336_v1  ;;  %v2560_v12 = vadd.f32 %v2550_v10, %v338_v2 }
 0x223   : > { %2565 = vst [vmem:[#allocation2 + $0x20] sm:$0xff] %v2557_v7  ;;  %2567 = vst [vmem:[#allocation2 + $0x30] sm:$0xff] %v2559_v8 }
 0x224   : > { %2566 = vst [vmem:[#allocation2 + $0x28] sm:$0xff] %v2558_v11  ;;  %2568 = vst [vmem:[#allocation2 + $0x38] sm:$0xff] %v2560_v12 }
 0x228   : > { %v2573_v16 = vld [vmem:[#allocation2] sm:$0xff]  ;;  %v2575_v22 = vld [vmem:[#allocation2 + $0x10] sm:$0xff] }
 0x229   : > { %v2574_v17 = vld [vmem:[#allocation2 + $0x8] sm:$0xff]  ;;  %v2576_v23 = vld [vmem:[#allocation2 + $0x18] sm:$0xff]  ;;  %v2603_v32 = vadd.f32 %v2586_v25, %v2573_v16  ;;  %v2605_v34 = vadd.f32 %v2594_v27, %v2575_v22 }
 0x22a   : > { %v2577_v24 = vld [vmem:[#allocation2 + $0x20] sm:$0xff]  ;;  %v2579_v30 = vld [vmem:[#allocation2 + $0x30] sm:$0xff]  ;;  %v2604_v33 = vadd.f32 %v2590_v26, %v2574_v17  ;;  %v2606_v35 = vadd.f32 %v2598_v28, %v2576_v23 }
 0x22b   : > { %v2578_v29 = vld [vmem:[#allocation2 + $0x28] sm:$0xff]  ;;  %v2580_v31 = vld [vmem:[#allocation2 + $0x38] sm:$0xff]  ;;  %v2607_v36 = vadd.f32 %v2586_v25, %v2577_v24  ;;  %v2609_v38 = vadd.f32 %v2594_v27, %v2579_v30  ;;  %v2611_v40 = vmax.f32 %v2603_v32, 0.0  ;;  %v2613_v42 = vmax.f32 %v2605_v34, 0.0 }
 0x22c   : > { %v2608_v37 = vadd.f32 %v2590_v26, %v2578_v29  ;;  %v2610_v39 = vadd.f32 %v2598_v28, %v2580_v31  ;;  %v2612_v41 = vmax.f32 %v2604_v33, 0.0  ;;  %v2614_v43 = vmax.f32 %v2606_v35, 0.0 }
 0x22d   : > { %v2615_v44 = vmax.f32 %v2607_v36, 0.0  ;;  %v2617_v46 = vmax.f32 %v2609_v38, 0.0 }
 0x22e   : > { %v2616_v45 = vmax.f32 %v2608_v37, 0.0  ;;  %v2618_v47 = vmax.f32 %v2610_v39, 0.0  ;;  %v3095_v48 = vpack.c.bf16 %v2612_v41, %v2611_v40  ;;  %v3096_v49 = vpack.c.bf16 %v2614_v43, %v2613_v42 }
 0x230   : > { %v3097_v50 = vpack.c.bf16 %v2616_v45, %v2615_v44  ;;  %v3098_v51 = vpack.c.bf16 %v2618_v47, %v2617_v46  ;;  %2643 = vst [vmem:[%s4068_s3] sm:$0xff] %v3095_v48  ;;  %2644 = vst [vmem:[%s4068_s3 + $0x8] sm:$0xff] %v3096_v49 }
 0x232   : > { %2645 = vst [vmem:[%s4068_s3 + $0x10] sm:$0xff] %v3097_v50  ;;  %2646 = vst [vmem:[%s4068_s3 + $0x18] sm:$0xff] %v3098_v51 }
 0x233 PF: > { %s13_s16 = sadd.s32 1, %s3658_s16   ;;  %s4069_s12 = smov %s3646_s13 }
 0x234   : > { %p10_p12 = scmp.ge.s32.totalorder %s13_s16, 4   ;;  %s4070_s13 = smov %s3717_s20 }
 0x235   : > { %s4071_s14 = smov %s3654_s15  ;;  %s4072_s15 = smov %s4074_s17 }
 0x236   :  { %12 = sbr.rel (!%p10_p12) target bundleno = 3 (0x3), region = 113 }

// kernel: _lambda_.23
= control target key start
LH: loop header
LB: loop body
LE: loop exit
PB: predicated region body
PF: predicated region fallthrough
CT: control target
= control target key end

     0   :  { %s1011_s1 = inlined_call_operand.vmem [shape: bf16[256,512], index: 1, kind: input, shape index: {}]   ;;  %s1012_s0 = inlined_call_operand.vmem [shape: bf16[16,256], index: 0, kind: input, shape index: {}]   ;;  %s1013_s2 = inlined_call_operand.vmem [shape: f32[1,512], index: 2, kind: input, shape index: {}]   ;;  %s1014_s3 = inlined_call_operand.vmem [shape: bf16[16,512], index: 3, kind: output, shape index: {}]  }
   0x1   :  { %v679_v0 = vld [vmem:[%s1011_s1 + $0x4] ss:$16 sps:$4 sm:$0xff]   ;;  %v681_v1 = vld [vmem:[%s1011_s1 + $0xc] ss:$16 sps:$4 sm:$0xff]   ;;  %v683_v2 = vld [vmem:[%s1011_s1] ss:$16 sps:$4 sm:$0xff]  }
   0x2   :  { %430 = vmatprep.subr.bf16.mxu0 %v679_v0  ;;  %v684_v3 = vld [vmem:[%s1011_s1 + $0x8] ss:$16 sps:$4 sm:$0xff]   ;;  %473 = vmatprep.subr.bf16.mxu1 %v681_v1  ;;  %v685_v4 = vld [vmem:[%s1011_s1 + $0x24] ss:$16 sps:$4 sm:$0xff]   ;;  %v687_v5 = vld [vmem:[%s1011_s1 + $0x2c] ss:$16 sps:$4 sm:$0xff]  }
   0x3   :  { %431 = vmatpush1.bf16.msra.mxu0 %v683_v2  ;;  %474 = vmatpush1.bf16.msra.mxu1 %v684_v3  ;;  %v689_v6 = vld [vmem:[%s1011_s1 + $0x20] ss:$16 sps:$4 sm:$0xff]   ;;  %v690_v7 = vld [vmem:[%s1011_s1 + $0x28] ss:$16 sps:$4 sm:$0xff]   ;;  %v691_v8 = vld [vmem:[%s1011_s1 + $0x44] ss:$16 sps:$4 sm:$0xff]   ;;  %v545_v2 = vlaneseq }
   0x4   :  { %432 = vmatprep.subr.bf16.mxu0 %v685_v4  ;;  %475 = vmatprep.subr.bf16.mxu1 %v687_v5  ;;  %v693_v9 = vld [vmem:[%s1011_s1 + $0x4c] ss:$16 sps:$4 sm:$0xff]   ;;  %v695_v10 = vld [vmem:[%s1011_s1 + $0x40] ss:$16 sps:$4 sm:$0xff]   ;;  %v696_v11 = vld [vmem:[%s1011_s1 + $0x48] ss:$16 sps:$4 sm:$0xff]  }
   0x5   :  { %v697_v12 = vld [vmem:[%s1011_s1 + $0x64] ss:$16 sps:$4 sm:$0xff]   ;;  %v699_v13 = vld [vmem:[%s1011_s1 + $0x6c] ss:$16 sps:$4 sm:$0xff]   ;;  %v701_v14 = vld [vmem:[%s1011_s1 + $0x60] ss:$16 sps:$4 sm:$0xff]  }
   0x6   :  { %v702_v15 = vld [vmem:[%s1011_s1 + $0x68] ss:$16 sps:$4 sm:$0xff]   ;;  %v703_v16 = vld [vmem:[%s1011_s1 + $0x84] ss:$16 sps:$4 sm:$0xff]   ;;  %v705_v17 = vld [vmem:[%s1011_s1 + $0x8c] ss:$16 sps:$4 sm:$0xff]  }
   0x7   :  { %433 = vmatpush1.bf16.msra.mxu0 %v689_v6  ;;  %476 = vmatpush1.bf16.msra.mxu1 %v690_v7  ;;  %v707_v18 = vld [vmem:[%s1011_s1 + $0x80] ss:$16 sps:$4 sm:$0xff]   ;;  %v708_v19 = vld [vmem:[%s1011_s1 + $0x88] ss:$16 sps:$4 sm:$0xff]   ;;  %v709_v20 = vld [vmem:[%s1011_s1 + $0xa4] ss:$16 sps:$4 sm:$0xff]  }
   0x8   :  { %434 = vmatprep.subr.bf16.mxu0 %v691_v8  ;;  %477 = vmatprep.subr.bf16.mxu1 %v693_v9  ;;  %v711_v21 = vld [vmem:[%s1011_s1 + $0xac] ss:$16 sps:$4 sm:$0xff]   ;;  %v713_v22 = vld [vmem:[%s1011_s1 + $0xa0] ss:$16 sps:$4 sm:$0xff]   ;;  %v714_v23 = vld [vmem:[%s1011_s1 + $0xa8] ss:$16 sps:$4 sm:$0xff]  }
   0x9   :  { %v715_v24 = vld [vmem:[%s1011_s1 + $0xc4] ss:$16 sps:$4 sm:$0xff]   ;;  %v717_v25 = vld [vmem:[%s1011_s1 + $0xcc] ss:$16 sps:$4 sm:$0xff]   ;;  %v719_v26 = vld [vmem:[%s1011_s1 + $0xc0] ss:$16 sps:$4 sm:$0xff]  }
   0xa   :  { %v720_v27 = vld [vmem:[%s1011_s1 + $0xc8] ss:$16 sps:$4 sm:$0xff]   ;;  %v721_v28 = vld [vmem:[%s1011_s1 + $0xe4] ss:$16 sps:$4 sm:$0xff]   ;;  %v723_v29 = vld [vmem:[%s1011_s1 + $0xec] ss:$16 sps:$4 sm:$0xff]  }
   0xb   :  { %435 = vmatpush1.bf16.msra.mxu0 %v695_v10  ;;  %478 = vmatpush1.bf16.msra.mxu1 %v696_v11  ;;  %v725_v30 = vld [vmem:[%s1011_s1 + $0xe0] ss:$16 sps:$4 sm:$0xff]   ;;  %v726_v31 = vld [vmem:[%s1011_s1 + $0xe8] ss:$16 sps:$4 sm:$0xff]   ;;  %v727_v32 = vld [vmem:[%s1011_s1 + $0x104] ss:$16 sps:$4 sm:$0xff]  }
   0xc   :  { %436 = vmatprep.subr.bf16.mxu0 %v697_v12  ;;  %479 = vmatprep.subr.bf16.mxu1 %v699_v13  ;;  %v729_v33 = vld [vmem:[%s1011_s1 + $0x10c] ss:$16 sps:$4 sm:$0xff]   ;;  %v731_v34 = vld [vmem:[%s1011_s1 + $0x100] ss:$16 sps:$4 sm:$0xff]   ;;  %v732_v35 = vld [vmem:[%s1011_s1 + $0x108] ss:$16 sps:$4 sm:$0xff]  }
   0xd   :  { %v733_v36 = vld [vmem:[%s1011_s1 + $0x124] ss:$16 sps:$4 sm:$0xff]   ;;  %v735_v37 = vld [vmem:[%s1011_s1 + $0x12c] ss:$16 sps:$4 sm:$0xff]   ;;  %v737_v38 = vld [vmem:[%s1011_s1 + $0x120] ss:$16 sps:$4 sm:$0xff]  }
   0xe   :  { %v738_v39 = vld [vmem:[%s1011_s1 + $0x128] ss:$16 sps:$4 sm:$0xff]   ;;  %v739_v40 = vld [vmem:[%s1011_s1 + $0x144] ss:$16 sps:$4 sm:$0xff]   ;;  %v741_v41 = vld [vmem:[%s1011_s1 + $0x14c] ss:$16 sps:$4 sm:$0xff]  }
   0xf   :  { %437 = vmatpush1.bf16.msra.mxu0 %v701_v14  ;;  %480 = vmatpush1.bf16.msra.mxu1 %v702_v15  ;;  %v743_v42 = vld [vmem:[%s1011_s1 + $0x140] ss:$16 sps:$4 sm:$0xff]   ;;  %v744_v43 = vld [vmem:[%s1011_s1 + $0x148] ss:$16 sps:$4 sm:$0xff]   ;;  %v745_v44 = vld [vmem:[%s1011_s1 + $0x164] ss:$16 sps:$4 sm:$0xff]  }
  0x10   :  { %438 = vmatprep.subr.bf16.mxu0 %v703_v16  ;;  %481 = vmatprep.subr.bf16.mxu1 %v705_v17  ;;  %v747_v45 = vld [vmem:[%s1011_s1 + $0x16c] ss:$16 sps:$4 sm:$0xff]   ;;  %v749_v47 = vld [vmem:[%s1011_s1 + $0x160] ss:$16 sps:$4 sm:$0xff]   ;;  %v750_v48 = vld [vmem:[%s1011_s1 + $0x168] ss:$16 sps:$4 sm:$0xff]  }
  0x11   :  { %v777_v46 = vld [vmem:[%s1012_s0 + $0x4] ss:$8 sps:$4 sm:$0xff]   ;;  %v755_v51 = vld [vmem:[%s1011_s1 + $0x180] ss:$16 sps:$4 sm:$0xff]   ;;  %v756_v52 = vld [vmem:[%s1011_s1 + $0x188] ss:$16 sps:$4 sm:$0xff]  }
  0x12   :  { %v751_v49 = vld [vmem:[%s1011_s1 + $0x184] ss:$16 sps:$4 sm:$0xff]   ;;  %v753_v50 = vld [vmem:[%s1011_s1 + $0x18c] ss:$16 sps:$4 sm:$0xff]   ;;  %462 = vmatprep.mubr.bf16.mxu0 %v777_v46  ;;  %505 = vmatprep.mubr.bf16.mxu1 %v777_v46  ;;  %v761_v55 = vld [vmem:[%s1011_s1 + $0x1a0] ss:$16 sps:$4 sm:$0xff]  }
  0x13   :  { %439 = vmatpush1.bf16.msra.mxu0 %v707_v18  ;;  %482 = vmatpush1.bf16.msra.mxu1 %v708_v19  ;;  %v757_v53 = vld [vmem:[%s1011_s1 + $0x1a4] ss:$16 sps:$4 sm:$0xff]   ;;  %v759_v54 = vld [vmem:[%s1011_s1 + $0x1ac] ss:$16 sps:$4 sm:$0xff]   ;;  %v762_v56 = vld [vmem:[%s1011_s1 + $0x1a8] ss:$16 sps:$4 sm:$0xff]  }
  0x14   :  { %440 = vmatprep.subr.bf16.mxu0 %v709_v20  ;;  %483 = vmatprep.subr.bf16.mxu1 %v711_v21  ;;  %v763_v57 = vld [vmem:[%s1011_s1 + $0x1c4] ss:$16 sps:$4 sm:$0xff]   ;;  %v765_v58 = vld [vmem:[%s1011_s1 + $0x1cc] ss:$16 sps:$4 sm:$0xff]   ;;  %v767_v59 = vld [vmem:[%s1011_s1 + $0x1c0] ss:$16 sps:$4 sm:$0xff]  }
  0x15   :  { %v768_v60 = vld [vmem:[%s1011_s1 + $0x1c8] ss:$16 sps:$4 sm:$0xff]   ;;  %v769_v61 = vld [vmem:[%s1011_s1 + $0x1e4] ss:$16 sps:$4 sm:$0xff]   ;;  %v771_v62 = vld [vmem:[%s1011_s1 + $0x1ec] ss:$16 sps:$4 sm:$0xff]  }
  0x16   :  { %v773_v63 = vld [vmem:[%s1011_s1 + $0x1e0] ss:$16 sps:$4 sm:$0xff]   ;;  %v774_v0 = vld [vmem:[%s1011_s1 + $0x1e8] ss:$16 sps:$4 sm:$0xff]   ;;  %v546_v3 = vshrl.u32 %v545_v2, 7 }
  0x17   :  { %441 = vmatpush1.bf16.msra.mxu0 %v713_v22  ;;  %484 = vmatpush1.bf16.msra.mxu1 %v714_v23  ;;  %v775_v1 = vld [vmem:[%s1012_s0] ss:$8 sps:$4 sm:$0xff]  }
  0x18   :  { %442 = vmatprep.subr.bf16.mxu0 %v715_v24  ;;  %485 = vmatprep.subr.bf16.mxu1 %v717_v25  ;;  %v547_v4 = vsub.s32 0, %v546_v3  ;;  %v555_v5 = vsub.s32 2, %v546_v3  ;;  %v543_v6 = vld [vmem:[%s1013_s2] sm:$0xf]  ;;  %v551_v7 = vsub.s32 1, %v546_v3  ;;  %v559_v8 = vsub.s32 3, %v546_v3 }
  0x1a   :  { %v548_v9 = vrot.slane %v543_v6, %v547_v4  ;;  %v556_v10 = vrot.slane %v543_v6, %v555_v5  ;;  %v552_v11 = vrot.slane %v543_v6, %v551_v7  ;;  %v560_v12 = vrot.slane %v543_v6, %v559_v8 }
  0x1b   :  { %443 = vmatpush1.bf16.msra.mxu0 %v719_v26  ;;  %486 = vmatpush1.bf16.msra.mxu1 %v720_v27 }
  0x1c   :  { %444 = vmatprep.subr.bf16.mxu0 %v721_v28  ;;  %487 = vmatprep.subr.bf16.mxu1 %v723_v29 }
  0x1f   :  { %445 = vmatpush1.bf16.msra.mxu0 %v725_v30  ;;  %488 = vmatpush1.bf16.msra.mxu1 %v726_v31 }
  0x20   :  { %446 = vmatprep.subr.bf16.mxu0 %v727_v32  ;;  %489 = vmatprep.subr.bf16.mxu1 %v729_v33 }
  0x23   :  { %447 = vmatpush1.bf16.msra.mxu0 %v731_v34  ;;  %490 = vmatpush1.bf16.msra.mxu1 %v732_v35 }
  0x24   :  { %448 = vmatprep.subr.bf16.mxu0 %v733_v36  ;;  %491 = vmatprep.subr.bf16.mxu1 %v735_v37 }
  0x27   :  { %449 = vmatpush1.bf16.msra.mxu0 %v737_v38  ;;  %492 = vmatpush1.bf16.msra.mxu1 %v738_v39 }
  0x28   :  { %450 = vmatprep.subr.bf16.mxu0 %v739_v40  ;;  %493 = vmatprep.subr.bf16.mxu1 %v741_v41 }
  0x2b   :  { %451 = vmatpush1.bf16.msra.mxu0 %v743_v42  ;;  %494 = vmatpush1.bf16.msra.mxu1 %v744_v43 }
  0x2c   :  { %452 = vmatprep.subr.bf16.mxu0 %v745_v44  ;;  %495 = vmatprep.subr.bf16.mxu1 %v747_v45 }
  0x2f   :  { %453 = vmatpush1.bf16.msra.mxu0 %v749_v47  ;;  %496 = vmatpush1.bf16.msra.mxu1 %v750_v48 }
  0x30   :  { %454 = vmatprep.subr.bf16.mxu0 %v751_v49  ;;  %497 = vmatprep.subr.bf16.mxu1 %v753_v50 }
  0x33   :  { %455 = vmatpush1.bf16.msra.mxu0 %v755_v51  ;;  %498 = vmatpush1.bf16.msra.mxu1 %v756_v52 }
  0x34   :  { %456 = vmatprep.subr.bf16.mxu0 %v757_v53  ;;  %499 = vmatprep.subr.bf16.mxu1 %v759_v54 }
  0x37   :  { %457 = vmatpush1.bf16.msra.mxu0 %v761_v55  ;;  %500 = vmatpush1.bf16.msra.mxu1 %v762_v56 }
  0x38   :  { %458 = vmatprep.subr.bf16.mxu0 %v763_v57  ;;  %501 = vmatprep.subr.bf16.mxu1 %v765_v58 }
  0x3b   :  { %459 = vmatpush1.bf16.msra.mxu0 %v767_v59  ;;  %502 = vmatpush1.bf16.msra.mxu1 %v768_v60 }
  0x3c   :  { %460 = vmatprep.subr.bf16.mxu0 %v769_v61  ;;  %503 = vmatprep.subr.bf16.mxu1 %v771_v62 }
  0x3f   :  { %461 = vmatpush1.bf16.msra.mxu0 %v773_v63  ;;  %504 = vmatpush1.bf16.msra.mxu1 %v774_v0 }
  0x42   :  { %463 = vmatmul.mubr.bf16.vlgmr.msra.gmra.mrb[0].mxu0 %v775_v1  ;;  %506 = vmatmul.mubr.bf16.vlgmr.msra.gmra.mrb[0].mxu1 %v775_v1 }
 0x115   :  { %v464_v13 = vpop.f32.mrb[0].mxu0  ;;  %v507_v14 = vpop.f32.mrb[0].mxu1 }
 0x116   :  { %v565_v15 = vadd.f32 %v548_v9, %v464_v13  ;;  %v567_v16 = vadd.f32 %v556_v10, %v507_v14  ;;  %v466_v17 = vpop.f32.mrb[1].mxu0  ;;  %v509_v18 = vpop.f32.mrb[1].mxu1 }
 0x117   :  { %v566_v19 = vadd.f32 %v552_v11, %v466_v17  ;;  %v568_v20 = vadd.f32 %v560_v12, %v509_v18  ;;  %v468_v21 = vpop.f32.mrb[2].mxu0  ;;  %v511_v22 = vpop.f32.mrb[2].mxu1 }
 0x118   :  { %v569_v23 = vadd.f32 %v548_v9, %v468_v21  ;;  %v571_v24 = vadd.f32 %v556_v10, %v511_v22  ;;  %v470_v25 = vpop.f32.mrb[3].mxu0  ;;  %v513_v26 = vpop.f32.mrb[3].mxu1 }
 0x119   :  { %v675_v27 = vpack.c.bf16 %v566_v19, %v565_v15  ;;  %v676_v28 = vpack.c.bf16 %v568_v20, %v567_v16  ;;  %v570_v29 = vadd.f32 %v552_v11, %v470_v25  ;;  %v572_v30 = vadd.f32 %v560_v12, %v513_v26 }
 0x11b   :  { %597 = vst [vmem:[%s1014_s3] sm:$0xff] %v675_v27  ;;  %598 = vst [vmem:[%s1014_s3 + $0x8] sm:$0xff] %v676_v28  ;;  %v677_v31 = vpack.c.bf16 %v570_v29, %v569_v23  ;;  %v678_v32 = vpack.c.bf16 %v572_v30, %v571_v24 }
 0x11d   :  { %599 = vst [vmem:[%s1014_s3 + $0x10] sm:$0xff] %v677_v31  ;;  %600 = vst [vmem:[%s1014_s3 + $0x18] sm:$0xff] %v678_v32 }

// kernel: _lambda_.25
= control target key start
LH: loop header
LB: loop body
LE: loop exit
PB: predicated region body
PF: predicated region fallthrough
CT: control target
= control target key end

     0   :  { %vm31_vm0 = vcmask 1043456   ;;  %s774_s0 = inlined_call_operand.vmem [shape: f32[2,4,512], index: 0, kind: input, shape index: {}]   ;;  %s775_s1 = inlined_call_operand.vmem [shape: f32[512,10], index: 1, kind: input, shape index: {}]   ;;  %s776_s2 = inlined_call_operand.vmem [shape: f32[1,10], index: 2, kind: input, shape index: {}]   ;;  %s777_s3 = inlined_call_operand.hbm [shape: f32[2,10], index: 3, kind: output, shape index: {}]  }
   0x1   :  { %v112_v0 = vld [vmem:[%s775_s1 + $0x80] sm:$0xff]  ;;  %v113_v1 = vld [vmem:[%s775_s1 + $0x88] sm:$0xff]  ;;  %v114_v11 = vld [vmem:[%s775_s1 + $0x90] sm:$0xff] }
   0x2   :  { %v96_v2 = vld [vmem:[%s775_s1] sm:$0xff]  ;;  %v411_v3 = vpack.c.bf16 %v113_v1, %v112_v0  ;;  %v97_v4 = vld [vmem:[%s775_s1 + $0x8] sm:$0xff]  ;;  %v115_v13 = vld [vmem:[%s775_s1 + $0x98] sm:$0xff] }
   0x3   :  { %v144_v5 = vld [vmem:[%s775_s1 + $0x180] sm:$0xff]  ;;  %v145_v6 = vld [vmem:[%s775_s1 + $0x188] sm:$0xff]  ;;  %v413_v7 = vpack.c.bf16 %v97_v4, %v96_v2  ;;  %v98_v14 = vld [vmem:[%s775_s1 + $0x10] sm:$0xff]  ;;  %v415_v16 = vpack.c.bf16 %v115_v13, %v114_v11 }
   0x4   :  { %v443_v8 = vpack.c.bf16 %v145_v6, %v144_v5  ;;  %v128_v9 = vld [vmem:[%s775_s1 + $0x100] sm:$0xff]  ;;  %v129_v10 = vld [vmem:[%s775_s1 + $0x108] sm:$0xff]  ;;  %412 = vmatprep.subr.bf16.mxu0 %v411_v3  ;;  %v99_v15 = vld [vmem:[%s775_s1 + $0x18] sm:$0xff] }
   0x5   :  { %v445_v12 = vpack.c.bf16 %v129_v10, %v128_v9  ;;  %414 = vmatpush3.bf16.msra.mxu0 %v413_v7  ;;  %v417_v17 = vpack.c.bf16 %v99_v15, %v98_v14  ;;  %v146_v18 = vld [vmem:[%s775_s1 + $0x190] sm:$0xff]  ;;  %v147_v19 = vld [vmem:[%s775_s1 + $0x198] sm:$0xff]  ;;  %v116_v23 = vld [vmem:[%s775_s1 + $0xa0] sm:$0xff] }
   0x6   :  { %444 = vmatprep.subr.bf16.mxu1 %v443_v8  ;;  %v130_v20 = vld [vmem:[%s775_s1 + $0x110] sm:$0xff]  ;;  %v447_v21 = vpack.c.bf16 %v147_v19, %v146_v18  ;;  %v131_v22 = vld [vmem:[%s775_s1 + $0x118] sm:$0xff]  ;;  %v117_v24 = vld [vmem:[%s775_s1 + $0xa8] sm:$0xff]  ;;  %416 = vmatprep.subr.bf16.mxu0 %v415_v16 }
   0x7   :  { %446 = vmatpush3.bf16.msra.mxu1 %v445_v12  ;;  %v449_v25 = vpack.c.bf16 %v131_v22, %v130_v20  ;;  %v419_v26 = vpack.c.bf16 %v117_v24, %v116_v23  ;;  %v100_v27 = vld [vmem:[%s775_s1 + $0x20] sm:$0xff]  ;;  %v101_v28 = vld [vmem:[%s775_s1 + $0x28] sm:$0xff]  ;;  %v118_v35 = vld [vmem:[%s775_s1 + $0xb0] sm:$0xff] }
   0x8   :  { %v148_v29 = vld [vmem:[%s775_s1 + $0x1a0] sm:$0xff]  ;;  %448 = vmatprep.subr.bf16.mxu1 %v447_v21  ;;  %v149_v30 = vld [vmem:[%s775_s1 + $0x1a8] sm:$0xff]  ;;  %v421_v33 = vpack.c.bf16 %v101_v28, %v100_v27  ;;  %v119_v36 = vld [vmem:[%s775_s1 + $0xb8] sm:$0xff] }
   0x9   :  { %v132_v31 = vld [vmem:[%s775_s1 + $0x120] sm:$0xff]  ;;  %v133_v32 = vld [vmem:[%s775_s1 + $0x128] sm:$0xff]  ;;  %418 = vmatpush3.bf16.msra.mxu0 %v417_v17  ;;  %v451_v34 = vpack.c.bf16 %v149_v30, %v148_v29  ;;  %v102_v37 = vld [vmem:[%s775_s1 + $0x30] sm:$0xff]  ;;  %v423_v39 = vpack.c.bf16 %v119_v36, %v118_v35 }
   0xa   :  { %420 = vmatprep.subr.bf16.mxu0 %v419_v26  ;;  %v453_v38 = vpack.c.bf16 %v133_v32, %v132_v31  ;;  %v103_v40 = vld [vmem:[%s775_s1 + $0x38] sm:$0xff]  ;;  %v150_v41 = vld [vmem:[%s775_s1 + $0x1b0] sm:$0xff]  ;;  %v120_v46 = vld [vmem:[%s775_s1 + $0xc0] sm:$0xff] }
   0xb   :  { %450 = vmatpush3.bf16.msra.mxu1 %v449_v25  ;;  %v151_v42 = vld [vmem:[%s775_s1 + $0x1b8] sm:$0xff]  ;;  %v134_v44 = vld [vmem:[%s775_s1 + $0x130] sm:$0xff]  ;;  %v121_v47 = vld [vmem:[%s775_s1 + $0xc8] sm:$0xff]  ;;  %v425_v50 = vpack.c.bf16 %v103_v40, %v102_v37 }
   0xc   :  { %452 = vmatprep.subr.bf16.mxu1 %v451_v34  ;;  %v455_v43 = vpack.c.bf16 %v151_v42, %v150_v41  ;;  %v135_v45 = vld [vmem:[%s775_s1 + $0x138] sm:$0xff]  ;;  %v104_v48 = vld [vmem:[%s775_s1 + $0x40] sm:$0xff]  ;;  %v105_v49 = vld [vmem:[%s775_s1 + $0x48] sm:$0xff]  ;;  %v427_v55 = vpack.c.bf16 %v121_v47, %v120_v46 }
   0xd   :  { %422 = vmatpush3.bf16.msra.mxu0 %v421_v33  ;;  %v152_v51 = vld [vmem:[%s775_s1 + $0x1c0] sm:$0xff]  ;;  %v153_v52 = vld [vmem:[%s775_s1 + $0x1c8] sm:$0xff]  ;;  %v457_v54 = vpack.c.bf16 %v135_v45, %v134_v44  ;;  %v122_v57 = vld [vmem:[%s775_s1 + $0xd0] sm:$0xff]  ;;  %v429_v2 = vpack.c.bf16 %v105_v49, %v104_v48 }
   0xe   :  { %v136_v53 = vld [vmem:[%s775_s1 + $0x140] sm:$0xff]  ;;  %424 = vmatprep.subr.bf16.mxu0 %v423_v39  ;;  %v137_v56 = vld [vmem:[%s775_s1 + $0x148] sm:$0xff]  ;;  %v123_v58 = vld [vmem:[%s775_s1 + $0xd8] sm:$0xff]  ;;  %v459_v59 = vpack.c.bf16 %v153_v52, %v152_v51 }
   0xf   :  { %454 = vmatpush3.bf16.msra.mxu1 %v453_v38  ;;  %v106_v60 = vld [vmem:[%s775_s1 + $0x50] sm:$0xff]  ;;  %v107_v61 = vld [vmem:[%s775_s1 + $0x58] sm:$0xff]  ;;  %v124_v3 = vld [vmem:[%s775_s1 + $0xe0] sm:$0xff]  ;;  %v461_v6 = vpack.c.bf16 %v137_v56, %v136_v53  ;;  %v431_v7 = vpack.c.bf16 %v123_v58, %v122_v57 }
  0x10   :  { %456 = vmatprep.subr.bf16.mxu1 %v455_v43  ;;  %v154_v62 = vld [vmem:[%s775_s1 + $0x1d0] sm:$0xff]  ;;  %v155_v63 = vld [vmem:[%s775_s1 + $0x1d8] sm:$0xff]  ;;  %v125_v4 = vld [vmem:[%s775_s1 + $0xe8] sm:$0xff]  ;;  %v433_v15 = vpack.c.bf16 %v107_v61, %v106_v60 }
  0x11   :  { %v138_v0 = vld [vmem:[%s775_s1 + $0x150] sm:$0xff]  ;;  %v139_v1 = vld [vmem:[%s775_s1 + $0x158] sm:$0xff]  ;;  %426 = vmatpush3.bf16.msra.mxu0 %v425_v50  ;;  %v678_v5 = vld [vmem:[%s775_s1 + $0x60] sm:$0xff]  ;;  %v463_v11 = vpack.c.bf16 %v155_v63, %v154_v62  ;;  %v435_v20 = vpack.c.bf16 %v125_v4, %v124_v3 }
  0x12   :  { %428 = vmatprep.subr.bf16.mxu0 %v427_v55  ;;  %v683_v8 = vld [vmem:[%s775_s1 + $0x68] sm:$0xff]  ;;  %v156_v9 = vld [vmem:[%s775_s1 + $0x1e0] sm:$0xff]  ;;  %v126_v14 = vld [vmem:[%s775_s1 + $0xf0] sm:$0xff]  ;;  %v465_v16 = vpack.c.bf16 %v139_v1, %v138_v0 }
  0x13   :  { %458 = vmatpush3.bf16.msra.mxu1 %v457_v54  ;;  %v157_v10 = vld [vmem:[%s775_s1 + $0x1e8] sm:$0xff]  ;;  %v694_v12 = vld [vmem:[%s775_s1 + $0x160] sm:$0xff]  ;;  %v127_v17 = vld [vmem:[%s775_s1 + $0xf8] sm:$0xff]  ;;  %v437_v21 = vpack.c.bf16 %v683_v8, %v678_v5 }
  0x14   :  { %460 = vmatprep.subr.bf16.mxu1 %v459_v59  ;;  %v141_v13 = vld [vmem:[%s775_s1 + $0x168] sm:$0xff]  ;;  %v708_v18 = vld [vmem:[%s775_s1 + $0x70] sm:$0xff]  ;;  %v713_v19 = vld [vmem:[%s775_s1 + $0x78] sm:$0xff]  ;;  %v467_v22 = vpack.c.bf16 %v157_v10, %v156_v9  ;;  %v439_v27 = vpack.c.bf16 %v127_v17, %v126_v14 }
  0x15   :  { %430 = vmatpush3.bf16.msra.mxu0 %v429_v2  ;;  %v469_v23 = vpack.c.bf16 %v141_v13, %v694_v12  ;;  %v158_v24 = vld [vmem:[%s775_s1 + $0x1f0] sm:$0xff]  ;;  %v159_v25 = vld [vmem:[%s775_s1 + $0x1f8] sm:$0xff]  ;;  %v441_v28 = vpack.c.bf16 %v713_v19, %v708_v18  ;;  %v15_v31 = vld [vmem:[%s774_s0] sm:$0xff] }
  0x16   :  { %v727_v26 = vld [vmem:[%s775_s1 + $0x170] sm:$0xff]  ;;  %432 = vmatprep.subr.bf16.mxu0 %v431_v7  ;;  %v471_v29 = vpack.c.bf16 %v159_v25, %v158_v24  ;;  %v143_v30 = vld [vmem:[%s775_s1 + $0x178] sm:$0xff]  ;;  %v23_v34 = vcombine.high %v15_v31, %v15_v31  ;;  %v32_v36 = vsel %vm31_vm0, %v15_v31, 0.0  ;;  %v16_v37 = vld [vmem:[%s774_s0 + $0x8] sm:$0xff] }
  0x17   :  { %462 = vmatpush3.bf16.msra.mxu1 %v461_v6  ;;  %v17_v32 = vld [vmem:[%s774_s0 + $0x10] sm:$0xff]  ;;  %v473_v33 = vpack.c.bf16 %v143_v30, %v727_v26  ;;  %v18_v38 = vld [vmem:[%s774_s0 + $0x18] sm:$0xff] }
  0x18   :  { %464 = vmatprep.subr.bf16.mxu1 %v463_v11  ;;  %v25_v35 = vcombine.high %v17_v32, %v17_v32 }
  0x19   :  { %8 = vsyncpa [#allocation3], 0  ;;  %v33_v39 = vrot.slane %v32_v36, 4  ;;  %v60_v40 = vsel %vm31_vm0, %v17_v32, 0.0  ;;  %v24_v41 = vcombine.high %v16_v37, %v16_v37  ;;  %v26_v42 = vcombine.high %v18_v38, %v18_v38  ;;  %434 = vmatpush3.bf16.msra.mxu0 %v433_v15  ;;  %s504_s13 = smov [#allocation2]  }
  0x1a   :  { %v39_v43 = vsel %vm31_vm0, %v23_v34, 0.0  ;;  %v67_v44 = vsel %vm31_vm0, %v25_v35, 0.0  ;;  %v61_v45 = vrot.slane %v60_v40, 4  ;;  %v46_v46 = vsel %vm31_vm0, %v16_v37, 0.0  ;;  %436 = vmatprep.subr.bf16.mxu0 %v435_v20  ;;  %s332_s14 = sshll.u32 %s504_s13, 4  ;;  %s333_s14 = int_to_ptr.vmem [resolvable:$true] %s332_s14 }
  0x1b   :  { %466 = vmatpush3.bf16.msra.mxu1 %v465_v16  ;;  %v40_v47 = vrot.slane %v39_v43, 4  ;;  %v68_v48 = vrot.slane %v67_v44, 4  ;;  %v34_v49 = vadd.f32 %v33_v39, %v32_v36  ;;  %v53_v50 = vsel %vm31_vm0, %v24_v41, 0.0  ;;  %s480_s15 = scalar_lea.vmem %s333_s14, 32  ;;  %p485_p1 = scmp.lt.s32.totalorder %s333_s14, %s333_s14 }
  0x1c   :  { %468 = vmatprep.subr.bf16.mxu1 %v467_v22  ;;  %v62_v51 = vadd.f32 %v61_v45, %v60_v40  ;;  %v54_v52 = vrot.slane %v53_v50, 4  ;;  %v81_v53 = vsel %vm31_vm0, %v26_v42, 0.0  ;;  %v47_v54 = vrot.slane %v46_v46, 4  ;;  %v340_v45 = vld [vmem:[%s776_s2] ss:$0 sm:$0xff]  ;;  %p481_p0 = scmp.ne.s32.totalorder %s333_s14, %s480_s15  ;;  %p486_p2 = scmp.lt.s32.totalorder %s480_s15, %s480_s15 }
  0x1d   :  { %v41_v55 = vadd.f32 %v40_v47, %v39_v43  ;;  %v69_v56 = vadd.f32 %v68_v48, %v67_v44  ;;  %vm175_vm1 = vcmask 1041409   ;;  %v35_v57 = vrot.slane %v34_v49, 2  ;;  %438 = vmatpush3.bf16.msra.mxu0 %v437_v21 }
  0x1e   :  { %v82_v58 = vrot.slane %v81_v53, 4  ;;  %v63_v59 = vrot.slane %v62_v51, 2  ;;  %v55_v60 = vadd.f32 %v54_v52, %v53_v50  ;;  %v48_v61 = vadd.f32 %v47_v54, %v46_v46  ;;  %440 = vmatprep.subr.bf16.mxu0 %v439_v27  ;;  %p487_p3 = por %p486_p2, %p485_p1 }
  0x1f   :  { %v74_v62 = vsel %vm31_vm0, %v18_v38, 0.0  ;;  %470 = vmatpush3.bf16.msra.mxu1 %v469_v23  ;;  %v42_v63 = vrot.slane %v41_v55, 2  ;;  %v70_v0 = vrot.slane %v69_v56, 2  ;;  %v36_v1 = vadd.f32 %v35_v57, %v34_v49 }
  0x20   :  { %v83_v2 = vadd.f32 %v82_v58, %v81_v53  ;;  %472 = vmatprep.subr.bf16.mxu1 %v471_v29  ;;  %v64_v3 = vadd.f32 %v63_v59, %v62_v51  ;;  %v56_v4 = vrot.slane %v55_v60, 2  ;;  %v49_v5 = vrot.slane %v48_v61, 2  ;;  %p488_p4 = pnand %p487_p3, %p481_p0 }
  0x21   :  { %v75_v6 = vrot.slane %v74_v62, 4  ;;  %v43_v7 = vadd.f32 %v42_v63, %v41_v55  ;;  %v71_v8 = vadd.f32 %v70_v0, %v69_v56  ;;  %v37_v9 = vrot.slane %v36_v1, 1  ;;  %442 = vmatpush3.bf16.msra.mxu0 %v441_v28 }
  0x22   :  { %v84_v10 = vrot.slane %v83_v2, 2  ;;  %v65_v11 = vrot.slane %v64_v3, 1  ;;  %v57_v12 = vadd.f32 %v56_v4, %v55_v60  ;;  %v50_v13 = vadd.f32 %v49_v5, %v48_v61 }
  0x23   :  { %v76_v14 = vadd.f32 %v75_v6, %v74_v62  ;;  %474 = vmatpush3.bf16.msra.mxu1 %v473_v33  ;;  %v44_v15 = vrot.slane %v43_v7, 1  ;;  %v72_v16 = vrot.slane %v71_v8, 1  ;;  %v38_v17 = vadd.f32 %v37_v9, %v36_v1 }
  0x24   :  { %v85_v18 = vadd.f32 %v84_v10, %v83_v2  ;;  %v66_v19 = vadd.f32 %v65_v11, %v64_v3  ;;  %v58_v20 = vrot.slane %v57_v12, 1  ;;  %v51_v21 = vrot.slane %v50_v13, 1 }
  0x25   :  { %v77_v22 = vrot.slane %v76_v14, 2  ;;  %v45_v23 = vadd.f32 %v44_v15, %v43_v7  ;;  %v73_v24 = vadd.f32 %v72_v16, %v71_v8  ;;  %v88_v25 = vmul.f32 0.25, %v38_v17 }
  0x26   :  { %v86_v26 = vrot.slane %v85_v18, 1  ;;  %v92_v27 = vmul.f32 0.25, %v66_v19  ;;  %v59_v29 = vadd.f32 %v58_v20, %v57_v12  ;;  %v52_v28 = vadd.f32 %v51_v21, %v50_v13 }
  0x27   :  { %v78_v30 = vadd.f32 %v77_v22, %v76_v14  ;;  %v89_v31 = vmul.f32 0.25, %v45_v23  ;;  %v93_v32 = vmul.f32 0.25, %v73_v24  ;;  %vm324_vm2 = vcmask 74752  }
  0x28   :  { %v87_v34 = vadd.f32 %v86_v26, %v85_v18  ;;  %v176_v33 = vsel %vm175_vm1, %v92_v27, %v88_v25  ;;  %v91_v35 = vmul.f32 0.25, %v59_v29  ;;  %v90_v40 = vmul.f32 0.25, %v52_v28 }
  0x29   :  { %v79_v36 = vrot.slane %v78_v30, 1  ;;  %v177_v37 = vsel %vm175_vm1, %v93_v32, %v89_v31 }
  0x2a   :  { %v95_v38 = vmul.f32 0.25, %v87_v34  ;;  %248 = vmatprep.mubr.f32.mxu0 %v177_v37 }
  0x2b   :  { %v80_v39 = vadd.f32 %v79_v36, %v78_v30  ;;  %249 = vmatmul.mubr.f32.vlgmr.msra.gmra.mrb[0].mxu0 %v176_v33 }
  0x2c   :  { %v179_v41 = vsel %vm175_vm1, %v95_v38, %v91_v35 }
  0x2d   :  { %318 = vmatprep.mubr.f32.mxu1 %v179_v41  ;;  %v94_v42 = vmul.f32 0.25, %v80_v39 }
  0x2f   :  { %v178_v43 = vsel %vm175_vm1, %v94_v42, %v90_v40 }
  0x30   :  { %319 = vmatmul.mubr.f32.vlgmr.msra.gmra.mrb[0].mxu1 %v178_v43 }
  0xfe   :  { %v373_v44 = vpop.f32.mrb[0].mxu0 }
  0xff   :  { %v374_v46 = vpop.f32.mrb[1].mxu0 }
 0x100   :  { %v375_v47 = vadd.f32 %v374_v46, %v373_v44 }
 0x102   :  { %v251_v48 = vadd.f32 %v375_v47, %v340_v45 }
 0x103   :  { %v408_v49 = vpop.f32.mrb[0].mxu1 }
 0x104   :  { %v409_v50 = vpop.f32.mrb[1].mxu1 }
 0x105   :  { %v410_v51 = vadd.f32 %v409_v50, %v408_v49 }
 0x107   :  { %v321_v52 = vadd.f32 %v410_v51, %v251_v48 }
 0x109   :  { %325 = vst.msk [vmem:[#allocation2] sm:$0x3] %vm324_vm2, %v321_v52 }
 0x10a   :  { %491 = shalt.err (!%p488_p4)
}
 0x10b   :  { %s492_s17 = scalar_lea.hbm %s777_s3, 32 }
 0x10c   :  { %p493_p5 = scmp.ne.s32.totalorder %s777_s3, %s492_s17  ;;  %p496_p6 = scmp.lt.u32.totalorder %s492_s17, %s777_s3 }
 0x10e   :  { %p498_p7 = pnand %p496_p6, %p493_p5 }
 0x110   :  { %501 = shalt.err (!%p498_p7)
}
 0x111   :  { %335 = dma.vmem_to_hbm [thread:$0]  %s333_s14, 32, %s777_s3, [#allocation3]  }
 0x112   :  { %502 = dma.done.wait [#allocation3], 32  }
 0x113   :  { %503 = vsyncadd [#allocation3], 4294967264 }
 0x114   :  { %339 = vsyncpa [#allocation3], 1 }

// kernel: _lambda_.24
= control target key start
LH: loop header
LB: loop body
LE: loop exit
PB: predicated region body
PF: predicated region fallthrough
CT: control target
= control target key end

     0   :  { %s4715_s15 = smov 0   ;;  %s4717_s16 = smov 0   ;;  %s5209_s0 = inlined_call_operand.vmem [shape: bf16[16,4608], index: 0, kind: input, shape index: {}]   ;;  %s5210_s1 = inlined_call_operand.vmem [shape: bf16[4608,512], index: 1, kind: input, shape index: {}]   ;;  %s5211_s2 = inlined_call_operand.vmem [shape: f32[1,512], index: 2, kind: input, shape index: {}]   ;;  %s5212_s3 = inlined_call_operand.vmem [shape: bf16[16,512], index: 3, kind: input, shape index: {}]   ;;  %s5213_s4 = inlined_call_operand.vmem [shape: bf16[16,512], index: 4, kind: output, shape index: {}]  }
   0x1   :  { %s4719_s17 = smov 0   ;;  %s4721_s18 = smov 0  }
   0x2   :  { %s4723_s19 = smov 0  }
   0x3 LB: > { %s26_s20 = sadd.s32 1, %s4683_s18  ;;  %p49_p1 = scmp.ne.s32.totalorder %s4675_s16, %s4671_s15  ;;  %s4687_s19 = sphi %s4723_s19, %s14_s19   ;;  %s4683_s18 = sphi %s4721_s18, %s5217_s18   ;;  %s4679_s17 = sphi %s4719_s17, %s5216_s17   ;;  %s4675_s16 = sphi %s4717_s16, %s5215_s16   ;;  %s4671_s15 = sphi %s4715_s15, %s5214_s15  }
   0x4   : > { %p27_p0 = scmp.ge.s32.totalorder %s26_s20, 3  ;;  %p50_p2 = scmp.eq.s32.totalorder %s4687_s19, 0 }
   0x5   : > { %s42_s22 = sadd.s32 1, %s4675_s16  ;;  %p3555_p5 = scmp.ge.s32.totalorder %s4687_s19, 3 }
   0x6   : > { %s5219_s20 = smov (%p27_p0, %s26_s20), 0  ;;  %p51_p3 = por %p50_p2, %p49_p1 }
   0x7   : > { %s38_s21 = ssub.s32 %s4683_s18, %s5219_s20  ;;  %208 = sbr.rel (%p3555_p5) target bundleno = 25 (0x19), region = 24 }
   0x8   : > { %p40_p4 = scmp.eq.s32.totalorder %s38_s21, 0 }
   0xa   : > { %s4750_s23 = scalar_select %p40_p4, %s4675_s16, %s42_s22  }
   0xe   : > { %211 = sbr.rel (!%p51_p3) target bundleno = 25 (0x19), region = 28  ;;  %s213_s24 = sand.u32 (%p51_p3), 1, %s4675_s16  }
   0xf   : > { %s3966_s25 = smul.u32 (%p51_p3), 48, %s4683_s18 }
  0x10   : > { %s4012_s26 = smul.u32 (%p51_p3), 96, %s213_s24 }
  0x11   : > { %s221_s29 = scalar_lea.vmem (%p51_p3), %s5209_s0, %s3966_s25 }
  0x12   : > { %v234_v0 = vld [vmem:[%s221_s29] sm:$0xff] (%p51_p3)  ;;  %v236_v1 = vld [vmem:[%s221_s29 + $0x8] sm:$0xff] (%p51_p3)  ;;  %v238_v2 = vld [vmem:[%s221_s29 + $0x10] sm:$0xff] (%p51_p3)  ;;  %s215_s30 = scalar_lea.vmem (%p51_p3), [#allocation3], %s4012_s26 }
  0x13   : > { %235 = vst [vmem:[%s215_s30] sm:$0xff] (%p51_p3), %v234_v0  ;;  %237 = vst [vmem:[%s215_s30 + $0x8] sm:$0xff] (%p51_p3), %v236_v1  ;;  %v240_v3 = vld [vmem:[%s221_s29 + $0x18] sm:$0xff] (%p51_p3)  ;;  %v242_v4 = vld [vmem:[%s221_s29 + $0x20] sm:$0xff] (%p51_p3) }
  0x14   : > { %239 = vst [vmem:[%s215_s30 + $0x10] sm:$0xff] (%p51_p3), %v238_v2  ;;  %v244_v5 = vld [vmem:[%s221_s29 + $0x28] sm:$0xff] (%p51_p3)  ;;  %241 = vst [vmem:[%s215_s30 + $0x18] sm:$0xff] (%p51_p3), %v240_v3  ;;  %v246_v6 = vld [vmem:[%s221_s29 + $0x90] sm:$0xff] (%p51_p3) }
  0x15   : > { %243 = vst [vmem:[%s215_s30 + $0x20] sm:$0xff] %v242_v4  ;;  %245 = vst [vmem:[%s215_s30 + $0x28] sm:$0xff] %v244_v5  ;;  %v248_v7 = vld [vmem:[%s221_s29 + $0x98] sm:$0xff]  ;;  %v250_v8 = vld [vmem:[%s221_s29 + $0xa0] sm:$0xff] }
  0x16   : > { %247 = vst [vmem:[%s215_s30 + $0x30] sm:$0xff] %v246_v6  ;;  %249 = vst [vmem:[%s215_s30 + $0x38] sm:$0xff] %v248_v7  ;;  %v252_v9 = vld [vmem:[%s221_s29 + $0xa8] sm:$0xff]  ;;  %v254_v10 = vld [vmem:[%s221_s29 + $0xb0] sm:$0xff] }
  0x17   : > { %251 = vst [vmem:[%s215_s30 + $0x40] sm:$0xff] %v250_v8  ;;  %v256_v11 = vld [vmem:[%s221_s29 + $0xb8] sm:$0xff]  ;;  %253 = vst [vmem:[%s215_s30 + $0x48] sm:$0xff] %v252_v9 }
  0x18   : > { %255 = vst [vmem:[%s215_s30 + $0x50] sm:$0xff] %v254_v10  ;;  %257 = vst [vmem:[%s215_s30 + $0x58] sm:$0xff] %v256_v11 }
  0x19 PF: > { %p3557_p6 = scmp.ge.s32.totalorder %s4687_s19, 1  ;;  %p277_p7 = scmp.lt.s32.totalorder %s4687_s19, 4 }
  0x1b   : > { %p278_p8 = pnand %p3557_p6, %p277_p7 }
  0x1c   : > { %s284_s5 = sand.u32 (!%p278_p8), 1, %s4671_s15   ;;  %s340_s6 = smul.u32 (!%p278_p8), 192, %s4679_s17 }
  0x1d   : > { %281 = sbr.rel (%p278_p8) target bundleno = 662 (0x296), region = 55  ;;  %p3560_p10 = scmp.ne.s32.totalorder (!%p278_p8), %s4679_s17, 0 }
  0x1e   : > { %s4013_s7 = smul.u32 (!%p278_p8), 96, %s284_s5  ;;  %p342_p9 = scmp.lt.s32.totalorder (!%p278_p8), %s340_s6, 575 }
  0x20   : > { %s4767_s12 = scalar_lea.vmem (!%p278_p8), [#allocation3], %s4013_s7 }
  0x24   : > { %s5221_s6 = smov (!%p342_p9, %s340_s6), 575  ;;  %384 = sbr.rel (%p3560_p10) target bundleno = 43 (0x2b), region = 63 }
  0x25   : > { %s3967_s8 = sshll.u32 %s5221_s6, 4  ;;  %v4689_v12 = vmov (!%p3560_p10), 0.0  }
  0x26   : > { %s4765_s11 = scalar_lea.vmem %s5210_s1, %s3967_s8  ;;  %385 = vst [vmem:[#allocation2] sm:$0xff] (!%p3560_p10), %v4689_v12  ;;  %386 = vst [vmem:[#allocation2 + $0x8] sm:$0xff] (!%p3560_p10), %v4689_v12 }
  0x27   : > { %387 = vst [vmem:[#allocation2 + $0x10] sm:$0xff] (!%p3560_p10), %v4689_v12  ;;  %388 = vst [vmem:[#allocation2 + $0x18] sm:$0xff] (!%p3560_p10), %v4689_v12 }
  0x28   : > { %389 = vst [vmem:[#allocation2 + $0x20] sm:$0xff] (!%p3560_p10), %v4689_v12  ;;  %390 = vst [vmem:[#allocation2 + $0x28] sm:$0xff] (!%p3560_p10), %v4689_v12 }
  0x29   : > { %391 = vst [vmem:[#allocation2 + $0x30] sm:$0xff] (!%p3560_p10), %v4689_v12  ;;  %392 = vst [vmem:[#allocation2 + $0x38] sm:$0xff] (!%p3560_p10), %v4689_v12 }
  0x2b PF: > { %v4055_v13 = vld [vmem:[%s4765_s11 + $0x4] ss:$16 sps:$4 sm:$0xff]   ;;  %v4057_v14 = vld [vmem:[%s4765_s11 + $0xc] ss:$16 sps:$4 sm:$0xff]   ;;  %v4059_v15 = vld [vmem:[%s4765_s11] ss:$16 sps:$4 sm:$0xff]  }
  0x2c   : > { %2777 = vmatprep.subr.bf16.mxu0 %v4055_v13  ;;  %v4060_v16 = vld [vmem:[%s4765_s11 + $0x8] ss:$16 sps:$4 sm:$0xff]   ;;  %3035 = vmatprep.subr.bf16.mxu1 %v4057_v14  ;;  %v4061_v17 = vld [vmem:[%s4765_s11 + $0x24] ss:$16 sps:$4 sm:$0xff]   ;;  %v4063_v18 = vld [vmem:[%s4765_s11 + $0x2c] ss:$16 sps:$4 sm:$0xff]  }
  0x2d   : > { %2778 = vmatpush1.bf16.msra.mxu0 %v4059_v15  ;;  %3036 = vmatpush1.bf16.msra.mxu1 %v4060_v16  ;;  %v4065_v19 = vld [vmem:[%s4765_s11 + $0x20] ss:$16 sps:$4 sm:$0xff]   ;;  %v4066_v20 = vld [vmem:[%s4765_s11 + $0x28] ss:$16 sps:$4 sm:$0xff]   ;;  %v4067_v21 = vld [vmem:[%s4765_s11 + $0x44] ss:$16 sps:$4 sm:$0xff]  }
  0x2e   : > { %2779 = vmatprep.subr.bf16.mxu0 %v4061_v17  ;;  %3037 = vmatprep.subr.bf16.mxu1 %v4063_v18  ;;  %v4069_v22 = vld [vmem:[%s4765_s11 + $0x4c] ss:$16 sps:$4 sm:$0xff]   ;;  %v4071_v23 = vld [vmem:[%s4765_s11 + $0x40] ss:$16 sps:$4 sm:$0xff]   ;;  %v4072_v24 = vld [vmem:[%s4765_s11 + $0x48] ss:$16 sps:$4 sm:$0xff]  }
  0x2f   : > { %v4073_v25 = vld [vmem:[%s4765_s11 + $0x64] ss:$16 sps:$4 sm:$0xff]   ;;  %v4075_v26 = vld [vmem:[%s4765_s11 + $0x6c] ss:$16 sps:$4 sm:$0xff]   ;;  %v4077_v27 = vld [vmem:[%s4765_s11 + $0x60] ss:$16 sps:$4 sm:$0xff]  }
  0x30   : > { %v4078_v28 = vld [vmem:[%s4765_s11 + $0x68] ss:$16 sps:$4 sm:$0xff]   ;;  %v4079_v29 = vld [vmem:[%s4765_s11 + $0x84] ss:$16 sps:$4 sm:$0xff]   ;;  %v4081_v30 = vld [vmem:[%s4765_s11 + $0x8c] ss:$16 sps:$4 sm:$0xff]  }
  0x31   : > { %2780 = vmatpush1.bf16.msra.mxu0 %v4065_v19  ;;  %3038 = vmatpush1.bf16.msra.mxu1 %v4066_v20  ;;  %v4083_v31 = vld [vmem:[%s4765_s11 + $0x80] ss:$16 sps:$4 sm:$0xff]   ;;  %v4084_v32 = vld [vmem:[%s4765_s11 + $0x88] ss:$16 sps:$4 sm:$0xff]   ;;  %v4085_v33 = vld [vmem:[%s4765_s11 + $0xa4] ss:$16 sps:$4 sm:$0xff]  }
  0x32   : > { %2781 = vmatprep.subr.bf16.mxu0 %v4067_v21  ;;  %3039 = vmatprep.subr.bf16.mxu1 %v4069_v22  ;;  %v4087_v34 = vld [vmem:[%s4765_s11 + $0xac] ss:$16 sps:$4 sm:$0xff]   ;;  %v4089_v35 = vld [vmem:[%s4765_s11 + $0xa0] ss:$16 sps:$4 sm:$0xff]   ;;  %v4090_v36 = vld [vmem:[%s4765_s11 + $0xa8] ss:$16 sps:$4 sm:$0xff]  }
  0x33   : > { %v4091_v37 = vld [vmem:[%s4765_s11 + $0xc4] ss:$16 sps:$4 sm:$0xff]   ;;  %v4093_v38 = vld [vmem:[%s4765_s11 + $0xcc] ss:$16 sps:$4 sm:$0xff]   ;;  %v4095_v39 = vld [vmem:[%s4765_s11 + $0xc0] ss:$16 sps:$4 sm:$0xff]  }
  0x34   : > { %v4096_v40 = vld [vmem:[%s4765_s11 + $0xc8] ss:$16 sps:$4 sm:$0xff]   ;;  %v4097_v41 = vld [vmem:[%s4765_s11 + $0xe4] ss:$16 sps:$4 sm:$0xff]   ;;  %v4099_v42 = vld [vmem:[%s4765_s11 + $0xec] ss:$16 sps:$4 sm:$0xff]  }
  0x35   : > { %2782 = vmatpush1.bf16.msra.mxu0 %v4071_v23  ;;  %3040 = vmatpush1.bf16.msra.mxu1 %v4072_v24  ;;  %v4101_v43 = vld [vmem:[%s4765_s11 + $0xe0] ss:$16 sps:$4 sm:$0xff]   ;;  %v4102_v44 = vld [vmem:[%s4765_s11 + $0xe8] ss:$16 sps:$4 sm:$0xff]   ;;  %v4103_v45 = vld [vmem:[%s4765_s11 + $0x104] ss:$16 sps:$4 sm:$0xff]  }
  0x36   : > { %2783 = vmatprep.subr.bf16.mxu0 %v4073_v25  ;;  %3041 = vmatprep.subr.bf16.mxu1 %v4075_v26  ;;  %v4105_v46 = vld [vmem:[%s4765_s11 + $0x10c] ss:$16 sps:$4 sm:$0xff]   ;;  %v4107_v47 = vld [vmem:[%s4765_s11 + $0x100] ss:$16 sps:$4 sm:$0xff]   ;;  %v4108_v48 = vld [vmem:[%s4765_s11 + $0x108] ss:$16 sps:$4 sm:$0xff]  }
  0x37   : > { %v4109_v49 = vld [vmem:[%s4765_s11 + $0x124] ss:$16 sps:$4 sm:$0xff]   ;;  %v4111_v50 = vld [vmem:[%s4765_s11 + $0x12c] ss:$16 sps:$4 sm:$0xff]   ;;  %v4113_v51 = vld [vmem:[%s4765_s11 + $0x120] ss:$16 sps:$4 sm:$0xff]  }
  0x38   : > { %v4114_v52 = vld [vmem:[%s4765_s11 + $0x128] ss:$16 sps:$4 sm:$0xff]   ;;  %v4115_v53 = vld [vmem:[%s4765_s11 + $0x144] ss:$16 sps:$4 sm:$0xff]   ;;  %v4117_v54 = vld [vmem:[%s4765_s11 + $0x14c] ss:$16 sps:$4 sm:$0xff]  }
  0x39   : > { %2784 = vmatpush1.bf16.msra.mxu0 %v4077_v27  ;;  %3042 = vmatpush1.bf16.msra.mxu1 %v4078_v28  ;;  %v4119_v55 = vld [vmem:[%s4765_s11 + $0x140] ss:$16 sps:$4 sm:$0xff]   ;;  %v4120_v56 = vld [vmem:[%s4765_s11 + $0x148] ss:$16 sps:$4 sm:$0xff]   ;;  %v4121_v57 = vld [vmem:[%s4765_s11 + $0x164] ss:$16 sps:$4 sm:$0xff]  }
  0x3a   : > { %2785 = vmatprep.subr.bf16.mxu0 %v4079_v29  ;;  %3043 = vmatprep.subr.bf16.mxu1 %v4081_v30  ;;  %v4123_v58 = vld [vmem:[%s4765_s11 + $0x16c] ss:$16 sps:$4 sm:$0xff]   ;;  %v4125_v59 = vld [vmem:[%s4765_s11 + $0x160] ss:$16 sps:$4 sm:$0xff]   ;;  %v4126_v60 = vld [vmem:[%s4765_s11 + $0x168] ss:$16 sps:$4 sm:$0xff]  }
  0x3b   : > { %v4153_v61 = vld [vmem:[%s4767_s12 + $0x4] ss:$48 sps:$4 sm:$0xff]   ;;  %v4129_v63 = vld [vmem:[%s4765_s11 + $0x18c] ss:$16 sps:$4 sm:$0xff]   ;;  %v4131_v0 = vld [vmem:[%s4765_s11 + $0x180] ss:$16 sps:$4 sm:$0xff]  }
  0x3c   : > { %v4127_v62 = vld [vmem:[%s4765_s11 + $0x184] ss:$16 sps:$4 sm:$0xff]   ;;  %2809 = vmatprep.mubr.bf16.mxu0 %v4153_v61  ;;  %3067 = vmatprep.mubr.bf16.mxu1 %v4153_v61  ;;  %v4132_v1 = vld [vmem:[%s4765_s11 + $0x188] ss:$16 sps:$4 sm:$0xff]   ;;  %v4135_v3 = vld [vmem:[%s4765_s11 + $0x1ac] ss:$16 sps:$4 sm:$0xff]  }
  0x3d   : > { %2786 = vmatpush1.bf16.msra.mxu0 %v4083_v31  ;;  %3044 = vmatpush1.bf16.msra.mxu1 %v4084_v32  ;;  %v4133_v2 = vld [vmem:[%s4765_s11 + $0x1a4] ss:$16 sps:$4 sm:$0xff]   ;;  %v4137_v4 = vld [vmem:[%s4765_s11 + $0x1a0] ss:$16 sps:$4 sm:$0xff]   ;;  %v4138_v5 = vld [vmem:[%s4765_s11 + $0x1a8] ss:$16 sps:$4 sm:$0xff]  }
  0x3e   : > { %2787 = vmatprep.subr.bf16.mxu0 %v4085_v33  ;;  %3045 = vmatprep.subr.bf16.mxu1 %v4087_v34  ;;  %v4139_v6 = vld [vmem:[%s4765_s11 + $0x1c4] ss:$16 sps:$4 sm:$0xff]   ;;  %v4141_v7 = vld [vmem:[%s4765_s11 + $0x1cc] ss:$16 sps:$4 sm:$0xff]   ;;  %v4143_v8 = vld [vmem:[%s4765_s11 + $0x1c0] ss:$16 sps:$4 sm:$0xff]  }
  0x3f   : > { %v4144_v9 = vld [vmem:[%s4765_s11 + $0x1c8] ss:$16 sps:$4 sm:$0xff]   ;;  %v4145_v10 = vld [vmem:[%s4765_s11 + $0x1e4] ss:$16 sps:$4 sm:$0xff]   ;;  %v4147_v11 = vld [vmem:[%s4765_s11 + $0x1ec] ss:$16 sps:$4 sm:$0xff]  }
  0x40   : > { %v4149_v12 = vld [vmem:[%s4765_s11 + $0x1e0] ss:$16 sps:$4 sm:$0xff]   ;;  %v4150_v13 = vld [vmem:[%s4765_s11 + $0x1e8] ss:$16 sps:$4 sm:$0xff]   ;;  %v4156_v14 = vld [vmem:[%s4765_s11 + $0x204] ss:$16 sps:$4 sm:$0xff]  }
  0x41   : > { %2788 = vmatpush1.bf16.msra.mxu0 %v4089_v35  ;;  %3046 = vmatpush1.bf16.msra.mxu1 %v4090_v36  ;;  %v4159_v15 = vld [vmem:[%s4765_s11 + $0x20c] ss:$16 sps:$4 sm:$0xff]   ;;  %v4151_v16 = vld [vmem:[%s4767_s12] ss:$48 sps:$4 sm:$0xff]   ;;  %v4157_v18 = vld [vmem:[%s4765_s11 + $0x208] ss:$16 sps:$4 sm:$0xff]  }
  0x42   : > { %2789 = vmatprep.subr.bf16.mxu0 %v4091_v37  ;;  %3047 = vmatprep.subr.bf16.mxu1 %v4093_v38  ;;  %v4154_v17 = vld [vmem:[%s4765_s11 + $0x200] ss:$16 sps:$4 sm:$0xff]   ;;  %v4162_v19 = vld [vmem:[%s4765_s11 + $0x224] ss:$16 sps:$4 sm:$0xff]   ;;  %v4165_v20 = vld [vmem:[%s4765_s11 + $0x22c] ss:$16 sps:$4 sm:$0xff]  }
  0x43   : > { %v4160_v21 = vld [vmem:[%s4765_s11 + $0x220] ss:$16 sps:$4 sm:$0xff]   ;;  %v4163_v22 = vld [vmem:[%s4765_s11 + $0x228] ss:$16 sps:$4 sm:$0xff]   ;;  %v4168_v23 = vld [vmem:[%s4765_s11 + $0x244] ss:$16 sps:$4 sm:$0xff]  }
  0x44   : > { %v4171_v24 = vld [vmem:[%s4765_s11 + $0x24c] ss:$16 sps:$4 sm:$0xff]   ;;  %v4166_v25 = vld [vmem:[%s4765_s11 + $0x240] ss:$16 sps:$4 sm:$0xff]   ;;  %v4169_v26 = vld [vmem:[%s4765_s11 + $0x248] ss:$16 sps:$4 sm:$0xff]  }
  0x45   : > { %2790 = vmatpush1.bf16.msra.mxu0 %v4095_v39  ;;  %3048 = vmatpush1.bf16.msra.mxu1 %v4096_v40  ;;  %v4174_v27 = vld [vmem:[%s4765_s11 + $0x264] ss:$16 sps:$4 sm:$0xff]   ;;  %v4177_v28 = vld [vmem:[%s4765_s11 + $0x26c] ss:$16 sps:$4 sm:$0xff]   ;;  %v4172_v29 = vld [vmem:[%s4765_s11 + $0x260] ss:$16 sps:$4 sm:$0xff]  }
  0x46   : > { %2791 = vmatprep.subr.bf16.mxu0 %v4097_v41  ;;  %3049 = vmatprep.subr.bf16.mxu1 %v4099_v42  ;;  %v4175_v30 = vld [vmem:[%s4765_s11 + $0x268] ss:$16 sps:$4 sm:$0xff]   ;;  %v4180_v31 = vld [vmem:[%s4765_s11 + $0x284] ss:$16 sps:$4 sm:$0xff]   ;;  %v4183_v32 = vld [vmem:[%s4765_s11 + $0x28c] ss:$16 sps:$4 sm:$0xff]  }
  0x47   : > { %v4178_v33 = vld [vmem:[%s4765_s11 + $0x280] ss:$16 sps:$4 sm:$0xff]   ;;  %v4181_v34 = vld [vmem:[%s4765_s11 + $0x288] ss:$16 sps:$4 sm:$0xff]   ;;  %v4186_v35 = vld [vmem:[%s4765_s11 + $0x2a4] ss:$16 sps:$4 sm:$0xff]  }
  0x48   : > { %v4189_v36 = vld [vmem:[%s4765_s11 + $0x2ac] ss:$16 sps:$4 sm:$0xff]   ;;  %v4184_v37 = vld [vmem:[%s4765_s11 + $0x2a0] ss:$16 sps:$4 sm:$0xff]   ;;  %v4187_v38 = vld [vmem:[%s4765_s11 + $0x2a8] ss:$16 sps:$4 sm:$0xff]  }
  0x49   : > { %2792 = vmatpush1.bf16.msra.mxu0 %v4101_v43  ;;  %3050 = vmatpush1.bf16.msra.mxu1 %v4102_v44  ;;  %v4192_v39 = vld [vmem:[%s4765_s11 + $0x2c4] ss:$16 sps:$4 sm:$0xff]   ;;  %v4195_v40 = vld [vmem:[%s4765_s11 + $0x2cc] ss:$16 sps:$4 sm:$0xff]   ;;  %v4190_v41 = vld [vmem:[%s4765_s11 + $0x2c0] ss:$16 sps:$4 sm:$0xff]  }
  0x4a   : > { %2793 = vmatprep.subr.bf16.mxu0 %v4103_v45  ;;  %3051 = vmatprep.subr.bf16.mxu1 %v4105_v46  ;;  %v4193_v42 = vld [vmem:[%s4765_s11 + $0x2c8] ss:$16 sps:$4 sm:$0xff]   ;;  %v4252_v43 = vld [vmem:[%s4767_s12 + $0xc] ss:$48 sps:$4 sm:$0xff]   ;;  %v4198_v44 = vld [vmem:[%s4765_s11 + $0x2e4] ss:$16 sps:$4 sm:$0xff]  }
  0x4b   : > { %v4201_v45 = vld [vmem:[%s4765_s11 + $0x2ec] ss:$16 sps:$4 sm:$0xff]   ;;  %v4196_v46 = vld [vmem:[%s4765_s11 + $0x2e0] ss:$16 sps:$4 sm:$0xff]   ;;  %p3957_p11 = scmp.ne.s32.totalorder %s4679_s17, 2 }
  0x4c   : > { %v4225_v61 = vld [vmem:[%s4765_s11 + $0x36c] ss:$16 sps:$4 sm:$0xff]  }
  0x4d   : > { %2794 = vmatpush1.bf16.msra.mxu0 %v4107_v47  ;;  %3052 = vmatpush1.bf16.msra.mxu1 %v4108_v48  ;;  %v4199_v47 = vld [vmem:[%s4765_s11 + $0x2e8] ss:$16 sps:$4 sm:$0xff]   ;;  %v4204_v48 = vld [vmem:[%s4765_s11 + $0x304] ss:$16 sps:$4 sm:$0xff]  }
  0x4e   : > { %2795 = vmatprep.subr.bf16.mxu0 %v4109_v49  ;;  %3053 = vmatprep.subr.bf16.mxu1 %v4111_v50  ;;  %v4207_v49 = vld [vmem:[%s4765_s11 + $0x30c] ss:$16 sps:$4 sm:$0xff]   ;;  %v4202_v50 = vld [vmem:[%s4765_s11 + $0x300] ss:$16 sps:$4 sm:$0xff]  }
  0x51   : > { %2796 = vmatpush1.bf16.msra.mxu0 %v4113_v51  ;;  %3054 = vmatpush1.bf16.msra.mxu1 %v4114_v52  ;;  %v4205_v51 = vld [vmem:[%s4765_s11 + $0x308] ss:$16 sps:$4 sm:$0xff]   ;;  %v4210_v52 = vld [vmem:[%s4765_s11 + $0x324] ss:$16 sps:$4 sm:$0xff]  }
  0x52   : > { %2797 = vmatprep.subr.bf16.mxu0 %v4115_v53  ;;  %3055 = vmatprep.subr.bf16.mxu1 %v4117_v54  ;;  %v4213_v53 = vld [vmem:[%s4765_s11 + $0x32c] ss:$16 sps:$4 sm:$0xff]   ;;  %v4208_v54 = vld [vmem:[%s4765_s11 + $0x320] ss:$16 sps:$4 sm:$0xff]  }
  0x55   : > { %2798 = vmatpush1.bf16.msra.mxu0 %v4119_v55  ;;  %3056 = vmatpush1.bf16.msra.mxu1 %v4120_v56  ;;  %v4211_v55 = vld [vmem:[%s4765_s11 + $0x328] ss:$16 sps:$4 sm:$0xff]   ;;  %v4216_v56 = vld [vmem:[%s4765_s11 + $0x344] ss:$16 sps:$4 sm:$0xff]  }
  0x56   : > { %2799 = vmatprep.subr.bf16.mxu0 %v4121_v57  ;;  %3057 = vmatprep.subr.bf16.mxu1 %v4123_v58  ;;  %v4219_v57 = vld [vmem:[%s4765_s11 + $0x34c] ss:$16 sps:$4 sm:$0xff]   ;;  %v4214_v58 = vld [vmem:[%s4765_s11 + $0x340] ss:$16 sps:$4 sm:$0xff]  }
  0x59   : > { %2800 = vmatpush1.bf16.msra.mxu0 %v4125_v59  ;;  %3058 = vmatpush1.bf16.msra.mxu1 %v4126_v60  ;;  %v4217_v59 = vld [vmem:[%s4765_s11 + $0x348] ss:$16 sps:$4 sm:$0xff]   ;;  %v4222_v60 = vld [vmem:[%s4765_s11 + $0x364] ss:$16 sps:$4 sm:$0xff]  }
  0x5a   : > { %2801 = vmatprep.subr.bf16.mxu0 %v4127_v62  ;;  %3059 = vmatprep.subr.bf16.mxu1 %v4129_v63  ;;  %v4220_v62 = vld [vmem:[%s4765_s11 + $0x360] ss:$16 sps:$4 sm:$0xff]   ;;  %v4223_v63 = vld [vmem:[%s4765_s11 + $0x368] ss:$16 sps:$4 sm:$0xff]  }
  0x5d   : > { %2802 = vmatpush1.bf16.msra.mxu0 %v4131_v0  ;;  %3060 = vmatpush1.bf16.msra.mxu1 %v4132_v1  ;;  %v4228_v0 = vld [vmem:[%s4765_s11 + $0x384] ss:$16 sps:$4 sm:$0xff]   ;;  %v4231_v1 = vld [vmem:[%s4765_s11 + $0x38c] ss:$16 sps:$4 sm:$0xff]  }
  0x5e   : > { %2803 = vmatprep.subr.bf16.mxu0 %v4133_v2  ;;  %3061 = vmatprep.subr.bf16.mxu1 %v4135_v3  ;;  %v4226_v2 = vld [vmem:[%s4765_s11 + $0x380] ss:$16 sps:$4 sm:$0xff]   ;;  %v4229_v3 = vld [vmem:[%s4765_s11 + $0x388] ss:$16 sps:$4 sm:$0xff]  }
  0x61   : > { %2804 = vmatpush1.bf16.msra.mxu0 %v4137_v4  ;;  %3062 = vmatpush1.bf16.msra.mxu1 %v4138_v5  ;;  %v4234_v4 = vld [vmem:[%s4765_s11 + $0x3a4] ss:$16 sps:$4 sm:$0xff]   ;;  %v4237_v5 = vld [vmem:[%s4765_s11 + $0x3ac] ss:$16 sps:$4 sm:$0xff]  }
  0x62   : > { %2805 = vmatprep.subr.bf16.mxu0 %v4139_v6  ;;  %3063 = vmatprep.subr.bf16.mxu1 %v4141_v7  ;;  %v4232_v6 = vld [vmem:[%s4765_s11 + $0x3a0] ss:$16 sps:$4 sm:$0xff]   ;;  %v4235_v7 = vld [vmem:[%s4765_s11 + $0x3a8] ss:$16 sps:$4 sm:$0xff]  }
  0x65   : > { %2806 = vmatpush1.bf16.msra.mxu0 %v4143_v8  ;;  %3064 = vmatpush1.bf16.msra.mxu1 %v4144_v9  ;;  %v4240_v8 = vld [vmem:[%s4765_s11 + $0x3c4] ss:$16 sps:$4 sm:$0xff]   ;;  %v4243_v9 = vld [vmem:[%s4765_s11 + $0x3cc] ss:$16 sps:$4 sm:$0xff]  }
  0x66   : > { %2807 = vmatprep.subr.bf16.mxu0 %v4145_v10  ;;  %3065 = vmatprep.subr.bf16.mxu1 %v4147_v11  ;;  %v4238_v10 = vld [vmem:[%s4765_s11 + $0x3c0] ss:$16 sps:$4 sm:$0xff]   ;;  %v4241_v11 = vld [vmem:[%s4765_s11 + $0x3c8] ss:$16 sps:$4 sm:$0xff]  }
  0x69   : > { %2808 = vmatpush1.bf16.msra.mxu0 %v4149_v12  ;;  %3066 = vmatpush1.bf16.msra.mxu1 %v4150_v13  ;;  %v4246_v12 = vld [vmem:[%s4765_s11 + $0x3e4] ss:$16 sps:$4 sm:$0xff]   ;;  %v4249_v13 = vld [vmem:[%s4765_s11 + $0x3ec] ss:$16 sps:$4 sm:$0xff]  }
  0x6a   : > { %2820 = vmatprep.subr.bf16.mxu0 %v4156_v14  ;;  %3078 = vmatprep.subr.bf16.mxu1 %v4159_v15  ;;  %v4244_v14 = vld [vmem:[%s4765_s11 + $0x3e0] ss:$16 sps:$4 sm:$0xff]   ;;  %v4247_v15 = vld [vmem:[%s4765_s11 + $0x3e8] ss:$16 sps:$4 sm:$0xff]  }
  0x6c   : > { %2810 = vmatmul.mubr.bf16.vlgmr.msra.gmra.mrb[0].mxu0 %v4151_v16  ;;  %3068 = vmatmul.mubr.bf16.vlgmr.msra.gmra.mrb[0].mxu1 %v4151_v16  ;;  %v4255_v16 = vld [vmem:[%s4765_s11 + $0x404] ss:$16 sps:$4 sm:$0xff]  }
  0x6d   : > { %2821 = vmatpush1.bf16.msra.mxu0 %v4154_v17  ;;  %3079 = vmatpush1.bf16.msra.mxu1 %v4157_v18  ;;  %v4258_v17 = vld [vmem:[%s4765_s11 + $0x40c] ss:$16 sps:$4 sm:$0xff]   ;;  %v4250_v18 = vld [vmem:[%s4767_s12 + $0x8] ss:$48 sps:$4 sm:$0xff]  }
  0x6e   : > { %2822 = vmatprep.subr.bf16.mxu0 %v4162_v19  ;;  %3080 = vmatprep.subr.bf16.mxu1 %v4165_v20  ;;  %v4253_v19 = vld [vmem:[%s4765_s11 + $0x400] ss:$16 sps:$4 sm:$0xff]   ;;  %v4256_v20 = vld [vmem:[%s4765_s11 + $0x408] ss:$16 sps:$4 sm:$0xff]  }
  0x6f   : > { %2852 = vmatprep.mubr.bf16.mxu0 %v4252_v43  ;;  %3110 = vmatprep.mubr.bf16.mxu1 %v4252_v43  ;;  %v4294_v43 = vld [vmem:[%s4765_s11 + $0x4cc] ss:$16 sps:$4 sm:$0xff]  }
  0x71   : > { %2823 = vmatpush1.bf16.msra.mxu0 %v4160_v21  ;;  %3081 = vmatpush1.bf16.msra.mxu1 %v4163_v22  ;;  %v4261_v21 = vld [vmem:[%s4765_s11 + $0x424] ss:$16 sps:$4 sm:$0xff]   ;;  %v4264_v22 = vld [vmem:[%s4765_s11 + $0x42c] ss:$16 sps:$4 sm:$0xff]  }
  0x72   : > { %2824 = vmatprep.subr.bf16.mxu0 %v4168_v23  ;;  %3082 = vmatprep.subr.bf16.mxu1 %v4171_v24  ;;  %v4259_v23 = vld [vmem:[%s4765_s11 + $0x420] ss:$16 sps:$4 sm:$0xff]   ;;  %v4262_v24 = vld [vmem:[%s4765_s11 + $0x428] ss:$16 sps:$4 sm:$0xff]  }
  0x75   : > { %2825 = vmatpush1.bf16.msra.mxu0 %v4166_v25  ;;  %3083 = vmatpush1.bf16.msra.mxu1 %v4169_v26  ;;  %v4351_v25 = vld [vmem:[%s4767_s12 + $0x14] ss:$48 sps:$4 sm:$0xff]  }
  0x76   : > { %2826 = vmatprep.subr.bf16.mxu0 %v4174_v27  ;;  %3084 = vmatprep.subr.bf16.mxu1 %v4177_v28  ;;  %v4267_v26 = vld [vmem:[%s4765_s11 + $0x444] ss:$16 sps:$4 sm:$0xff]   ;;  %v4270_v27 = vld [vmem:[%s4765_s11 + $0x44c] ss:$16 sps:$4 sm:$0xff]   ;;  %v4265_v28 = vld [vmem:[%s4765_s11 + $0x440] ss:$16 sps:$4 sm:$0xff]  }
  0x79   : > { %2827 = vmatpush1.bf16.msra.mxu0 %v4172_v29  ;;  %3085 = vmatpush1.bf16.msra.mxu1 %v4175_v30  ;;  %v4268_v29 = vld [vmem:[%s4765_s11 + $0x448] ss:$16 sps:$4 sm:$0xff]   ;;  %v4273_v30 = vld [vmem:[%s4765_s11 + $0x464] ss:$16 sps:$4 sm:$0xff]  }
  0x7a   : > { %2828 = vmatprep.subr.bf16.mxu0 %v4180_v31  ;;  %3086 = vmatprep.subr.bf16.mxu1 %v4183_v32  ;;  %v4276_v31 = vld [vmem:[%s4765_s11 + $0x46c] ss:$16 sps:$4 sm:$0xff]   ;;  %v4271_v32 = vld [vmem:[%s4765_s11 + $0x460] ss:$16 sps:$4 sm:$0xff]  }
  0x7d   : > { %2829 = vmatpush1.bf16.msra.mxu0 %v4178_v33  ;;  %3087 = vmatpush1.bf16.msra.mxu1 %v4181_v34  ;;  %v4274_v33 = vld [vmem:[%s4765_s11 + $0x468] ss:$16 sps:$4 sm:$0xff]   ;;  %v4279_v34 = vld [vmem:[%s4765_s11 + $0x484] ss:$16 sps:$4 sm:$0xff]  }
  0x7e   : > { %2830 = vmatprep.subr.bf16.mxu0 %v4186_v35  ;;  %3088 = vmatprep.subr.bf16.mxu1 %v4189_v36  ;;  %v4282_v35 = vld [vmem:[%s4765_s11 + $0x48c] ss:$16 sps:$4 sm:$0xff]   ;;  %v4277_v36 = vld [vmem:[%s4765_s11 + $0x480] ss:$16 sps:$4 sm:$0xff]  }
  0x81   : > { %2831 = vmatpush1.bf16.msra.mxu0 %v4184_v37  ;;  %3089 = vmatpush1.bf16.msra.mxu1 %v4187_v38  ;;  %v4280_v37 = vld [vmem:[%s4765_s11 + $0x488] ss:$16 sps:$4 sm:$0xff]   ;;  %v4285_v38 = vld [vmem:[%s4765_s11 + $0x4a4] ss:$16 sps:$4 sm:$0xff]  }
  0x82   : > { %2832 = vmatprep.subr.bf16.mxu0 %v4192_v39  ;;  %3090 = vmatprep.subr.bf16.mxu1 %v4195_v40  ;;  %v4288_v39 = vld [vmem:[%s4765_s11 + $0x4ac] ss:$16 sps:$4 sm:$0xff]   ;;  %v4283_v40 = vld [vmem:[%s4765_s11 + $0x4a0] ss:$16 sps:$4 sm:$0xff]  }
  0x85   : > { %2833 = vmatpush1.bf16.msra.mxu0 %v4190_v41  ;;  %3091 = vmatpush1.bf16.msra.mxu1 %v4193_v42  ;;  %v4286_v41 = vld [vmem:[%s4765_s11 + $0x4a8] ss:$16 sps:$4 sm:$0xff]   ;;  %v4291_v42 = vld [vmem:[%s4765_s11 + $0x4c4] ss:$16 sps:$4 sm:$0xff]  }
  0x86   : > { %2834 = vmatprep.subr.bf16.mxu0 %v4198_v44  ;;  %3092 = vmatprep.subr.bf16.mxu1 %v4201_v45  ;;  %v4289_v44 = vld [vmem:[%s4765_s11 + $0x4c0] ss:$16 sps:$4 sm:$0xff]   ;;  %v4292_v45 = vld [vmem:[%s4765_s11 + $0x4c8] ss:$16 sps:$4 sm:$0xff]  }
  0x89   : > { %2835 = vmatpush1.bf16.msra.mxu0 %v4196_v46  ;;  %3093 = vmatpush1.bf16.msra.mxu1 %v4199_v47  ;;  %v4297_v46 = vld [vmem:[%s4765_s11 + $0x4e4] ss:$16 sps:$4 sm:$0xff]   ;;  %v4300_v47 = vld [vmem:[%s4765_s11 + $0x4ec] ss:$16 sps:$4 sm:$0xff]  }
  0x8a   : > { %2836 = vmatprep.subr.bf16.mxu0 %v4204_v48  ;;  %3094 = vmatprep.subr.bf16.mxu1 %v4207_v49  ;;  %v4295_v48 = vld [vmem:[%s4765_s11 + $0x4e0] ss:$16 sps:$4 sm:$0xff]   ;;  %v4298_v49 = vld [vmem:[%s4765_s11 + $0x4e8] ss:$16 sps:$4 sm:$0xff]  }
  0x8d   : > { %2837 = vmatpush1.bf16.msra.mxu0 %v4202_v50  ;;  %3095 = vmatpush1.bf16.msra.mxu1 %v4205_v51  ;;  %v4303_v50 = vld [vmem:[%s4765_s11 + $0x504] ss:$16 sps:$4 sm:$0xff]   ;;  %v4306_v51 = vld [vmem:[%s4765_s11 + $0x50c] ss:$16 sps:$4 sm:$0xff]  }
  0x8e   : > { %2838 = vmatprep.subr.bf16.mxu0 %v4210_v52  ;;  %3096 = vmatprep.subr.bf16.mxu1 %v4213_v53  ;;  %v4301_v52 = vld [vmem:[%s4765_s11 + $0x500] ss:$16 sps:$4 sm:$0xff]   ;;  %v4304_v53 = vld [vmem:[%s4765_s11 + $0x508] ss:$16 sps:$4 sm:$0xff]  }
  0x91   : > { %2839 = vmatpush1.bf16.msra.mxu0 %v4208_v54  ;;  %3097 = vmatpush1.bf16.msra.mxu1 %v4211_v55  ;;  %v4309_v54 = vld [vmem:[%s4765_s11 + $0x524] ss:$16 sps:$4 sm:$0xff]   ;;  %v4312_v55 = vld [vmem:[%s4765_s11 + $0x52c] ss:$16 sps:$4 sm:$0xff]  }
  0x92   : > { %2840 = vmatprep.subr.bf16.mxu0 %v4216_v56  ;;  %3098 = vmatprep.subr.bf16.mxu1 %v4219_v57  ;;  %v4307_v56 = vld [vmem:[%s4765_s11 + $0x520] ss:$16 sps:$4 sm:$0xff]   ;;  %v4310_v57 = vld [vmem:[%s4765_s11 + $0x528] ss:$16 sps:$4 sm:$0xff]  }
  0x95   : > { %2841 = vmatpush1.bf16.msra.mxu0 %v4214_v58  ;;  %3099 = vmatpush1.bf16.msra.mxu1 %v4217_v59  ;;  %v4315_v58 = vld [vmem:[%s4765_s11 + $0x544] ss:$16 sps:$4 sm:$0xff]   ;;  %v4318_v59 = vld [vmem:[%s4765_s11 + $0x54c] ss:$16 sps:$4 sm:$0xff]  }
  0x96   : > { %2842 = vmatprep.subr.bf16.mxu0 %v4222_v60  ;;  %3100 = vmatprep.subr.bf16.mxu1 %v4225_v61  ;;  %v4313_v60 = vld [vmem:[%s4765_s11 + $0x540] ss:$16 sps:$4 sm:$0xff]   ;;  %v4316_v61 = vld [vmem:[%s4765_s11 + $0x548] ss:$16 sps:$4 sm:$0xff]  }
  0x99   : > { %2843 = vmatpush1.bf16.msra.mxu0 %v4220_v62  ;;  %3101 = vmatpush1.bf16.msra.mxu1 %v4223_v63  ;;  %v4321_v62 = vld [vmem:[%s4765_s11 + $0x564] ss:$16 sps:$4 sm:$0xff]   ;;  %v4324_v63 = vld [vmem:[%s4765_s11 + $0x56c] ss:$16 sps:$4 sm:$0xff]  }
  0x9a   : > { %2844 = vmatprep.subr.bf16.mxu0 %v4228_v0  ;;  %3102 = vmatprep.subr.bf16.mxu1 %v4231_v1  ;;  %v4319_v0 = vld [vmem:[%s4765_s11 + $0x560] ss:$16 sps:$4 sm:$0xff]   ;;  %v4322_v1 = vld [vmem:[%s4765_s11 + $0x568] ss:$16 sps:$4 sm:$0xff]  }
  0x9d   : > { %2845 = vmatpush1.bf16.msra.mxu0 %v4226_v2  ;;  %3103 = vmatpush1.bf16.msra.mxu1 %v4229_v3  ;;  %v4327_v2 = vld [vmem:[%s4765_s11 + $0x584] ss:$16 sps:$4 sm:$0xff]   ;;  %v4330_v3 = vld [vmem:[%s4765_s11 + $0x58c] ss:$16 sps:$4 sm:$0xff]  }
  0x9e   : > { %2846 = vmatprep.subr.bf16.mxu0 %v4234_v4  ;;  %3104 = vmatprep.subr.bf16.mxu1 %v4237_v5  ;;  %v4325_v4 = vld [vmem:[%s4765_s11 + $0x580] ss:$16 sps:$4 sm:$0xff]   ;;  %v4328_v5 = vld [vmem:[%s4765_s11 + $0x588] ss:$16 sps:$4 sm:$0xff]  }
  0xa1   : > { %2847 = vmatpush1.bf16.msra.mxu0 %v4232_v6  ;;  %3105 = vmatpush1.bf16.msra.mxu1 %v4235_v7  ;;  %v4333_v6 = vld [vmem:[%s4765_s11 + $0x5a4] ss:$16 sps:$4 sm:$0xff]   ;;  %v4336_v7 = vld [vmem:[%s4765_s11 + $0x5ac] ss:$16 sps:$4 sm:$0xff]  }
  0xa2   : > { %2848 = vmatprep.subr.bf16.mxu0 %v4240_v8  ;;  %3106 = vmatprep.subr.bf16.mxu1 %v4243_v9  ;;  %v4331_v8 = vld [vmem:[%s4765_s11 + $0x5a0] ss:$16 sps:$4 sm:$0xff]   ;;  %v4334_v9 = vld [vmem:[%s4765_s11 + $0x5a8] ss:$16 sps:$4 sm:$0xff]  }
  0xa5   : > { %2849 = vmatpush1.bf16.msra.mxu0 %v4238_v10  ;;  %3107 = vmatpush1.bf16.msra.mxu1 %v4241_v11  ;;  %v4339_v10 = vld [vmem:[%s4765_s11 + $0x5c4] ss:$16 sps:$4 sm:$0xff]   ;;  %v4342_v11 = vld [vmem:[%s4765_s11 + $0x5cc] ss:$16 sps:$4 sm:$0xff]  }
  0xa6   : > { %2850 = vmatprep.subr.bf16.mxu0 %v4246_v12  ;;  %3108 = vmatprep.subr.bf16.mxu1 %v4249_v13  ;;  %v4337_v12 = vld [vmem:[%s4765_s11 + $0x5c0] ss:$16 sps:$4 sm:$0xff]   ;;  %v4340_v13 = vld [vmem:[%s4765_s11 + $0x5c8] ss:$16 sps:$4 sm:$0xff]  }
  0xa9   : > { %2851 = vmatpush1.bf16.msra.mxu0 %v4244_v14  ;;  %3109 = vmatpush1.bf16.msra.mxu1 %v4247_v15  ;;  %v4345_v14 = vld [vmem:[%s4765_s11 + $0x5e4] ss:$16 sps:$4 sm:$0xff]   ;;  %v4348_v15 = vld [vmem:[%s4765_s11 + $0x5ec] ss:$16 sps:$4 sm:$0xff]  }
  0xaa   : > { %2863 = vmatprep.subr.bf16.mxu0 %v4255_v16  ;;  %3121 = vmatprep.subr.bf16.mxu1 %v4258_v17  ;;  %v4343_v16 = vld [vmem:[%s4765_s11 + $0x5e0] ss:$16 sps:$4 sm:$0xff]   ;;  %v4346_v17 = vld [vmem:[%s4765_s11 + $0x5e8] ss:$16 sps:$4 sm:$0xff]  }
  0xac   : > { %2853 = vmatmul.mubr.bf16.vlgmr.msra.gmra.mrb[0].mxu0 %v4250_v18  ;;  %3111 = vmatmul.mubr.bf16.vlgmr.msra.gmra.mrb[0].mxu1 %v4250_v18  ;;  %v4354_v18 = vld [vmem:[%s4765_s11 + $0x604] ss:$16 sps:$4 sm:$0xff]  }
  0xad   : > { %2864 = vmatpush1.bf16.msra.mxu0 %v4253_v19  ;;  %3122 = vmatpush1.bf16.msra.mxu1 %v4256_v20  ;;  %v4357_v19 = vld [vmem:[%s4765_s11 + $0x60c] ss:$16 sps:$4 sm:$0xff]   ;;  %v4349_v20 = vld [vmem:[%s4767_s12 + $0x10] ss:$48 sps:$4 sm:$0xff]  }
  0xae   : > { %2865 = vmatprep.subr.bf16.mxu0 %v4261_v21  ;;  %3123 = vmatprep.subr.bf16.mxu1 %v4264_v22  ;;  %v4352_v21 = vld [vmem:[%s4765_s11 + $0x600] ss:$16 sps:$4 sm:$0xff]   ;;  %v4355_v22 = vld [vmem:[%s4765_s11 + $0x608] ss:$16 sps:$4 sm:$0xff]  }
  0xaf   : > { %2895 = vmatprep.mubr.bf16.mxu0 %v4351_v25  ;;  %3153 = vmatprep.mubr.bf16.mxu1 %v4351_v25  ;;  %v4450_v25 = vld [vmem:[%s4767_s12 + $0x1c] ss:$48 sps:$4 sm:$0xff]  }
  0xb1   : > { %2866 = vmatpush1.bf16.msra.mxu0 %v4259_v23  ;;  %3124 = vmatpush1.bf16.msra.mxu1 %v4262_v24  ;;  %v4360_v23 = vld [vmem:[%s4765_s11 + $0x624] ss:$16 sps:$4 sm:$0xff]   ;;  %v4363_v24 = vld [vmem:[%s4765_s11 + $0x62c] ss:$16 sps:$4 sm:$0xff]  }
  0xb2   : > { %2867 = vmatprep.subr.bf16.mxu0 %v4267_v26  ;;  %3125 = vmatprep.subr.bf16.mxu1 %v4270_v27  ;;  %v4358_v26 = vld [vmem:[%s4765_s11 + $0x620] ss:$16 sps:$4 sm:$0xff]   ;;  %v4361_v27 = vld [vmem:[%s4765_s11 + $0x628] ss:$16 sps:$4 sm:$0xff]  }
  0xb5   : > { %2868 = vmatpush1.bf16.msra.mxu0 %v4265_v28  ;;  %3126 = vmatpush1.bf16.msra.mxu1 %v4268_v29  ;;  %v4366_v28 = vld [vmem:[%s4765_s11 + $0x644] ss:$16 sps:$4 sm:$0xff]   ;;  %v4369_v29 = vld [vmem:[%s4765_s11 + $0x64c] ss:$16 sps:$4 sm:$0xff]  }
  0xb6   : > { %2869 = vmatprep.subr.bf16.mxu0 %v4273_v30  ;;  %3127 = vmatprep.subr.bf16.mxu1 %v4276_v31  ;;  %v4364_v30 = vld [vmem:[%s4765_s11 + $0x640] ss:$16 sps:$4 sm:$0xff]   ;;  %v4367_v31 = vld [vmem:[%s4765_s11 + $0x648] ss:$16 sps:$4 sm:$0xff]  }
  0xb9   : > { %2870 = vmatpush1.bf16.msra.mxu0 %v4271_v32  ;;  %3128 = vmatpush1.bf16.msra.mxu1 %v4274_v33  ;;  %v4372_v32 = vld [vmem:[%s4765_s11 + $0x664] ss:$16 sps:$4 sm:$0xff]   ;;  %v4375_v33 = vld [vmem:[%s4765_s11 + $0x66c] ss:$16 sps:$4 sm:$0xff]  }
  0xba   : > { %2871 = vmatprep.subr.bf16.mxu0 %v4279_v34  ;;  %3129 = vmatprep.subr.bf16.mxu1 %v4282_v35  ;;  %v4370_v34 = vld [vmem:[%s4765_s11 + $0x660] ss:$16 sps:$4 sm:$0xff]   ;;  %v4373_v35 = vld [vmem:[%s4765_s11 + $0x668] ss:$16 sps:$4 sm:$0xff]  }
  0xbd   : > { %2872 = vmatpush1.bf16.msra.mxu0 %v4277_v36  ;;  %3130 = vmatpush1.bf16.msra.mxu1 %v4280_v37  ;;  %v4378_v36 = vld [vmem:[%s4765_s11 + $0x684] ss:$16 sps:$4 sm:$0xff]   ;;  %v4381_v37 = vld [vmem:[%s4765_s11 + $0x68c] ss:$16 sps:$4 sm:$0xff]  }
  0xbe   : > { %2873 = vmatprep.subr.bf16.mxu0 %v4285_v38  ;;  %3131 = vmatprep.subr.bf16.mxu1 %v4288_v39  ;;  %v4376_v38 = vld [vmem:[%s4765_s11 + $0x680] ss:$16 sps:$4 sm:$0xff]   ;;  %v4379_v39 = vld [vmem:[%s4765_s11 + $0x688] ss:$16 sps:$4 sm:$0xff]  }
  0xc1   : > { %2874 = vmatpush1.bf16.msra.mxu0 %v4283_v40  ;;  %3132 = vmatpush1.bf16.msra.mxu1 %v4286_v41  ;;  %v4384_v40 = vld [vmem:[%s4765_s11 + $0x6a4] ss:$16 sps:$4 sm:$0xff]   ;;  %v4387_v41 = vld [vmem:[%s4765_s11 + $0x6ac] ss:$16 sps:$4 sm:$0xff]  }
  0xc2   : > { %2875 = vmatprep.subr.bf16.mxu0 %v4291_v42  ;;  %3133 = vmatprep.subr.bf16.mxu1 %v4294_v43  ;;  %v4382_v42 = vld [vmem:[%s4765_s11 + $0x6a0] ss:$16 sps:$4 sm:$0xff]   ;;  %v4385_v43 = vld [vmem:[%s4765_s11 + $0x6a8] ss:$16 sps:$4 sm:$0xff]  }
  0xc5   : > { %2876 = vmatpush1.bf16.msra.mxu0 %v4289_v44  ;;  %3134 = vmatpush1.bf16.msra.mxu1 %v4292_v45  ;;  %v4390_v44 = vld [vmem:[%s4765_s11 + $0x6c4] ss:$16 sps:$4 sm:$0xff]   ;;  %v4393_v45 = vld [vmem:[%s4765_s11 + $0x6cc] ss:$16 sps:$4 sm:$0xff]  }
  0xc6   : > { %2877 = vmatprep.subr.bf16.mxu0 %v4297_v46  ;;  %3135 = vmatprep.subr.bf16.mxu1 %v4300_v47  ;;  %v4388_v46 = vld [vmem:[%s4765_s11 + $0x6c0] ss:$16 sps:$4 sm:$0xff]   ;;  %v4391_v47 = vld [vmem:[%s4765_s11 + $0x6c8] ss:$16 sps:$4 sm:$0xff]  }
  0xc9   : > { %2878 = vmatpush1.bf16.msra.mxu0 %v4295_v48  ;;  %3136 = vmatpush1.bf16.msra.mxu1 %v4298_v49  ;;  %v4396_v48 = vld [vmem:[%s4765_s11 + $0x6e4] ss:$16 sps:$4 sm:$0xff]   ;;  %v4399_v49 = vld [vmem:[%s4765_s11 + $0x6ec] ss:$16 sps:$4 sm:$0xff]  }
  0xca   : > { %2879 = vmatprep.subr.bf16.mxu0 %v4303_v50  ;;  %3137 = vmatprep.subr.bf16.mxu1 %v4306_v51  ;;  %v4394_v50 = vld [vmem:[%s4765_s11 + $0x6e0] ss:$16 sps:$4 sm:$0xff]   ;;  %v4397_v51 = vld [vmem:[%s4765_s11 + $0x6e8] ss:$16 sps:$4 sm:$0xff]  }
  0xcd   : > { %2880 = vmatpush1.bf16.msra.mxu0 %v4301_v52  ;;  %3138 = vmatpush1.bf16.msra.mxu1 %v4304_v53  ;;  %v4402_v52 = vld [vmem:[%s4765_s11 + $0x704] ss:$16 sps:$4 sm:$0xff]   ;;  %v4405_v53 = vld [vmem:[%s4765_s11 + $0x70c] ss:$16 sps:$4 sm:$0xff]  }
  0xce   : > { %2881 = vmatprep.subr.bf16.mxu0 %v4309_v54  ;;  %3139 = vmatprep.subr.bf16.mxu1 %v4312_v55  ;;  %v4400_v54 = vld [vmem:[%s4765_s11 + $0x700] ss:$16 sps:$4 sm:$0xff]   ;;  %v4403_v55 = vld [vmem:[%s4765_s11 + $0x708] ss:$16 sps:$4 sm:$0xff]  }
  0xd1   : > { %2882 = vmatpush1.bf16.msra.mxu0 %v4307_v56  ;;  %3140 = vmatpush1.bf16.msra.mxu1 %v4310_v57  ;;  %v4408_v56 = vld [vmem:[%s4765_s11 + $0x724] ss:$16 sps:$4 sm:$0xff]   ;;  %v4411_v57 = vld [vmem:[%s4765_s11 + $0x72c] ss:$16 sps:$4 sm:$0xff]  }
  0xd2   : > { %2883 = vmatprep.subr.bf16.mxu0 %v4315_v58  ;;  %3141 = vmatprep.subr.bf16.mxu1 %v4318_v59  ;;  %v4406_v58 = vld [vmem:[%s4765_s11 + $0x720] ss:$16 sps:$4 sm:$0xff]   ;;  %v4409_v59 = vld [vmem:[%s4765_s11 + $0x728] ss:$16 sps:$4 sm:$0xff]  }
  0xd5   : > { %2884 = vmatpush1.bf16.msra.mxu0 %v4313_v60  ;;  %3142 = vmatpush1.bf16.msra.mxu1 %v4316_v61  ;;  %v4414_v60 = vld [vmem:[%s4765_s11 + $0x744] ss:$16 sps:$4 sm:$0xff]   ;;  %v4417_v61 = vld [vmem:[%s4765_s11 + $0x74c] ss:$16 sps:$4 sm:$0xff]  }
  0xd6   : > { %2885 = vmatprep.subr.bf16.mxu0 %v4321_v62  ;;  %3143 = vmatprep.subr.bf16.mxu1 %v4324_v63  ;;  %v4412_v62 = vld [vmem:[%s4765_s11 + $0x740] ss:$16 sps:$4 sm:$0xff]   ;;  %v4415_v63 = vld [vmem:[%s4765_s11 + $0x748] ss:$16 sps:$4 sm:$0xff]  }
  0xd9   : > { %2886 = vmatpush1.bf16.msra.mxu0 %v4319_v0  ;;  %3144 = vmatpush1.bf16.msra.mxu1 %v4322_v1  ;;  %v4420_v0 = vld [vmem:[%s4765_s11 + $0x764] ss:$16 sps:$4 sm:$0xff]   ;;  %v4423_v1 = vld [vmem:[%s4765_s11 + $0x76c] ss:$16 sps:$4 sm:$0xff]  }
  0xda   : > { %2887 = vmatprep.subr.bf16.mxu0 %v4327_v2  ;;  %3145 = vmatprep.subr.bf16.mxu1 %v4330_v3  ;;  %v4418_v2 = vld [vmem:[%s4765_s11 + $0x760] ss:$16 sps:$4 sm:$0xff]   ;;  %v4421_v3 = vld [vmem:[%s4765_s11 + $0x768] ss:$16 sps:$4 sm:$0xff]  }
  0xdd   : > { %2888 = vmatpush1.bf16.msra.mxu0 %v4325_v4  ;;  %3146 = vmatpush1.bf16.msra.mxu1 %v4328_v5  ;;  %v4426_v4 = vld [vmem:[%s4765_s11 + $0x784] ss:$16 sps:$4 sm:$0xff]   ;;  %v4429_v5 = vld [vmem:[%s4765_s11 + $0x78c] ss:$16 sps:$4 sm:$0xff]  }
  0xde   : > { %2889 = vmatprep.subr.bf16.mxu0 %v4333_v6  ;;  %3147 = vmatprep.subr.bf16.mxu1 %v4336_v7  ;;  %v4424_v6 = vld [vmem:[%s4765_s11 + $0x780] ss:$16 sps:$4 sm:$0xff]   ;;  %v4427_v7 = vld [vmem:[%s4765_s11 + $0x788] ss:$16 sps:$4 sm:$0xff]  }
  0xe1   : > { %2890 = vmatpush1.bf16.msra.mxu0 %v4331_v8  ;;  %3148 = vmatpush1.bf16.msra.mxu1 %v4334_v9  ;;  %v4432_v8 = vld [vmem:[%s4765_s11 + $0x7a4] ss:$16 sps:$4 sm:$0xff]   ;;  %v4435_v9 = vld [vmem:[%s4765_s11 + $0x7ac] ss:$16 sps:$4 sm:$0xff]  }
  0xe2   : > { %2891 = vmatprep.subr.bf16.mxu0 %v4339_v10  ;;  %3149 = vmatprep.subr.bf16.mxu1 %v4342_v11  ;;  %v4430_v10 = vld [vmem:[%s4765_s11 + $0x7a0] ss:$16 sps:$4 sm:$0xff]   ;;  %v4433_v11 = vld [vmem:[%s4765_s11 + $0x7a8] ss:$16 sps:$4 sm:$0xff]  }
  0xe5   : > { %2892 = vmatpush1.bf16.msra.mxu0 %v4337_v12  ;;  %3150 = vmatpush1.bf16.msra.mxu1 %v4340_v13  ;;  %v4438_v12 = vld [vmem:[%s4765_s11 + $0x7c4] ss:$16 sps:$4 sm:$0xff]   ;;  %v4441_v13 = vld [vmem:[%s4765_s11 + $0x7cc] ss:$16 sps:$4 sm:$0xff]  }
  0xe6   : > { %2893 = vmatprep.subr.bf16.mxu0 %v4345_v14  ;;  %3151 = vmatprep.subr.bf16.mxu1 %v4348_v15  ;;  %v4436_v14 = vld [vmem:[%s4765_s11 + $0x7c0] ss:$16 sps:$4 sm:$0xff]   ;;  %v4439_v15 = vld [vmem:[%s4765_s11 + $0x7c8] ss:$16 sps:$4 sm:$0xff]  }
  0xe9   : > { %2894 = vmatpush1.bf16.msra.mxu0 %v4343_v16  ;;  %3152 = vmatpush1.bf16.msra.mxu1 %v4346_v17  ;;  %v4444_v16 = vld [vmem:[%s4765_s11 + $0x7e4] ss:$16 sps:$4 sm:$0xff]   ;;  %v4447_v17 = vld [vmem:[%s4765_s11 + $0x7ec] ss:$16 sps:$4 sm:$0xff]  }
  0xea   : > { %2906 = vmatprep.subr.bf16.mxu0 %v4354_v18  ;;  %3164 = vmatprep.subr.bf16.mxu1 %v4357_v19  ;;  %v4442_v18 = vld [vmem:[%s4765_s11 + $0x7e0] ss:$16 sps:$4 sm:$0xff]   ;;  %v4445_v19 = vld [vmem:[%s4765_s11 + $0x7e8] ss:$16 sps:$4 sm:$0xff]  }
  0xec   : > { %2896 = vmatmul.mubr.bf16.vlgmr.msra.gmra.mrb[0].mxu0 %v4349_v20  ;;  %3154 = vmatmul.mubr.bf16.vlgmr.msra.gmra.mrb[0].mxu1 %v4349_v20  ;;  %v4453_v20 = vld [vmem:[%s4765_s11 + $0x804] ss:$16 sps:$4 sm:$0xff]  }
  0xed   : > { %2907 = vmatpush1.bf16.msra.mxu0 %v4352_v21  ;;  %3165 = vmatpush1.bf16.msra.mxu1 %v4355_v22  ;;  %v4456_v21 = vld [vmem:[%s4765_s11 + $0x80c] ss:$16 sps:$4 sm:$0xff]   ;;  %v4448_v22 = vld [vmem:[%s4767_s12 + $0x18] ss:$48 sps:$4 sm:$0xff]  }
  0xee   : > { %2908 = vmatprep.subr.bf16.mxu0 %v4360_v23  ;;  %3166 = vmatprep.subr.bf16.mxu1 %v4363_v24  ;;  %v4451_v23 = vld [vmem:[%s4765_s11 + $0x800] ss:$16 sps:$4 sm:$0xff]   ;;  %v4454_v24 = vld [vmem:[%s4765_s11 + $0x808] ss:$16 sps:$4 sm:$0xff]  }
  0xef   : > { %2938 = vmatprep.mubr.bf16.mxu0 %v4450_v25  ;;  %3196 = vmatprep.mubr.bf16.mxu1 %v4450_v25  ;;  %v4459_v25 = vld [vmem:[%s4765_s11 + $0x824] ss:$16 sps:$4 sm:$0xff]  }
  0xf1   : > { %2909 = vmatpush1.bf16.msra.mxu0 %v4358_v26  ;;  %3167 = vmatpush1.bf16.msra.mxu1 %v4361_v27  ;;  %v4462_v26 = vld [vmem:[%s4765_s11 + $0x82c] ss:$16 sps:$4 sm:$0xff]   ;;  %v4549_v27 = vld [vmem:[%s4767_s12 + $0x24] ss:$48 sps:$4 sm:$0xff]  }
  0xf2   : > { %2910 = vmatprep.subr.bf16.mxu0 %v4366_v28  ;;  %3168 = vmatprep.subr.bf16.mxu1 %v4369_v29  ;;  %v4457_v28 = vld [vmem:[%s4765_s11 + $0x820] ss:$16 sps:$4 sm:$0xff]   ;;  %v4460_v29 = vld [vmem:[%s4765_s11 + $0x828] ss:$16 sps:$4 sm:$0xff]  }
  0xf5   : > { %2911 = vmatpush1.bf16.msra.mxu0 %v4364_v30  ;;  %3169 = vmatpush1.bf16.msra.mxu1 %v4367_v31  ;;  %v4465_v30 = vld [vmem:[%s4765_s11 + $0x844] ss:$16 sps:$4 sm:$0xff]   ;;  %v4468_v31 = vld [vmem:[%s4765_s11 + $0x84c] ss:$16 sps:$4 sm:$0xff]  }
  0xf6   : > { %2912 = vmatprep.subr.bf16.mxu0 %v4372_v32  ;;  %3170 = vmatprep.subr.bf16.mxu1 %v4375_v33  ;;  %v4463_v32 = vld [vmem:[%s4765_s11 + $0x840] ss:$16 sps:$4 sm:$0xff]   ;;  %v4466_v33 = vld [vmem:[%s4765_s11 + $0x848] ss:$16 sps:$4 sm:$0xff]  }
  0xf9   : > { %2913 = vmatpush1.bf16.msra.mxu0 %v4370_v34  ;;  %3171 = vmatpush1.bf16.msra.mxu1 %v4373_v35  ;;  %v4471_v34 = vld [vmem:[%s4765_s11 + $0x864] ss:$16 sps:$4 sm:$0xff]   ;;  %v4474_v35 = vld [vmem:[%s4765_s11 + $0x86c] ss:$16 sps:$4 sm:$0xff]  }
  0xfa   : > { %2914 = vmatprep.subr.bf16.mxu0 %v4378_v36  ;;  %3172 = vmatprep.subr.bf16.mxu1 %v4381_v37  ;;  %v4469_v36 = vld [vmem:[%s4765_s11 + $0x860] ss:$16 sps:$4 sm:$0xff]   ;;  %v4472_v37 = vld [vmem:[%s4765_s11 + $0x868] ss:$16 sps:$4 sm:$0xff]  }
  0xfd   : > { %2915 = vmatpush1.bf16.msra.mxu0 %v4376_v38  ;;  %3173 = vmatpush1.bf16.msra.mxu1 %v4379_v39  ;;  %v4477_v38 = vld [vmem:[%s4765_s11 + $0x884] ss:$16 sps:$4 sm:$0xff]   ;;  %v4480_v39 = vld [vmem:[%s4765_s11 + $0x88c] ss:$16 sps:$4 sm:$0xff]  }
  0xfe   : > { %2916 = vmatprep.subr.bf16.mxu0 %v4384_v40  ;;  %3174 = vmatprep.subr.bf16.mxu1 %v4387_v41  ;;  %v4475_v40 = vld [vmem:[%s4765_s11 + $0x880] ss:$16 sps:$4 sm:$0xff]   ;;  %v4478_v41 = vld [vmem:[%s4765_s11 + $0x888] ss:$16 sps:$4 sm:$0xff]  }
 0x101   : > { %2917 = vmatpush1.bf16.msra.mxu0 %v4382_v42  ;;  %3175 = vmatpush1.bf16.msra.mxu1 %v4385_v43  ;;  %v4483_v42 = vld [vmem:[%s4765_s11 + $0x8a4] ss:$16 sps:$4 sm:$0xff]   ;;  %v4486_v43 = vld [vmem:[%s4765_s11 + $0x8ac] ss:$16 sps:$4 sm:$0xff]  }
 0x102   : > { %2918 = vmatprep.subr.bf16.mxu0 %v4390_v44  ;;  %3176 = vmatprep.subr.bf16.mxu1 %v4393_v45  ;;  %v4481_v44 = vld [vmem:[%s4765_s11 + $0x8a0] ss:$16 sps:$4 sm:$0xff]   ;;  %v4484_v45 = vld [vmem:[%s4765_s11 + $0x8a8] ss:$16 sps:$4 sm:$0xff]  }
 0x105   : > { %2919 = vmatpush1.bf16.msra.mxu0 %v4388_v46  ;;  %3177 = vmatpush1.bf16.msra.mxu1 %v4391_v47  ;;  %v4489_v46 = vld [vmem:[%s4765_s11 + $0x8c4] ss:$16 sps:$4 sm:$0xff]   ;;  %v4492_v47 = vld [vmem:[%s4765_s11 + $0x8cc] ss:$16 sps:$4 sm:$0xff]  }
 0x106   : > { %2920 = vmatprep.subr.bf16.mxu0 %v4396_v48  ;;  %3178 = vmatprep.subr.bf16.mxu1 %v4399_v49  ;;  %v4487_v48 = vld [vmem:[%s4765_s11 + $0x8c0] ss:$16 sps:$4 sm:$0xff]   ;;  %v4490_v49 = vld [vmem:[%s4765_s11 + $0x8c8] ss:$16 sps:$4 sm:$0xff]  }
 0x109   : > { %2921 = vmatpush1.bf16.msra.mxu0 %v4394_v50  ;;  %3179 = vmatpush1.bf16.msra.mxu1 %v4397_v51  ;;  %v4495_v50 = vld [vmem:[%s4765_s11 + $0x8e4] ss:$16 sps:$4 sm:$0xff]   ;;  %v4498_v51 = vld [vmem:[%s4765_s11 + $0x8ec] ss:$16 sps:$4 sm:$0xff]  }
 0x10a   : > { %2922 = vmatprep.subr.bf16.mxu0 %v4402_v52  ;;  %3180 = vmatprep.subr.bf16.mxu1 %v4405_v53  ;;  %v4493_v52 = vld [vmem:[%s4765_s11 + $0x8e0] ss:$16 sps:$4 sm:$0xff]   ;;  %v4496_v53 = vld [vmem:[%s4765_s11 + $0x8e8] ss:$16 sps:$4 sm:$0xff]  }
 0x10d   : > { %2923 = vmatpush1.bf16.msra.mxu0 %v4400_v54  ;;  %3181 = vmatpush1.bf16.msra.mxu1 %v4403_v55  ;;  %v4501_v54 = vld [vmem:[%s4765_s11 + $0x904] ss:$16 sps:$4 sm:$0xff]   ;;  %v4504_v55 = vld [vmem:[%s4765_s11 + $0x90c] ss:$16 sps:$4 sm:$0xff]  }
 0x10e   : > { %2924 = vmatprep.subr.bf16.mxu0 %v4408_v56  ;;  %3182 = vmatprep.subr.bf16.mxu1 %v4411_v57  ;;  %v4499_v56 = vld [vmem:[%s4765_s11 + $0x900] ss:$16 sps:$4 sm:$0xff]   ;;  %v4502_v57 = vld [vmem:[%s4765_s11 + $0x908] ss:$16 sps:$4 sm:$0xff]  }
 0x111   : > { %2925 = vmatpush1.bf16.msra.mxu0 %v4406_v58  ;;  %3183 = vmatpush1.bf16.msra.mxu1 %v4409_v59  ;;  %v4507_v58 = vld [vmem:[%s4765_s11 + $0x924] ss:$16 sps:$4 sm:$0xff]   ;;  %v4510_v59 = vld [vmem:[%s4765_s11 + $0x92c] ss:$16 sps:$4 sm:$0xff]  }
 0x112   : > { %2926 = vmatprep.subr.bf16.mxu0 %v4414_v60  ;;  %3184 = vmatprep.subr.bf16.mxu1 %v4417_v61  ;;  %v4505_v60 = vld [vmem:[%s4765_s11 + $0x920] ss:$16 sps:$4 sm:$0xff]   ;;  %v4508_v61 = vld [vmem:[%s4765_s11 + $0x928] ss:$16 sps:$4 sm:$0xff]  }
 0x115   : > { %2927 = vmatpush1.bf16.msra.mxu0 %v4412_v62  ;;  %3185 = vmatpush1.bf16.msra.mxu1 %v4415_v63  ;;  %v4513_v62 = vld [vmem:[%s4765_s11 + $0x944] ss:$16 sps:$4 sm:$0xff]   ;;  %v4516_v63 = vld [vmem:[%s4765_s11 + $0x94c] ss:$16 sps:$4 sm:$0xff]  }
 0x116   : > { %2928 = vmatprep.subr.bf16.mxu0 %v4420_v0  ;;  %3186 = vmatprep.subr.bf16.mxu1 %v4423_v1  ;;  %v4511_v0 = vld [vmem:[%s4765_s11 + $0x940] ss:$16 sps:$4 sm:$0xff]   ;;  %v4514_v1 = vld [vmem:[%s4765_s11 + $0x948] ss:$16 sps:$4 sm:$0xff]  }
 0x119   : > { %2929 = vmatpush1.bf16.msra.mxu0 %v4418_v2  ;;  %3187 = vmatpush1.bf16.msra.mxu1 %v4421_v3  ;;  %v4519_v2 = vld [vmem:[%s4765_s11 + $0x964] ss:$16 sps:$4 sm:$0xff]   ;;  %v4522_v3 = vld [vmem:[%s4765_s11 + $0x96c] ss:$16 sps:$4 sm:$0xff]  }
 0x11a   : > { %2930 = vmatprep.subr.bf16.mxu0 %v4426_v4  ;;  %3188 = vmatprep.subr.bf16.mxu1 %v4429_v5  ;;  %v4517_v4 = vld [vmem:[%s4765_s11 + $0x960] ss:$16 sps:$4 sm:$0xff]   ;;  %v4520_v5 = vld [vmem:[%s4765_s11 + $0x968] ss:$16 sps:$4 sm:$0xff]  }
 0x11d   : > { %2931 = vmatpush1.bf16.msra.mxu0 %v4424_v6  ;;  %3189 = vmatpush1.bf16.msra.mxu1 %v4427_v7  ;;  %v4525_v6 = vld [vmem:[%s4765_s11 + $0x984] ss:$16 sps:$4 sm:$0xff]   ;;  %v4528_v7 = vld [vmem:[%s4765_s11 + $0x98c] ss:$16 sps:$4 sm:$0xff]  }
 0x11e   : > { %2932 = vmatprep.subr.bf16.mxu0 %v4432_v8  ;;  %3190 = vmatprep.subr.bf16.mxu1 %v4435_v9  ;;  %v4523_v8 = vld [vmem:[%s4765_s11 + $0x980] ss:$16 sps:$4 sm:$0xff]   ;;  %v4526_v9 = vld [vmem:[%s4765_s11 + $0x988] ss:$16 sps:$4 sm:$0xff]  }
 0x121   : > { %2933 = vmatpush1.bf16.msra.mxu0 %v4430_v10  ;;  %3191 = vmatpush1.bf16.msra.mxu1 %v4433_v11  ;;  %v4531_v10 = vld [vmem:[%s4765_s11 + $0x9a4] ss:$16 sps:$4 sm:$0xff]   ;;  %v4534_v11 = vld [vmem:[%s4765_s11 + $0x9ac] ss:$16 sps:$4 sm:$0xff]  }
 0x122   : > { %2934 = vmatprep.subr.bf16.mxu0 %v4438_v12  ;;  %3192 = vmatprep.subr.bf16.mxu1 %v4441_v13  ;;  %v4529_v12 = vld [vmem:[%s4765_s11 + $0x9a0] ss:$16 sps:$4 sm:$0xff]   ;;  %v4532_v13 = vld [vmem:[%s4765_s11 + $0x9a8] ss:$16 sps:$4 sm:$0xff]  }
 0x125   : > { %2935 = vmatpush1.bf16.msra.mxu0 %v4436_v14  ;;  %3193 = vmatpush1.bf16.msra.mxu1 %v4439_v15  ;;  %v4537_v14 = vld [vmem:[%s4765_s11 + $0x9c4] ss:$16 sps:$4 sm:$0xff]   ;;  %v4540_v15 = vld [vmem:[%s4765_s11 + $0x9cc] ss:$16 sps:$4 sm:$0xff]  }
 0x126   : > { %2936 = vmatprep.subr.bf16.mxu0 %v4444_v16  ;;  %3194 = vmatprep.subr.bf16.mxu1 %v4447_v17  ;;  %v4535_v16 = vld [vmem:[%s4765_s11 + $0x9c0] ss:$16 sps:$4 sm:$0xff]   ;;  %v4538_v17 = vld [vmem:[%s4765_s11 + $0x9c8] ss:$16 sps:$4 sm:$0xff]  }
 0x129   : > { %2937 = vmatpush1.bf16.msra.mxu0 %v4442_v18  ;;  %3195 = vmatpush1.bf16.msra.mxu1 %v4445_v19  ;;  %v4543_v18 = vld [vmem:[%s4765_s11 + $0x9e4] ss:$16 sps:$4 sm:$0xff]   ;;  %v4546_v19 = vld [vmem:[%s4765_s11 + $0x9ec] ss:$16 sps:$4 sm:$0xff]  }
 0x12a   : > { %2949 = vmatprep.subr.bf16.mxu0 %v4453_v20  ;;  %3207 = vmatprep.subr.bf16.mxu1 %v4456_v21  ;;  %v4541_v20 = vld [vmem:[%s4765_s11 + $0x9e0] ss:$16 sps:$4 sm:$0xff]   ;;  %v4544_v21 = vld [vmem:[%s4765_s11 + $0x9e8] ss:$16 sps:$4 sm:$0xff]  }
 0x12c   : > { %2939 = vmatmul.mubr.bf16.vlgmr.msra.gmra.mrb[0].mxu0 %v4448_v22  ;;  %3197 = vmatmul.mubr.bf16.vlgmr.msra.gmra.mrb[0].mxu1 %v4448_v22  ;;  %v4552_v22 = vld [vmem:[%s4765_s11 + $0xa04] ss:$16 sps:$4 sm:$0xff]  }
 0x12d   : > { %2950 = vmatpush1.bf16.msra.mxu0 %v4451_v23  ;;  %3208 = vmatpush1.bf16.msra.mxu1 %v4454_v24  ;;  %v4555_v23 = vld [vmem:[%s4765_s11 + $0xa0c] ss:$16 sps:$4 sm:$0xff]   ;;  %v4547_v24 = vld [vmem:[%s4767_s12 + $0x20] ss:$48 sps:$4 sm:$0xff]  }
 0x12e   : > { %2951 = vmatprep.subr.bf16.mxu0 %v4459_v25  ;;  %3209 = vmatprep.subr.bf16.mxu1 %v4462_v26  ;;  %v4550_v25 = vld [vmem:[%s4765_s11 + $0xa00] ss:$16 sps:$4 sm:$0xff]   ;;  %v4553_v26 = vld [vmem:[%s4765_s11 + $0xa08] ss:$16 sps:$4 sm:$0xff]  }
 0x12f   : > { %2981 = vmatprep.mubr.bf16.mxu0 %v4549_v27  ;;  %3239 = vmatprep.mubr.bf16.mxu1 %v4549_v27  ;;  %v4558_v27 = vld [vmem:[%s4765_s11 + $0xa24] ss:$16 sps:$4 sm:$0xff]  }
 0x131   : > { %2952 = vmatpush1.bf16.msra.mxu0 %v4457_v28  ;;  %3210 = vmatpush1.bf16.msra.mxu1 %v4460_v29  ;;  %v4561_v28 = vld [vmem:[%s4765_s11 + $0xa2c] ss:$16 sps:$4 sm:$0xff]  }
 0x132   : > { %2953 = vmatprep.subr.bf16.mxu0 %v4465_v30  ;;  %3211 = vmatprep.subr.bf16.mxu1 %v4468_v31  ;;  %v4648_v29 = vld [vmem:[%s4767_s12 + $0x2c] ss:$48 sps:$4 sm:$0xff]   ;;  %v4556_v30 = vld [vmem:[%s4765_s11 + $0xa20] ss:$16 sps:$4 sm:$0xff]   ;;  %v4559_v31 = vld [vmem:[%s4765_s11 + $0xa28] ss:$16 sps:$4 sm:$0xff]  }
 0x135   : > { %2954 = vmatpush1.bf16.msra.mxu0 %v4463_v32  ;;  %3212 = vmatpush1.bf16.msra.mxu1 %v4466_v33  ;;  %v4564_v32 = vld [vmem:[%s4765_s11 + $0xa44] ss:$16 sps:$4 sm:$0xff]   ;;  %v4567_v33 = vld [vmem:[%s4765_s11 + $0xa4c] ss:$16 sps:$4 sm:$0xff]  }
 0x136   : > { %2955 = vmatprep.subr.bf16.mxu0 %v4471_v34  ;;  %3213 = vmatprep.subr.bf16.mxu1 %v4474_v35  ;;  %v4562_v34 = vld [vmem:[%s4765_s11 + $0xa40] ss:$16 sps:$4 sm:$0xff]   ;;  %v4565_v35 = vld [vmem:[%s4765_s11 + $0xa48] ss:$16 sps:$4 sm:$0xff]  }
 0x139   : > { %2956 = vmatpush1.bf16.msra.mxu0 %v4469_v36  ;;  %3214 = vmatpush1.bf16.msra.mxu1 %v4472_v37  ;;  %v4570_v36 = vld [vmem:[%s4765_s11 + $0xa64] ss:$16 sps:$4 sm:$0xff]   ;;  %v4573_v37 = vld [vmem:[%s4765_s11 + $0xa6c] ss:$16 sps:$4 sm:$0xff]  }
 0x13a   : > { %2957 = vmatprep.subr.bf16.mxu0 %v4477_v38  ;;  %3215 = vmatprep.subr.bf16.mxu1 %v4480_v39  ;;  %v4568_v38 = vld [vmem:[%s4765_s11 + $0xa60] ss:$16 sps:$4 sm:$0xff]   ;;  %v4571_v39 = vld [vmem:[%s4765_s11 + $0xa68] ss:$16 sps:$4 sm:$0xff]  }
 0x13d   : > { %2958 = vmatpush1.bf16.msra.mxu0 %v4475_v40  ;;  %3216 = vmatpush1.bf16.msra.mxu1 %v4478_v41  ;;  %v4576_v40 = vld [vmem:[%s4765_s11 + $0xa84] ss:$16 sps:$4 sm:$0xff]   ;;  %v4579_v41 = vld [vmem:[%s4765_s11 + $0xa8c] ss:$16 sps:$4 sm:$0xff]  }
 0x13e   : > { %2959 = vmatprep.subr.bf16.mxu0 %v4483_v42  ;;  %3217 = vmatprep.subr.bf16.mxu1 %v4486_v43  ;;  %v4574_v42 = vld [vmem:[%s4765_s11 + $0xa80] ss:$16 sps:$4 sm:$0xff]   ;;  %v4577_v43 = vld [vmem:[%s4765_s11 + $0xa88] ss:$16 sps:$4 sm:$0xff]  }
 0x141   : > { %2960 = vmatpush1.bf16.msra.mxu0 %v4481_v44  ;;  %3218 = vmatpush1.bf16.msra.mxu1 %v4484_v45  ;;  %v4582_v44 = vld [vmem:[%s4765_s11 + $0xaa4] ss:$16 sps:$4 sm:$0xff]   ;;  %v4585_v45 = vld [vmem:[%s4765_s11 + $0xaac] ss:$16 sps:$4 sm:$0xff]  }
 0x142   : > { %2961 = vmatprep.subr.bf16.mxu0 %v4489_v46  ;;  %3219 = vmatprep.subr.bf16.mxu1 %v4492_v47  ;;  %v4580_v46 = vld [vmem:[%s4765_s11 + $0xaa0] ss:$16 sps:$4 sm:$0xff]   ;;  %v4583_v47 = vld [vmem:[%s4765_s11 + $0xaa8] ss:$16 sps:$4 sm:$0xff]  }
 0x145   : > { %2962 = vmatpush1.bf16.msra.mxu0 %v4487_v48  ;;  %3220 = vmatpush1.bf16.msra.mxu1 %v4490_v49  ;;  %v4588_v48 = vld [vmem:[%s4765_s11 + $0xac4] ss:$16 sps:$4 sm:$0xff]   ;;  %v4591_v49 = vld [vmem:[%s4765_s11 + $0xacc] ss:$16 sps:$4 sm:$0xff]  }
 0x146   : > { %2963 = vmatprep.subr.bf16.mxu0 %v4495_v50  ;;  %3221 = vmatprep.subr.bf16.mxu1 %v4498_v51  ;;  %v4586_v50 = vld [vmem:[%s4765_s11 + $0xac0] ss:$16 sps:$4 sm:$0xff]   ;;  %v4589_v51 = vld [vmem:[%s4765_s11 + $0xac8] ss:$16 sps:$4 sm:$0xff]  }
 0x149   : > { %2964 = vmatpush1.bf16.msra.mxu0 %v4493_v52  ;;  %3222 = vmatpush1.bf16.msra.mxu1 %v4496_v53  ;;  %v4594_v52 = vld [vmem:[%s4765_s11 + $0xae4] ss:$16 sps:$4 sm:$0xff]   ;;  %v4597_v53 = vld [vmem:[%s4765_s11 + $0xaec] ss:$16 sps:$4 sm:$0xff]  }
 0x14a   : > { %2965 = vmatprep.subr.bf16.mxu0 %v4501_v54  ;;  %3223 = vmatprep.subr.bf16.mxu1 %v4504_v55  ;;  %v4592_v54 = vld [vmem:[%s4765_s11 + $0xae0] ss:$16 sps:$4 sm:$0xff]   ;;  %v4595_v55 = vld [vmem:[%s4765_s11 + $0xae8] ss:$16 sps:$4 sm:$0xff]  }
 0x14d   : > { %2966 = vmatpush1.bf16.msra.mxu0 %v4499_v56  ;;  %3224 = vmatpush1.bf16.msra.mxu1 %v4502_v57  ;;  %v4600_v56 = vld [vmem:[%s4765_s11 + $0xb04] ss:$16 sps:$4 sm:$0xff]   ;;  %v4603_v57 = vld [vmem:[%s4765_s11 + $0xb0c] ss:$16 sps:$4 sm:$0xff]  }
 0x14e   : > { %2967 = vmatprep.subr.bf16.mxu0 %v4507_v58  ;;  %3225 = vmatprep.subr.bf16.mxu1 %v4510_v59  ;;  %v4598_v58 = vld [vmem:[%s4765_s11 + $0xb00] ss:$16 sps:$4 sm:$0xff]   ;;  %v4601_v59 = vld [vmem:[%s4765_s11 + $0xb08] ss:$16 sps:$4 sm:$0xff]  }
 0x151   : > { %2968 = vmatpush1.bf16.msra.mxu0 %v4505_v60  ;;  %3226 = vmatpush1.bf16.msra.mxu1 %v4508_v61  ;;  %v4606_v60 = vld [vmem:[%s4765_s11 + $0xb24] ss:$16 sps:$4 sm:$0xff]   ;;  %v4609_v61 = vld [vmem:[%s4765_s11 + $0xb2c] ss:$16 sps:$4 sm:$0xff]  }
 0x152   : > { %2969 = vmatprep.subr.bf16.mxu0 %v4513_v62  ;;  %3227 = vmatprep.subr.bf16.mxu1 %v4516_v63  ;;  %v4604_v62 = vld [vmem:[%s4765_s11 + $0xb20] ss:$16 sps:$4 sm:$0xff]   ;;  %v4607_v63 = vld [vmem:[%s4765_s11 + $0xb28] ss:$16 sps:$4 sm:$0xff]  }
 0x155   : > { %2970 = vmatpush1.bf16.msra.mxu0 %v4511_v0  ;;  %3228 = vmatpush1.bf16.msra.mxu1 %v4514_v1  ;;  %v4612_v0 = vld [vmem:[%s4765_s11 + $0xb44] ss:$16 sps:$4 sm:$0xff]   ;;  %v4615_v1 = vld [vmem:[%s4765_s11 + $0xb4c] ss:$16 sps:$4 sm:$0xff]  }
 0x156   : > { %2971 = vmatprep.subr.bf16.mxu0 %v4519_v2  ;;  %3229 = vmatprep.subr.bf16.mxu1 %v4522_v3  ;;  %v4610_v2 = vld [vmem:[%s4765_s11 + $0xb40] ss:$16 sps:$4 sm:$0xff]   ;;  %v4613_v3 = vld [vmem:[%s4765_s11 + $0xb48] ss:$16 sps:$4 sm:$0xff]  }
 0x159   : > { %2972 = vmatpush1.bf16.msra.mxu0 %v4517_v4  ;;  %3230 = vmatpush1.bf16.msra.mxu1 %v4520_v5  ;;  %v4618_v4 = vld [vmem:[%s4765_s11 + $0xb64] ss:$16 sps:$4 sm:$0xff]   ;;  %v4621_v5 = vld [vmem:[%s4765_s11 + $0xb6c] ss:$16 sps:$4 sm:$0xff]  }
 0x15a   : > { %2973 = vmatprep.subr.bf16.mxu0 %v4525_v6  ;;  %3231 = vmatprep.subr.bf16.mxu1 %v4528_v7  ;;  %v4616_v6 = vld [vmem:[%s4765_s11 + $0xb60] ss:$16 sps:$4 sm:$0xff]   ;;  %v4619_v7 = vld [vmem:[%s4765_s11 + $0xb68] ss:$16 sps:$4 sm:$0xff]  }
 0x15d   : > { %2974 = vmatpush1.bf16.msra.mxu0 %v4523_v8  ;;  %3232 = vmatpush1.bf16.msra.mxu1 %v4526_v9  ;;  %v4624_v8 = vld [vmem:[%s4765_s11 + $0xb84] ss:$16 sps:$4 sm:$0xff]   ;;  %v4627_v9 = vld [vmem:[%s4765_s11 + $0xb8c] ss:$16 sps:$4 sm:$0xff]  }
 0x15e   : > { %2975 = vmatprep.subr.bf16.mxu0 %v4531_v10  ;;  %3233 = vmatprep.subr.bf16.mxu1 %v4534_v11  ;;  %v4622_v10 = vld [vmem:[%s4765_s11 + $0xb80] ss:$16 sps:$4 sm:$0xff]   ;;  %v4625_v11 = vld [vmem:[%s4765_s11 + $0xb88] ss:$16 sps:$4 sm:$0xff]  }
 0x161   : > { %2976 = vmatpush1.bf16.msra.mxu0 %v4529_v12  ;;  %3234 = vmatpush1.bf16.msra.mxu1 %v4532_v13  ;;  %v4630_v12 = vld [vmem:[%s4765_s11 + $0xba4] ss:$16 sps:$4 sm:$0xff]   ;;  %v4633_v13 = vld [vmem:[%s4765_s11 + $0xbac] ss:$16 sps:$4 sm:$0xff]  }
 0x162   : > { %2977 = vmatprep.subr.bf16.mxu0 %v4537_v14  ;;  %3235 = vmatprep.subr.bf16.mxu1 %v4540_v15  ;;  %v4628_v14 = vld [vmem:[%s4765_s11 + $0xba0] ss:$16 sps:$4 sm:$0xff]   ;;  %v4631_v15 = vld [vmem:[%s4765_s11 + $0xba8] ss:$16 sps:$4 sm:$0xff]  }
 0x165   : > { %2978 = vmatpush1.bf16.msra.mxu0 %v4535_v16  ;;  %3236 = vmatpush1.bf16.msra.mxu1 %v4538_v17  ;;  %v4636_v16 = vld [vmem:[%s4765_s11 + $0xbc4] ss:$16 sps:$4 sm:$0xff]   ;;  %v4639_v17 = vld [vmem:[%s4765_s11 + $0xbcc] ss:$16 sps:$4 sm:$0xff]  }
 0x166   : > { %2979 = vmatprep.subr.bf16.mxu0 %v4543_v18  ;;  %3237 = vmatprep.subr.bf16.mxu1 %v4546_v19  ;;  %v4634_v18 = vld [vmem:[%s4765_s11 + $0xbc0] ss:$16 sps:$4 sm:$0xff]   ;;  %v4637_v19 = vld [vmem:[%s4765_s11 + $0xbc8] ss:$16 sps:$4 sm:$0xff]  }
 0x169   : > { %2980 = vmatpush1.bf16.msra.mxu0 %v4541_v20  ;;  %3238 = vmatpush1.bf16.msra.mxu1 %v4544_v21  ;;  %v4642_v20 = vld [vmem:[%s4765_s11 + $0xbe4] ss:$16 sps:$4 sm:$0xff]   ;;  %v4645_v21 = vld [vmem:[%s4765_s11 + $0xbec] ss:$16 sps:$4 sm:$0xff]  }
 0x16a   : > { %2992 = vmatprep.subr.bf16.mxu0 %v4552_v22  ;;  %3250 = vmatprep.subr.bf16.mxu1 %v4555_v23  ;;  %v4640_v22 = vld [vmem:[%s4765_s11 + $0xbe0] ss:$16 sps:$4 sm:$0xff]   ;;  %v4643_v23 = vld [vmem:[%s4765_s11 + $0xbe8] ss:$16 sps:$4 sm:$0xff]  }
 0x16c   : > { %2982 = vmatmul.mubr.bf16.vlgmr.msra.gmra.mrb[0].mxu0 %v4547_v24  ;;  %3240 = vmatmul.mubr.bf16.vlgmr.msra.gmra.mrb[0].mxu1 %v4547_v24  ;;  %v4646_v24 = vld [vmem:[%s4767_s12 + $0x28] ss:$48 sps:$4 sm:$0xff]  }
 0x16d   : > { %2993 = vmatpush1.bf16.msra.mxu0 %v4550_v25  ;;  %3251 = vmatpush1.bf16.msra.mxu1 %v4553_v26  ;;  %v393_v25 = vld [vmem:[#allocation2] sm:$0xff]  ;;  %v395_v26 = vld [vmem:[#allocation2 + $0x10] sm:$0xff] }
 0x16e   : > { %2994 = vmatprep.subr.bf16.mxu0 %v4558_v27  ;;  %3252 = vmatprep.subr.bf16.mxu1 %v4561_v28  ;;  %v394_v27 = vld [vmem:[#allocation2 + $0x8] sm:$0xff]  ;;  %v396_v28 = vld [vmem:[#allocation2 + $0x18] sm:$0xff] }
 0x16f   : > { %3024 = vmatprep.mubr.bf16.mxu0 %v4648_v29  ;;  %3282 = vmatprep.mubr.bf16.mxu1 %v4648_v29 }
 0x171   : > { %2995 = vmatpush1.bf16.msra.mxu0 %v4556_v30  ;;  %3253 = vmatpush1.bf16.msra.mxu1 %v4559_v31  ;;  %v397_v31 = vld [vmem:[#allocation2 + $0x20] sm:$0xff] }
 0x172   : > { %2996 = vmatprep.subr.bf16.mxu0 %v4564_v32  ;;  %3254 = vmatprep.subr.bf16.mxu1 %v4567_v33  ;;  %v399_v32 = vld [vmem:[#allocation2 + $0x30] sm:$0xff] }
 0x175   : > { %2997 = vmatpush1.bf16.msra.mxu0 %v4562_v34  ;;  %3255 = vmatpush1.bf16.msra.mxu1 %v4565_v35 }
 0x176   : > { %2998 = vmatprep.subr.bf16.mxu0 %v4570_v36  ;;  %3256 = vmatprep.subr.bf16.mxu1 %v4573_v37  ;;  %v398_v37 = vld [vmem:[#allocation2 + $0x28] sm:$0xff] }
 0x179   : > { %2999 = vmatpush1.bf16.msra.mxu0 %v4568_v38  ;;  %3257 = vmatpush1.bf16.msra.mxu1 %v4571_v39  ;;  %v400_v38 = vld [vmem:[#allocation2 + $0x38] sm:$0xff] }
 0x17a   : > { %3000 = vmatprep.subr.bf16.mxu0 %v4576_v40  ;;  %3258 = vmatprep.subr.bf16.mxu1 %v4579_v41 }
 0x17d   : > { %3001 = vmatpush1.bf16.msra.mxu0 %v4574_v42  ;;  %3259 = vmatpush1.bf16.msra.mxu1 %v4577_v43 }
 0x17e   : > { %3002 = vmatprep.subr.bf16.mxu0 %v4582_v44  ;;  %3260 = vmatprep.subr.bf16.mxu1 %v4585_v45 }
 0x181   : > { %3003 = vmatpush1.bf16.msra.mxu0 %v4580_v46  ;;  %3261 = vmatpush1.bf16.msra.mxu1 %v4583_v47 }
 0x182   : > { %3004 = vmatprep.subr.bf16.mxu0 %v4588_v48  ;;  %3262 = vmatprep.subr.bf16.mxu1 %v4591_v49  ;;  %v3323_v49 = vlaneseq (!%p3957_p11) }
 0x185   : > { %3005 = vmatpush1.bf16.msra.mxu0 %v4586_v50  ;;  %3263 = vmatpush1.bf16.msra.mxu1 %v4589_v51  ;;  %v3324_v50 = vshrl.u32 (!%p3957_p11), %v3323_v49, 7  ;;  %v3351_v51 = vld [vmem:[%s5212_s3] sm:$0xff] (!%p3957_p11) }
 0x186   : > { %3006 = vmatprep.subr.bf16.mxu0 %v4594_v52  ;;  %3264 = vmatprep.subr.bf16.mxu1 %v4597_v53  ;;  %v3352_v52 = vld [vmem:[%s5212_s3 + $0x8] sm:$0xff] (!%p3957_p11) }
 0x189   : > { %3007 = vmatpush1.bf16.msra.mxu0 %v4592_v54  ;;  %3265 = vmatpush1.bf16.msra.mxu1 %v4595_v55  ;;  %v3321_v55 = vld [vmem:[%s5211_s2] sm:$0xf] (!%p3957_p11) }
 0x18a   : > { %3008 = vmatprep.subr.bf16.mxu0 %v4600_v56  ;;  %3266 = vmatprep.subr.bf16.mxu1 %v4603_v57  ;;  %v3325_v56 = vsub.s32 (!%p3957_p11), 0, %v3324_v50  ;;  %v3329_v57 = vsub.s32 (!%p3957_p11), 1, %v3324_v50 }
 0x18d   : > { %3009 = vmatpush1.bf16.msra.mxu0 %v4598_v58  ;;  %3267 = vmatpush1.bf16.msra.mxu1 %v4601_v59  ;;  %v3333_v58 = vsub.s32 (!%p3957_p11), 2, %v3324_v50  ;;  %v3337_v59 = vsub.s32 (!%p3957_p11), 3, %v3324_v50 }
 0x18e   : > { %3010 = vmatprep.subr.bf16.mxu0 %v4606_v60  ;;  %3268 = vmatprep.subr.bf16.mxu1 %v4609_v61  ;;  %v3353_v60 = vld [vmem:[%s5212_s3 + $0x10] sm:$0xff] (!%p3957_p11)  ;;  %v3354_v61 = vld [vmem:[%s5212_s3 + $0x18] sm:$0xff] (!%p3957_p11) }
 0x191   : > { %3011 = vmatpush1.bf16.msra.mxu0 %v4604_v62  ;;  %3269 = vmatpush1.bf16.msra.mxu1 %v4607_v63  ;;  %v3355_v62 = vunpack.c.l.bf16 (!%p3957_p11), %v3351_v51  ;;  %v3356_v63 = vunpack.c.h.bf16 (!%p3957_p11), %v3351_v51 }
 0x192   : > { %3012 = vmatprep.subr.bf16.mxu0 %v4612_v0  ;;  %3270 = vmatprep.subr.bf16.mxu1 %v4615_v1 }
 0x195   : > { %3013 = vmatpush1.bf16.msra.mxu0 %v4610_v2  ;;  %3271 = vmatpush1.bf16.msra.mxu1 %v4613_v3  ;;  %v3357_v2 = vunpack.c.l.bf16 (!%p3957_p11), %v3352_v52  ;;  %v3358_v3 = vunpack.c.h.bf16 (!%p3957_p11), %v3352_v52 }
 0x196   : > { %3014 = vmatprep.subr.bf16.mxu0 %v4618_v4  ;;  %3272 = vmatprep.subr.bf16.mxu1 %v4621_v5  ;;  %v3326_v5 = vrot.slane (!%p3957_p11), %v3321_v55, %v3325_v56 }
 0x199   : > { %3015 = vmatpush1.bf16.msra.mxu0 %v4616_v6  ;;  %3273 = vmatpush1.bf16.msra.mxu1 %v4619_v7  ;;  %v3330_v6 = vrot.slane (!%p3957_p11), %v3321_v55, %v3329_v57  ;;  %v3334_v7 = vrot.slane (!%p3957_p11), %v3321_v55, %v3333_v58 }
 0x19a   : > { %3016 = vmatprep.subr.bf16.mxu0 %v4624_v8  ;;  %3274 = vmatprep.subr.bf16.mxu1 %v4627_v9  ;;  %v3338_v8 = vrot.slane (!%p3957_p11), %v3321_v55, %v3337_v59 }
 0x19d   : > { %3017 = vmatpush1.bf16.msra.mxu0 %v4622_v10  ;;  %3275 = vmatpush1.bf16.msra.mxu1 %v4625_v11 }
 0x19e   : > { %3018 = vmatprep.subr.bf16.mxu0 %v4630_v12  ;;  %3276 = vmatprep.subr.bf16.mxu1 %v4633_v13  ;;  %v3359_v12 = vunpack.c.l.bf16 (!%p3957_p11), %v3353_v60  ;;  %v3360_v13 = vunpack.c.h.bf16 (!%p3957_p11), %v3353_v60 }
 0x1a1   : > { %3019 = vmatpush1.bf16.msra.mxu0 %v4628_v14  ;;  %3277 = vmatpush1.bf16.msra.mxu1 %v4631_v15  ;;  %v3361_v14 = vunpack.c.l.bf16 (!%p3957_p11), %v3354_v61  ;;  %v3362_v15 = vunpack.c.h.bf16 (!%p3957_p11), %v3354_v61 }
 0x1a2   : > { %3020 = vmatprep.subr.bf16.mxu0 %v4636_v16  ;;  %3278 = vmatprep.subr.bf16.mxu1 %v4639_v17 }
 0x1a5   : > { %3021 = vmatpush1.bf16.msra.mxu0 %v4634_v18  ;;  %3279 = vmatpush1.bf16.msra.mxu1 %v4637_v19 }
 0x1a6   : > { %3022 = vmatprep.subr.bf16.mxu0 %v4642_v20  ;;  %3280 = vmatprep.subr.bf16.mxu1 %v4645_v21 }
 0x1a9   : > { %3023 = vmatpush1.bf16.msra.mxu0 %v4640_v22  ;;  %3281 = vmatpush1.bf16.msra.mxu1 %v4643_v23 }
 0x1ac   : > { %3025 = vmatmul.mubr.bf16.vlgmr.msra.gmra.mrb[0].mxu0 %v4646_v24  ;;  %3283 = vmatmul.mubr.bf16.vlgmr.msra.gmra.mrb[0].mxu1 %v4646_v24 }
 0x27f   : > { %v3026_v29 = vpop.f32.mrb[0].mxu0  ;;  %v3284_v30 = vpop.f32.mrb[0].mxu1  ;;  %3312 = sbr.rel (%p3957_p11) target bundleno = 662 (0x296), region = 67 }
 0x280   : > { %v3293_v33 = vadd.f32 %v3026_v29, %v393_v25  ;;  %v3295_v34 = vadd.f32 %v3284_v30, %v395_v26  ;;  %v3028_v35 = vpop.f32.mrb[1].mxu0  ;;  %v3286_v36 = vpop.f32.mrb[1].mxu1 }
 0x281   : > { %v3294_v39 = vadd.f32 %v3028_v35, %v394_v27  ;;  %v3296_v40 = vadd.f32 %v3286_v36, %v396_v28  ;;  %v3030_v41 = vpop.f32.mrb[2].mxu0  ;;  %v3288_v42 = vpop.f32.mrb[2].mxu1 }
 0x282   : > { %3301 = vst [vmem:[#allocation2] sm:$0xff] %v3293_v33  ;;  %3303 = vst [vmem:[#allocation2 + $0x10] sm:$0xff] %v3295_v34  ;;  %v3297_v43 = vadd.f32 %v3030_v41, %v397_v31  ;;  %v3299_v44 = vadd.f32 %v3288_v42, %v399_v32  ;;  %v3032_v45 = vpop.f32.mrb[3].mxu0  ;;  %v3290_v46 = vpop.f32.mrb[3].mxu1 }
 0x283   : > { %3302 = vst [vmem:[#allocation2 + $0x8] sm:$0xff] %v3294_v39  ;;  %3304 = vst [vmem:[#allocation2 + $0x18] sm:$0xff] %v3296_v40  ;;  %v3298_v47 = vadd.f32 %v3032_v45, %v398_v37  ;;  %v3300_v48 = vadd.f32 %v3290_v46, %v400_v38 }
 0x284   : > { %3305 = vst [vmem:[#allocation2 + $0x20] sm:$0xff] %v3297_v43  ;;  %3307 = vst [vmem:[#allocation2 + $0x30] sm:$0xff] %v3299_v44 }
 0x285   : > { %3306 = vst [vmem:[#allocation2 + $0x28] sm:$0xff] %v3298_v47  ;;  %3308 = vst [vmem:[#allocation2 + $0x38] sm:$0xff] %v3300_v48 }
 0x289   : > { %v3313_v53 = vld [vmem:[#allocation2] sm:$0xff]  ;;  %v3315_v0 = vld [vmem:[#allocation2 + $0x10] sm:$0xff] }
 0x28a   : > { %v3314_v54 = vld [vmem:[#allocation2 + $0x8] sm:$0xff]  ;;  %v3316_v1 = vld [vmem:[#allocation2 + $0x18] sm:$0xff]  ;;  %v3343_v16 = vadd.f32 %v3326_v5, %v3313_v53  ;;  %v3345_v18 = vadd.f32 %v3334_v7, %v3315_v0 }
 0x28b   : > { %v3317_v4 = vld [vmem:[#allocation2 + $0x20] sm:$0xff]  ;;  %v3319_v10 = vld [vmem:[#allocation2 + $0x30] sm:$0xff]  ;;  %v3344_v17 = vadd.f32 %v3330_v6, %v3314_v54  ;;  %v3346_v19 = vadd.f32 %v3338_v8, %v3316_v1 }
 0x28c   : > { %v3318_v9 = vld [vmem:[#allocation2 + $0x28] sm:$0xff]  ;;  %v3320_v11 = vld [vmem:[#allocation2 + $0x38] sm:$0xff]  ;;  %v3347_v20 = vadd.f32 %v3326_v5, %v3317_v4  ;;  %v3349_v22 = vadd.f32 %v3334_v7, %v3319_v10  ;;  %v3363_v24 = vadd.f32 %v3355_v62, %v3343_v16  ;;  %v3365_v26 = vadd.f32 %v3357_v2, %v3345_v18 }
 0x28d   : > { %v3348_v21 = vadd.f32 %v3330_v6, %v3318_v9  ;;  %v3350_v23 = vadd.f32 %v3338_v8, %v3320_v11  ;;  %v3364_v25 = vadd.f32 %v3356_v63, %v3344_v17  ;;  %v3366_v27 = vadd.f32 %v3358_v3, %v3346_v19 }
 0x28e   : > { %v3367_v28 = vadd.f32 %v3359_v12, %v3347_v20  ;;  %v3369_v30 = vadd.f32 %v3361_v14, %v3349_v22  ;;  %v3371_v32 = vmax.f32 %v3363_v24, 0.0  ;;  %v3373_v34 = vmax.f32 %v3365_v26, 0.0 }
 0x28f   : > { %v3368_v29 = vadd.f32 %v3360_v13, %v3348_v21  ;;  %v3370_v31 = vadd.f32 %v3362_v15, %v3350_v23  ;;  %v3372_v33 = vmax.f32 %v3364_v25, 0.0  ;;  %v3374_v35 = vmax.f32 %v3366_v27, 0.0 }
 0x290   : > { %v3375_v36 = vmax.f32 %v3367_v28, 0.0  ;;  %v3377_v38 = vmax.f32 %v3369_v30, 0.0 }
 0x291   : > { %v3376_v37 = vmax.f32 %v3368_v29, 0.0  ;;  %v3378_v39 = vmax.f32 %v3370_v31, 0.0  ;;  %v3968_v40 = vpack.c.bf16 %v3372_v33, %v3371_v32  ;;  %v3969_v41 = vpack.c.bf16 %v3374_v35, %v3373_v34 }
 0x293   : > { %v3970_v42 = vpack.c.bf16 %v3376_v37, %v3375_v36  ;;  %v3971_v43 = vpack.c.bf16 %v3378_v39, %v3377_v38  ;;  %3403 = vst [vmem:[%s5213_s4] sm:$0xff] %v3968_v40  ;;  %3404 = vst [vmem:[%s5213_s4 + $0x8] sm:$0xff] %v3969_v41 }
 0x295   : > { %3405 = vst [vmem:[%s5213_s4 + $0x10] sm:$0xff] %v3970_v42  ;;  %3406 = vst [vmem:[%s5213_s4 + $0x18] sm:$0xff] %v3971_v43 }
 0x296 PF: > { %s14_s19 = sadd.s32 1, %s4687_s19   ;;  %s5214_s15 = smov %s4675_s16 }
 0x297   : > { %p11_p12 = scmp.ge.s32.totalorder %s14_s19, 5   ;;  %s5215_s16 = smov %s4750_s23 }
 0x298   : > { %s5216_s17 = smov %s4683_s18  ;;  %s5217_s18 = smov %s5219_s20 }
 0x299   :  { %13 = sbr.rel (!%p11_p12) target bundleno = 3 (0x3), region = 111 }

</bundles_post_ra>
